<compile_context>
chip_gen: v7x
topology: tpu7x:2x2x1
jax: 0.10.0
libtpu: 0.0.40
codegen_flags: <defaults>
</compile_context>

<pallas_src>
import functools

import numpy as np

import jax
import jax.numpy as jnp
from jax.experimental import pallas as pl
from jax.experimental.pallas import tpu as pltpu


# ----------------------------------------------------------------------------
# Configuration (small shapes consistent with the VQEncoder constructor)
# ----------------------------------------------------------------------------
IMG_SIZE = 16
PATCH_SIZE = 8            # VQEncoder patch_size
IN_CHANS = 4
EMBED_DIM = 32            # divisible by 2 and by NUM_HEADS
NUM_HEADS = 4
DEPTH = 6                 # stage1 = 4 blocks, stage2 = DEPTH - 4 blocks
CODEBOOK_DIM = 64
WINDOW_SIZE = 8           # fixed inside the module
LN_EPS = 1e-5

STAGE1_DEPTH = 4
STAGE2_DEPTH = DEPTH - 4

_P = PATCH_SIZE // 2                      # patch-embed conv kernel/stride (4)
_KIN = IN_CHANS * _P * _P                 # patchified token feature size (64)
_RES1 = IMG_SIZE // PATCH_SIZE * 2        # stage-1 feature resolution (4)
_RES2 = IMG_SIZE // PATCH_SIZE            # stage-2 feature resolution (2)
_L1 = _RES1 * _RES1                       # 16 tokens in stage 1
_L2 = _RES2 * _RES2                       # 4 tokens in stage 2
_D1 = EMBED_DIM // 2                      # stage-1 dim (16)
_D2 = EMBED_DIM                           # stage-2 dim (32)

_MXU_DT = jnp.bfloat16                    # MXU operand dtype (f32 accumulation)
_MAX_BT = 8                               # max samples folded into one grid step

# For this configuration min(resolution) <= WINDOW_SIZE in both stages, so the
# module forces window_size = resolution and shift = 0: each stage is exactly
# one window per image and the shifted-window roll / attn-mask path is dead.
assert _RES1 <= WINDOW_SIZE and _RES2 <= WINDOW_SIZE
# TODO(synk): the general shifted-window path (torch.roll + attn_mask) is not
# implemented inside the fused kernel; it is unreachable for this config.

# ---- packed-weight layout constants -----------------------------------------
# `misc` (f32): one slab holding every small vector / table, 64 lanes wide.
_MISC_COLS = max(4 * _D1, _D2, CODEBOOK_DIM, _D1)
_MISC_PATCH_B = 0
_MISC_PATCH_LN_G = 1
_MISC_PATCH_LN_B = 2
_MISC_POS = 3                             # rows 3 .. 3 + L1 : pos embed
_MISC_PM_G = _MISC_POS + _L1              # PatchMerging LayerNorm(4*D1) gamma
_MISC_PM_B = _MISC_PM_G + 1               # PatchMerging LayerNorm(4*D1) beta
_MISC_NORM_G = _MISC_PM_G + 2             # final LayerNorm gamma
_MISC_NORM_B = _MISC_PM_G + 3             # final LayerNorm beta
_MISC_PQ_B = _MISC_PM_G + 4               # pre_quant bias
_MISC_ROWS = _MISC_PM_G + 5

# `mats` (bf16): one slab holding the "misc" MXU operands.
_MM_COLS = max(_D1, CODEBOOK_DIM, 2 * _D1)
_MM_PATCH = 0                             # rows [0, KIN): patch-embed weight (KIN, D1)
_MM_PQ = _MM_PATCH + _KIN                 # rows [KIN, KIN+D2): pre_quant weight (D2, CD)
_MM_RED = _MM_PQ + _D2                    # rows [.., ..+4*D1): PatchMerging reduction
_MM_ROWS = _MM_RED + 4 * _D1

_PARAM_ORDER = ('misc', 'mats', 'pm_sel',
                's1_A', 's1_vecs', 's1_fc2', 's1_proj', 's1_rpb',
                's2_A', 's2_vecs', 's2_fc2', 's2_proj', 's2_rpb')

# Row layout of each per-block `vecs[i]` slab: (8, 4*dim), f32.
_V_LN1_G, _V_LN1_B, _V_LN2_G, _V_LN2_B = 0, 1, 2, 3
_V_QKV_B, _V_PROJ_B, _V_FC1_B, _V_FC2_B = 4, 5, 6, 7


# ----------------------------------------------------------------------------
# Shared forward math (used by the Pallas kernel AND the pure-JAX reference).
# Stacked weight containers are "indexable": Pallas Refs inside the kernel
# (ref[i] => leading-axis sub-view load) or plain arrays in the reference.
# ----------------------------------------------------------------------------
def _ln(x, g, b):
    mu = jnp.mean(x, axis=-1, keepdims=True)
    xc = x - mu
    var = jnp.mean(xc * xc, axis=-1, keepdims=True)
    return xc * jax.lax.rsqrt(var + LN_EPS) * g + b


def _gelu(x):
    # exact (erf) GELU, matching torch.nn.GELU default
    return 0.5 * x * (1.0 + jax.lax.erf(x * 0.7071067811865476))


def _softmax_rows(s, in_kernel):
    s = s - jnp.max(s, axis=-1, keepdims=True)
    e = jnp.exp(s)
    d = jnp.sum(e, axis=-1, keepdims=True)
    if in_kernel:
        return e * pl.reciprocal(d, approx=True)      # EUP slot (free here)
    return e / d


def _swin_block(x, A_i, V_i, fc2_i, proj_tab, rpb_tab, head_base, *,
                dim, num_heads, n_tok, bt, in_kernel):
    """One SwinTransformerBlock (shift=0, single window == all tokens/sample).

    x:        (bt*n_tok, dim) f32
    A_i:      (dim, 7*dim) bf16  = [qkv head-major (3*dim) | fc1_w (4*dim)]
    V_i:      (8, 4*dim)  f32    = packed vectors (see _V_* rows)
    fc2_i:    (4*dim, dim) bf16
    proj_tab: indexable (depth*heads, hd, dim) bf16   (output proj, per head)
    rpb_tab:  indexable (depth*heads, n_tok, n_tok) f32 (dense rel-pos bias)
    """
    hd = dim // num_heads
    t3 = 3 * hd
    c3 = 3 * dim
    hidden = 4 * dim
    scale = float(hd) ** -0.5

    ln1_g = V_i[_V_LN1_G:_V_LN1_G + 1, 0:dim]
    ln1_b = V_i[_V_LN1_B:_V_LN1_B + 1, 0:dim]
    ln2_g = V_i[_V_LN2_G:_V_LN2_G + 1, 0:dim]
    ln2_b = V_i[_V_LN2_B:_V_LN2_B + 1, 0:dim]
    qkv_b = V_i[_V_QKV_B:_V_QKV_B + 1, 0:c3]
    proj_b = V_i[_V_PROJ_B:_V_PROJ_B + 1, 0:dim]
    fc1_b = V_i[_V_FC1_B:_V_FC1_B + 1, 0:hidden]
    fc2_b = V_i[_V_FC2_B:_V_FC2_B + 1, 0:dim]

    # ---- window multi-head self attention (one window per sample) ----------
    xn = _ln(x, ln1_g, ln1_b)
    xn_m = xn.astype(_MXU_DT)
    attn_out = None
    for h in range(num_heads):
        w_h = A_i[:, h * t3:(h + 1) * t3]                          # (dim, 3hd) bf16
        qkv_h = jnp.dot(xn_m, w_h, preferred_element_type=jnp.float32)
        qkv_h = qkv_h + qkv_b[:, h * t3:(h + 1) * t3]
        q = qkv_h[:, 0:hd] * scale                                 # (bt*N, hd)
        k = qkv_h[:, hd:2 * hd]
        v = qkv_h[:, 2 * hd:3 * hd]
        rpb_h = rpb_tab[head_base + h]                             # (N, N) f32

        o_rows = []
        for b in range(bt):                                        # per-sample scores
            r0 = b * n_tok
            qb = q[r0:r0 + n_tok].astype(_MXU_DT)
            kb = k[r0:r0 + n_tok].astype(_MXU_DT)
            vb = v[r0:r0 + n_tok].astype(_MXU_DT)
            s = jnp.einsum('nd,md->nm', qb, kb,
                           preferred_element_type=jnp.float32) + rpb_h
            p = _softmax_rows(s, in_kernel)
            o_rows.append(jnp.dot(p.astype(_MXU_DT), vb,
                                  preferred_element_type=jnp.float32))
        o_h = o_rows[0] if bt == 1 else jnp.concatenate(o_rows, axis=0)
        ctx = jnp.dot(o_h.astype(_MXU_DT), proj_tab[head_base + h],
                      preferred_element_type=jnp.float32)          # (bt*N, dim)
        attn_out = ctx if attn_out is None else attn_out + ctx
    x = x + attn_out + proj_b

    # ---- MLP ----------------------------------------------------------------
    xn2 = _ln(x, ln2_g, ln2_b)
    fc1_w = A_i[:, c3:c3 + hidden]                                  # (dim, 4*dim) bf16
    h1 = _gelu(jnp.dot(xn2.astype(_MXU_DT), fc1_w,
                       preferred_element_type=jnp.float32) + fc1_b)
    x = x + jnp.dot(h1.astype(_MXU_DT), fc2_i,
                    preferred_element_type=jnp.float32) + fc2_b
    return x


def _patch_merging(x, pm_sel, misc, mats, *, bt):
    """PatchMerging: 2x2 gather as 0/1 selection matmuls (per-sample, exact),
    LayerNorm(4*C) decomposed per C-wide chunk, bias-free Linear(4C -> 2C)
    decomposed per chunk so no lane concatenation is materialized.

    x: (bt*L1, D1) f32  ->  (bt*L2, 2*D1) f32
    """
    C = _D1
    chunks = []
    for j in range(4):
        sel_j = pm_sel[j]                                           # (L2, L1) f32
        rows = []
        for b in range(bt):
            xb = x[b * _L1:(b + 1) * _L1]                           # (L1, C)
            rows.append(jnp.dot(sel_j, xb, preferred_element_type=jnp.float32))
        chunks.append(rows[0] if bt == 1 else jnp.concatenate(rows, axis=0))

    norm_g = misc[_MISC_PM_G:_MISC_PM_G + 1, 0:4 * C]
    norm_b = misc[_MISC_PM_B:_MISC_PM_B + 1, 0:4 * C]
    nfeat = 4.0 * C
    mu = sum(jnp.sum(c, axis=-1, keepdims=True) for c in chunks) / nfeat
    var = sum(jnp.sum((c - mu) ** 2, axis=-1, keepdims=True) for c in chunks) / nfeat
    inv = jax.lax.rsqrt(var + LN_EPS)

    out = None
    for j in range(4):
        nj = (chunks[j] - mu) * inv * norm_g[:, j * C:(j + 1) * C] \
             + norm_b[:, j * C:(j + 1) * C]
        red_j = mats[_MM_RED + j * C:_MM_RED + (j + 1) * C, 0:2 * C]   # (C, 2C) bf16
        cj = jnp.dot(nj.astype(_MXU_DT), red_j, preferred_element_type=jnp.float32)
        out = cj if out is None else out + cj
    return out


def _forward(x2d, misc, mats, pm_sel,
             s1_A, s1_vecs, s1_fc2, s1_proj, s1_rpb,
             s2_A, s2_vecs, s2_fc2, s2_proj, s2_rpb,
             *, bt, in_kernel):
    """Forward math for `bt` samples folded into the row dimension.

    x2d: (bt*L1, KIN) pre-patchified tokens; returns (bt*L2, CODEBOOK_DIM)."""
    # ---- patch embed (conv-as-matmul) + LayerNorm + pos embed ---------------
    patch_w = mats[_MM_PATCH:_MM_PATCH + _KIN, 0:_D1]               # (KIN, D1) bf16
    x = jnp.dot(x2d.astype(_MXU_DT), patch_w, preferred_element_type=jnp.float32)
    x = x + misc[_MISC_PATCH_B:_MISC_PATCH_B + 1, 0:_D1]
    x = _ln(x, misc[_MISC_PATCH_LN_G:_MISC_PATCH_LN_G + 1, 0:_D1],
            misc[_MISC_PATCH_LN_B:_MISC_PATCH_LN_B + 1, 0:_D1])
    pos = misc[_MISC_POS:_MISC_POS + _L1, 0:_D1]                    # (L1, D1)
    x = x + (pos if bt == 1 else jnp.concatenate([pos] * bt, axis=0))

    # ---- stage 1: 4 Swin blocks at 4x4 resolution (single window, shift 0) --
    for i in range(STAGE1_DEPTH):
        x = _swin_block(x, s1_A[i], s1_vecs[i], s1_fc2[i], s1_proj, s1_rpb,
                        i * NUM_HEADS, dim=_D1, num_heads=NUM_HEADS, n_tok=_L1,
                        bt=bt, in_kernel=in_kernel)

    # ---- PatchMerging: 4x4 -> 2x2, dim 16 -> 32 ------------------------------
    x = _patch_merging(x, pm_sel, misc, mats, bt=bt)

    # ---- stage 2: 2 Swin blocks at 2x2 resolution ----------------------------
    for i in range(STAGE2_DEPTH):
        x = _swin_block(x, s2_A[i], s2_vecs[i], s2_fc2[i], s2_proj, s2_rpb,
                        i * NUM_HEADS, dim=_D2, num_heads=NUM_HEADS, n_tok=_L2,
                        bt=bt, in_kernel=in_kernel)

    # ---- final LayerNorm + GELU, then pre_quant linear -----------------------
    x = _gelu(_ln(x, misc[_MISC_NORM_G:_MISC_NORM_G + 1, 0:_D2],
                  misc[_MISC_NORM_B:_MISC_NORM_B + 1, 0:_D2]))
    pq_w = mats[_MM_PQ:_MM_PQ + _D2, 0:CODEBOOK_DIM]                # (D2, CD) bf16
    x = jnp.dot(x.astype(_MXU_DT), pq_w, preferred_element_type=jnp.float32) \
        + misc[_MISC_PQ_B:_MISC_PQ_B + 1, 0:CODEBOOK_DIM]
    return x                                                        # (bt*L2, CD)


# ----------------------------------------------------------------------------
# Fused Pallas kernel + wrapper
# ----------------------------------------------------------------------------
def _fused_encoder_kernel(x_ref, misc_ref, mats_ref, pm_sel_ref,
                          s1_A, s1_vecs, s1_fc2, s1_proj, s1_rpb,
                          s2_A, s2_vecs, s2_fc2, s2_proj, s2_rpb,
                          out_ref, *, bt, out_2d):
    y = _forward(x_ref[...], misc_ref[...], mats_ref, pm_sel_ref,
                 s1_A, s1_vecs, s1_fc2, s1_proj, s1_rpb,
                 s2_A, s2_vecs, s2_fc2, s2_proj, s2_rpb,
                 bt=bt, in_kernel=True)                              # (bt*L2, CD)
    if out_2d:
        out_ref[...] = y
    else:
        for b in range(bt):
            out_ref[b] = y[b * _L2:(b + 1) * _L2]


def _zero_index(nd, g):
    return (0,) * nd


def _choose_bt(batch):
    """Largest BT <= _MAX_BT dividing the batch, preferring an even grid (>=2)
    so v7x's two TensorCores both get work (no effect on v5e/v6e)."""
    best_even, best_any = None, 1
    for bt in range(1, min(batch, _MAX_BT) + 1):
        if batch % bt:
            continue
        best_any = bt
        if (batch // bt) % 2 == 0:
            best_even = bt
    return best_even if best_even is not None else best_any


def _patchify(x):
    """NCHW -> (B, tokens, Cin*p*p), feature order (c, kh, kw), matching
    timm PatchEmbed's Conv2d(k=p, s=p) + flatten(2).transpose(1, 2)."""
    B, Cin, H, W = x.shape
    gh, gw = H // _P, W // _P
    xp = x.reshape(B, Cin, gh, _P, gw, _P)
    xp = xp.transpose(0, 2, 4, 1, 3, 5)
    return xp.reshape(B, gh * gw, Cin * _P * _P)


def _cost_estimate(batch, x2d, weights):
    """Rough advisory cost so XLA can overlap surrounding ops."""
    flops_per_sample = 2 * (
        _L1 * _KIN * _D1
        + STAGE1_DEPTH * (_L1 * _D1 * 7 * _D1 + 2 * _L1 * _L1 * _D1
                          + _L1 * _D1 * _D1 + _L1 * 4 * _D1 * _D1)
        + 4 * _L2 * _L1 * _D1 + 4 * _L2 * _D1 * 2 * _D1
        + STAGE2_DEPTH * (_L2 * _D2 * 7 * _D2 + 2 * _L2 * _L2 * _D2
                          + _L2 * _D2 * _D2 + _L2 * 4 * _D2 * _D2)
        + _L2 * _D2 * CODEBOOK_DIM)
    trans_per_sample = (
        STAGE1_DEPTH * (NUM_HEADS * _L1 * _L1 + _L1 * 4 * _D1)
        + STAGE2_DEPTH * (NUM_HEADS * _L2 * _L2 + _L2 * 4 * _D2) + _L2 * _D2)
    bytes_accessed = (int(x2d.size) * x2d.dtype.itemsize
                      + sum(int(w.size) * w.dtype.itemsize for w in weights)
                      + batch * _L2 * CODEBOOK_DIM * 4)
    return pl.CostEstimate(flops=int(batch * flops_per_sample),
                           transcendentals=int(batch * trans_per_sample),
                           bytes_accessed=int(bytes_accessed))


@jax.jit
def vq_encoder_forward(params, x):
    """x: (B, IN_CHANS, IMG_SIZE, IMG_SIZE) NCHW, like the PyTorch module."""
    xp = _patchify(x)                                    # (B, L1, KIN)
    B = xp.shape[0]
    bt = _choose_bt(B)
    grid = (B // bt,)
    out_2d = (bt * _L2) % 8 == 0                         # lane/sublane-legal 2-D store

    x2d = xp.reshape(B * _L1, _KIN)
    weights = [params[k] for k in _PARAM_ORDER]

    in_specs = [pl.BlockSpec((bt * _L1, _KIN), lambda g: (g, 0))]
    in_specs += [pl.BlockSpec(w.shape, functools.partial(_zero_index, w.ndim))
                 for w in weights]

    if out_2d:
        out_shape = jax.ShapeDtypeStruct((B * _L2, CODEBOOK_DIM), jnp.float32)
        out_specs = pl.BlockSpec((bt * _L2, CODEBOOK_DIM), lambda g: (g, 0))
    else:
        out_shape = jax.ShapeDtypeStruct((B, _L2, CODEBOOK_DIM), jnp.float32)
        out_specs = pl.BlockSpec((bt, _L2, CODEBOOK_DIM), lambda g: (g, 0, 0))

    out = pl.pallas_call(
        functools.partial(_fused_encoder_kernel, bt=bt, out_2d=out_2d),
        grid=grid,
        in_specs=in_specs,
        out_specs=out_specs,
        out_shape=out_shape,
        compiler_params=pltpu.CompilerParams(
            dimension_semantics=("parallel",)),          # v7x: split grid over 2 TCs
        cost_estimate=_cost_estimate(B, x2d, weights),
    )(x2d, *weights)
    return out.reshape(B, _L2, CODEBOOK_DIM)


@jax.jit
def reference_forward(params, x):
    """Pure-JAX (XLA) reference with identical math, for validation."""
    xp = _patchify(x)
    B = xp.shape[0]
    x2d = xp.reshape(B * _L1, _KIN)
    out = _forward(x2d, params['misc'], params['mats'], params['pm_sel'],
                   params['s1_A'], params['s1_vecs'], params['s1_fc2'],
                   params['s1_proj'], params['s1_rpb'],
                   params['s2_A'], params['s2_vecs'], params['s2_fc2'],
                   params['s2_proj'], params['s2_rpb'],
                   bt=B, in_kernel=False)
    return out.reshape(B, _L2, CODEBOOK_DIM)


# ----------------------------------------------------------------------------
# Deterministic synthetic parameters, packed/precomputed for the fused kernel
# ----------------------------------------------------------------------------
def get_1d_sincos_pos_embed_from_grid(embed_dim, pos):
    omega = np.arange(embed_dim // 2, dtype=np.float32)
    omega /= embed_dim / 2.0
    omega = 1.0 / 10000 ** omega
    pos = pos.reshape(-1)
    out = np.einsum('m,d->md', pos, omega)
    return np.concatenate([np.sin(out), np.cos(out)], axis=1)


def get_2d_sincos_pos_embed(embed_dim, grid_size):
    grid_h = np.arange(grid_size[0], dtype=np.float32)
    grid_w = np.arange(grid_size[1], dtype=np.float32)
    grid = np.meshgrid(grid_w, grid_h)
    grid = np.stack(grid, axis=0).reshape([2, 1, grid_size[0], grid_size[1]])
    emb_h = get_1d_sincos_pos_embed_from_grid(embed_dim // 2, grid[0])
    emb_w = get_1d_sincos_pos_embed_from_grid(embed_dim // 2, grid[1])
    return np.concatenate([emb_h, emb_w], axis=1)


def relative_position_index(ws):
    coords = np.stack(np.meshgrid(np.arange(ws), np.arange(ws), indexing='ij'))
    flat = coords.reshape(2, -1)
    rel = flat[:, :, None] - flat[:, None, :]
    rel = rel.transpose(1, 2, 0).copy()
    rel[:, :, 0] += ws - 1
    rel[:, :, 1] += ws - 1
    rel[:, :, 0] *= 2 * ws - 1
    return rel.sum(-1)                                   # (ws*ws, ws*ws)


def _merge_selectors(H, W):
    """0/1 matrices implementing PatchMerging's x[:, i::2, j::2] gather."""
    Ho, Wo = H // 2, W // 2
    sel = np.zeros((4, Ho * Wo, H * W), np.float32)
    offsets = ((0, 0), (1, 0), (0, 1), (1, 1))           # x0, x1, x2, x3
    for j, (dh, dw) in enumerate(offsets):
        for ho in range(Ho):
            for wo in range(Wo):
                sel[j, ho * Wo + wo, (2 * ho + dh) * W + (2 * wo + dw)] = 1.0
    return sel


def _xavier(key, fan_in, fan_out):
    a = float(np.sqrt(6.0 / (fan_in + fan_out)))
    return jax.random.uniform(key, (fan_in, fan_out), jnp.float32, -a, a)


def _pack_stage(key, depth, dim, num_heads, res):
    """Build + pack one BasicLayer stage into a handful of stacked slabs."""
    ws = res                            # single window == stage resolution
    N = ws * ws
    hd = dim // num_heads
    hidden = 4 * dim
    rpi = jnp.asarray(relative_position_index(ws).reshape(-1), jnp.int32)

    A, vecs, fc2, proj, rpb = [], [], [], [], []
    for bk in jax.random.split(key, depth):
        k = jax.random.split(bk, 13)
        qkv_w = _xavier(k[0], dim, 3 * dim)
        qkv_b = 0.02 * jax.random.normal(k[1], (1, 3 * dim), jnp.float32)
        proj_w = _xavier(k[2], dim, dim)
        proj_b = 0.02 * jax.random.normal(k[3], (1, dim), jnp.float32)
        fc1_w = _xavier(k[4], dim, hidden)
        fc1_b = 0.02 * jax.random.normal(k[5], (1, hidden), jnp.float32)
        fc2_w = _xavier(k[6], hidden, dim)
        fc2_b = 0.02 * jax.random.normal(k[7], (1, dim), jnp.float32)
        ln1_g = 1.0 + 0.05 * jax.random.normal(k[8], (1, dim), jnp.float32)
        ln1_b = 0.02 * jax.random.normal(k[9], (1, dim), jnp.float32)
        ln2_g = 1.0 + 0.05 * jax.random.normal(k[10], (1, dim), jnp.float32)
        ln2_b = 0.02 * jax.random.normal(k[11], (1, dim), jnp.float32)
        table = 0.02 * jax.random.normal(
            k[12], ((2 * ws - 1) * (2 * ws - 1), num_heads), jnp.float32)
        rpb_blk = table[rpi].reshape(N, N, num_heads).transpose(2, 0, 1)

        # head-major [q_h | k_h | v_h] re-packing (per-head q starts at lane 0)
        def hm(w):
            return jnp.concatenate(
                [jnp.concatenate([w[:, h * hd:(h + 1) * hd],
                                  w[:, dim + h * hd:dim + (h + 1) * hd],
                                  w[:, 2 * dim + h * hd:2 * dim + (h + 1) * hd]],
                                 axis=1) for h in range(num_heads)], axis=1)
        qkv_w_hm, qkv_b_hm = hm(qkv_w), hm(qkv_b)

        def pad_h(v):
            return jnp.pad(v, ((0, 0), (0, hidden - v.shape[1])))

        A.append(jnp.concatenate([qkv_w_hm, fc1_w], axis=1))          # (dim, 7*dim)
        vecs.append(jnp.concatenate(
            [pad_h(ln1_g), pad_h(ln1_b), pad_h(ln2_g), pad_h(ln2_b),
             pad_h(qkv_b_hm), pad_h(proj_b), fc1_b, pad_h(fc2_b)], axis=0))
        fc2.append(fc2_w)
        proj.append(proj_w.reshape(num_heads, hd, dim))
        rpb.append(rpb_blk)

    return dict(
        A=jnp.stack(A).astype(jnp.bfloat16),                          # (d, dim, 7*dim)
        vecs=jnp.stack(vecs),                                         # (d, 8, 4*dim) f32
        fc2=jnp.stack(fc2).astype(jnp.bfloat16),                      # (d, 4*dim, dim)
        proj=jnp.concatenate(proj, axis=0).astype(jnp.bfloat16),      # (d*heads, hd, dim)
        rpb=jnp.concatenate(rpb, axis=0),                             # (d*heads, N, N) f32
    )


def make_params(seed=0):
    keys = jax.random.split(jax.random.PRNGKey(seed), 13)

    # patch embed
    patch_w = _xavier(keys[0], _KIN, _D1)
    patch_b = 0.02 * jax.random.normal(keys[1], (1, _D1), jnp.float32)
    patch_ln_g = 1.0 + 0.05 * jax.random.normal(keys[2], (1, _D1), jnp.float32)
    patch_ln_b = 0.02 * jax.random.normal(keys[3], (1, _D1), jnp.float32)
    pos = jnp.asarray(get_2d_sincos_pos_embed(_D1, (_RES1, _RES1)), jnp.float32)

    # stages (window_size = min(WINDOW_SIZE, res) = res -> one window, shift 0)
    s1 = _pack_stage(keys[4], STAGE1_DEPTH, _D1, NUM_HEADS, _RES1)
    s2 = _pack_stage(keys[5], STAGE2_DEPTH, _D2, NUM_HEADS, _RES2)

    # PatchMerging: LayerNorm(4*D1) + bias-free Linear(4*D1 -> 2*D1)
    pm_sel = jnp.asarray(_merge_selectors(_RES1, _RES1), jnp.float32)
    pm_norm_g = 1.0 + 0.05 * jax.random.normal(keys[6], (1, 4 * _D1), jnp.float32)
    pm_norm_b = 0.02 * jax.random.normal(keys[7], (1, 4 * _D1), jnp.float32)
    pm_red_w = _xavier(keys[8], 4 * _D1, 2 * _D1)

    # head
    norm_g = 1.0 + 0.05 * jax.random.normal(keys[9], (1, _D2), jnp.float32)
    norm_b = 0.02 * jax.random.normal(keys[10], (1, _D2), jnp.float32)
    pq_w = _xavier(keys[11], _D2, CODEBOOK_DIM)
    pq_b = 0.02 * jax.random.normal(keys[12], (1, CODEBOOK_DIM), jnp.float32)

    # ---- misc f32 slab: every small vector / table in one descriptor --------
    def row(v):
        return jnp.pad(v, ((0, 0), (0, _MISC_COLS - v.shape[1])))
    misc = jnp.concatenate(
        [row(patch_b), row(patch_ln_g), row(patch_ln_b), row(pos),
         row(pm_norm_g), row(pm_norm_b), row(norm_g), row(norm_b), row(pq_b)],
        axis=0)
    assert misc.shape == (_MISC_ROWS, _MISC_COLS)

    # ---- misc bf16 matmul slab ----------------------------------------------
    mm = jnp.zeros((_MM_ROWS, _MM_COLS), jnp.float32)
    mm = mm.at[_MM_PATCH:_MM_PATCH + _KIN, 0:_D1].set(patch_w)
    mm = mm.at[_MM_PQ:_MM_PQ + _D2, 0:CODEBOOK_DIM].set(pq_w)
    mm = mm.at[_MM_RED:_MM_RED + 4 * _D1, 0:2 * _D1].set(pm_red_w)
    mats = mm.astype(jnp.bfloat16)

    params = dict(misc=misc, mats=mats, pm_sel=pm_sel)
    params.update({'s1_' + k: v for k, v in s1.items()})
    params.update({'s2_' + k: v for k, v in s2.items()})
    return params


# ----------------------------------------------------------------------------
if __name__ == "__main__":
    x = jax.random.normal(jax.random.PRNGKey(0),
                          (2, IN_CHANS, IMG_SIZE, IMG_SIZE), jnp.float32)
    params = make_params(seed=0)

    out = jax.block_until_ready(vq_encoder_forward(params, x))

    expected_tokens = (IMG_SIZE // PATCH_SIZE) ** 2
    assert out.shape == (2, expected_tokens, CODEBOOK_DIM), out.shape
    assert bool(jnp.all(jnp.isfinite(out)))

    # Validate the fused kernel against identical pure-JAX math (loose tol to
    # absorb Mosaic-vs-XLA bf16 matmul scheduling and the approx reciprocal).
    ref = jax.block_until_ready(reference_forward(params, x))
    assert bool(jnp.allclose(out, ref, atol=5e-2, rtol=5e-2)), \
        float(jnp.max(jnp.abs(out - ref)))

    print("KERNEL_OK")
</pallas_src>

<mosaic_0001>
module attributes {stable_mosaic.version = 11 : i64} {
  func.func @_fused_encoder_kernel(%arg0: i32, %arg1: memref<16x64xf32, #tpu.memory_space<vmem>>, %arg2: memref<24x64xf32, #tpu.memory_space<vmem>>, %arg3: memref<160x64xbf16, #tpu.memory_space<vmem>>, %arg4: memref<4x4x16xf32, #tpu.memory_space<vmem>>, %arg5: memref<4x16x112xbf16, #tpu.memory_space<vmem>>, %arg6: memref<4x8x64xf32, #tpu.memory_space<vmem>>, %arg7: memref<4x64x16xbf16, #tpu.memory_space<vmem>>, %arg8: memref<16x4x16xbf16, #tpu.memory_space<vmem>>, %arg9: memref<16x16x16xf32, #tpu.memory_space<vmem>>, %arg10: memref<2x32x224xbf16, #tpu.memory_space<vmem>>, %arg11: memref<2x8x128xf32, #tpu.memory_space<vmem>>, %arg12: memref<2x128x32xbf16, #tpu.memory_space<vmem>>, %arg13: memref<8x8x32xbf16, #tpu.memory_space<vmem>>, %arg14: memref<8x4x4xf32, #tpu.memory_space<vmem>>, %arg15: memref<1x4x64xf32, #tpu.memory_space<vmem>>) attributes {dimension_semantics = [#tpu.dimension_semantics<parallel>], iteration_bounds = array<i64: 2>, scalar_prefetch = 0 : i64, scratch_operands = 0 : i64, tpu.core_type = #tpu.core_type<tc>, window_params = [{transform_indices = @transform_0, window_bounds = array<i64: 16, 64>}, {pipeline_mode = #tpu.pipeline_mode<synchronous>, transform_indices = @transform_1, window_bounds = array<i64: 24, 64>}, {pipeline_mode = #tpu.pipeline_mode<synchronous>, transform_indices = @transform_2, window_bounds = array<i64: 160, 64>}, {pipeline_mode = #tpu.pipeline_mode<synchronous>, transform_indices = @transform_3, window_bounds = array<i64: 4, 4, 16>}, {pipeline_mode = #tpu.pipeline_mode<synchronous>, transform_indices = @transform_4, window_bounds = array<i64: 4, 16, 112>}, {pipeline_mode = #tpu.pipeline_mode<synchronous>, transform_indices = @transform_5, window_bounds = array<i64: 4, 8, 64>}, {pipeline_mode = #tpu.pipeline_mode<synchronous>, transform_indices = @transform_6, window_bounds = array<i64: 4, 64, 16>}, {pipeline_mode = #tpu.pipeline_mode<synchronous>, transform_indices = @transform_7, window_bounds = array<i64: 16, 4, 16>}, {pipeline_mode = #tpu.pipeline_mode<synchronous>, transform_indices = @transform_8, window_bounds = array<i64: 16, 16, 16>}, {pipeline_mode = #tpu.pipeline_mode<synchronous>, transform_indices = @transform_9, window_bounds = array<i64: 2, 32, 224>}, {pipeline_mode = #tpu.pipeline_mode<synchronous>, transform_indices = @transform_10, window_bounds = array<i64: 2, 8, 128>}, {pipeline_mode = #tpu.pipeline_mode<synchronous>, transform_indices = @transform_11, window_bounds = array<i64: 2, 128, 32>}, {pipeline_mode = #tpu.pipeline_mode<synchronous>, transform_indices = @transform_12, window_bounds = array<i64: 8, 8, 32>}, {pipeline_mode = #tpu.pipeline_mode<synchronous>, transform_indices = @transform_13, window_bounds = array<i64: 8, 4, 4>}, {transform_indices = @transform_14, window_bounds = array<i64: 1, 4, 64>}]} {
    %c0 = arith.constant 0 : index
    %c0_0 = arith.constant 0 : index
    %0 = vector.load %arg1[%c0, %c0_0] : memref<16x64xf32, #tpu.memory_space<vmem>>, vector<16x64xf32>
    %c0_1 = arith.constant 0 : index
    %c0_2 = arith.constant 0 : index
    %1 = vector.load %arg2[%c0_1, %c0_2] : memref<24x64xf32, #tpu.memory_space<vmem>>, vector<24x64xf32>
    %c0_3 = arith.constant 0 : index
    %c0_4 = arith.constant 0 : index
    %2 = vector.load %arg3[%c0_3, %c0_4] : memref<160x64xbf16, #tpu.memory_space<vmem>>, vector<64x16xbf16>
    %3 = arith.truncf %0 : vector<16x64xf32> to vector<16x64xbf16>
    %cst = arith.constant dense<0.000000e+00> : vector<16x16xf32>
    %4 = tpu.matmul %3, %2, %cst {dimension_numbers = #tpu.dot_dimension_numbers<[1], [0], [0], [1], [0, 0, 1, 1], [], []>} : vector<16x64xbf16>, vector<64x16xbf16>, vector<16x16xf32> -> vector<16x16xf32>
    %5 = vector.extract_strided_slice %1 {offsets = [0, 0], sizes = [1, 16], strides = [1, 1]} : vector<24x64xf32> to vector<1x16xf32>
    %6 = vector.broadcast %5 : vector<1x16xf32> to vector<16x16xf32>
    %7 = arith.addf %4, %6 : vector<16x16xf32>
    %8 = vector.extract_strided_slice %1 {offsets = [1, 0], sizes = [1, 16], strides = [1, 1]} : vector<24x64xf32> to vector<1x16xf32>
    %9 = vector.extract_strided_slice %1 {offsets = [2, 0], sizes = [1, 16], strides = [1, 1]} : vector<24x64xf32> to vector<1x16xf32>
    %cst_5 = arith.constant dense<0.000000e+00> : vector<16xf32>
    %10 = vector.multi_reduction <add>, %7, %cst_5 [1] : vector<16x16xf32> to vector<16xf32>
    %11 = vector.shape_cast %10 : vector<16xf32> to vector<16x1xf32>
    %cst_6 = arith.constant 1.600000e+01 : f32
    %12 = vector.broadcast %cst_6 : f32 to vector<16x1xf32>
    %13 = arith.divf %11, %12 : vector<16x1xf32>
    %14 = vector.broadcast %13 : vector<16x1xf32> to vector<16x16xf32>
    %15 = arith.subf %7, %14 : vector<16x16xf32>
    %16 = arith.mulf %15, %15 : vector<16x16xf32>
    %cst_7 = arith.constant dense<0.000000e+00> : vector<16xf32>
    %17 = vector.multi_reduction <add>, %16, %cst_7 [1] : vector<16x16xf32> to vector<16xf32>
    %18 = vector.shape_cast %17 : vector<16xf32> to vector<16x1xf32>
    %cst_8 = arith.constant 1.600000e+01 : f32
    %19 = vector.broadcast %cst_8 : f32 to vector<16x1xf32>
    %20 = arith.divf %18, %19 : vector<16x1xf32>
    %cst_9 = arith.constant 9.99999974E-6 : f32
    %21 = vector.broadcast %cst_9 : f32 to vector<16x1xf32>
    %22 = arith.addf %20, %21 : vector<16x1xf32>
    %23 = math.rsqrt %22 : vector<16x1xf32>
    %24 = vector.broadcast %23 : vector<16x1xf32> to vector<16x16xf32>
    %25 = arith.mulf %15, %24 : vector<16x16xf32>
    %26 = vector.broadcast %8 : vector<1x16xf32> to vector<16x16xf32>
    %27 = arith.mulf %25, %26 : vector<16x16xf32>
    %28 = vector.broadcast %9 : vector<1x16xf32> to vector<16x16xf32>
    %29 = arith.addf %27, %28 : vector<16x16xf32>
    %30 = vector.extract_strided_slice %1 {offsets = [3, 0], sizes = [16, 16], strides = [1, 1]} : vector<24x64xf32> to vector<16x16xf32>
    %31 = arith.addf %29, %30 : vector<16x16xf32>
    %c0_10 = arith.constant 0 : index
    %c0_11 = arith.constant 0 : index
    %c0_12 = arith.constant 0 : index
    %32 = vector.load %arg5[%c0_10, %c0_11, %c0_12] : memref<4x16x112xbf16, #tpu.memory_space<vmem>>, vector<1x16x112xbf16>
    %33 = vector.shape_cast %32 : vector<1x16x112xbf16> to vector<16x112xbf16>
    %c0_13 = arith.constant 0 : index
    %c0_14 = arith.constant 0 : index
    %c0_15 = arith.constant 0 : index
    %34 = vector.load %arg6[%c0_13, %c0_14, %c0_15] : memref<4x8x64xf32, #tpu.memory_space<vmem>>, vector<1x8x64xf32>
    %35 = vector.shape_cast %34 : vector<1x8x64xf32> to vector<8x64xf32>
    %c0_16 = arith.constant 0 : index
    %c0_17 = arith.constant 0 : index
    %c0_18 = arith.constant 0 : index
    %36 = vector.load %arg7[%c0_16, %c0_17, %c0_18] : memref<4x64x16xbf16, #tpu.memory_space<vmem>>, vector<1x64x16xbf16>
    %37 = vector.shape_cast %36 : vector<1x64x16xbf16> to vector<64x16xbf16>
    %38 = vector.extract_strided_slice %35 {offsets = [0, 0], sizes = [1, 16], strides = [1, 1]} : vector<8x64xf32> to vector<1x16xf32>
    %39 = vector.extract_strided_slice %35 {offsets = [1, 0], sizes = [1, 16], strides = [1, 1]} : vector<8x64xf32> to vector<1x16xf32>
    %40 = vector.extract_strided_slice %35 {offsets = [2, 0], sizes = [1, 16], strides = [1, 1]} : vector<8x64xf32> to vector<1x16xf32>
    %41 = vector.extract_strided_slice %35 {offsets = [3, 0], sizes = [1, 16], strides = [1, 1]} : vector<8x64xf32> to vector<1x16xf32>
    %42 = vector.extract_strided_slice %35 {offsets = [4, 0], sizes = [1, 48], strides = [1, 1]} : vector<8x64xf32> to vector<1x48xf32>
    %43 = vector.extract_strided_slice %35 {offsets = [5, 0], sizes = [1, 16], strides = [1, 1]} : vector<8x64xf32> to vector<1x16xf32>
    %44 = vector.extract_strided_slice %35 {offsets = [6, 0], sizes = [1, 64], strides = [1, 1]} : vector<8x64xf32> to vector<1x64xf32>
    %45 = vector.extract_strided_slice %35 {offsets = [7, 0], sizes = [1, 16], strides = [1, 1]} : vector<8x64xf32> to vector<1x16xf32>
    %cst_19 = arith.constant dense<0.000000e+00> : vector<16xf32>
    %46 = vector.multi_reduction <add>, %31, %cst_19 [1] : vector<16x16xf32> to vector<16xf32>
    %47 = vector.shape_cast %46 : vector<16xf32> to vector<16x1xf32>
    %cst_20 = arith.constant 1.600000e+01 : f32
    %48 = vector.broadcast %cst_20 : f32 to vector<16x1xf32>
    %49 = arith.divf %47, %48 : vector<16x1xf32>
    %50 = vector.broadcast %49 : vector<16x1xf32> to vector<16x16xf32>
    %51 = arith.subf %31, %50 : vector<16x16xf32>
    %52 = arith.mulf %51, %51 : vector<16x16xf32>
    %cst_21 = arith.constant dense<0.000000e+00> : vector<16xf32>
    %53 = vector.multi_reduction <add>, %52, %cst_21 [1] : vector<16x16xf32> to vector<16xf32>
    %54 = vector.shape_cast %53 : vector<16xf32> to vector<16x1xf32>
    %cst_22 = arith.constant 1.600000e+01 : f32
    %55 = vector.broadcast %cst_22 : f32 to vector<16x1xf32>
    %56 = arith.divf %54, %55 : vector<16x1xf32>
    %cst_23 = arith.constant 9.99999974E-6 : f32
    %57 = vector.broadcast %cst_23 : f32 to vector<16x1xf32>
    %58 = arith.addf %56, %57 : vector<16x1xf32>
    %59 = math.rsqrt %58 : vector<16x1xf32>
    %60 = vector.broadcast %59 : vector<16x1xf32> to vector<16x16xf32>
    %61 = arith.mulf %51, %60 : vector<16x16xf32>
    %62 = vector.broadcast %38 : vector<1x16xf32> to vector<16x16xf32>
    %63 = arith.mulf %61, %62 : vector<16x16xf32>
    %64 = vector.broadcast %39 : vector<1x16xf32> to vector<16x16xf32>
    %65 = arith.addf %63, %64 : vector<16x16xf32>
    %66 = arith.truncf %65 : vector<16x16xf32> to vector<16x16xbf16>
    %67 = vector.extract_strided_slice %33 {offsets = [0, 0], sizes = [16, 12], strides = [1, 1]} : vector<16x112xbf16> to vector<16x12xbf16>
    %cst_24 = arith.constant dense<0.000000e+00> : vector<16x12xf32>
    %68 = tpu.matmul %66, %67, %cst_24 {dimension_numbers = #tpu.dot_dimension_numbers<[1], [0], [0], [1], [0, 0, 1, 1], [], []>} : vector<16x16xbf16>, vector<16x12xbf16>, vector<16x12xf32> -> vector<16x12xf32>
    %69 = vector.extract_strided_slice %42 {offsets = [0, 0], sizes = [1, 12], strides = [1, 1]} : vector<1x48xf32> to vector<1x12xf32>
    %70 = vector.broadcast %69 : vector<1x12xf32> to vector<16x12xf32>
    %71 = arith.addf %68, %70 : vector<16x12xf32>
    %72 = vector.extract_strided_slice %71 {offsets = [0, 0], sizes = [16, 4], strides = [1, 1]} : vector<16x12xf32> to vector<16x4xf32>
    %cst_25 = arith.constant 5.000000e-01 : f32
    %73 = vector.broadcast %cst_25 : f32 to vector<16x4xf32>
    %74 = arith.mulf %72, %73 : vector<16x4xf32>
    %75 = vector.extract_strided_slice %71 {offsets = [0, 4], sizes = [16, 4], strides = [1, 1]} : vector<16x12xf32> to vector<16x4xf32>
    %76 = vector.extract_strided_slice %71 {offsets = [0, 8], sizes = [16, 4], strides = [1, 1]} : vector<16x12xf32> to vector<16x4xf32>
    %c0_26 = arith.constant 0 : index
    %c0_27 = arith.constant 0 : index
    %c0_28 = arith.constant 0 : index
    %77 = vector.load %arg9[%c0_26, %c0_27, %c0_28] : memref<16x16x16xf32, #tpu.memory_space<vmem>>, vector<1x16x16xf32>
    %78 = vector.shape_cast %77 : vector<1x16x16xf32> to vector<16x16xf32>
    %79 = arith.truncf %74 : vector<16x4xf32> to vector<16x4xbf16>
    %80 = arith.truncf %75 : vector<16x4xf32> to vector<16x4xbf16>
    %81 = arith.truncf %76 : vector<16x4xf32> to vector<16x4xbf16>
    "tpu.trace_start"() <{level = 10 : i32, message = "nd,md->nm"}> : () -> ()
    %cst_29 = arith.constant dense<0.000000e+00> : vector<16x16xf32>
    %82 = tpu.matmul %79, %80, %cst_29 {dimension_numbers = #tpu.dot_dimension_numbers<[1], [1], [0], [0], [0, 0, 1, 0], [], []>} : vector<16x4xbf16>, vector<16x4xbf16>, vector<16x16xf32> -> vector<16x16xf32>
    "tpu.trace_stop"() : () -> ()
    %83 = arith.addf %82, %78 : vector<16x16xf32>
    %cst_30 = arith.constant dense<0xFF800000> : vector<16xf32>
    %84 = vector.multi_reduction <maximumf>, %83, %cst_30 [1] : vector<16x16xf32> to vector<16xf32>
    %85 = vector.shape_cast %84 : vector<16xf32> to vector<16x1xf32>
    %86 = vector.broadcast %85 : vector<16x1xf32> to vector<16x16xf32>
    %87 = arith.subf %83, %86 : vector<16x16xf32>
    %88 = math.exp %87 : vector<16x16xf32>
    %cst_31 = arith.constant dense<0.000000e+00> : vector<16xf32>
    %89 = vector.multi_reduction <add>, %88, %cst_31 [1] : vector<16x16xf32> to vector<16xf32>
    %90 = vector.shape_cast %89 : vector<16xf32> to vector<16x1xf32>
    %91 = tpu.reciprocal %90 {approx = true} : vector<16x1xf32> -> vector<16x1xf32>
    %92 = vector.broadcast %91 : vector<16x1xf32> to vector<16x16xf32>
    %93 = arith.mulf %88, %92 : vector<16x16xf32>
    %94 = arith.truncf %93 : vector<16x16xf32> to vector<16x16xbf16>
    %cst_32 = arith.constant dense<0.000000e+00> : vector<16x4xf32>
    %95 = tpu.matmul %94, %81, %cst_32 {dimension_numbers = #tpu.dot_dimension_numbers<[1], [0], [0], [1], [0, 0, 1, 1], [], []>} : vector<16x16xbf16>, vector<16x4xbf16>, vector<16x4xf32> -> vector<16x4xf32>
    %96 = arith.truncf %95 : vector<16x4xf32> to vector<16x4xbf16>
    %c0_33 = arith.constant 0 : index
    %c0_34 = arith.constant 0 : index
    %c0_35 = arith.constant 0 : index
    %97 = vector.load %arg8[%c0_33, %c0_34, %c0_35] : memref<16x4x16xbf16, #tpu.memory_space<vmem>>, vector<1x4x16xbf16>
    %98 = vector.shape_cast %97 : vector<1x4x16xbf16> to vector<4x16xbf16>
    %cst_36 = arith.constant dense<0.000000e+00> : vector<16x16xf32>
    %99 = tpu.matmul %96, %98, %cst_36 {dimension_numbers = #tpu.dot_dimension_numbers<[1], [0], [0], [1], [0, 0, 1, 1], [], []>} : vector<16x4xbf16>, vector<4x16xbf16>, vector<16x16xf32> -> vector<16x16xf32>
    %100 = vector.extract_strided_slice %33 {offsets = [0, 12], sizes = [16, 12], strides = [1, 1]} : vector<16x112xbf16> to vector<16x12xbf16>
    %cst_37 = arith.constant dense<0.000000e+00> : vector<16x12xf32>
    %101 = tpu.matmul %66, %100, %cst_37 {dimension_numbers = #tpu.dot_dimension_numbers<[1], [0], [0], [1], [0, 0, 1, 1], [], []>} : vector<16x16xbf16>, vector<16x12xbf16>, vector<16x12xf32> -> vector<16x12xf32>
    %102 = vector.extract_strided_slice %42 {offsets = [0, 12], sizes = [1, 12], strides = [1, 1]} : vector<1x48xf32> to vector<1x12xf32>
    %103 = vector.broadcast %102 : vector<1x12xf32> to vector<16x12xf32>
    %104 = arith.addf %101, %103 : vector<16x12xf32>
    %105 = vector.extract_strided_slice %104 {offsets = [0, 0], sizes = [16, 4], strides = [1, 1]} : vector<16x12xf32> to vector<16x4xf32>
    %cst_38 = arith.constant 5.000000e-01 : f32
    %106 = vector.broadcast %cst_38 : f32 to vector<16x4xf32>
    %107 = arith.mulf %105, %106 : vector<16x4xf32>
    %108 = vector.extract_strided_slice %104 {offsets = [0, 4], sizes = [16, 4], strides = [1, 1]} : vector<16x12xf32> to vector<16x4xf32>
    %109 = vector.extract_strided_slice %104 {offsets = [0, 8], sizes = [16, 4], strides = [1, 1]} : vector<16x12xf32> to vector<16x4xf32>
    %c1 = arith.constant 1 : index
    %c0_39 = arith.constant 0 : index
    %c0_40 = arith.constant 0 : index
    %110 = vector.load %arg9[%c1, %c0_39, %c0_40] : memref<16x16x16xf32, #tpu.memory_space<vmem>>, vector<1x16x16xf32>
    %111 = vector.shape_cast %110 : vector<1x16x16xf32> to vector<16x16xf32>
    %112 = arith.truncf %107 : vector<16x4xf32> to vector<16x4xbf16>
    %113 = arith.truncf %108 : vector<16x4xf32> to vector<16x4xbf16>
    %114 = arith.truncf %109 : vector<16x4xf32> to vector<16x4xbf16>
    "tpu.trace_start"() <{level = 10 : i32, message = "nd,md->nm"}> : () -> ()
    %cst_41 = arith.constant dense<0.000000e+00> : vector<16x16xf32>
    %115 = tpu.matmul %112, %113, %cst_41 {dimension_numbers = #tpu.dot_dimension_numbers<[1], [1], [0], [0], [0, 0, 1, 0], [], []>} : vector<16x4xbf16>, vector<16x4xbf16>, vector<16x16xf32> -> vector<16x16xf32>
    "tpu.trace_stop"() : () -> ()
    %116 = arith.addf %115, %111 : vector<16x16xf32>
    %cst_42 = arith.constant dense<0xFF800000> : vector<16xf32>
    %117 = vector.multi_reduction <maximumf>, %116, %cst_42 [1] : vector<16x16xf32> to vector<16xf32>
    %118 = vector.shape_cast %117 : vector<16xf32> to vector<16x1xf32>
    %119 = vector.broadcast %118 : vector<16x1xf32> to vector<16x16xf32>
    %120 = arith.subf %116, %119 : vector<16x16xf32>
    %121 = math.exp %120 : vector<16x16xf32>
    %cst_43 = arith.constant dense<0.000000e+00> : vector<16xf32>
    %122 = vector.multi_reduction <add>, %121, %cst_43 [1] : vector<16x16xf32> to vector<16xf32>
    %123 = vector.shape_cast %122 : vector<16xf32> to vector<16x1xf32>
    %124 = tpu.reciprocal %123 {approx = true} : vector<16x1xf32> -> vector<16x1xf32>
    %125 = vector.broadcast %124 : vector<16x1xf32> to vector<16x16xf32>
    %126 = arith.mulf %121, %125 : vector<16x16xf32>
    %127 = arith.truncf %126 : vector<16x16xf32> to vector<16x16xbf16>
    %cst_44 = arith.constant dense<0.000000e+00> : vector<16x4xf32>
    %128 = tpu.matmul %127, %114, %cst_44 {dimension_numbers = #tpu.dot_dimension_numbers<[1], [0], [0], [1], [0, 0, 1, 1], [], []>} : vector<16x16xbf16>, vector<16x4xbf16>, vector<16x4xf32> -> vector<16x4xf32>
    %129 = arith.truncf %128 : vector<16x4xf32> to vector<16x4xbf16>
    %c1_45 = arith.constant 1 : index
    %c0_46 = arith.constant 0 : index
    %c0_47 = arith.constant 0 : index
    %130 = vector.load %arg8[%c1_45, %c0_46, %c0_47] : memref<16x4x16xbf16, #tpu.memory_space<vmem>>, vector<1x4x16xbf16>
    %131 = vector.shape_cast %130 : vector<1x4x16xbf16> to vector<4x16xbf16>
    %cst_48 = arith.constant dense<0.000000e+00> : vector<16x16xf32>
    %132 = tpu.matmul %129, %131, %cst_48 {dimension_numbers = #tpu.dot_dimension_numbers<[1], [0], [0], [1], [0, 0, 1, 1], [], []>} : vector<16x4xbf16>, vector<4x16xbf16>, vector<16x16xf32> -> vector<16x16xf32>
    %133 = arith.addf %99, %132 : vector<16x16xf32>
    %134 = vector.extract_strided_slice %33 {offsets = [0, 24], sizes = [16, 12], strides = [1, 1]} : vector<16x112xbf16> to vector<16x12xbf16>
    %cst_49 = arith.constant dense<0.000000e+00> : vector<16x12xf32>
    %135 = tpu.matmul %66, %134, %cst_49 {dimension_numbers = #tpu.dot_dimension_numbers<[1], [0], [0], [1], [0, 0, 1, 1], [], []>} : vector<16x16xbf16>, vector<16x12xbf16>, vector<16x12xf32> -> vector<16x12xf32>
    %136 = vector.extract_strided_slice %42 {offsets = [0, 24], sizes = [1, 12], strides = [1, 1]} : vector<1x48xf32> to vector<1x12xf32>
    %137 = vector.broadcast %136 : vector<1x12xf32> to vector<16x12xf32>
    %138 = arith.addf %135, %137 : vector<16x12xf32>
    %139 = vector.extract_strided_slice %138 {offsets = [0, 0], sizes = [16, 4], strides = [1, 1]} : vector<16x12xf32> to vector<16x4xf32>
    %cst_50 = arith.constant 5.000000e-01 : f32
    %140 = vector.broadcast %cst_50 : f32 to vector<16x4xf32>
    %141 = arith.mulf %139, %140 : vector<16x4xf32>
    %142 = vector.extract_strided_slice %138 {offsets = [0, 4], sizes = [16, 4], strides = [1, 1]} : vector<16x12xf32> to vector<16x4xf32>
    %143 = vector.extract_strided_slice %138 {offsets = [0, 8], sizes = [16, 4], strides = [1, 1]} : vector<16x12xf32> to vector<16x4xf32>
    %c2 = arith.constant 2 : index
    %c0_51 = arith.constant 0 : index
    %c0_52 = arith.constant 0 : index
    %144 = vector.load %arg9[%c2, %c0_51, %c0_52] : memref<16x16x16xf32, #tpu.memory_space<vmem>>, vector<1x16x16xf32>
    %145 = vector.shape_cast %144 : vector<1x16x16xf32> to vector<16x16xf32>
    %146 = arith.truncf %141 : vector<16x4xf32> to vector<16x4xbf16>
    %147 = arith.truncf %142 : vector<16x4xf32> to vector<16x4xbf16>
    %148 = arith.truncf %143 : vector<16x4xf32> to vector<16x4xbf16>
    "tpu.trace_start"() <{level = 10 : i32, message = "nd,md->nm"}> : () -> ()
    %cst_53 = arith.constant dense<0.000000e+00> : vector<16x16xf32>
    %149 = tpu.matmul %146, %147, %cst_53 {dimension_numbers = #tpu.dot_dimension_numbers<[1], [1], [0], [0], [0, 0, 1, 0], [], []>} : vector<16x4xbf16>, vector<16x4xbf16>, vector<16x16xf32> -> vector<16x16xf32>
    "tpu.trace_stop"() : () -> ()
    %150 = arith.addf %149, %145 : vector<16x16xf32>
    %cst_54 = arith.constant dense<0xFF800000> : vector<16xf32>
    %151 = vector.multi_reduction <maximumf>, %150, %cst_54 [1] : vector<16x16xf32> to vector<16xf32>
    %152 = vector.shape_cast %151 : vector<16xf32> to vector<16x1xf32>
    %153 = vector.broadcast %152 : vector<16x1xf32> to vector<16x16xf32>
    %154 = arith.subf %150, %153 : vector<16x16xf32>
    %155 = math.exp %154 : vector<16x16xf32>
    %cst_55 = arith.constant dense<0.000000e+00> : vector<16xf32>
    %156 = vector.multi_reduction <add>, %155, %cst_55 [1] : vector<16x16xf32> to vector<16xf32>
    %157 = vector.shape_cast %156 : vector<16xf32> to vector<16x1xf32>
    %158 = tpu.reciprocal %157 {approx = true} : vector<16x1xf32> -> vector<16x1xf32>
    %159 = vector.broadcast %158 : vector<16x1xf32> to vector<16x16xf32>
    %160 = arith.mulf %155, %159 : vector<16x16xf32>
    %161 = arith.truncf %160 : vector<16x16xf32> to vector<16x16xbf16>
    %cst_56 = arith.constant dense<0.000000e+00> : vector<16x4xf32>
    %162 = tpu.matmul %161, %148, %cst_56 {dimension_numbers = #tpu.dot_dimension_numbers<[1], [0], [0], [1], [0, 0, 1, 1], [], []>} : vector<16x16xbf16>, vector<16x4xbf16>, vector<16x4xf32> -> vector<16x4xf32>
    %163 = arith.truncf %162 : vector<16x4xf32> to vector<16x4xbf16>
    %c2_57 = arith.constant 2 : index
    %c0_58 = arith.constant 0 : index
    %c0_59 = arith.constant 0 : index
    %164 = vector.load %arg8[%c2_57, %c0_58, %c0_59] : memref<16x4x16xbf16, #tpu.memory_space<vmem>>, vector<1x4x16xbf16>
    %165 = vector.shape_cast %164 : vector<1x4x16xbf16> to vector<4x16xbf16>
    %cst_60 = arith.constant dense<0.000000e+00> : vector<16x16xf32>
    %166 = tpu.matmul %163, %165, %cst_60 {dimension_numbers = #tpu.dot_dimension_numbers<[1], [0], [0], [1], [0, 0, 1, 1], [], []>} : vector<16x4xbf16>, vector<4x16xbf16>, vector<16x16xf32> -> vector<16x16xf32>
    %167 = arith.addf %133, %166 : vector<16x16xf32>
    %168 = vector.extract_strided_slice %33 {offsets = [0, 36], sizes = [16, 12], strides = [1, 1]} : vector<16x112xbf16> to vector<16x12xbf16>
    %cst_61 = arith.constant dense<0.000000e+00> : vector<16x12xf32>
    %169 = tpu.matmul %66, %168, %cst_61 {dimension_numbers = #tpu.dot_dimension_numbers<[1], [0], [0], [1], [0, 0, 1, 1], [], []>} : vector<16x16xbf16>, vector<16x12xbf16>, vector<16x12xf32> -> vector<16x12xf32>
    %170 = vector.extract_strided_slice %42 {offsets = [0, 36], sizes = [1, 12], strides = [1, 1]} : vector<1x48xf32> to vector<1x12xf32>
    %171 = vector.broadcast %170 : vector<1x12xf32> to vector<16x12xf32>
    %172 = arith.addf %169, %171 : vector<16x12xf32>
    %173 = vector.extract_strided_slice %172 {offsets = [0, 0], sizes = [16, 4], strides = [1, 1]} : vector<16x12xf32> to vector<16x4xf32>
    %cst_62 = arith.constant 5.000000e-01 : f32
    %174 = vector.broadcast %cst_62 : f32 to vector<16x4xf32>
    %175 = arith.mulf %173, %174 : vector<16x4xf32>
    %176 = vector.extract_strided_slice %172 {offsets = [0, 4], sizes = [16, 4], strides = [1, 1]} : vector<16x12xf32> to vector<16x4xf32>
    %177 = vector.extract_strided_slice %172 {offsets = [0, 8], sizes = [16, 4], strides = [1, 1]} : vector<16x12xf32> to vector<16x4xf32>
    %c3 = arith.constant 3 : index
    %c0_63 = arith.constant 0 : index
    %c0_64 = arith.constant 0 : index
    %178 = vector.load %arg9[%c3, %c0_63, %c0_64] : memref<16x16x16xf32, #tpu.memory_space<vmem>>, vector<1x16x16xf32>
    %179 = vector.shape_cast %178 : vector<1x16x16xf32> to vector<16x16xf32>
    %180 = arith.truncf %175 : vector<16x4xf32> to vector<16x4xbf16>
    %181 = arith.truncf %176 : vector<16x4xf32> to vector<16x4xbf16>
    %182 = arith.truncf %177 : vector<16x4xf32> to vector<16x4xbf16>
    "tpu.trace_start"() <{level = 10 : i32, message = "nd,md->nm"}> : () -> ()
    %cst_65 = arith.constant dense<0.000000e+00> : vector<16x16xf32>
    %183 = tpu.matmul %180, %181, %cst_65 {dimension_numbers = #tpu.dot_dimension_numbers<[1], [1], [0], [0], [0, 0, 1, 0], [], []>} : vector<16x4xbf16>, vector<16x4xbf16>, vector<16x16xf32> -> vector<16x16xf32>
    "tpu.trace_stop"() : () -> ()
    %184 = arith.addf %183, %179 : vector<16x16xf32>
    %cst_66 = arith.constant dense<0xFF800000> : vector<16xf32>
    %185 = vector.multi_reduction <maximumf>, %184, %cst_66 [1] : vector<16x16xf32> to vector<16xf32>
    %186 = vector.shape_cast %185 : vector<16xf32> to vector<16x1xf32>
    %187 = vector.broadcast %186 : vector<16x1xf32> to vector<16x16xf32>
    %188 = arith.subf %184, %187 : vector<16x16xf32>
    %189 = math.exp %188 : vector<16x16xf32>
    %cst_67 = arith.constant dense<0.000000e+00> : vector<16xf32>
    %190 = vector.multi_reduction <add>, %189, %cst_67 [1] : vector<16x16xf32> to vector<16xf32>
    %191 = vector.shape_cast %190 : vector<16xf32> to vector<16x1xf32>
    %192 = tpu.reciprocal %191 {approx = true} : vector<16x1xf32> -> vector<16x1xf32>
    %193 = vector.broadcast %192 : vector<16x1xf32> to vector<16x16xf32>
    %194 = arith.mulf %189, %193 : vector<16x16xf32>
    %195 = arith.truncf %194 : vector<16x16xf32> to vector<16x16xbf16>
    %cst_68 = arith.constant dense<0.000000e+00> : vector<16x4xf32>
    %196 = tpu.matmul %195, %182, %cst_68 {dimension_numbers = #tpu.dot_dimension_numbers<[1], [0], [0], [1], [0, 0, 1, 1], [], []>} : vector<16x16xbf16>, vector<16x4xbf16>, vector<16x4xf32> -> vector<16x4xf32>
    %197 = arith.truncf %196 : vector<16x4xf32> to vector<16x4xbf16>
    %c3_69 = arith.constant 3 : index
    %c0_70 = arith.constant 0 : index
    %c0_71 = arith.constant 0 : index
    %198 = vector.load %arg8[%c3_69, %c0_70, %c0_71] : memref<16x4x16xbf16, #tpu.memory_space<vmem>>, vector<1x4x16xbf16>
    %199 = vector.shape_cast %198 : vector<1x4x16xbf16> to vector<4x16xbf16>
    %cst_72 = arith.constant dense<0.000000e+00> : vector<16x16xf32>
    %200 = tpu.matmul %197, %199, %cst_72 {dimension_numbers = #tpu.dot_dimension_numbers<[1], [0], [0], [1], [0, 0, 1, 1], [], []>} : vector<16x4xbf16>, vector<4x16xbf16>, vector<16x16xf32> -> vector<16x16xf32>
    %201 = arith.addf %167, %200 : vector<16x16xf32>
    %202 = arith.addf %31, %201 : vector<16x16xf32>
    %203 = vector.broadcast %43 : vector<1x16xf32> to vector<16x16xf32>
    %204 = arith.addf %202, %203 : vector<16x16xf32>
    %cst_73 = arith.constant dense<0.000000e+00> : vector<16xf32>
    %205 = vector.multi_reduction <add>, %204, %cst_73 [1] : vector<16x16xf32> to vector<16xf32>
    %206 = vector.shape_cast %205 : vector<16xf32> to vector<16x1xf32>
    %cst_74 = arith.constant 1.600000e+01 : f32
    %207 = vector.broadcast %cst_74 : f32 to vector<16x1xf32>
    %208 = arith.divf %206, %207 : vector<16x1xf32>
    %209 = vector.broadcast %208 : vector<16x1xf32> to vector<16x16xf32>
    %210 = arith.subf %204, %209 : vector<16x16xf32>
    %211 = arith.mulf %210, %210 : vector<16x16xf32>
    %cst_75 = arith.constant dense<0.000000e+00> : vector<16xf32>
    %212 = vector.multi_reduction <add>, %211, %cst_75 [1] : vector<16x16xf32> to vector<16xf32>
    %213 = vector.shape_cast %212 : vector<16xf32> to vector<16x1xf32>
    %cst_76 = arith.constant 1.600000e+01 : f32
    %214 = vector.broadcast %cst_76 : f32 to vector<16x1xf32>
    %215 = arith.divf %213, %214 : vector<16x1xf32>
    %cst_77 = arith.constant 9.99999974E-6 : f32
    %216 = vector.broadcast %cst_77 : f32 to vector<16x1xf32>
    %217 = arith.addf %215, %216 : vector<16x1xf32>
    %218 = math.rsqrt %217 : vector<16x1xf32>
    %219 = vector.broadcast %218 : vector<16x1xf32> to vector<16x16xf32>
    %220 = arith.mulf %210, %219 : vector<16x16xf32>
    %221 = vector.broadcast %40 : vector<1x16xf32> to vector<16x16xf32>
    %222 = arith.mulf %220, %221 : vector<16x16xf32>
    %223 = vector.broadcast %41 : vector<1x16xf32> to vector<16x16xf32>
    %224 = arith.addf %222, %223 : vector<16x16xf32>
    %225 = vector.extract_strided_slice %33 {offsets = [0, 48], sizes = [16, 64], strides = [1, 1]} : vector<16x112xbf16> to vector<16x64xbf16>
    %226 = arith.truncf %224 : vector<16x16xf32> to vector<16x16xbf16>
    %cst_78 = arith.constant dense<0.000000e+00> : vector<16x64xf32>
    %227 = tpu.matmul %226, %225, %cst_78 {dimension_numbers = #tpu.dot_dimension_numbers<[1], [0], [0], [1], [0, 0, 1, 1], [], []>} : vector<16x16xbf16>, vector<16x64xbf16>, vector<16x64xf32> -> vector<16x64xf32>
    %228 = vector.broadcast %44 : vector<1x64xf32> to vector<16x64xf32>
    %229 = arith.addf %227, %228 : vector<16x64xf32>
    %cst_79 = arith.constant 5.000000e-01 : f32
    %230 = vector.broadcast %cst_79 : f32 to vector<16x64xf32>
    %231 = arith.mulf %230, %229 : vector<16x64xf32>
    %cst_80 = arith.constant 0.707106769 : f32
    %232 = vector.broadcast %cst_80 : f32 to vector<16x64xf32>
    %233 = arith.mulf %229, %232 : vector<16x64xf32>
    %234 = math.erf %233 : vector<16x64xf32>
    %cst_81 = arith.constant 1.000000e+00 : f32
    %235 = vector.broadcast %cst_81 : f32 to vector<16x64xf32>
    %236 = arith.addf %235, %234 : vector<16x64xf32>
    %237 = arith.mulf %231, %236 : vector<16x64xf32>
    %238 = arith.truncf %237 : vector<16x64xf32> to vector<16x64xbf16>
    %cst_82 = arith.constant dense<0.000000e+00> : vector<16x16xf32>
    %239 = tpu.matmul %238, %37, %cst_82 {dimension_numbers = #tpu.dot_dimension_numbers<[1], [0], [0], [1], [0, 0, 1, 1], [], []>} : vector<16x64xbf16>, vector<64x16xbf16>, vector<16x16xf32> -> vector<16x16xf32>
    %240 = arith.addf %204, %239 : vector<16x16xf32>
    %241 = vector.broadcast %45 : vector<1x16xf32> to vector<16x16xf32>
    %242 = arith.addf %240, %241 : vector<16x16xf32>
    %c1_83 = arith.constant 1 : index
    %c0_84 = arith.constant 0 : index
    %c0_85 = arith.constant 0 : index
    %243 = vector.load %arg5[%c1_83, %c0_84, %c0_85] : memref<4x16x112xbf16, #tpu.memory_space<vmem>>, vector<1x16x112xbf16>
    %244 = vector.shape_cast %243 : vector<1x16x112xbf16> to vector<16x112xbf16>
    %c1_86 = arith.constant 1 : index
    %c0_87 = arith.constant 0 : index
    %c0_88 = arith.constant 0 : index
    %245 = vector.load %arg6[%c1_86, %c0_87, %c0_88] : memref<4x8x64xf32, #tpu.memory_space<vmem>>, vector<1x8x64xf32>
    %246 = vector.shape_cast %245 : vector<1x8x64xf32> to vector<8x64xf32>
    %c1_89 = arith.constant 1 : index
    %c0_90 = arith.constant 0 : index
    %c0_91 = arith.constant 0 : index
    %247 = vector.load %arg7[%c1_89, %c0_90, %c0_91] : memref<4x64x16xbf16, #tpu.memory_space<vmem>>, vector<1x64x16xbf16>
    %248 = vector.shape_cast %247 : vector<1x64x16xbf16> to vector<64x16xbf16>
    %249 = vector.extract_strided_slice %246 {offsets = [0, 0], sizes = [1, 16], strides = [1, 1]} : vector<8x64xf32> to vector<1x16xf32>
    %250 = vector.extract_strided_slice %246 {offsets = [1, 0], sizes = [1, 16], strides = [1, 1]} : vector<8x64xf32> to vector<1x16xf32>
    %251 = vector.extract_strided_slice %246 {offsets = [2, 0], sizes = [1, 16], strides = [1, 1]} : vector<8x64xf32> to vector<1x16xf32>
    %252 = vector.extract_strided_slice %246 {offsets = [3, 0], sizes = [1, 16], strides = [1, 1]} : vector<8x64xf32> to vector<1x16xf32>
    %253 = vector.extract_strided_slice %246 {offsets = [4, 0], sizes = [1, 48], strides = [1, 1]} : vector<8x64xf32> to vector<1x48xf32>
    %254 = vector.extract_strided_slice %246 {offsets = [5, 0], sizes = [1, 16], strides = [1, 1]} : vector<8x64xf32> to vector<1x16xf32>
    %255 = vector.extract_strided_slice %246 {offsets = [6, 0], sizes = [1, 64], strides = [1, 1]} : vector<8x64xf32> to vector<1x64xf32>
    %256 = vector.extract_strided_slice %246 {offsets = [7, 0], sizes = [1, 16], strides = [1, 1]} : vector<8x64xf32> to vector<1x16xf32>
    %cst_92 = arith.constant dense<0.000000e+00> : vector<16xf32>
    %257 = vector.multi_reduction <add>, %242, %cst_92 [1] : vector<16x16xf32> to vector<16xf32>
    %258 = vector.shape_cast %257 : vector<16xf32> to vector<16x1xf32>
    %cst_93 = arith.constant 1.600000e+01 : f32
    %259 = vector.broadcast %cst_93 : f32 to vector<16x1xf32>
    %260 = arith.divf %258, %259 : vector<16x1xf32>
    %261 = vector.broadcast %260 : vector<16x1xf32> to vector<16x16xf32>
    %262 = arith.subf %242, %261 : vector<16x16xf32>
    %263 = arith.mulf %262, %262 : vector<16x16xf32>
    %cst_94 = arith.constant dense<0.000000e+00> : vector<16xf32>
    %264 = vector.multi_reduction <add>, %263, %cst_94 [1] : vector<16x16xf32> to vector<16xf32>
    %265 = vector.shape_cast %264 : vector<16xf32> to vector<16x1xf32>
    %cst_95 = arith.constant 1.600000e+01 : f32
    %266 = vector.broadcast %cst_95 : f32 to vector<16x1xf32>
    %267 = arith.divf %265, %266 : vector<16x1xf32>
    %cst_96 = arith.constant 9.99999974E-6 : f32
    %268 = vector.broadcast %cst_96 : f32 to vector<16x1xf32>
    %269 = arith.addf %267, %268 : vector<16x1xf32>
    %270 = math.rsqrt %269 : vector<16x1xf32>
    %271 = vector.broadcast %270 : vector<16x1xf32> to vector<16x16xf32>
    %272 = arith.mulf %262, %271 : vector<16x16xf32>
    %273 = vector.broadcast %249 : vector<1x16xf32> to vector<16x16xf32>
    %274 = arith.mulf %272, %273 : vector<16x16xf32>
    %275 = vector.broadcast %250 : vector<1x16xf32> to vector<16x16xf32>
    %276 = arith.addf %274, %275 : vector<16x16xf32>
    %277 = arith.truncf %276 : vector<16x16xf32> to vector<16x16xbf16>
    %278 = vector.extract_strided_slice %244 {offsets = [0, 0], sizes = [16, 12], strides = [1, 1]} : vector<16x112xbf16> to vector<16x12xbf16>
    %cst_97 = arith.constant dense<0.000000e+00> : vector<16x12xf32>
    %279 = tpu.matmul %277, %278, %cst_97 {dimension_numbers = #tpu.dot_dimension_numbers<[1], [0], [0], [1], [0, 0, 1, 1], [], []>} : vector<16x16xbf16>, vector<16x12xbf16>, vector<16x12xf32> -> vector<16x12xf32>
    %280 = vector.extract_strided_slice %253 {offsets = [0, 0], sizes = [1, 12], strides = [1, 1]} : vector<1x48xf32> to vector<1x12xf32>
    %281 = vector.broadcast %280 : vector<1x12xf32> to vector<16x12xf32>
    %282 = arith.addf %279, %281 : vector<16x12xf32>
    %283 = vector.extract_strided_slice %282 {offsets = [0, 0], sizes = [16, 4], strides = [1, 1]} : vector<16x12xf32> to vector<16x4xf32>
    %cst_98 = arith.constant 5.000000e-01 : f32
    %284 = vector.broadcast %cst_98 : f32 to vector<16x4xf32>
    %285 = arith.mulf %283, %284 : vector<16x4xf32>
    %286 = vector.extract_strided_slice %282 {offsets = [0, 4], sizes = [16, 4], strides = [1, 1]} : vector<16x12xf32> to vector<16x4xf32>
    %287 = vector.extract_strided_slice %282 {offsets = [0, 8], sizes = [16, 4], strides = [1, 1]} : vector<16x12xf32> to vector<16x4xf32>
    %c4 = arith.constant 4 : index
    %c0_99 = arith.constant 0 : index
    %c0_100 = arith.constant 0 : index
    %288 = vector.load %arg9[%c4, %c0_99, %c0_100] : memref<16x16x16xf32, #tpu.memory_space<vmem>>, vector<1x16x16xf32>
    %289 = vector.shape_cast %288 : vector<1x16x16xf32> to vector<16x16xf32>
    %290 = arith.truncf %285 : vector<16x4xf32> to vector<16x4xbf16>
    %291 = arith.truncf %286 : vector<16x4xf32> to vector<16x4xbf16>
    %292 = arith.truncf %287 : vector<16x4xf32> to vector<16x4xbf16>
    "tpu.trace_start"() <{level = 10 : i32, message = "nd,md->nm"}> : () -> ()
    %cst_101 = arith.constant dense<0.000000e+00> : vector<16x16xf32>
    %293 = tpu.matmul %290, %291, %cst_101 {dimension_numbers = #tpu.dot_dimension_numbers<[1], [1], [0], [0], [0, 0, 1, 0], [], []>} : vector<16x4xbf16>, vector<16x4xbf16>, vector<16x16xf32> -> vector<16x16xf32>
    "tpu.trace_stop"() : () -> ()
    %294 = arith.addf %293, %289 : vector<16x16xf32>
    %cst_102 = arith.constant dense<0xFF800000> : vector<16xf32>
    %295 = vector.multi_reduction <maximumf>, %294, %cst_102 [1] : vector<16x16xf32> to vector<16xf32>
    %296 = vector.shape_cast %295 : vector<16xf32> to vector<16x1xf32>
    %297 = vector.broadcast %296 : vector<16x1xf32> to vector<16x16xf32>
    %298 = arith.subf %294, %297 : vector<16x16xf32>
    %299 = math.exp %298 : vector<16x16xf32>
    %cst_103 = arith.constant dense<0.000000e+00> : vector<16xf32>
    %300 = vector.multi_reduction <add>, %299, %cst_103 [1] : vector<16x16xf32> to vector<16xf32>
    %301 = vector.shape_cast %300 : vector<16xf32> to vector<16x1xf32>
    %302 = tpu.reciprocal %301 {approx = true} : vector<16x1xf32> -> vector<16x1xf32>
    %303 = vector.broadcast %302 : vector<16x1xf32> to vector<16x16xf32>
    %304 = arith.mulf %299, %303 : vector<16x16xf32>
    %305 = arith.truncf %304 : vector<16x16xf32> to vector<16x16xbf16>
    %cst_104 = arith.constant dense<0.000000e+00> : vector<16x4xf32>
    %306 = tpu.matmul %305, %292, %cst_104 {dimension_numbers = #tpu.dot_dimension_numbers<[1], [0], [0], [1], [0, 0, 1, 1], [], []>} : vector<16x16xbf16>, vector<16x4xbf16>, vector<16x4xf32> -> vector<16x4xf32>
    %307 = arith.truncf %306 : vector<16x4xf32> to vector<16x4xbf16>
    %c4_105 = arith.constant 4 : index
    %c0_106 = arith.constant 0 : index
    %c0_107 = arith.constant 0 : index
    %308 = vector.load %arg8[%c4_105, %c0_106, %c0_107] : memref<16x4x16xbf16, #tpu.memory_space<vmem>>, vector<1x4x16xbf16>
    %309 = vector.shape_cast %308 : vector<1x4x16xbf16> to vector<4x16xbf16>
    %cst_108 = arith.constant dense<0.000000e+00> : vector<16x16xf32>
    %310 = tpu.matmul %307, %309, %cst_108 {dimension_numbers = #tpu.dot_dimension_numbers<[1], [0], [0], [1], [0, 0, 1, 1], [], []>} : vector<16x4xbf16>, vector<4x16xbf16>, vector<16x16xf32> -> vector<16x16xf32>
    %311 = vector.extract_strided_slice %244 {offsets = [0, 12], sizes = [16, 12], strides = [1, 1]} : vector<16x112xbf16> to vector<16x12xbf16>
    %cst_109 = arith.constant dense<0.000000e+00> : vector<16x12xf32>
    %312 = tpu.matmul %277, %311, %cst_109 {dimension_numbers = #tpu.dot_dimension_numbers<[1], [0], [0], [1], [0, 0, 1, 1], [], []>} : vector<16x16xbf16>, vector<16x12xbf16>, vector<16x12xf32> -> vector<16x12xf32>
    %313 = vector.extract_strided_slice %253 {offsets = [0, 12], sizes = [1, 12], strides = [1, 1]} : vector<1x48xf32> to vector<1x12xf32>
    %314 = vector.broadcast %313 : vector<1x12xf32> to vector<16x12xf32>
    %315 = arith.addf %312, %314 : vector<16x12xf32>
    %316 = vector.extract_strided_slice %315 {offsets = [0, 0], sizes = [16, 4], strides = [1, 1]} : vector<16x12xf32> to vector<16x4xf32>
    %cst_110 = arith.constant 5.000000e-01 : f32
    %317 = vector.broadcast %cst_110 : f32 to vector<16x4xf32>
    %318 = arith.mulf %316, %317 : vector<16x4xf32>
    %319 = vector.extract_strided_slice %315 {offsets = [0, 4], sizes = [16, 4], strides = [1, 1]} : vector<16x12xf32> to vector<16x4xf32>
    %320 = vector.extract_strided_slice %315 {offsets = [0, 8], sizes = [16, 4], strides = [1, 1]} : vector<16x12xf32> to vector<16x4xf32>
    %c5 = arith.constant 5 : index
    %c0_111 = arith.constant 0 : index
    %c0_112 = arith.constant 0 : index
    %321 = vector.load %arg9[%c5, %c0_111, %c0_112] : memref<16x16x16xf32, #tpu.memory_space<vmem>>, vector<1x16x16xf32>
    %322 = vector.shape_cast %321 : vector<1x16x16xf32> to vector<16x16xf32>
    %323 = arith.truncf %318 : vector<16x4xf32> to vector<16x4xbf16>
    %324 = arith.truncf %319 : vector<16x4xf32> to vector<16x4xbf16>
    %325 = arith.truncf %320 : vector<16x4xf32> to vector<16x4xbf16>
    "tpu.trace_start"() <{level = 10 : i32, message = "nd,md->nm"}> : () -> ()
    %cst_113 = arith.constant dense<0.000000e+00> : vector<16x16xf32>
    %326 = tpu.matmul %323, %324, %cst_113 {dimension_numbers = #tpu.dot_dimension_numbers<[1], [1], [0], [0], [0, 0, 1, 0], [], []>} : vector<16x4xbf16>, vector<16x4xbf16>, vector<16x16xf32> -> vector<16x16xf32>
    "tpu.trace_stop"() : () -> ()
    %327 = arith.addf %326, %322 : vector<16x16xf32>
    %cst_114 = arith.constant dense<0xFF800000> : vector<16xf32>
    %328 = vector.multi_reduction <maximumf>, %327, %cst_114 [1] : vector<16x16xf32> to vector<16xf32>
    %329 = vector.shape_cast %328 : vector<16xf32> to vector<16x1xf32>
    %330 = vector.broadcast %329 : vector<16x1xf32> to vector<16x16xf32>
    %331 = arith.subf %327, %330 : vector<16x16xf32>
    %332 = math.exp %331 : vector<16x16xf32>
    %cst_115 = arith.constant dense<0.000000e+00> : vector<16xf32>
    %333 = vector.multi_reduction <add>, %332, %cst_115 [1] : vector<16x16xf32> to vector<16xf32>
    %334 = vector.shape_cast %333 : vector<16xf32> to vector<16x1xf32>
    %335 = tpu.reciprocal %334 {approx = true} : vector<16x1xf32> -> vector<16x1xf32>
    %336 = vector.broadcast %335 : vector<16x1xf32> to vector<16x16xf32>
    %337 = arith.mulf %332, %336 : vector<16x16xf32>
    %338 = arith.truncf %337 : vector<16x16xf32> to vector<16x16xbf16>
    %cst_116 = arith.constant dense<0.000000e+00> : vector<16x4xf32>
    %339 = tpu.matmul %338, %325, %cst_116 {dimension_numbers = #tpu.dot_dimension_numbers<[1], [0], [0], [1], [0, 0, 1, 1], [], []>} : vector<16x16xbf16>, vector<16x4xbf16>, vector<16x4xf32> -> vector<16x4xf32>
    %340 = arith.truncf %339 : vector<16x4xf32> to vector<16x4xbf16>
    %c5_117 = arith.constant 5 : index
    %c0_118 = arith.constant 0 : index
    %c0_119 = arith.constant 0 : index
    %341 = vector.load %arg8[%c5_117, %c0_118, %c0_119] : memref<16x4x16xbf16, #tpu.memory_space<vmem>>, vector<1x4x16xbf16>
    %342 = vector.shape_cast %341 : vector<1x4x16xbf16> to vector<4x16xbf16>
    %cst_120 = arith.constant dense<0.000000e+00> : vector<16x16xf32>
    %343 = tpu.matmul %340, %342, %cst_120 {dimension_numbers = #tpu.dot_dimension_numbers<[1], [0], [0], [1], [0, 0, 1, 1], [], []>} : vector<16x4xbf16>, vector<4x16xbf16>, vector<16x16xf32> -> vector<16x16xf32>
    %344 = arith.addf %310, %343 : vector<16x16xf32>
    %345 = vector.extract_strided_slice %244 {offsets = [0, 24], sizes = [16, 12], strides = [1, 1]} : vector<16x112xbf16> to vector<16x12xbf16>
    %cst_121 = arith.constant dense<0.000000e+00> : vector<16x12xf32>
    %346 = tpu.matmul %277, %345, %cst_121 {dimension_numbers = #tpu.dot_dimension_numbers<[1], [0], [0], [1], [0, 0, 1, 1], [], []>} : vector<16x16xbf16>, vector<16x12xbf16>, vector<16x12xf32> -> vector<16x12xf32>
    %347 = vector.extract_strided_slice %253 {offsets = [0, 24], sizes = [1, 12], strides = [1, 1]} : vector<1x48xf32> to vector<1x12xf32>
    %348 = vector.broadcast %347 : vector<1x12xf32> to vector<16x12xf32>
    %349 = arith.addf %346, %348 : vector<16x12xf32>
    %350 = vector.extract_strided_slice %349 {offsets = [0, 0], sizes = [16, 4], strides = [1, 1]} : vector<16x12xf32> to vector<16x4xf32>
    %cst_122 = arith.constant 5.000000e-01 : f32
    %351 = vector.broadcast %cst_122 : f32 to vector<16x4xf32>
    %352 = arith.mulf %350, %351 : vector<16x4xf32>
    %353 = vector.extract_strided_slice %349 {offsets = [0, 4], sizes = [16, 4], strides = [1, 1]} : vector<16x12xf32> to vector<16x4xf32>
    %354 = vector.extract_strided_slice %349 {offsets = [0, 8], sizes = [16, 4], strides = [1, 1]} : vector<16x12xf32> to vector<16x4xf32>
    %c6 = arith.constant 6 : index
    %c0_123 = arith.constant 0 : index
    %c0_124 = arith.constant 0 : index
    %355 = vector.load %arg9[%c6, %c0_123, %c0_124] : memref<16x16x16xf32, #tpu.memory_space<vmem>>, vector<1x16x16xf32>
    %356 = vector.shape_cast %355 : vector<1x16x16xf32> to vector<16x16xf32>
    %357 = arith.truncf %352 : vector<16x4xf32> to vector<16x4xbf16>
    %358 = arith.truncf %353 : vector<16x4xf32> to vector<16x4xbf16>
    %359 = arith.truncf %354 : vector<16x4xf32> to vector<16x4xbf16>
    "tpu.trace_start"() <{level = 10 : i32, message = "nd,md->nm"}> : () -> ()
    %cst_125 = arith.constant dense<0.000000e+00> : vector<16x16xf32>
    %360 = tpu.matmul %357, %358, %cst_125 {dimension_numbers = #tpu.dot_dimension_numbers<[1], [1], [0], [0], [0, 0, 1, 0], [], []>} : vector<16x4xbf16>, vector<16x4xbf16>, vector<16x16xf32> -> vector<16x16xf32>
    "tpu.trace_stop"() : () -> ()
    %361 = arith.addf %360, %356 : vector<16x16xf32>
    %cst_126 = arith.constant dense<0xFF800000> : vector<16xf32>
    %362 = vector.multi_reduction <maximumf>, %361, %cst_126 [1] : vector<16x16xf32> to vector<16xf32>
    %363 = vector.shape_cast %362 : vector<16xf32> to vector<16x1xf32>
    %364 = vector.broadcast %363 : vector<16x1xf32> to vector<16x16xf32>
    %365 = arith.subf %361, %364 : vector<16x16xf32>
    %366 = math.exp %365 : vector<16x16xf32>
    %cst_127 = arith.constant dense<0.000000e+00> : vector<16xf32>
    %367 = vector.multi_reduction <add>, %366, %cst_127 [1] : vector<16x16xf32> to vector<16xf32>
    %368 = vector.shape_cast %367 : vector<16xf32> to vector<16x1xf32>
    %369 = tpu.reciprocal %368 {approx = true} : vector<16x1xf32> -> vector<16x1xf32>
    %370 = vector.broadcast %369 : vector<16x1xf32> to vector<16x16xf32>
    %371 = arith.mulf %366, %370 : vector<16x16xf32>
    %372 = arith.truncf %371 : vector<16x16xf32> to vector<16x16xbf16>
    %cst_128 = arith.constant dense<0.000000e+00> : vector<16x4xf32>
    %373 = tpu.matmul %372, %359, %cst_128 {dimension_numbers = #tpu.dot_dimension_numbers<[1], [0], [0], [1], [0, 0, 1, 1], [], []>} : vector<16x16xbf16>, vector<16x4xbf16>, vector<16x4xf32> -> vector<16x4xf32>
    %374 = arith.truncf %373 : vector<16x4xf32> to vector<16x4xbf16>
    %c6_129 = arith.constant 6 : index
    %c0_130 = arith.constant 0 : index
    %c0_131 = arith.constant 0 : index
    %375 = vector.load %arg8[%c6_129, %c0_130, %c0_131] : memref<16x4x16xbf16, #tpu.memory_space<vmem>>, vector<1x4x16xbf16>
    %376 = vector.shape_cast %375 : vector<1x4x16xbf16> to vector<4x16xbf16>
    %cst_132 = arith.constant dense<0.000000e+00> : vector<16x16xf32>
    %377 = tpu.matmul %374, %376, %cst_132 {dimension_numbers = #tpu.dot_dimension_numbers<[1], [0], [0], [1], [0, 0, 1, 1], [], []>} : vector<16x4xbf16>, vector<4x16xbf16>, vector<16x16xf32> -> vector<16x16xf32>
    %378 = arith.addf %344, %377 : vector<16x16xf32>
    %379 = vector.extract_strided_slice %244 {offsets = [0, 36], sizes = [16, 12], strides = [1, 1]} : vector<16x112xbf16> to vector<16x12xbf16>
    %cst_133 = arith.constant dense<0.000000e+00> : vector<16x12xf32>
    %380 = tpu.matmul %277, %379, %cst_133 {dimension_numbers = #tpu.dot_dimension_numbers<[1], [0], [0], [1], [0, 0, 1, 1], [], []>} : vector<16x16xbf16>, vector<16x12xbf16>, vector<16x12xf32> -> vector<16x12xf32>
    %381 = vector.extract_strided_slice %253 {offsets = [0, 36], sizes = [1, 12], strides = [1, 1]} : vector<1x48xf32> to vector<1x12xf32>
    %382 = vector.broadcast %381 : vector<1x12xf32> to vector<16x12xf32>
    %383 = arith.addf %380, %382 : vector<16x12xf32>
    %384 = vector.extract_strided_slice %383 {offsets = [0, 0], sizes = [16, 4], strides = [1, 1]} : vector<16x12xf32> to vector<16x4xf32>
    %cst_134 = arith.constant 5.000000e-01 : f32
    %385 = vector.broadcast %cst_134 : f32 to vector<16x4xf32>
    %386 = arith.mulf %384, %385 : vector<16x4xf32>
    %387 = vector.extract_strided_slice %383 {offsets = [0, 4], sizes = [16, 4], strides = [1, 1]} : vector<16x12xf32> to vector<16x4xf32>
    %388 = vector.extract_strided_slice %383 {offsets = [0, 8], sizes = [16, 4], strides = [1, 1]} : vector<16x12xf32> to vector<16x4xf32>
    %c7 = arith.constant 7 : index
    %c0_135 = arith.constant 0 : index
    %c0_136 = arith.constant 0 : index
    %389 = vector.load %arg9[%c7, %c0_135, %c0_136] : memref<16x16x16xf32, #tpu.memory_space<vmem>>, vector<1x16x16xf32>
    %390 = vector.shape_cast %389 : vector<1x16x16xf32> to vector<16x16xf32>
    %391 = arith.truncf %386 : vector<16x4xf32> to vector<16x4xbf16>
    %392 = arith.truncf %387 : vector<16x4xf32> to vector<16x4xbf16>
    %393 = arith.truncf %388 : vector<16x4xf32> to vector<16x4xbf16>
    "tpu.trace_start"() <{level = 10 : i32, message = "nd,md->nm"}> : () -> ()
    %cst_137 = arith.constant dense<0.000000e+00> : vector<16x16xf32>
    %394 = tpu.matmul %391, %392, %cst_137 {dimension_numbers = #tpu.dot_dimension_numbers<[1], [1], [0], [0], [0, 0, 1, 0], [], []>} : vector<16x4xbf16>, vector<16x4xbf16>, vector<16x16xf32> -> vector<16x16xf32>
    "tpu.trace_stop"() : () -> ()
    %395 = arith.addf %394, %390 : vector<16x16xf32>
    %cst_138 = arith.constant dense<0xFF800000> : vector<16xf32>
    %396 = vector.multi_reduction <maximumf>, %395, %cst_138 [1] : vector<16x16xf32> to vector<16xf32>
    %397 = vector.shape_cast %396 : vector<16xf32> to vector<16x1xf32>
    %398 = vector.broadcast %397 : vector<16x1xf32> to vector<16x16xf32>
    %399 = arith.subf %395, %398 : vector<16x16xf32>
    %400 = math.exp %399 : vector<16x16xf32>
    %cst_139 = arith.constant dense<0.000000e+00> : vector<16xf32>
    %401 = vector.multi_reduction <add>, %400, %cst_139 [1] : vector<16x16xf32> to vector<16xf32>
    %402 = vector.shape_cast %401 : vector<16xf32> to vector<16x1xf32>
    %403 = tpu.reciprocal %402 {approx = true} : vector<16x1xf32> -> vector<16x1xf32>
    %404 = vector.broadcast %403 : vector<16x1xf32> to vector<16x16xf32>
    %405 = arith.mulf %400, %404 : vector<16x16xf32>
    %406 = arith.truncf %405 : vector<16x16xf32> to vector<16x16xbf16>
    %cst_140 = arith.constant dense<0.000000e+00> : vector<16x4xf32>
    %407 = tpu.matmul %406, %393, %cst_140 {dimension_numbers = #tpu.dot_dimension_numbers<[1], [0], [0], [1], [0, 0, 1, 1], [], []>} : vector<16x16xbf16>, vector<16x4xbf16>, vector<16x4xf32> -> vector<16x4xf32>
    %408 = arith.truncf %407 : vector<16x4xf32> to vector<16x4xbf16>
    %c7_141 = arith.constant 7 : index
    %c0_142 = arith.constant 0 : index
    %c0_143 = arith.constant 0 : index
    %409 = vector.load %arg8[%c7_141, %c0_142, %c0_143] : memref<16x4x16xbf16, #tpu.memory_space<vmem>>, vector<1x4x16xbf16>
    %410 = vector.shape_cast %409 : vector<1x4x16xbf16> to vector<4x16xbf16>
    %cst_144 = arith.constant dense<0.000000e+00> : vector<16x16xf32>
    %411 = tpu.matmul %408, %410, %cst_144 {dimension_numbers = #tpu.dot_dimension_numbers<[1], [0], [0], [1], [0, 0, 1, 1], [], []>} : vector<16x4xbf16>, vector<4x16xbf16>, vector<16x16xf32> -> vector<16x16xf32>
    %412 = arith.addf %378, %411 : vector<16x16xf32>
    %413 = arith.addf %242, %412 : vector<16x16xf32>
    %414 = vector.broadcast %254 : vector<1x16xf32> to vector<16x16xf32>
    %415 = arith.addf %413, %414 : vector<16x16xf32>
    %cst_145 = arith.constant dense<0.000000e+00> : vector<16xf32>
    %416 = vector.multi_reduction <add>, %415, %cst_145 [1] : vector<16x16xf32> to vector<16xf32>
    %417 = vector.shape_cast %416 : vector<16xf32> to vector<16x1xf32>
    %cst_146 = arith.constant 1.600000e+01 : f32
    %418 = vector.broadcast %cst_146 : f32 to vector<16x1xf32>
    %419 = arith.divf %417, %418 : vector<16x1xf32>
    %420 = vector.broadcast %419 : vector<16x1xf32> to vector<16x16xf32>
    %421 = arith.subf %415, %420 : vector<16x16xf32>
    %422 = arith.mulf %421, %421 : vector<16x16xf32>
    %cst_147 = arith.constant dense<0.000000e+00> : vector<16xf32>
    %423 = vector.multi_reduction <add>, %422, %cst_147 [1] : vector<16x16xf32> to vector<16xf32>
    %424 = vector.shape_cast %423 : vector<16xf32> to vector<16x1xf32>
    %cst_148 = arith.constant 1.600000e+01 : f32
    %425 = vector.broadcast %cst_148 : f32 to vector<16x1xf32>
    %426 = arith.divf %424, %425 : vector<16x1xf32>
    %cst_149 = arith.constant 9.99999974E-6 : f32
    %427 = vector.broadcast %cst_149 : f32 to vector<16x1xf32>
    %428 = arith.addf %426, %427 : vector<16x1xf32>
    %429 = math.rsqrt %428 : vector<16x1xf32>
    %430 = vector.broadcast %429 : vector<16x1xf32> to vector<16x16xf32>
    %431 = arith.mulf %421, %430 : vector<16x16xf32>
    %432 = vector.broadcast %251 : vector<1x16xf32> to vector<16x16xf32>
    %433 = arith.mulf %431, %432 : vector<16x16xf32>
    %434 = vector.broadcast %252 : vector<1x16xf32> to vector<16x16xf32>
    %435 = arith.addf %433, %434 : vector<16x16xf32>
    %436 = vector.extract_strided_slice %244 {offsets = [0, 48], sizes = [16, 64], strides = [1, 1]} : vector<16x112xbf16> to vector<16x64xbf16>
    %437 = arith.truncf %435 : vector<16x16xf32> to vector<16x16xbf16>
    %cst_150 = arith.constant dense<0.000000e+00> : vector<16x64xf32>
    %438 = tpu.matmul %437, %436, %cst_150 {dimension_numbers = #tpu.dot_dimension_numbers<[1], [0], [0], [1], [0, 0, 1, 1], [], []>} : vector<16x16xbf16>, vector<16x64xbf16>, vector<16x64xf32> -> vector<16x64xf32>
    %439 = vector.broadcast %255 : vector<1x64xf32> to vector<16x64xf32>
    %440 = arith.addf %438, %439 : vector<16x64xf32>
    %cst_151 = arith.constant 5.000000e-01 : f32
    %441 = vector.broadcast %cst_151 : f32 to vector<16x64xf32>
    %442 = arith.mulf %441, %440 : vector<16x64xf32>
    %cst_152 = arith.constant 0.707106769 : f32
    %443 = vector.broadcast %cst_152 : f32 to vector<16x64xf32>
    %444 = arith.mulf %440, %443 : vector<16x64xf32>
    %445 = math.erf %444 : vector<16x64xf32>
    %cst_153 = arith.constant 1.000000e+00 : f32
    %446 = vector.broadcast %cst_153 : f32 to vector<16x64xf32>
    %447 = arith.addf %446, %445 : vector<16x64xf32>
    %448 = arith.mulf %442, %447 : vector<16x64xf32>
    %449 = arith.truncf %448 : vector<16x64xf32> to vector<16x64xbf16>
    %cst_154 = arith.constant dense<0.000000e+00> : vector<16x16xf32>
    %450 = tpu.matmul %449, %248, %cst_154 {dimension_numbers = #tpu.dot_dimension_numbers<[1], [0], [0], [1], [0, 0, 1, 1], [], []>} : vector<16x64xbf16>, vector<64x16xbf16>, vector<16x16xf32> -> vector<16x16xf32>
    %451 = arith.addf %415, %450 : vector<16x16xf32>
    %452 = vector.broadcast %256 : vector<1x16xf32> to vector<16x16xf32>
    %453 = arith.addf %451, %452 : vector<16x16xf32>
    %c2_155 = arith.constant 2 : index
    %c0_156 = arith.constant 0 : index
    %c0_157 = arith.constant 0 : index
    %454 = vector.load %arg5[%c2_155, %c0_156, %c0_157] : memref<4x16x112xbf16, #tpu.memory_space<vmem>>, vector<1x16x112xbf16>
    %455 = vector.shape_cast %454 : vector<1x16x112xbf16> to vector<16x112xbf16>
    %c2_158 = arith.constant 2 : index
    %c0_159 = arith.constant 0 : index
    %c0_160 = arith.constant 0 : index
    %456 = vector.load %arg6[%c2_158, %c0_159, %c0_160] : memref<4x8x64xf32, #tpu.memory_space<vmem>>, vector<1x8x64xf32>
    %457 = vector.shape_cast %456 : vector<1x8x64xf32> to vector<8x64xf32>
    %c2_161 = arith.constant 2 : index
    %c0_162 = arith.constant 0 : index
    %c0_163 = arith.constant 0 : index
    %458 = vector.load %arg7[%c2_161, %c0_162, %c0_163] : memref<4x64x16xbf16, #tpu.memory_space<vmem>>, vector<1x64x16xbf16>
    %459 = vector.shape_cast %458 : vector<1x64x16xbf16> to vector<64x16xbf16>
    %460 = vector.extract_strided_slice %457 {offsets = [0, 0], sizes = [1, 16], strides = [1, 1]} : vector<8x64xf32> to vector<1x16xf32>
    %461 = vector.extract_strided_slice %457 {offsets = [1, 0], sizes = [1, 16], strides = [1, 1]} : vector<8x64xf32> to vector<1x16xf32>
    %462 = vector.extract_strided_slice %457 {offsets = [2, 0], sizes = [1, 16], strides = [1, 1]} : vector<8x64xf32> to vector<1x16xf32>
    %463 = vector.extract_strided_slice %457 {offsets = [3, 0], sizes = [1, 16], strides = [1, 1]} : vector<8x64xf32> to vector<1x16xf32>
    %464 = vector.extract_strided_slice %457 {offsets = [4, 0], sizes = [1, 48], strides = [1, 1]} : vector<8x64xf32> to vector<1x48xf32>
    %465 = vector.extract_strided_slice %457 {offsets = [5, 0], sizes = [1, 16], strides = [1, 1]} : vector<8x64xf32> to vector<1x16xf32>
    %466 = vector.extract_strided_slice %457 {offsets = [6, 0], sizes = [1, 64], strides = [1, 1]} : vector<8x64xf32> to vector<1x64xf32>
    %467 = vector.extract_strided_slice %457 {offsets = [7, 0], sizes = [1, 16], strides = [1, 1]} : vector<8x64xf32> to vector<1x16xf32>
    %cst_164 = arith.constant dense<0.000000e+00> : vector<16xf32>
    %468 = vector.multi_reduction <add>, %453, %cst_164 [1] : vector<16x16xf32> to vector<16xf32>
    %469 = vector.shape_cast %468 : vector<16xf32> to vector<16x1xf32>
    %cst_165 = arith.constant 1.600000e+01 : f32
    %470 = vector.broadcast %cst_165 : f32 to vector<16x1xf32>
    %471 = arith.divf %469, %470 : vector<16x1xf32>
    %472 = vector.broadcast %471 : vector<16x1xf32> to vector<16x16xf32>
    %473 = arith.subf %453, %472 : vector<16x16xf32>
    %474 = arith.mulf %473, %473 : vector<16x16xf32>
    %cst_166 = arith.constant dense<0.000000e+00> : vector<16xf32>
    %475 = vector.multi_reduction <add>, %474, %cst_166 [1] : vector<16x16xf32> to vector<16xf32>
    %476 = vector.shape_cast %475 : vector<16xf32> to vector<16x1xf32>
    %cst_167 = arith.constant 1.600000e+01 : f32
    %477 = vector.broadcast %cst_167 : f32 to vector<16x1xf32>
    %478 = arith.divf %476, %477 : vector<16x1xf32>
    %cst_168 = arith.constant 9.99999974E-6 : f32
    %479 = vector.broadcast %cst_168 : f32 to vector<16x1xf32>
    %480 = arith.addf %478, %479 : vector<16x1xf32>
    %481 = math.rsqrt %480 : vector<16x1xf32>
    %482 = vector.broadcast %481 : vector<16x1xf32> to vector<16x16xf32>
    %483 = arith.mulf %473, %482 : vector<16x16xf32>
    %484 = vector.broadcast %460 : vector<1x16xf32> to vector<16x16xf32>
    %485 = arith.mulf %483, %484 : vector<16x16xf32>
    %486 = vector.broadcast %461 : vector<1x16xf32> to vector<16x16xf32>
    %487 = arith.addf %485, %486 : vector<16x16xf32>
    %488 = arith.truncf %487 : vector<16x16xf32> to vector<16x16xbf16>
    %489 = vector.extract_strided_slice %455 {offsets = [0, 0], sizes = [16, 12], strides = [1, 1]} : vector<16x112xbf16> to vector<16x12xbf16>
    %cst_169 = arith.constant dense<0.000000e+00> : vector<16x12xf32>
    %490 = tpu.matmul %488, %489, %cst_169 {dimension_numbers = #tpu.dot_dimension_numbers<[1], [0], [0], [1], [0, 0, 1, 1], [], []>} : vector<16x16xbf16>, vector<16x12xbf16>, vector<16x12xf32> -> vector<16x12xf32>
    %491 = vector.extract_strided_slice %464 {offsets = [0, 0], sizes = [1, 12], strides = [1, 1]} : vector<1x48xf32> to vector<1x12xf32>
    %492 = vector.broadcast %491 : vector<1x12xf32> to vector<16x12xf32>
    %493 = arith.addf %490, %492 : vector<16x12xf32>
    %494 = vector.extract_strided_slice %493 {offsets = [0, 0], sizes = [16, 4], strides = [1, 1]} : vector<16x12xf32> to vector<16x4xf32>
    %cst_170 = arith.constant 5.000000e-01 : f32
    %495 = vector.broadcast %cst_170 : f32 to vector<16x4xf32>
    %496 = arith.mulf %494, %495 : vector<16x4xf32>
    %497 = vector.extract_strided_slice %493 {offsets = [0, 4], sizes = [16, 4], strides = [1, 1]} : vector<16x12xf32> to vector<16x4xf32>
    %498 = vector.extract_strided_slice %493 {offsets = [0, 8], sizes = [16, 4], strides = [1, 1]} : vector<16x12xf32> to vector<16x4xf32>
    %c8 = arith.constant 8 : index
    %c0_171 = arith.constant 0 : index
    %c0_172 = arith.constant 0 : index
    %499 = vector.load %arg9[%c8, %c0_171, %c0_172] : memref<16x16x16xf32, #tpu.memory_space<vmem>>, vector<1x16x16xf32>
    %500 = vector.shape_cast %499 : vector<1x16x16xf32> to vector<16x16xf32>
    %501 = arith.truncf %496 : vector<16x4xf32> to vector<16x4xbf16>
    %502 = arith.truncf %497 : vector<16x4xf32> to vector<16x4xbf16>
    %503 = arith.truncf %498 : vector<16x4xf32> to vector<16x4xbf16>
    "tpu.trace_start"() <{level = 10 : i32, message = "nd,md->nm"}> : () -> ()
    %cst_173 = arith.constant dense<0.000000e+00> : vector<16x16xf32>
    %504 = tpu.matmul %501, %502, %cst_173 {dimension_numbers = #tpu.dot_dimension_numbers<[1], [1], [0], [0], [0, 0, 1, 0], [], []>} : vector<16x4xbf16>, vector<16x4xbf16>, vector<16x16xf32> -> vector<16x16xf32>
    "tpu.trace_stop"() : () -> ()
    %505 = arith.addf %504, %500 : vector<16x16xf32>
    %cst_174 = arith.constant dense<0xFF800000> : vector<16xf32>
    %506 = vector.multi_reduction <maximumf>, %505, %cst_174 [1] : vector<16x16xf32> to vector<16xf32>
    %507 = vector.shape_cast %506 : vector<16xf32> to vector<16x1xf32>
    %508 = vector.broadcast %507 : vector<16x1xf32> to vector<16x16xf32>
    %509 = arith.subf %505, %508 : vector<16x16xf32>
    %510 = math.exp %509 : vector<16x16xf32>
    %cst_175 = arith.constant dense<0.000000e+00> : vector<16xf32>
    %511 = vector.multi_reduction <add>, %510, %cst_175 [1] : vector<16x16xf32> to vector<16xf32>
    %512 = vector.shape_cast %511 : vector<16xf32> to vector<16x1xf32>
    %513 = tpu.reciprocal %512 {approx = true} : vector<16x1xf32> -> vector<16x1xf32>
    %514 = vector.broadcast %513 : vector<16x1xf32> to vector<16x16xf32>
    %515 = arith.mulf %510, %514 : vector<16x16xf32>
    %516 = arith.truncf %515 : vector<16x16xf32> to vector<16x16xbf16>
    %cst_176 = arith.constant dense<0.000000e+00> : vector<16x4xf32>
    %517 = tpu.matmul %516, %503, %cst_176 {dimension_numbers = #tpu.dot_dimension_numbers<[1], [0], [0], [1], [0, 0, 1, 1], [], []>} : vector<16x16xbf16>, vector<16x4xbf16>, vector<16x4xf32> -> vector<16x4xf32>
    %518 = arith.truncf %517 : vector<16x4xf32> to vector<16x4xbf16>
    %c8_177 = arith.constant 8 : index
    %c0_178 = arith.constant 0 : index
    %c0_179 = arith.constant 0 : index
    %519 = vector.load %arg8[%c8_177, %c0_178, %c0_179] : memref<16x4x16xbf16, #tpu.memory_space<vmem>>, vector<1x4x16xbf16>
    %520 = vector.shape_cast %519 : vector<1x4x16xbf16> to vector<4x16xbf16>
    %cst_180 = arith.constant dense<0.000000e+00> : vector<16x16xf32>
    %521 = tpu.matmul %518, %520, %cst_180 {dimension_numbers = #tpu.dot_dimension_numbers<[1], [0], [0], [1], [0, 0, 1, 1], [], []>} : vector<16x4xbf16>, vector<4x16xbf16>, vector<16x16xf32> -> vector<16x16xf32>
    %522 = vector.extract_strided_slice %455 {offsets = [0, 12], sizes = [16, 12], strides = [1, 1]} : vector<16x112xbf16> to vector<16x12xbf16>
    %cst_181 = arith.constant dense<0.000000e+00> : vector<16x12xf32>
    %523 = tpu.matmul %488, %522, %cst_181 {dimension_numbers = #tpu.dot_dimension_numbers<[1], [0], [0], [1], [0, 0, 1, 1], [], []>} : vector<16x16xbf16>, vector<16x12xbf16>, vector<16x12xf32> -> vector<16x12xf32>
    %524 = vector.extract_strided_slice %464 {offsets = [0, 12], sizes = [1, 12], strides = [1, 1]} : vector<1x48xf32> to vector<1x12xf32>
    %525 = vector.broadcast %524 : vector<1x12xf32> to vector<16x12xf32>
    %526 = arith.addf %523, %525 : vector<16x12xf32>
    %527 = vector.extract_strided_slice %526 {offsets = [0, 0], sizes = [16, 4], strides = [1, 1]} : vector<16x12xf32> to vector<16x4xf32>
    %cst_182 = arith.constant 5.000000e-01 : f32
    %528 = vector.broadcast %cst_182 : f32 to vector<16x4xf32>
    %529 = arith.mulf %527, %528 : vector<16x4xf32>
    %530 = vector.extract_strided_slice %526 {offsets = [0, 4], sizes = [16, 4], strides = [1, 1]} : vector<16x12xf32> to vector<16x4xf32>
    %531 = vector.extract_strided_slice %526 {offsets = [0, 8], sizes = [16, 4], strides = [1, 1]} : vector<16x12xf32> to vector<16x4xf32>
    %c9 = arith.constant 9 : index
    %c0_183 = arith.constant 0 : index
    %c0_184 = arith.constant 0 : index
    %532 = vector.load %arg9[%c9, %c0_183, %c0_184] : memref<16x16x16xf32, #tpu.memory_space<vmem>>, vector<1x16x16xf32>
    %533 = vector.shape_cast %532 : vector<1x16x16xf32> to vector<16x16xf32>
    %534 = arith.truncf %529 : vector<16x4xf32> to vector<16x4xbf16>
    %535 = arith.truncf %530 : vector<16x4xf32> to vector<16x4xbf16>
    %536 = arith.truncf %531 : vector<16x4xf32> to vector<16x4xbf16>
    "tpu.trace_start"() <{level = 10 : i32, message = "nd,md->nm"}> : () -> ()
    %cst_185 = arith.constant dense<0.000000e+00> : vector<16x16xf32>
    %537 = tpu.matmul %534, %535, %cst_185 {dimension_numbers = #tpu.dot_dimension_numbers<[1], [1], [0], [0], [0, 0, 1, 0], [], []>} : vector<16x4xbf16>, vector<16x4xbf16>, vector<16x16xf32> -> vector<16x16xf32>
    "tpu.trace_stop"() : () -> ()
    %538 = arith.addf %537, %533 : vector<16x16xf32>
    %cst_186 = arith.constant dense<0xFF800000> : vector<16xf32>
    %539 = vector.multi_reduction <maximumf>, %538, %cst_186 [1] : vector<16x16xf32> to vector<16xf32>
    %540 = vector.shape_cast %539 : vector<16xf32> to vector<16x1xf32>
    %541 = vector.broadcast %540 : vector<16x1xf32> to vector<16x16xf32>
    %542 = arith.subf %538, %541 : vector<16x16xf32>
    %543 = math.exp %542 : vector<16x16xf32>
    %cst_187 = arith.constant dense<0.000000e+00> : vector<16xf32>
    %544 = vector.multi_reduction <add>, %543, %cst_187 [1] : vector<16x16xf32> to vector<16xf32>
    %545 = vector.shape_cast %544 : vector<16xf32> to vector<16x1xf32>
    %546 = tpu.reciprocal %545 {approx = true} : vector<16x1xf32> -> vector<16x1xf32>
    %547 = vector.broadcast %546 : vector<16x1xf32> to vector<16x16xf32>
    %548 = arith.mulf %543, %547 : vector<16x16xf32>
    %549 = arith.truncf %548 : vector<16x16xf32> to vector<16x16xbf16>
    %cst_188 = arith.constant dense<0.000000e+00> : vector<16x4xf32>
    %550 = tpu.matmul %549, %536, %cst_188 {dimension_numbers = #tpu.dot_dimension_numbers<[1], [0], [0], [1], [0, 0, 1, 1], [], []>} : vector<16x16xbf16>, vector<16x4xbf16>, vector<16x4xf32> -> vector<16x4xf32>
    %551 = arith.truncf %550 : vector<16x4xf32> to vector<16x4xbf16>
    %c9_189 = arith.constant 9 : index
    %c0_190 = arith.constant 0 : index
    %c0_191 = arith.constant 0 : index
    %552 = vector.load %arg8[%c9_189, %c0_190, %c0_191] : memref<16x4x16xbf16, #tpu.memory_space<vmem>>, vector<1x4x16xbf16>
    %553 = vector.shape_cast %552 : vector<1x4x16xbf16> to vector<4x16xbf16>
    %cst_192 = arith.constant dense<0.000000e+00> : vector<16x16xf32>
    %554 = tpu.matmul %551, %553, %cst_192 {dimension_numbers = #tpu.dot_dimension_numbers<[1], [0], [0], [1], [0, 0, 1, 1], [], []>} : vector<16x4xbf16>, vector<4x16xbf16>, vector<16x16xf32> -> vector<16x16xf32>
    %555 = arith.addf %521, %554 : vector<16x16xf32>
    %556 = vector.extract_strided_slice %455 {offsets = [0, 24], sizes = [16, 12], strides = [1, 1]} : vector<16x112xbf16> to vector<16x12xbf16>
    %cst_193 = arith.constant dense<0.000000e+00> : vector<16x12xf32>
    %557 = tpu.matmul %488, %556, %cst_193 {dimension_numbers = #tpu.dot_dimension_numbers<[1], [0], [0], [1], [0, 0, 1, 1], [], []>} : vector<16x16xbf16>, vector<16x12xbf16>, vector<16x12xf32> -> vector<16x12xf32>
    %558 = vector.extract_strided_slice %464 {offsets = [0, 24], sizes = [1, 12], strides = [1, 1]} : vector<1x48xf32> to vector<1x12xf32>
    %559 = vector.broadcast %558 : vector<1x12xf32> to vector<16x12xf32>
    %560 = arith.addf %557, %559 : vector<16x12xf32>
    %561 = vector.extract_strided_slice %560 {offsets = [0, 0], sizes = [16, 4], strides = [1, 1]} : vector<16x12xf32> to vector<16x4xf32>
    %cst_194 = arith.constant 5.000000e-01 : f32
    %562 = vector.broadcast %cst_194 : f32 to vector<16x4xf32>
    %563 = arith.mulf %561, %562 : vector<16x4xf32>
    %564 = vector.extract_strided_slice %560 {offsets = [0, 4], sizes = [16, 4], strides = [1, 1]} : vector<16x12xf32> to vector<16x4xf32>
    %565 = vector.extract_strided_slice %560 {offsets = [0, 8], sizes = [16, 4], strides = [1, 1]} : vector<16x12xf32> to vector<16x4xf32>
    %c10 = arith.constant 10 : index
    %c0_195 = arith.constant 0 : index
    %c0_196 = arith.constant 0 : index
    %566 = vector.load %arg9[%c10, %c0_195, %c0_196] : memref<16x16x16xf32, #tpu.memory_space<vmem>>, vector<1x16x16xf32>
    %567 = vector.shape_cast %566 : vector<1x16x16xf32> to vector<16x16xf32>
    %568 = arith.truncf %563 : vector<16x4xf32> to vector<16x4xbf16>
    %569 = arith.truncf %564 : vector<16x4xf32> to vector<16x4xbf16>
    %570 = arith.truncf %565 : vector<16x4xf32> to vector<16x4xbf16>
    "tpu.trace_start"() <{level = 10 : i32, message = "nd,md->nm"}> : () -> ()
    %cst_197 = arith.constant dense<0.000000e+00> : vector<16x16xf32>
    %571 = tpu.matmul %568, %569, %cst_197 {dimension_numbers = #tpu.dot_dimension_numbers<[1], [1], [0], [0], [0, 0, 1, 0], [], []>} : vector<16x4xbf16>, vector<16x4xbf16>, vector<16x16xf32> -> vector<16x16xf32>
    "tpu.trace_stop"() : () -> ()
    %572 = arith.addf %571, %567 : vector<16x16xf32>
    %cst_198 = arith.constant dense<0xFF800000> : vector<16xf32>
    %573 = vector.multi_reduction <maximumf>, %572, %cst_198 [1] : vector<16x16xf32> to vector<16xf32>
    %574 = vector.shape_cast %573 : vector<16xf32> to vector<16x1xf32>
    %575 = vector.broadcast %574 : vector<16x1xf32> to vector<16x16xf32>
    %576 = arith.subf %572, %575 : vector<16x16xf32>
    %577 = math.exp %576 : vector<16x16xf32>
    %cst_199 = arith.constant dense<0.000000e+00> : vector<16xf32>
    %578 = vector.multi_reduction <add>, %577, %cst_199 [1] : vector<16x16xf32> to vector<16xf32>
    %579 = vector.shape_cast %578 : vector<16xf32> to vector<16x1xf32>
    %580 = tpu.reciprocal %579 {approx = true} : vector<16x1xf32> -> vector<16x1xf32>
    %581 = vector.broadcast %580 : vector<16x1xf32> to vector<16x16xf32>
    %582 = arith.mulf %577, %581 : vector<16x16xf32>
    %583 = arith.truncf %582 : vector<16x16xf32> to vector<16x16xbf16>
    %cst_200 = arith.constant dense<0.000000e+00> : vector<16x4xf32>
    %584 = tpu.matmul %583, %570, %cst_200 {dimension_numbers = #tpu.dot_dimension_numbers<[1], [0], [0], [1], [0, 0, 1, 1], [], []>} : vector<16x16xbf16>, vector<16x4xbf16>, vector<16x4xf32> -> vector<16x4xf32>
    %585 = arith.truncf %584 : vector<16x4xf32> to vector<16x4xbf16>
    %c10_201 = arith.constant 10 : index
    %c0_202 = arith.constant 0 : index
    %c0_203 = arith.constant 0 : index
    %586 = vector.load %arg8[%c10_201, %c0_202, %c0_203] : memref<16x4x16xbf16, #tpu.memory_space<vmem>>, vector<1x4x16xbf16>
    %587 = vector.shape_cast %586 : vector<1x4x16xbf16> to vector<4x16xbf16>
    %cst_204 = arith.constant dense<0.000000e+00> : vector<16x16xf32>
    %588 = tpu.matmul %585, %587, %cst_204 {dimension_numbers = #tpu.dot_dimension_numbers<[1], [0], [0], [1], [0, 0, 1, 1], [], []>} : vector<16x4xbf16>, vector<4x16xbf16>, vector<16x16xf32> -> vector<16x16xf32>
    %589 = arith.addf %555, %588 : vector<16x16xf32>
    %590 = vector.extract_strided_slice %455 {offsets = [0, 36], sizes = [16, 12], strides = [1, 1]} : vector<16x112xbf16> to vector<16x12xbf16>
    %cst_205 = arith.constant dense<0.000000e+00> : vector<16x12xf32>
    %591 = tpu.matmul %488, %590, %cst_205 {dimension_numbers = #tpu.dot_dimension_numbers<[1], [0], [0], [1], [0, 0, 1, 1], [], []>} : vector<16x16xbf16>, vector<16x12xbf16>, vector<16x12xf32> -> vector<16x12xf32>
    %592 = vector.extract_strided_slice %464 {offsets = [0, 36], sizes = [1, 12], strides = [1, 1]} : vector<1x48xf32> to vector<1x12xf32>
    %593 = vector.broadcast %592 : vector<1x12xf32> to vector<16x12xf32>
    %594 = arith.addf %591, %593 : vector<16x12xf32>
    %595 = vector.extract_strided_slice %594 {offsets = [0, 0], sizes = [16, 4], strides = [1, 1]} : vector<16x12xf32> to vector<16x4xf32>
    %cst_206 = arith.constant 5.000000e-01 : f32
    %596 = vector.broadcast %cst_206 : f32 to vector<16x4xf32>
    %597 = arith.mulf %595, %596 : vector<16x4xf32>
    %598 = vector.extract_strided_slice %594 {offsets = [0, 4], sizes = [16, 4], strides = [1, 1]} : vector<16x12xf32> to vector<16x4xf32>
    %599 = vector.extract_strided_slice %594 {offsets = [0, 8], sizes = [16, 4], strides = [1, 1]} : vector<16x12xf32> to vector<16x4xf32>
    %c11 = arith.constant 11 : index
    %c0_207 = arith.constant 0 : index
    %c0_208 = arith.constant 0 : index
    %600 = vector.load %arg9[%c11, %c0_207, %c0_208] : memref<16x16x16xf32, #tpu.memory_space<vmem>>, vector<1x16x16xf32>
    %601 = vector.shape_cast %600 : vector<1x16x16xf32> to vector<16x16xf32>
    %602 = arith.truncf %597 : vector<16x4xf32> to vector<16x4xbf16>
    %603 = arith.truncf %598 : vector<16x4xf32> to vector<16x4xbf16>
    %604 = arith.truncf %599 : vector<16x4xf32> to vector<16x4xbf16>
    "tpu.trace_start"() <{level = 10 : i32, message = "nd,md->nm"}> : () -> ()
    %cst_209 = arith.constant dense<0.000000e+00> : vector<16x16xf32>
    %605 = tpu.matmul %602, %603, %cst_209 {dimension_numbers = #tpu.dot_dimension_numbers<[1], [1], [0], [0], [0, 0, 1, 0], [], []>} : vector<16x4xbf16>, vector<16x4xbf16>, vector<16x16xf32> -> vector<16x16xf32>
    "tpu.trace_stop"() : () -> ()
    %606 = arith.addf %605, %601 : vector<16x16xf32>
    %cst_210 = arith.constant dense<0xFF800000> : vector<16xf32>
    %607 = vector.multi_reduction <maximumf>, %606, %cst_210 [1] : vector<16x16xf32> to vector<16xf32>
    %608 = vector.shape_cast %607 : vector<16xf32> to vector<16x1xf32>
    %609 = vector.broadcast %608 : vector<16x1xf32> to vector<16x16xf32>
    %610 = arith.subf %606, %609 : vector<16x16xf32>
    %611 = math.exp %610 : vector<16x16xf32>
    %cst_211 = arith.constant dense<0.000000e+00> : vector<16xf32>
    %612 = vector.multi_reduction <add>, %611, %cst_211 [1] : vector<16x16xf32> to vector<16xf32>
    %613 = vector.shape_cast %612 : vector<16xf32> to vector<16x1xf32>
    %614 = tpu.reciprocal %613 {approx = true} : vector<16x1xf32> -> vector<16x1xf32>
    %615 = vector.broadcast %614 : vector<16x1xf32> to vector<16x16xf32>
    %616 = arith.mulf %611, %615 : vector<16x16xf32>
    %617 = arith.truncf %616 : vector<16x16xf32> to vector<16x16xbf16>
    %cst_212 = arith.constant dense<0.000000e+00> : vector<16x4xf32>
    %618 = tpu.matmul %617, %604, %cst_212 {dimension_numbers = #tpu.dot_dimension_numbers<[1], [0], [0], [1], [0, 0, 1, 1], [], []>} : vector<16x16xbf16>, vector<16x4xbf16>, vector<16x4xf32> -> vector<16x4xf32>
    %619 = arith.truncf %618 : vector<16x4xf32> to vector<16x4xbf16>
    %c11_213 = arith.constant 11 : index
    %c0_214 = arith.constant 0 : index
    %c0_215 = arith.constant 0 : index
    %620 = vector.load %arg8[%c11_213, %c0_214, %c0_215] : memref<16x4x16xbf16, #tpu.memory_space<vmem>>, vector<1x4x16xbf16>
    %621 = vector.shape_cast %620 : vector<1x4x16xbf16> to vector<4x16xbf16>
    %cst_216 = arith.constant dense<0.000000e+00> : vector<16x16xf32>
    %622 = tpu.matmul %619, %621, %cst_216 {dimension_numbers = #tpu.dot_dimension_numbers<[1], [0], [0], [1], [0, 0, 1, 1], [], []>} : vector<16x4xbf16>, vector<4x16xbf16>, vector<16x16xf32> -> vector<16x16xf32>
    %623 = arith.addf %589, %622 : vector<16x16xf32>
    %624 = arith.addf %453, %623 : vector<16x16xf32>
    %625 = vector.broadcast %465 : vector<1x16xf32> to vector<16x16xf32>
    %626 = arith.addf %624, %625 : vector<16x16xf32>
    %cst_217 = arith.constant dense<0.000000e+00> : vector<16xf32>
    %627 = vector.multi_reduction <add>, %626, %cst_217 [1] : vector<16x16xf32> to vector<16xf32>
    %628 = vector.shape_cast %627 : vector<16xf32> to vector<16x1xf32>
    %cst_218 = arith.constant 1.600000e+01 : f32
    %629 = vector.broadcast %cst_218 : f32 to vector<16x1xf32>
    %630 = arith.divf %628, %629 : vector<16x1xf32>
    %631 = vector.broadcast %630 : vector<16x1xf32> to vector<16x16xf32>
    %632 = arith.subf %626, %631 : vector<16x16xf32>
    %633 = arith.mulf %632, %632 : vector<16x16xf32>
    %cst_219 = arith.constant dense<0.000000e+00> : vector<16xf32>
    %634 = vector.multi_reduction <add>, %633, %cst_219 [1] : vector<16x16xf32> to vector<16xf32>
    %635 = vector.shape_cast %634 : vector<16xf32> to vector<16x1xf32>
    %cst_220 = arith.constant 1.600000e+01 : f32
    %636 = vector.broadcast %cst_220 : f32 to vector<16x1xf32>
    %637 = arith.divf %635, %636 : vector<16x1xf32>
    %cst_221 = arith.constant 9.99999974E-6 : f32
    %638 = vector.broadcast %cst_221 : f32 to vector<16x1xf32>
    %639 = arith.addf %637, %638 : vector<16x1xf32>
    %640 = math.rsqrt %639 : vector<16x1xf32>
    %641 = vector.broadcast %640 : vector<16x1xf32> to vector<16x16xf32>
    %642 = arith.mulf %632, %641 : vector<16x16xf32>
    %643 = vector.broadcast %462 : vector<1x16xf32> to vector<16x16xf32>
    %644 = arith.mulf %642, %643 : vector<16x16xf32>
    %645 = vector.broadcast %463 : vector<1x16xf32> to vector<16x16xf32>
    %646 = arith.addf %644, %645 : vector<16x16xf32>
    %647 = vector.extract_strided_slice %455 {offsets = [0, 48], sizes = [16, 64], strides = [1, 1]} : vector<16x112xbf16> to vector<16x64xbf16>
    %648 = arith.truncf %646 : vector<16x16xf32> to vector<16x16xbf16>
    %cst_222 = arith.constant dense<0.000000e+00> : vector<16x64xf32>
    %649 = tpu.matmul %648, %647, %cst_222 {dimension_numbers = #tpu.dot_dimension_numbers<[1], [0], [0], [1], [0, 0, 1, 1], [], []>} : vector<16x16xbf16>, vector<16x64xbf16>, vector<16x64xf32> -> vector<16x64xf32>
    %650 = vector.broadcast %466 : vector<1x64xf32> to vector<16x64xf32>
    %651 = arith.addf %649, %650 : vector<16x64xf32>
    %cst_223 = arith.constant 5.000000e-01 : f32
    %652 = vector.broadcast %cst_223 : f32 to vector<16x64xf32>
    %653 = arith.mulf %652, %651 : vector<16x64xf32>
    %cst_224 = arith.constant 0.707106769 : f32
    %654 = vector.broadcast %cst_224 : f32 to vector<16x64xf32>
    %655 = arith.mulf %651, %654 : vector<16x64xf32>
    %656 = math.erf %655 : vector<16x64xf32>
    %cst_225 = arith.constant 1.000000e+00 : f32
    %657 = vector.broadcast %cst_225 : f32 to vector<16x64xf32>
    %658 = arith.addf %657, %656 : vector<16x64xf32>
    %659 = arith.mulf %653, %658 : vector<16x64xf32>
    %660 = arith.truncf %659 : vector<16x64xf32> to vector<16x64xbf16>
    %cst_226 = arith.constant dense<0.000000e+00> : vector<16x16xf32>
    %661 = tpu.matmul %660, %459, %cst_226 {dimension_numbers = #tpu.dot_dimension_numbers<[1], [0], [0], [1], [0, 0, 1, 1], [], []>} : vector<16x64xbf16>, vector<64x16xbf16>, vector<16x16xf32> -> vector<16x16xf32>
    %662 = arith.addf %626, %661 : vector<16x16xf32>
    %663 = vector.broadcast %467 : vector<1x16xf32> to vector<16x16xf32>
    %664 = arith.addf %662, %663 : vector<16x16xf32>
    %c3_227 = arith.constant 3 : index
    %c0_228 = arith.constant 0 : index
    %c0_229 = arith.constant 0 : index
    %665 = vector.load %arg5[%c3_227, %c0_228, %c0_229] : memref<4x16x112xbf16, #tpu.memory_space<vmem>>, vector<1x16x112xbf16>
    %666 = vector.shape_cast %665 : vector<1x16x112xbf16> to vector<16x112xbf16>
    %c3_230 = arith.constant 3 : index
    %c0_231 = arith.constant 0 : index
    %c0_232 = arith.constant 0 : index
    %667 = vector.load %arg6[%c3_230, %c0_231, %c0_232] : memref<4x8x64xf32, #tpu.memory_space<vmem>>, vector<1x8x64xf32>
    %668 = vector.shape_cast %667 : vector<1x8x64xf32> to vector<8x64xf32>
    %c3_233 = arith.constant 3 : index
    %c0_234 = arith.constant 0 : index
    %c0_235 = arith.constant 0 : index
    %669 = vector.load %arg7[%c3_233, %c0_234, %c0_235] : memref<4x64x16xbf16, #tpu.memory_space<vmem>>, vector<1x64x16xbf16>
    %670 = vector.shape_cast %669 : vector<1x64x16xbf16> to vector<64x16xbf16>
    %671 = vector.extract_strided_slice %668 {offsets = [0, 0], sizes = [1, 16], strides = [1, 1]} : vector<8x64xf32> to vector<1x16xf32>
    %672 = vector.extract_strided_slice %668 {offsets = [1, 0], sizes = [1, 16], strides = [1, 1]} : vector<8x64xf32> to vector<1x16xf32>
    %673 = vector.extract_strided_slice %668 {offsets = [2, 0], sizes = [1, 16], strides = [1, 1]} : vector<8x64xf32> to vector<1x16xf32>
    %674 = vector.extract_strided_slice %668 {offsets = [3, 0], sizes = [1, 16], strides = [1, 1]} : vector<8x64xf32> to vector<1x16xf32>
    %675 = vector.extract_strided_slice %668 {offsets = [4, 0], sizes = [1, 48], strides = [1, 1]} : vector<8x64xf32> to vector<1x48xf32>
    %676 = vector.extract_strided_slice %668 {offsets = [5, 0], sizes = [1, 16], strides = [1, 1]} : vector<8x64xf32> to vector<1x16xf32>
    %677 = vector.extract_strided_slice %668 {offsets = [6, 0], sizes = [1, 64], strides = [1, 1]} : vector<8x64xf32> to vector<1x64xf32>
    %678 = vector.extract_strided_slice %668 {offsets = [7, 0], sizes = [1, 16], strides = [1, 1]} : vector<8x64xf32> to vector<1x16xf32>
    %cst_236 = arith.constant dense<0.000000e+00> : vector<16xf32>
    %679 = vector.multi_reduction <add>, %664, %cst_236 [1] : vector<16x16xf32> to vector<16xf32>
    %680 = vector.shape_cast %679 : vector<16xf32> to vector<16x1xf32>
    %cst_237 = arith.constant 1.600000e+01 : f32
    %681 = vector.broadcast %cst_237 : f32 to vector<16x1xf32>
    %682 = arith.divf %680, %681 : vector<16x1xf32>
    %683 = vector.broadcast %682 : vector<16x1xf32> to vector<16x16xf32>
    %684 = arith.subf %664, %683 : vector<16x16xf32>
    %685 = arith.mulf %684, %684 : vector<16x16xf32>
    %cst_238 = arith.constant dense<0.000000e+00> : vector<16xf32>
    %686 = vector.multi_reduction <add>, %685, %cst_238 [1] : vector<16x16xf32> to vector<16xf32>
    %687 = vector.shape_cast %686 : vector<16xf32> to vector<16x1xf32>
    %cst_239 = arith.constant 1.600000e+01 : f32
    %688 = vector.broadcast %cst_239 : f32 to vector<16x1xf32>
    %689 = arith.divf %687, %688 : vector<16x1xf32>
    %cst_240 = arith.constant 9.99999974E-6 : f32
    %690 = vector.broadcast %cst_240 : f32 to vector<16x1xf32>
    %691 = arith.addf %689, %690 : vector<16x1xf32>
    %692 = math.rsqrt %691 : vector<16x1xf32>
    %693 = vector.broadcast %692 : vector<16x1xf32> to vector<16x16xf32>
    %694 = arith.mulf %684, %693 : vector<16x16xf32>
    %695 = vector.broadcast %671 : vector<1x16xf32> to vector<16x16xf32>
    %696 = arith.mulf %694, %695 : vector<16x16xf32>
    %697 = vector.broadcast %672 : vector<1x16xf32> to vector<16x16xf32>
    %698 = arith.addf %696, %697 : vector<16x16xf32>
    %699 = arith.truncf %698 : vector<16x16xf32> to vector<16x16xbf16>
    %700 = vector.extract_strided_slice %666 {offsets = [0, 0], sizes = [16, 12], strides = [1, 1]} : vector<16x112xbf16> to vector<16x12xbf16>
    %cst_241 = arith.constant dense<0.000000e+00> : vector<16x12xf32>
    %701 = tpu.matmul %699, %700, %cst_241 {dimension_numbers = #tpu.dot_dimension_numbers<[1], [0], [0], [1], [0, 0, 1, 1], [], []>} : vector<16x16xbf16>, vector<16x12xbf16>, vector<16x12xf32> -> vector<16x12xf32>
    %702 = vector.extract_strided_slice %675 {offsets = [0, 0], sizes = [1, 12], strides = [1, 1]} : vector<1x48xf32> to vector<1x12xf32>
    %703 = vector.broadcast %702 : vector<1x12xf32> to vector<16x12xf32>
    %704 = arith.addf %701, %703 : vector<16x12xf32>
    %705 = vector.extract_strided_slice %704 {offsets = [0, 0], sizes = [16, 4], strides = [1, 1]} : vector<16x12xf32> to vector<16x4xf32>
    %cst_242 = arith.constant 5.000000e-01 : f32
    %706 = vector.broadcast %cst_242 : f32 to vector<16x4xf32>
    %707 = arith.mulf %705, %706 : vector<16x4xf32>
    %708 = vector.extract_strided_slice %704 {offsets = [0, 4], sizes = [16, 4], strides = [1, 1]} : vector<16x12xf32> to vector<16x4xf32>
    %709 = vector.extract_strided_slice %704 {offsets = [0, 8], sizes = [16, 4], strides = [1, 1]} : vector<16x12xf32> to vector<16x4xf32>
    %c12 = arith.constant 12 : index
    %c0_243 = arith.constant 0 : index
    %c0_244 = arith.constant 0 : index
    %710 = vector.load %arg9[%c12, %c0_243, %c0_244] : memref<16x16x16xf32, #tpu.memory_space<vmem>>, vector<1x16x16xf32>
    %711 = vector.shape_cast %710 : vector<1x16x16xf32> to vector<16x16xf32>
    %712 = arith.truncf %707 : vector<16x4xf32> to vector<16x4xbf16>
    %713 = arith.truncf %708 : vector<16x4xf32> to vector<16x4xbf16>
    %714 = arith.truncf %709 : vector<16x4xf32> to vector<16x4xbf16>
    "tpu.trace_start"() <{level = 10 : i32, message = "nd,md->nm"}> : () -> ()
    %cst_245 = arith.constant dense<0.000000e+00> : vector<16x16xf32>
    %715 = tpu.matmul %712, %713, %cst_245 {dimension_numbers = #tpu.dot_dimension_numbers<[1], [1], [0], [0], [0, 0, 1, 0], [], []>} : vector<16x4xbf16>, vector<16x4xbf16>, vector<16x16xf32> -> vector<16x16xf32>
    "tpu.trace_stop"() : () -> ()
    %716 = arith.addf %715, %711 : vector<16x16xf32>
    %cst_246 = arith.constant dense<0xFF800000> : vector<16xf32>
    %717 = vector.multi_reduction <maximumf>, %716, %cst_246 [1] : vector<16x16xf32> to vector<16xf32>
    %718 = vector.shape_cast %717 : vector<16xf32> to vector<16x1xf32>
    %719 = vector.broadcast %718 : vector<16x1xf32> to vector<16x16xf32>
    %720 = arith.subf %716, %719 : vector<16x16xf32>
    %721 = math.exp %720 : vector<16x16xf32>
    %cst_247 = arith.constant dense<0.000000e+00> : vector<16xf32>
    %722 = vector.multi_reduction <add>, %721, %cst_247 [1] : vector<16x16xf32> to vector<16xf32>
    %723 = vector.shape_cast %722 : vector<16xf32> to vector<16x1xf32>
    %724 = tpu.reciprocal %723 {approx = true} : vector<16x1xf32> -> vector<16x1xf32>
    %725 = vector.broadcast %724 : vector<16x1xf32> to vector<16x16xf32>
    %726 = arith.mulf %721, %725 : vector<16x16xf32>
    %727 = arith.truncf %726 : vector<16x16xf32> to vector<16x16xbf16>
    %cst_248 = arith.constant dense<0.000000e+00> : vector<16x4xf32>
    %728 = tpu.matmul %727, %714, %cst_248 {dimension_numbers = #tpu.dot_dimension_numbers<[1], [0], [0], [1], [0, 0, 1, 1], [], []>} : vector<16x16xbf16>, vector<16x4xbf16>, vector<16x4xf32> -> vector<16x4xf32>
    %729 = arith.truncf %728 : vector<16x4xf32> to vector<16x4xbf16>
    %c12_249 = arith.constant 12 : index
    %c0_250 = arith.constant 0 : index
    %c0_251 = arith.constant 0 : index
    %730 = vector.load %arg8[%c12_249, %c0_250, %c0_251] : memref<16x4x16xbf16, #tpu.memory_space<vmem>>, vector<1x4x16xbf16>
    %731 = vector.shape_cast %730 : vector<1x4x16xbf16> to vector<4x16xbf16>
    %cst_252 = arith.constant dense<0.000000e+00> : vector<16x16xf32>
    %732 = tpu.matmul %729, %731, %cst_252 {dimension_numbers = #tpu.dot_dimension_numbers<[1], [0], [0], [1], [0, 0, 1, 1], [], []>} : vector<16x4xbf16>, vector<4x16xbf16>, vector<16x16xf32> -> vector<16x16xf32>
    %733 = vector.extract_strided_slice %666 {offsets = [0, 12], sizes = [16, 12], strides = [1, 1]} : vector<16x112xbf16> to vector<16x12xbf16>
    %cst_253 = arith.constant dense<0.000000e+00> : vector<16x12xf32>
    %734 = tpu.matmul %699, %733, %cst_253 {dimension_numbers = #tpu.dot_dimension_numbers<[1], [0], [0], [1], [0, 0, 1, 1], [], []>} : vector<16x16xbf16>, vector<16x12xbf16>, vector<16x12xf32> -> vector<16x12xf32>
    %735 = vector.extract_strided_slice %675 {offsets = [0, 12], sizes = [1, 12], strides = [1, 1]} : vector<1x48xf32> to vector<1x12xf32>
    %736 = vector.broadcast %735 : vector<1x12xf32> to vector<16x12xf32>
    %737 = arith.addf %734, %736 : vector<16x12xf32>
    %738 = vector.extract_strided_slice %737 {offsets = [0, 0], sizes = [16, 4], strides = [1, 1]} : vector<16x12xf32> to vector<16x4xf32>
    %cst_254 = arith.constant 5.000000e-01 : f32
    %739 = vector.broadcast %cst_254 : f32 to vector<16x4xf32>
    %740 = arith.mulf %738, %739 : vector<16x4xf32>
    %741 = vector.extract_strided_slice %737 {offsets = [0, 4], sizes = [16, 4], strides = [1, 1]} : vector<16x12xf32> to vector<16x4xf32>
    %742 = vector.extract_strided_slice %737 {offsets = [0, 8], sizes = [16, 4], strides = [1, 1]} : vector<16x12xf32> to vector<16x4xf32>
    %c13 = arith.constant 13 : index
    %c0_255 = arith.constant 0 : index
    %c0_256 = arith.constant 0 : index
    %743 = vector.load %arg9[%c13, %c0_255, %c0_256] : memref<16x16x16xf32, #tpu.memory_space<vmem>>, vector<1x16x16xf32>
    %744 = vector.shape_cast %743 : vector<1x16x16xf32> to vector<16x16xf32>
    %745 = arith.truncf %740 : vector<16x4xf32> to vector<16x4xbf16>
    %746 = arith.truncf %741 : vector<16x4xf32> to vector<16x4xbf16>
    %747 = arith.truncf %742 : vector<16x4xf32> to vector<16x4xbf16>
    "tpu.trace_start"() <{level = 10 : i32, message = "nd,md->nm"}> : () -> ()
    %cst_257 = arith.constant dense<0.000000e+00> : vector<16x16xf32>
    %748 = tpu.matmul %745, %746, %cst_257 {dimension_numbers = #tpu.dot_dimension_numbers<[1], [1], [0], [0], [0, 0, 1, 0], [], []>} : vector<16x4xbf16>, vector<16x4xbf16>, vector<16x16xf32> -> vector<16x16xf32>
    "tpu.trace_stop"() : () -> ()
    %749 = arith.addf %748, %744 : vector<16x16xf32>
    %cst_258 = arith.constant dense<0xFF800000> : vector<16xf32>
    %750 = vector.multi_reduction <maximumf>, %749, %cst_258 [1] : vector<16x16xf32> to vector<16xf32>
    %751 = vector.shape_cast %750 : vector<16xf32> to vector<16x1xf32>
    %752 = vector.broadcast %751 : vector<16x1xf32> to vector<16x16xf32>
    %753 = arith.subf %749, %752 : vector<16x16xf32>
    %754 = math.exp %753 : vector<16x16xf32>
    %cst_259 = arith.constant dense<0.000000e+00> : vector<16xf32>
    %755 = vector.multi_reduction <add>, %754, %cst_259 [1] : vector<16x16xf32> to vector<16xf32>
    %756 = vector.shape_cast %755 : vector<16xf32> to vector<16x1xf32>
    %757 = tpu.reciprocal %756 {approx = true} : vector<16x1xf32> -> vector<16x1xf32>
    %758 = vector.broadcast %757 : vector<16x1xf32> to vector<16x16xf32>
    %759 = arith.mulf %754, %758 : vector<16x16xf32>
    %760 = arith.truncf %759 : vector<16x16xf32> to vector<16x16xbf16>
    %cst_260 = arith.constant dense<0.000000e+00> : vector<16x4xf32>
    %761 = tpu.matmul %760, %747, %cst_260 {dimension_numbers = #tpu.dot_dimension_numbers<[1], [0], [0], [1], [0, 0, 1, 1], [], []>} : vector<16x16xbf16>, vector<16x4xbf16>, vector<16x4xf32> -> vector<16x4xf32>
    %762 = arith.truncf %761 : vector<16x4xf32> to vector<16x4xbf16>
    %c13_261 = arith.constant 13 : index
    %c0_262 = arith.constant 0 : index
    %c0_263 = arith.constant 0 : index
    %763 = vector.load %arg8[%c13_261, %c0_262, %c0_263] : memref<16x4x16xbf16, #tpu.memory_space<vmem>>, vector<1x4x16xbf16>
    %764 = vector.shape_cast %763 : vector<1x4x16xbf16> to vector<4x16xbf16>
    %cst_264 = arith.constant dense<0.000000e+00> : vector<16x16xf32>
    %765 = tpu.matmul %762, %764, %cst_264 {dimension_numbers = #tpu.dot_dimension_numbers<[1], [0], [0], [1], [0, 0, 1, 1], [], []>} : vector<16x4xbf16>, vector<4x16xbf16>, vector<16x16xf32> -> vector<16x16xf32>
    %766 = arith.addf %732, %765 : vector<16x16xf32>
    %767 = vector.extract_strided_slice %666 {offsets = [0, 24], sizes = [16, 12], strides = [1, 1]} : vector<16x112xbf16> to vector<16x12xbf16>
    %cst_265 = arith.constant dense<0.000000e+00> : vector<16x12xf32>
    %768 = tpu.matmul %699, %767, %cst_265 {dimension_numbers = #tpu.dot_dimension_numbers<[1], [0], [0], [1], [0, 0, 1, 1], [], []>} : vector<16x16xbf16>, vector<16x12xbf16>, vector<16x12xf32> -> vector<16x12xf32>
    %769 = vector.extract_strided_slice %675 {offsets = [0, 24], sizes = [1, 12], strides = [1, 1]} : vector<1x48xf32> to vector<1x12xf32>
    %770 = vector.broadcast %769 : vector<1x12xf32> to vector<16x12xf32>
    %771 = arith.addf %768, %770 : vector<16x12xf32>
    %772 = vector.extract_strided_slice %771 {offsets = [0, 0], sizes = [16, 4], strides = [1, 1]} : vector<16x12xf32> to vector<16x4xf32>
    %cst_266 = arith.constant 5.000000e-01 : f32
    %773 = vector.broadcast %cst_266 : f32 to vector<16x4xf32>
    %774 = arith.mulf %772, %773 : vector<16x4xf32>
    %775 = vector.extract_strided_slice %771 {offsets = [0, 4], sizes = [16, 4], strides = [1, 1]} : vector<16x12xf32> to vector<16x4xf32>
    %776 = vector.extract_strided_slice %771 {offsets = [0, 8], sizes = [16, 4], strides = [1, 1]} : vector<16x12xf32> to vector<16x4xf32>
    %c14 = arith.constant 14 : index
    %c0_267 = arith.constant 0 : index
    %c0_268 = arith.constant 0 : index
    %777 = vector.load %arg9[%c14, %c0_267, %c0_268] : memref<16x16x16xf32, #tpu.memory_space<vmem>>, vector<1x16x16xf32>
    %778 = vector.shape_cast %777 : vector<1x16x16xf32> to vector<16x16xf32>
    %779 = arith.truncf %774 : vector<16x4xf32> to vector<16x4xbf16>
    %780 = arith.truncf %775 : vector<16x4xf32> to vector<16x4xbf16>
    %781 = arith.truncf %776 : vector<16x4xf32> to vector<16x4xbf16>
    "tpu.trace_start"() <{level = 10 : i32, message = "nd,md->nm"}> : () -> ()
    %cst_269 = arith.constant dense<0.000000e+00> : vector<16x16xf32>
    %782 = tpu.matmul %779, %780, %cst_269 {dimension_numbers = #tpu.dot_dimension_numbers<[1], [1], [0], [0], [0, 0, 1, 0], [], []>} : vector<16x4xbf16>, vector<16x4xbf16>, vector<16x16xf32> -> vector<16x16xf32>
    "tpu.trace_stop"() : () -> ()
    %783 = arith.addf %782, %778 : vector<16x16xf32>
    %cst_270 = arith.constant dense<0xFF800000> : vector<16xf32>
    %784 = vector.multi_reduction <maximumf>, %783, %cst_270 [1] : vector<16x16xf32> to vector<16xf32>
    %785 = vector.shape_cast %784 : vector<16xf32> to vector<16x1xf32>
    %786 = vector.broadcast %785 : vector<16x1xf32> to vector<16x16xf32>
    %787 = arith.subf %783, %786 : vector<16x16xf32>
    %788 = math.exp %787 : vector<16x16xf32>
    %cst_271 = arith.constant dense<0.000000e+00> : vector<16xf32>
    %789 = vector.multi_reduction <add>, %788, %cst_271 [1] : vector<16x16xf32> to vector<16xf32>
    %790 = vector.shape_cast %789 : vector<16xf32> to vector<16x1xf32>
    %791 = tpu.reciprocal %790 {approx = true} : vector<16x1xf32> -> vector<16x1xf32>
    %792 = vector.broadcast %791 : vector<16x1xf32> to vector<16x16xf32>
    %793 = arith.mulf %788, %792 : vector<16x16xf32>
    %794 = arith.truncf %793 : vector<16x16xf32> to vector<16x16xbf16>
    %cst_272 = arith.constant dense<0.000000e+00> : vector<16x4xf32>
    %795 = tpu.matmul %794, %781, %cst_272 {dimension_numbers = #tpu.dot_dimension_numbers<[1], [0], [0], [1], [0, 0, 1, 1], [], []>} : vector<16x16xbf16>, vector<16x4xbf16>, vector<16x4xf32> -> vector<16x4xf32>
    %796 = arith.truncf %795 : vector<16x4xf32> to vector<16x4xbf16>
    %c14_273 = arith.constant 14 : index
    %c0_274 = arith.constant 0 : index
    %c0_275 = arith.constant 0 : index
    %797 = vector.load %arg8[%c14_273, %c0_274, %c0_275] : memref<16x4x16xbf16, #tpu.memory_space<vmem>>, vector<1x4x16xbf16>
    %798 = vector.shape_cast %797 : vector<1x4x16xbf16> to vector<4x16xbf16>
    %cst_276 = arith.constant dense<0.000000e+00> : vector<16x16xf32>
    %799 = tpu.matmul %796, %798, %cst_276 {dimension_numbers = #tpu.dot_dimension_numbers<[1], [0], [0], [1], [0, 0, 1, 1], [], []>} : vector<16x4xbf16>, vector<4x16xbf16>, vector<16x16xf32> -> vector<16x16xf32>
    %800 = arith.addf %766, %799 : vector<16x16xf32>
    %801 = vector.extract_strided_slice %666 {offsets = [0, 36], sizes = [16, 12], strides = [1, 1]} : vector<16x112xbf16> to vector<16x12xbf16>
    %cst_277 = arith.constant dense<0.000000e+00> : vector<16x12xf32>
    %802 = tpu.matmul %699, %801, %cst_277 {dimension_numbers = #tpu.dot_dimension_numbers<[1], [0], [0], [1], [0, 0, 1, 1], [], []>} : vector<16x16xbf16>, vector<16x12xbf16>, vector<16x12xf32> -> vector<16x12xf32>
    %803 = vector.extract_strided_slice %675 {offsets = [0, 36], sizes = [1, 12], strides = [1, 1]} : vector<1x48xf32> to vector<1x12xf32>
    %804 = vector.broadcast %803 : vector<1x12xf32> to vector<16x12xf32>
    %805 = arith.addf %802, %804 : vector<16x12xf32>
    %806 = vector.extract_strided_slice %805 {offsets = [0, 0], sizes = [16, 4], strides = [1, 1]} : vector<16x12xf32> to vector<16x4xf32>
    %cst_278 = arith.constant 5.000000e-01 : f32
    %807 = vector.broadcast %cst_278 : f32 to vector<16x4xf32>
    %808 = arith.mulf %806, %807 : vector<16x4xf32>
    %809 = vector.extract_strided_slice %805 {offsets = [0, 4], sizes = [16, 4], strides = [1, 1]} : vector<16x12xf32> to vector<16x4xf32>
    %810 = vector.extract_strided_slice %805 {offsets = [0, 8], sizes = [16, 4], strides = [1, 1]} : vector<16x12xf32> to vector<16x4xf32>
    %c15 = arith.constant 15 : index
    %c0_279 = arith.constant 0 : index
    %c0_280 = arith.constant 0 : index
    %811 = vector.load %arg9[%c15, %c0_279, %c0_280] : memref<16x16x16xf32, #tpu.memory_space<vmem>>, vector<1x16x16xf32>
    %812 = vector.shape_cast %811 : vector<1x16x16xf32> to vector<16x16xf32>
    %813 = arith.truncf %808 : vector<16x4xf32> to vector<16x4xbf16>
    %814 = arith.truncf %809 : vector<16x4xf32> to vector<16x4xbf16>
    %815 = arith.truncf %810 : vector<16x4xf32> to vector<16x4xbf16>
    "tpu.trace_start"() <{level = 10 : i32, message = "nd,md->nm"}> : () -> ()
    %cst_281 = arith.constant dense<0.000000e+00> : vector<16x16xf32>
    %816 = tpu.matmul %813, %814, %cst_281 {dimension_numbers = #tpu.dot_dimension_numbers<[1], [1], [0], [0], [0, 0, 1, 0], [], []>} : vector<16x4xbf16>, vector<16x4xbf16>, vector<16x16xf32> -> vector<16x16xf32>
    "tpu.trace_stop"() : () -> ()
    %817 = arith.addf %816, %812 : vector<16x16xf32>
    %cst_282 = arith.constant dense<0xFF800000> : vector<16xf32>
    %818 = vector.multi_reduction <maximumf>, %817, %cst_282 [1] : vector<16x16xf32> to vector<16xf32>
    %819 = vector.shape_cast %818 : vector<16xf32> to vector<16x1xf32>
    %820 = vector.broadcast %819 : vector<16x1xf32> to vector<16x16xf32>
    %821 = arith.subf %817, %820 : vector<16x16xf32>
    %822 = math.exp %821 : vector<16x16xf32>
    %cst_283 = arith.constant dense<0.000000e+00> : vector<16xf32>
    %823 = vector.multi_reduction <add>, %822, %cst_283 [1] : vector<16x16xf32> to vector<16xf32>
    %824 = vector.shape_cast %823 : vector<16xf32> to vector<16x1xf32>
    %825 = tpu.reciprocal %824 {approx = true} : vector<16x1xf32> -> vector<16x1xf32>
    %826 = vector.broadcast %825 : vector<16x1xf32> to vector<16x16xf32>
    %827 = arith.mulf %822, %826 : vector<16x16xf32>
    %828 = arith.truncf %827 : vector<16x16xf32> to vector<16x16xbf16>
    %cst_284 = arith.constant dense<0.000000e+00> : vector<16x4xf32>
    %829 = tpu.matmul %828, %815, %cst_284 {dimension_numbers = #tpu.dot_dimension_numbers<[1], [0], [0], [1], [0, 0, 1, 1], [], []>} : vector<16x16xbf16>, vector<16x4xbf16>, vector<16x4xf32> -> vector<16x4xf32>
    %830 = arith.truncf %829 : vector<16x4xf32> to vector<16x4xbf16>
    %c15_285 = arith.constant 15 : index
    %c0_286 = arith.constant 0 : index
    %c0_287 = arith.constant 0 : index
    %831 = vector.load %arg8[%c15_285, %c0_286, %c0_287] : memref<16x4x16xbf16, #tpu.memory_space<vmem>>, vector<1x4x16xbf16>
    %832 = vector.shape_cast %831 : vector<1x4x16xbf16> to vector<4x16xbf16>
    %cst_288 = arith.constant dense<0.000000e+00> : vector<16x16xf32>
    %833 = tpu.matmul %830, %832, %cst_288 {dimension_numbers = #tpu.dot_dimension_numbers<[1], [0], [0], [1], [0, 0, 1, 1], [], []>} : vector<16x4xbf16>, vector<4x16xbf16>, vector<16x16xf32> -> vector<16x16xf32>
    %834 = arith.addf %800, %833 : vector<16x16xf32>
    %835 = arith.addf %664, %834 : vector<16x16xf32>
    %836 = vector.broadcast %676 : vector<1x16xf32> to vector<16x16xf32>
    %837 = arith.addf %835, %836 : vector<16x16xf32>
    %cst_289 = arith.constant dense<0.000000e+00> : vector<16xf32>
    %838 = vector.multi_reduction <add>, %837, %cst_289 [1] : vector<16x16xf32> to vector<16xf32>
    %839 = vector.shape_cast %838 : vector<16xf32> to vector<16x1xf32>
    %cst_290 = arith.constant 1.600000e+01 : f32
    %840 = vector.broadcast %cst_290 : f32 to vector<16x1xf32>
    %841 = arith.divf %839, %840 : vector<16x1xf32>
    %842 = vector.broadcast %841 : vector<16x1xf32> to vector<16x16xf32>
    %843 = arith.subf %837, %842 : vector<16x16xf32>
    %844 = arith.mulf %843, %843 : vector<16x16xf32>
    %cst_291 = arith.constant dense<0.000000e+00> : vector<16xf32>
    %845 = vector.multi_reduction <add>, %844, %cst_291 [1] : vector<16x16xf32> to vector<16xf32>
    %846 = vector.shape_cast %845 : vector<16xf32> to vector<16x1xf32>
    %cst_292 = arith.constant 1.600000e+01 : f32
    %847 = vector.broadcast %cst_292 : f32 to vector<16x1xf32>
    %848 = arith.divf %846, %847 : vector<16x1xf32>
    %cst_293 = arith.constant 9.99999974E-6 : f32
    %849 = vector.broadcast %cst_293 : f32 to vector<16x1xf32>
    %850 = arith.addf %848, %849 : vector<16x1xf32>
    %851 = math.rsqrt %850 : vector<16x1xf32>
    %852 = vector.broadcast %851 : vector<16x1xf32> to vector<16x16xf32>
    %853 = arith.mulf %843, %852 : vector<16x16xf32>
    %854 = vector.broadcast %673 : vector<1x16xf32> to vector<16x16xf32>
    %855 = arith.mulf %853, %854 : vector<16x16xf32>
    %856 = vector.broadcast %674 : vector<1x16xf32> to vector<16x16xf32>
    %857 = arith.addf %855, %856 : vector<16x16xf32>
    %858 = vector.extract_strided_slice %666 {offsets = [0, 48], sizes = [16, 64], strides = [1, 1]} : vector<16x112xbf16> to vector<16x64xbf16>
    %859 = arith.truncf %857 : vector<16x16xf32> to vector<16x16xbf16>
    %cst_294 = arith.constant dense<0.000000e+00> : vector<16x64xf32>
    %860 = tpu.matmul %859, %858, %cst_294 {dimension_numbers = #tpu.dot_dimension_numbers<[1], [0], [0], [1], [0, 0, 1, 1], [], []>} : vector<16x16xbf16>, vector<16x64xbf16>, vector<16x64xf32> -> vector<16x64xf32>
    %861 = vector.broadcast %677 : vector<1x64xf32> to vector<16x64xf32>
    %862 = arith.addf %860, %861 : vector<16x64xf32>
    %cst_295 = arith.constant 5.000000e-01 : f32
    %863 = vector.broadcast %cst_295 : f32 to vector<16x64xf32>
    %864 = arith.mulf %863, %862 : vector<16x64xf32>
    %cst_296 = arith.constant 0.707106769 : f32
    %865 = vector.broadcast %cst_296 : f32 to vector<16x64xf32>
    %866 = arith.mulf %862, %865 : vector<16x64xf32>
    %867 = math.erf %866 : vector<16x64xf32>
    %cst_297 = arith.constant 1.000000e+00 : f32
    %868 = vector.broadcast %cst_297 : f32 to vector<16x64xf32>
    %869 = arith.addf %868, %867 : vector<16x64xf32>
    %870 = arith.mulf %864, %869 : vector<16x64xf32>
    %871 = arith.truncf %870 : vector<16x64xf32> to vector<16x64xbf16>
    %cst_298 = arith.constant dense<0.000000e+00> : vector<16x16xf32>
    %872 = tpu.matmul %871, %670, %cst_298 {dimension_numbers = #tpu.dot_dimension_numbers<[1], [0], [0], [1], [0, 0, 1, 1], [], []>} : vector<16x64xbf16>, vector<64x16xbf16>, vector<16x16xf32> -> vector<16x16xf32>
    %873 = arith.addf %837, %872 : vector<16x16xf32>
    %874 = vector.broadcast %678 : vector<1x16xf32> to vector<16x16xf32>
    %875 = arith.addf %873, %874 : vector<16x16xf32>
    %c0_299 = arith.constant 0 : index
    %c0_300 = arith.constant 0 : index
    %c0_301 = arith.constant 0 : index
    %876 = vector.load %arg4[%c0_299, %c0_300, %c0_301] : memref<4x4x16xf32, #tpu.memory_space<vmem>>, vector<1x4x16xf32>
    %877 = vector.shape_cast %876 : vector<1x4x16xf32> to vector<4x16xf32>
    %cst_302 = arith.constant dense<0.000000e+00> : vector<4x16xf32>
    %878 = tpu.matmul %877, %875, %cst_302 {dimension_numbers = #tpu.dot_dimension_numbers<[1], [0], [0], [1], [0, 0, 1, 1], [], []>} : vector<4x16xf32>, vector<16x16xf32>, vector<4x16xf32> -> vector<4x16xf32>
    %c1_303 = arith.constant 1 : index
    %c0_304 = arith.constant 0 : index
    %c0_305 = arith.constant 0 : index
    %879 = vector.load %arg4[%c1_303, %c0_304, %c0_305] : memref<4x4x16xf32, #tpu.memory_space<vmem>>, vector<1x4x16xf32>
    %880 = vector.shape_cast %879 : vector<1x4x16xf32> to vector<4x16xf32>
    %cst_306 = arith.constant dense<0.000000e+00> : vector<4x16xf32>
    %881 = tpu.matmul %880, %875, %cst_306 {dimension_numbers = #tpu.dot_dimension_numbers<[1], [0], [0], [1], [0, 0, 1, 1], [], []>} : vector<4x16xf32>, vector<16x16xf32>, vector<4x16xf32> -> vector<4x16xf32>
    %c2_307 = arith.constant 2 : index
    %c0_308 = arith.constant 0 : index
    %c0_309 = arith.constant 0 : index
    %882 = vector.load %arg4[%c2_307, %c0_308, %c0_309] : memref<4x4x16xf32, #tpu.memory_space<vmem>>, vector<1x4x16xf32>
    %883 = vector.shape_cast %882 : vector<1x4x16xf32> to vector<4x16xf32>
    %cst_310 = arith.constant dense<0.000000e+00> : vector<4x16xf32>
    %884 = tpu.matmul %883, %875, %cst_310 {dimension_numbers = #tpu.dot_dimension_numbers<[1], [0], [0], [1], [0, 0, 1, 1], [], []>} : vector<4x16xf32>, vector<16x16xf32>, vector<4x16xf32> -> vector<4x16xf32>
    %c3_311 = arith.constant 3 : index
    %c0_312 = arith.constant 0 : index
    %c0_313 = arith.constant 0 : index
    %885 = vector.load %arg4[%c3_311, %c0_312, %c0_313] : memref<4x4x16xf32, #tpu.memory_space<vmem>>, vector<1x4x16xf32>
    %886 = vector.shape_cast %885 : vector<1x4x16xf32> to vector<4x16xf32>
    %cst_314 = arith.constant dense<0.000000e+00> : vector<4x16xf32>
    %887 = tpu.matmul %886, %875, %cst_314 {dimension_numbers = #tpu.dot_dimension_numbers<[1], [0], [0], [1], [0, 0, 1, 1], [], []>} : vector<4x16xf32>, vector<16x16xf32>, vector<4x16xf32> -> vector<4x16xf32>
    %888 = vector.extract_strided_slice %1 {offsets = [19, 0], sizes = [1, 64], strides = [1, 1]} : vector<24x64xf32> to vector<1x64xf32>
    %889 = vector.extract_strided_slice %1 {offsets = [20, 0], sizes = [1, 64], strides = [1, 1]} : vector<24x64xf32> to vector<1x64xf32>
    %cst_315 = arith.constant dense<0.000000e+00> : vector<4xf32>
    %890 = vector.multi_reduction <add>, %878, %cst_315 [1] : vector<4x16xf32> to vector<4xf32>
    %891 = vector.shape_cast %890 : vector<4xf32> to vector<4x1xf32>
    %cst_316 = arith.constant 0.000000e+00 : f32
    %892 = vector.broadcast %cst_316 : f32 to vector<4x1xf32>
    %893 = arith.addf %892, %891 : vector<4x1xf32>
    %cst_317 = arith.constant dense<0.000000e+00> : vector<4xf32>
    %894 = vector.multi_reduction <add>, %881, %cst_317 [1] : vector<4x16xf32> to vector<4xf32>
    %895 = vector.shape_cast %894 : vector<4xf32> to vector<4x1xf32>
    %896 = arith.addf %893, %895 : vector<4x1xf32>
    %cst_318 = arith.constant dense<0.000000e+00> : vector<4xf32>
    %897 = vector.multi_reduction <add>, %884, %cst_318 [1] : vector<4x16xf32> to vector<4xf32>
    %898 = vector.shape_cast %897 : vector<4xf32> to vector<4x1xf32>
    %899 = arith.addf %896, %898 : vector<4x1xf32>
    %cst_319 = arith.constant dense<0.000000e+00> : vector<4xf32>
    %900 = vector.multi_reduction <add>, %887, %cst_319 [1] : vector<4x16xf32> to vector<4xf32>
    %901 = vector.shape_cast %900 : vector<4xf32> to vector<4x1xf32>
    %902 = arith.addf %899, %901 : vector<4x1xf32>
    %cst_320 = arith.constant 6.400000e+01 : f32
    %903 = vector.broadcast %cst_320 : f32 to vector<4x1xf32>
    %904 = arith.divf %902, %903 : vector<4x1xf32>
    %905 = vector.broadcast %904 : vector<4x1xf32> to vector<4x16xf32>
    %906 = arith.subf %878, %905 : vector<4x16xf32>
    %907 = arith.mulf %906, %906 : vector<4x16xf32>
    %cst_321 = arith.constant dense<0.000000e+00> : vector<4xf32>
    %908 = vector.multi_reduction <add>, %907, %cst_321 [1] : vector<4x16xf32> to vector<4xf32>
    %909 = vector.shape_cast %908 : vector<4xf32> to vector<4x1xf32>
    %cst_322 = arith.constant 0.000000e+00 : f32
    %910 = vector.broadcast %cst_322 : f32 to vector<4x1xf32>
    %911 = arith.addf %910, %909 : vector<4x1xf32>
    %912 = vector.broadcast %904 : vector<4x1xf32> to vector<4x16xf32>
    %913 = arith.subf %881, %912 : vector<4x16xf32>
    %914 = arith.mulf %913, %913 : vector<4x16xf32>
    %cst_323 = arith.constant dense<0.000000e+00> : vector<4xf32>
    %915 = vector.multi_reduction <add>, %914, %cst_323 [1] : vector<4x16xf32> to vector<4xf32>
    %916 = vector.shape_cast %915 : vector<4xf32> to vector<4x1xf32>
    %917 = arith.addf %911, %916 : vector<4x1xf32>
    %918 = vector.broadcast %904 : vector<4x1xf32> to vector<4x16xf32>
    %919 = arith.subf %884, %918 : vector<4x16xf32>
    %920 = arith.mulf %919, %919 : vector<4x16xf32>
    %cst_324 = arith.constant dense<0.000000e+00> : vector<4xf32>
    %921 = vector.multi_reduction <add>, %920, %cst_324 [1] : vector<4x16xf32> to vector<4xf32>
    %922 = vector.shape_cast %921 : vector<4xf32> to vector<4x1xf32>
    %923 = arith.addf %917, %922 : vector<4x1xf32>
    %924 = vector.broadcast %904 : vector<4x1xf32> to vector<4x16xf32>
    %925 = arith.subf %887, %924 : vector<4x16xf32>
    %926 = arith.mulf %925, %925 : vector<4x16xf32>
    %cst_325 = arith.constant dense<0.000000e+00> : vector<4xf32>
    %927 = vector.multi_reduction <add>, %926, %cst_325 [1] : vector<4x16xf32> to vector<4xf32>
    %928 = vector.shape_cast %927 : vector<4xf32> to vector<4x1xf32>
    %929 = arith.addf %923, %928 : vector<4x1xf32>
    %cst_326 = arith.constant 6.400000e+01 : f32
    %930 = vector.broadcast %cst_326 : f32 to vector<4x1xf32>
    %931 = arith.divf %929, %930 : vector<4x1xf32>
    %cst_327 = arith.constant 9.99999974E-6 : f32
    %932 = vector.broadcast %cst_327 : f32 to vector<4x1xf32>
    %933 = arith.addf %931, %932 : vector<4x1xf32>
    %934 = math.rsqrt %933 : vector<4x1xf32>
    %935 = vector.broadcast %904 : vector<4x1xf32> to vector<4x16xf32>
    %936 = arith.subf %878, %935 : vector<4x16xf32>
    %937 = vector.broadcast %934 : vector<4x1xf32> to vector<4x16xf32>
    %938 = arith.mulf %936, %937 : vector<4x16xf32>
    %939 = vector.extract_strided_slice %888 {offsets = [0, 0], sizes = [1, 16], strides = [1, 1]} : vector<1x64xf32> to vector<1x16xf32>
    %940 = vector.broadcast %939 : vector<1x16xf32> to vector<4x16xf32>
    %941 = arith.mulf %938, %940 : vector<4x16xf32>
    %942 = vector.extract_strided_slice %889 {offsets = [0, 0], sizes = [1, 16], strides = [1, 1]} : vector<1x64xf32> to vector<1x16xf32>
    %943 = vector.broadcast %942 : vector<1x16xf32> to vector<4x16xf32>
    %944 = arith.addf %941, %943 : vector<4x16xf32>
    %c96 = arith.constant 96 : index
    %c0_328 = arith.constant 0 : index
    %945 = vector.load %arg3[%c96, %c0_328] : memref<160x64xbf16, #tpu.memory_space<vmem>>, vector<16x32xbf16>
    %946 = arith.truncf %944 : vector<4x16xf32> to vector<4x16xbf16>
    %cst_329 = arith.constant dense<0.000000e+00> : vector<4x32xf32>
    %947 = tpu.matmul %946, %945, %cst_329 {dimension_numbers = #tpu.dot_dimension_numbers<[1], [0], [0], [1], [0, 0, 1, 1], [], []>} : vector<4x16xbf16>, vector<16x32xbf16>, vector<4x32xf32> -> vector<4x32xf32>
    %948 = vector.broadcast %904 : vector<4x1xf32> to vector<4x16xf32>
    %949 = arith.subf %881, %948 : vector<4x16xf32>
    %950 = vector.broadcast %934 : vector<4x1xf32> to vector<4x16xf32>
    %951 = arith.mulf %949, %950 : vector<4x16xf32>
    %952 = vector.extract_strided_slice %888 {offsets = [0, 16], sizes = [1, 16], strides = [1, 1]} : vector<1x64xf32> to vector<1x16xf32>
    %953 = vector.broadcast %952 : vector<1x16xf32> to vector<4x16xf32>
    %954 = arith.mulf %951, %953 : vector<4x16xf32>
    %955 = vector.extract_strided_slice %889 {offsets = [0, 16], sizes = [1, 16], strides = [1, 1]} : vector<1x64xf32> to vector<1x16xf32>
    %956 = vector.broadcast %955 : vector<1x16xf32> to vector<4x16xf32>
    %957 = arith.addf %954, %956 : vector<4x16xf32>
    %c112 = arith.constant 112 : index
    %c0_330 = arith.constant 0 : index
    %958 = vector.load %arg3[%c112, %c0_330] : memref<160x64xbf16, #tpu.memory_space<vmem>>, vector<16x32xbf16>
    %959 = arith.truncf %957 : vector<4x16xf32> to vector<4x16xbf16>
    %cst_331 = arith.constant dense<0.000000e+00> : vector<4x32xf32>
    %960 = tpu.matmul %959, %958, %cst_331 {dimension_numbers = #tpu.dot_dimension_numbers<[1], [0], [0], [1], [0, 0, 1, 1], [], []>} : vector<4x16xbf16>, vector<16x32xbf16>, vector<4x32xf32> -> vector<4x32xf32>
    %961 = arith.addf %947, %960 : vector<4x32xf32>
    %962 = vector.broadcast %904 : vector<4x1xf32> to vector<4x16xf32>
    %963 = arith.subf %884, %962 : vector<4x16xf32>
    %964 = vector.broadcast %934 : vector<4x1xf32> to vector<4x16xf32>
    %965 = arith.mulf %963, %964 : vector<4x16xf32>
    %966 = vector.extract_strided_slice %888 {offsets = [0, 32], sizes = [1, 16], strides = [1, 1]} : vector<1x64xf32> to vector<1x16xf32>
    %967 = vector.broadcast %966 : vector<1x16xf32> to vector<4x16xf32>
    %968 = arith.mulf %965, %967 : vector<4x16xf32>
    %969 = vector.extract_strided_slice %889 {offsets = [0, 32], sizes = [1, 16], strides = [1, 1]} : vector<1x64xf32> to vector<1x16xf32>
    %970 = vector.broadcast %969 : vector<1x16xf32> to vector<4x16xf32>
    %971 = arith.addf %968, %970 : vector<4x16xf32>
    %c128 = arith.constant 128 : index
    %c0_332 = arith.constant 0 : index
    %972 = vector.load %arg3[%c128, %c0_332] : memref<160x64xbf16, #tpu.memory_space<vmem>>, vector<16x32xbf16>
    %973 = arith.truncf %971 : vector<4x16xf32> to vector<4x16xbf16>
    %cst_333 = arith.constant dense<0.000000e+00> : vector<4x32xf32>
    %974 = tpu.matmul %973, %972, %cst_333 {dimension_numbers = #tpu.dot_dimension_numbers<[1], [0], [0], [1], [0, 0, 1, 1], [], []>} : vector<4x16xbf16>, vector<16x32xbf16>, vector<4x32xf32> -> vector<4x32xf32>
    %975 = arith.addf %961, %974 : vector<4x32xf32>
    %976 = vector.broadcast %904 : vector<4x1xf32> to vector<4x16xf32>
    %977 = arith.subf %887, %976 : vector<4x16xf32>
    %978 = vector.broadcast %934 : vector<4x1xf32> to vector<4x16xf32>
    %979 = arith.mulf %977, %978 : vector<4x16xf32>
    %980 = vector.extract_strided_slice %888 {offsets = [0, 48], sizes = [1, 16], strides = [1, 1]} : vector<1x64xf32> to vector<1x16xf32>
    %981 = vector.broadcast %980 : vector<1x16xf32> to vector<4x16xf32>
    %982 = arith.mulf %979, %981 : vector<4x16xf32>
    %983 = vector.extract_strided_slice %889 {offsets = [0, 48], sizes = [1, 16], strides = [1, 1]} : vector<1x64xf32> to vector<1x16xf32>
    %984 = vector.broadcast %983 : vector<1x16xf32> to vector<4x16xf32>
    %985 = arith.addf %982, %984 : vector<4x16xf32>
    %c144 = arith.constant 144 : index
    %c0_334 = arith.constant 0 : index
    %986 = vector.load %arg3[%c144, %c0_334] : memref<160x64xbf16, #tpu.memory_space<vmem>>, vector<16x32xbf16>
    %987 = arith.truncf %985 : vector<4x16xf32> to vector<4x16xbf16>
    %cst_335 = arith.constant dense<0.000000e+00> : vector<4x32xf32>
    %988 = tpu.matmul %987, %986, %cst_335 {dimension_numbers = #tpu.dot_dimension_numbers<[1], [0], [0], [1], [0, 0, 1, 1], [], []>} : vector<4x16xbf16>, vector<16x32xbf16>, vector<4x32xf32> -> vector<4x32xf32>
    %989 = arith.addf %975, %988 : vector<4x32xf32>
    %c0_336 = arith.constant 0 : index
    %c0_337 = arith.constant 0 : index
    %c0_338 = arith.constant 0 : index
    %990 = vector.load %arg10[%c0_336, %c0_337, %c0_338] : memref<2x32x224xbf16, #tpu.memory_space<vmem>>, vector<1x32x224xbf16>
    %991 = vector.shape_cast %990 : vector<1x32x224xbf16> to vector<32x224xbf16>
    %c0_339 = arith.constant 0 : index
    %c0_340 = arith.constant 0 : index
    %c0_341 = arith.constant 0 : index
    %992 = vector.load %arg11[%c0_339, %c0_340, %c0_341] : memref<2x8x128xf32, #tpu.memory_space<vmem>>, vector<1x8x128xf32>
    %993 = vector.shape_cast %992 : vector<1x8x128xf32> to vector<8x128xf32>
    %c0_342 = arith.constant 0 : index
    %c0_343 = arith.constant 0 : index
    %c0_344 = arith.constant 0 : index
    %994 = vector.load %arg12[%c0_342, %c0_343, %c0_344] : memref<2x128x32xbf16, #tpu.memory_space<vmem>>, vector<1x128x32xbf16>
    %995 = vector.shape_cast %994 : vector<1x128x32xbf16> to vector<128x32xbf16>
    %996 = vector.extract_strided_slice %993 {offsets = [0, 0], sizes = [1, 32], strides = [1, 1]} : vector<8x128xf32> to vector<1x32xf32>
    %997 = vector.extract_strided_slice %993 {offsets = [1, 0], sizes = [1, 32], strides = [1, 1]} : vector<8x128xf32> to vector<1x32xf32>
    %998 = vector.extract_strided_slice %993 {offsets = [2, 0], sizes = [1, 32], strides = [1, 1]} : vector<8x128xf32> to vector<1x32xf32>
    %999 = vector.extract_strided_slice %993 {offsets = [3, 0], sizes = [1, 32], strides = [1, 1]} : vector<8x128xf32> to vector<1x32xf32>
    %1000 = vector.extract_strided_slice %993 {offsets = [4, 0], sizes = [1, 96], strides = [1, 1]} : vector<8x128xf32> to vector<1x96xf32>
    %1001 = vector.extract_strided_slice %993 {offsets = [5, 0], sizes = [1, 32], strides = [1, 1]} : vector<8x128xf32> to vector<1x32xf32>
    %1002 = vector.extract_strided_slice %993 {offsets = [6, 0], sizes = [1, 128], strides = [1, 1]} : vector<8x128xf32> to vector<1x128xf32>
    %1003 = vector.extract_strided_slice %993 {offsets = [7, 0], sizes = [1, 32], strides = [1, 1]} : vector<8x128xf32> to vector<1x32xf32>
    %cst_345 = arith.constant dense<0.000000e+00> : vector<4xf32>
    %1004 = vector.multi_reduction <add>, %989, %cst_345 [1] : vector<4x32xf32> to vector<4xf32>
    %1005 = vector.shape_cast %1004 : vector<4xf32> to vector<4x1xf32>
    %cst_346 = arith.constant 3.200000e+01 : f32
    %1006 = vector.broadcast %cst_346 : f32 to vector<4x1xf32>
    %1007 = arith.divf %1005, %1006 : vector<4x1xf32>
    %1008 = vector.broadcast %1007 : vector<4x1xf32> to vector<4x32xf32>
    %1009 = arith.subf %989, %1008 : vector<4x32xf32>
    %1010 = arith.mulf %1009, %1009 : vector<4x32xf32>
    %cst_347 = arith.constant dense<0.000000e+00> : vector<4xf32>
    %1011 = vector.multi_reduction <add>, %1010, %cst_347 [1] : vector<4x32xf32> to vector<4xf32>
    %1012 = vector.shape_cast %1011 : vector<4xf32> to vector<4x1xf32>
    %cst_348 = arith.constant 3.200000e+01 : f32
    %1013 = vector.broadcast %cst_348 : f32 to vector<4x1xf32>
    %1014 = arith.divf %1012, %1013 : vector<4x1xf32>
    %cst_349 = arith.constant 9.99999974E-6 : f32
    %1015 = vector.broadcast %cst_349 : f32 to vector<4x1xf32>
    %1016 = arith.addf %1014, %1015 : vector<4x1xf32>
    %1017 = math.rsqrt %1016 : vector<4x1xf32>
    %1018 = vector.broadcast %1017 : vector<4x1xf32> to vector<4x32xf32>
    %1019 = arith.mulf %1009, %1018 : vector<4x32xf32>
    %1020 = vector.broadcast %996 : vector<1x32xf32> to vector<4x32xf32>
    %1021 = arith.mulf %1019, %1020 : vector<4x32xf32>
    %1022 = vector.broadcast %997 : vector<1x32xf32> to vector<4x32xf32>
    %1023 = arith.addf %1021, %1022 : vector<4x32xf32>
    %1024 = arith.truncf %1023 : vector<4x32xf32> to vector<4x32xbf16>
    %1025 = vector.extract_strided_slice %991 {offsets = [0, 0], sizes = [32, 24], strides = [1, 1]} : vector<32x224xbf16> to vector<32x24xbf16>
    %cst_350 = arith.constant dense<0.000000e+00> : vector<4x24xf32>
    %1026 = tpu.matmul %1024, %1025, %cst_350 {dimension_numbers = #tpu.dot_dimension_numbers<[1], [0], [0], [1], [0, 0, 1, 1], [], []>} : vector<4x32xbf16>, vector<32x24xbf16>, vector<4x24xf32> -> vector<4x24xf32>
    %1027 = vector.extract_strided_slice %1000 {offsets = [0, 0], sizes = [1, 24], strides = [1, 1]} : vector<1x96xf32> to vector<1x24xf32>
    %1028 = vector.broadcast %1027 : vector<1x24xf32> to vector<4x24xf32>
    %1029 = arith.addf %1026, %1028 : vector<4x24xf32>
    %1030 = vector.extract_strided_slice %1029 {offsets = [0, 0], sizes = [4, 8], strides = [1, 1]} : vector<4x24xf32> to vector<4x8xf32>
    %cst_351 = arith.constant 0.353553385 : f32
    %1031 = vector.broadcast %cst_351 : f32 to vector<4x8xf32>
    %1032 = arith.mulf %1030, %1031 : vector<4x8xf32>
    %1033 = vector.extract_strided_slice %1029 {offsets = [0, 8], sizes = [4, 8], strides = [1, 1]} : vector<4x24xf32> to vector<4x8xf32>
    %1034 = vector.extract_strided_slice %1029 {offsets = [0, 16], sizes = [4, 8], strides = [1, 1]} : vector<4x24xf32> to vector<4x8xf32>
    %c0_352 = arith.constant 0 : index
    %c0_353 = arith.constant 0 : index
    %c0_354 = arith.constant 0 : index
    %1035 = vector.load %arg14[%c0_352, %c0_353, %c0_354] : memref<8x4x4xf32, #tpu.memory_space<vmem>>, vector<1x4x4xf32>
    %1036 = vector.shape_cast %1035 : vector<1x4x4xf32> to vector<4x4xf32>
    %1037 = arith.truncf %1032 : vector<4x8xf32> to vector<4x8xbf16>
    %1038 = arith.truncf %1033 : vector<4x8xf32> to vector<4x8xbf16>
    %1039 = arith.truncf %1034 : vector<4x8xf32> to vector<4x8xbf16>
    "tpu.trace_start"() <{level = 10 : i32, message = "nd,md->nm"}> : () -> ()
    %cst_355 = arith.constant dense<0.000000e+00> : vector<4x4xf32>
    %1040 = tpu.matmul %1037, %1038, %cst_355 {dimension_numbers = #tpu.dot_dimension_numbers<[1], [1], [0], [0], [0, 0, 1, 0], [], []>} : vector<4x8xbf16>, vector<4x8xbf16>, vector<4x4xf32> -> vector<4x4xf32>
    "tpu.trace_stop"() : () -> ()
    %1041 = arith.addf %1040, %1036 : vector<4x4xf32>
    %cst_356 = arith.constant dense<0xFF800000> : vector<4xf32>
    %1042 = vector.multi_reduction <maximumf>, %1041, %cst_356 [1] : vector<4x4xf32> to vector<4xf32>
    %1043 = vector.shape_cast %1042 : vector<4xf32> to vector<4x1xf32>
    %1044 = vector.broadcast %1043 : vector<4x1xf32> to vector<4x4xf32>
    %1045 = arith.subf %1041, %1044 : vector<4x4xf32>
    %1046 = math.exp %1045 : vector<4x4xf32>
    %cst_357 = arith.constant dense<0.000000e+00> : vector<4xf32>
    %1047 = vector.multi_reduction <add>, %1046, %cst_357 [1] : vector<4x4xf32> to vector<4xf32>
    %1048 = vector.shape_cast %1047 : vector<4xf32> to vector<4x1xf32>
    %1049 = tpu.reciprocal %1048 {approx = true} : vector<4x1xf32> -> vector<4x1xf32>
    %1050 = vector.broadcast %1049 : vector<4x1xf32> to vector<4x4xf32>
    %1051 = arith.mulf %1046, %1050 : vector<4x4xf32>
    %1052 = arith.truncf %1051 : vector<4x4xf32> to vector<4x4xbf16>
    %cst_358 = arith.constant dense<0.000000e+00> : vector<4x8xf32>
    %1053 = tpu.matmul %1052, %1039, %cst_358 {dimension_numbers = #tpu.dot_dimension_numbers<[1], [0], [0], [1], [0, 0, 1, 1], [], []>} : vector<4x4xbf16>, vector<4x8xbf16>, vector<4x8xf32> -> vector<4x8xf32>
    %1054 = arith.truncf %1053 : vector<4x8xf32> to vector<4x8xbf16>
    %c0_359 = arith.constant 0 : index
    %c0_360 = arith.constant 0 : index
    %c0_361 = arith.constant 0 : index
    %1055 = vector.load %arg13[%c0_359, %c0_360, %c0_361] : memref<8x8x32xbf16, #tpu.memory_space<vmem>>, vector<1x8x32xbf16>
    %1056 = vector.shape_cast %1055 : vector<1x8x32xbf16> to vector<8x32xbf16>
    %cst_362 = arith.constant dense<0.000000e+00> : vector<4x32xf32>
    %1057 = tpu.matmul %1054, %1056, %cst_362 {dimension_numbers = #tpu.dot_dimension_numbers<[1], [0], [0], [1], [0, 0, 1, 1], [], []>} : vector<4x8xbf16>, vector<8x32xbf16>, vector<4x32xf32> -> vector<4x32xf32>
    %1058 = vector.extract_strided_slice %991 {offsets = [0, 24], sizes = [32, 24], strides = [1, 1]} : vector<32x224xbf16> to vector<32x24xbf16>
    %cst_363 = arith.constant dense<0.000000e+00> : vector<4x24xf32>
    %1059 = tpu.matmul %1024, %1058, %cst_363 {dimension_numbers = #tpu.dot_dimension_numbers<[1], [0], [0], [1], [0, 0, 1, 1], [], []>} : vector<4x32xbf16>, vector<32x24xbf16>, vector<4x24xf32> -> vector<4x24xf32>
    %1060 = vector.extract_strided_slice %1000 {offsets = [0, 24], sizes = [1, 24], strides = [1, 1]} : vector<1x96xf32> to vector<1x24xf32>
    %1061 = vector.broadcast %1060 : vector<1x24xf32> to vector<4x24xf32>
    %1062 = arith.addf %1059, %1061 : vector<4x24xf32>
    %1063 = vector.extract_strided_slice %1062 {offsets = [0, 0], sizes = [4, 8], strides = [1, 1]} : vector<4x24xf32> to vector<4x8xf32>
    %cst_364 = arith.constant 0.353553385 : f32
    %1064 = vector.broadcast %cst_364 : f32 to vector<4x8xf32>
    %1065 = arith.mulf %1063, %1064 : vector<4x8xf32>
    %1066 = vector.extract_strided_slice %1062 {offsets = [0, 8], sizes = [4, 8], strides = [1, 1]} : vector<4x24xf32> to vector<4x8xf32>
    %1067 = vector.extract_strided_slice %1062 {offsets = [0, 16], sizes = [4, 8], strides = [1, 1]} : vector<4x24xf32> to vector<4x8xf32>
    %c1_365 = arith.constant 1 : index
    %c0_366 = arith.constant 0 : index
    %c0_367 = arith.constant 0 : index
    %1068 = vector.load %arg14[%c1_365, %c0_366, %c0_367] : memref<8x4x4xf32, #tpu.memory_space<vmem>>, vector<1x4x4xf32>
    %1069 = vector.shape_cast %1068 : vector<1x4x4xf32> to vector<4x4xf32>
    %1070 = arith.truncf %1065 : vector<4x8xf32> to vector<4x8xbf16>
    %1071 = arith.truncf %1066 : vector<4x8xf32> to vector<4x8xbf16>
    %1072 = arith.truncf %1067 : vector<4x8xf32> to vector<4x8xbf16>
    "tpu.trace_start"() <{level = 10 : i32, message = "nd,md->nm"}> : () -> ()
    %cst_368 = arith.constant dense<0.000000e+00> : vector<4x4xf32>
    %1073 = tpu.matmul %1070, %1071, %cst_368 {dimension_numbers = #tpu.dot_dimension_numbers<[1], [1], [0], [0], [0, 0, 1, 0], [], []>} : vector<4x8xbf16>, vector<4x8xbf16>, vector<4x4xf32> -> vector<4x4xf32>
    "tpu.trace_stop"() : () -> ()
    %1074 = arith.addf %1073, %1069 : vector<4x4xf32>
    %cst_369 = arith.constant dense<0xFF800000> : vector<4xf32>
    %1075 = vector.multi_reduction <maximumf>, %1074, %cst_369 [1] : vector<4x4xf32> to vector<4xf32>
    %1076 = vector.shape_cast %1075 : vector<4xf32> to vector<4x1xf32>
    %1077 = vector.broadcast %1076 : vector<4x1xf32> to vector<4x4xf32>
    %1078 = arith.subf %1074, %1077 : vector<4x4xf32>
    %1079 = math.exp %1078 : vector<4x4xf32>
    %cst_370 = arith.constant dense<0.000000e+00> : vector<4xf32>
    %1080 = vector.multi_reduction <add>, %1079, %cst_370 [1] : vector<4x4xf32> to vector<4xf32>
    %1081 = vector.shape_cast %1080 : vector<4xf32> to vector<4x1xf32>
    %1082 = tpu.reciprocal %1081 {approx = true} : vector<4x1xf32> -> vector<4x1xf32>
    %1083 = vector.broadcast %1082 : vector<4x1xf32> to vector<4x4xf32>
    %1084 = arith.mulf %1079, %1083 : vector<4x4xf32>
    %1085 = arith.truncf %1084 : vector<4x4xf32> to vector<4x4xbf16>
    %cst_371 = arith.constant dense<0.000000e+00> : vector<4x8xf32>
    %1086 = tpu.matmul %1085, %1072, %cst_371 {dimension_numbers = #tpu.dot_dimension_numbers<[1], [0], [0], [1], [0, 0, 1, 1], [], []>} : vector<4x4xbf16>, vector<4x8xbf16>, vector<4x8xf32> -> vector<4x8xf32>
    %1087 = arith.truncf %1086 : vector<4x8xf32> to vector<4x8xbf16>
    %c1_372 = arith.constant 1 : index
    %c0_373 = arith.constant 0 : index
    %c0_374 = arith.constant 0 : index
    %1088 = vector.load %arg13[%c1_372, %c0_373, %c0_374] : memref<8x8x32xbf16, #tpu.memory_space<vmem>>, vector<1x8x32xbf16>
    %1089 = vector.shape_cast %1088 : vector<1x8x32xbf16> to vector<8x32xbf16>
    %cst_375 = arith.constant dense<0.000000e+00> : vector<4x32xf32>
    %1090 = tpu.matmul %1087, %1089, %cst_375 {dimension_numbers = #tpu.dot_dimension_numbers<[1], [0], [0], [1], [0, 0, 1, 1], [], []>} : vector<4x8xbf16>, vector<8x32xbf16>, vector<4x32xf32> -> vector<4x32xf32>
    %1091 = arith.addf %1057, %1090 : vector<4x32xf32>
    %1092 = vector.extract_strided_slice %991 {offsets = [0, 48], sizes = [32, 24], strides = [1, 1]} : vector<32x224xbf16> to vector<32x24xbf16>
    %cst_376 = arith.constant dense<0.000000e+00> : vector<4x24xf32>
    %1093 = tpu.matmul %1024, %1092, %cst_376 {dimension_numbers = #tpu.dot_dimension_numbers<[1], [0], [0], [1], [0, 0, 1, 1], [], []>} : vector<4x32xbf16>, vector<32x24xbf16>, vector<4x24xf32> -> vector<4x24xf32>
    %1094 = vector.extract_strided_slice %1000 {offsets = [0, 48], sizes = [1, 24], strides = [1, 1]} : vector<1x96xf32> to vector<1x24xf32>
    %1095 = vector.broadcast %1094 : vector<1x24xf32> to vector<4x24xf32>
    %1096 = arith.addf %1093, %1095 : vector<4x24xf32>
    %1097 = vector.extract_strided_slice %1096 {offsets = [0, 0], sizes = [4, 8], strides = [1, 1]} : vector<4x24xf32> to vector<4x8xf32>
    %cst_377 = arith.constant 0.353553385 : f32
    %1098 = vector.broadcast %cst_377 : f32 to vector<4x8xf32>
    %1099 = arith.mulf %1097, %1098 : vector<4x8xf32>
    %1100 = vector.extract_strided_slice %1096 {offsets = [0, 8], sizes = [4, 8], strides = [1, 1]} : vector<4x24xf32> to vector<4x8xf32>
    %1101 = vector.extract_strided_slice %1096 {offsets = [0, 16], sizes = [4, 8], strides = [1, 1]} : vector<4x24xf32> to vector<4x8xf32>
    %c2_378 = arith.constant 2 : index
    %c0_379 = arith.constant 0 : index
    %c0_380 = arith.constant 0 : index
    %1102 = vector.load %arg14[%c2_378, %c0_379, %c0_380] : memref<8x4x4xf32, #tpu.memory_space<vmem>>, vector<1x4x4xf32>
    %1103 = vector.shape_cast %1102 : vector<1x4x4xf32> to vector<4x4xf32>
    %1104 = arith.truncf %1099 : vector<4x8xf32> to vector<4x8xbf16>
    %1105 = arith.truncf %1100 : vector<4x8xf32> to vector<4x8xbf16>
    %1106 = arith.truncf %1101 : vector<4x8xf32> to vector<4x8xbf16>
    "tpu.trace_start"() <{level = 10 : i32, message = "nd,md->nm"}> : () -> ()
    %cst_381 = arith.constant dense<0.000000e+00> : vector<4x4xf32>
    %1107 = tpu.matmul %1104, %1105, %cst_381 {dimension_numbers = #tpu.dot_dimension_numbers<[1], [1], [0], [0], [0, 0, 1, 0], [], []>} : vector<4x8xbf16>, vector<4x8xbf16>, vector<4x4xf32> -> vector<4x4xf32>
    "tpu.trace_stop"() : () -> ()
    %1108 = arith.addf %1107, %1103 : vector<4x4xf32>
    %cst_382 = arith.constant dense<0xFF800000> : vector<4xf32>
    %1109 = vector.multi_reduction <maximumf>, %1108, %cst_382 [1] : vector<4x4xf32> to vector<4xf32>
    %1110 = vector.shape_cast %1109 : vector<4xf32> to vector<4x1xf32>
    %1111 = vector.broadcast %1110 : vector<4x1xf32> to vector<4x4xf32>
    %1112 = arith.subf %1108, %1111 : vector<4x4xf32>
    %1113 = math.exp %1112 : vector<4x4xf32>
    %cst_383 = arith.constant dense<0.000000e+00> : vector<4xf32>
    %1114 = vector.multi_reduction <add>, %1113, %cst_383 [1] : vector<4x4xf32> to vector<4xf32>
    %1115 = vector.shape_cast %1114 : vector<4xf32> to vector<4x1xf32>
    %1116 = tpu.reciprocal %1115 {approx = true} : vector<4x1xf32> -> vector<4x1xf32>
    %1117 = vector.broadcast %1116 : vector<4x1xf32> to vector<4x4xf32>
    %1118 = arith.mulf %1113, %1117 : vector<4x4xf32>
    %1119 = arith.truncf %1118 : vector<4x4xf32> to vector<4x4xbf16>
    %cst_384 = arith.constant dense<0.000000e+00> : vector<4x8xf32>
    %1120 = tpu.matmul %1119, %1106, %cst_384 {dimension_numbers = #tpu.dot_dimension_numbers<[1], [0], [0], [1], [0, 0, 1, 1], [], []>} : vector<4x4xbf16>, vector<4x8xbf16>, vector<4x8xf32> -> vector<4x8xf32>
    %1121 = arith.truncf %1120 : vector<4x8xf32> to vector<4x8xbf16>
    %c2_385 = arith.constant 2 : index
    %c0_386 = arith.constant 0 : index
    %c0_387 = arith.constant 0 : index
    %1122 = vector.load %arg13[%c2_385, %c0_386, %c0_387] : memref<8x8x32xbf16, #tpu.memory_space<vmem>>, vector<1x8x32xbf16>
    %1123 = vector.shape_cast %1122 : vector<1x8x32xbf16> to vector<8x32xbf16>
    %cst_388 = arith.constant dense<0.000000e+00> : vector<4x32xf32>
    %1124 = tpu.matmul %1121, %1123, %cst_388 {dimension_numbers = #tpu.dot_dimension_numbers<[1], [0], [0], [1], [0, 0, 1, 1], [], []>} : vector<4x8xbf16>, vector<8x32xbf16>, vector<4x32xf32> -> vector<4x32xf32>
    %1125 = arith.addf %1091, %1124 : vector<4x32xf32>
    %1126 = vector.extract_strided_slice %991 {offsets = [0, 72], sizes = [32, 24], strides = [1, 1]} : vector<32x224xbf16> to vector<32x24xbf16>
    %cst_389 = arith.constant dense<0.000000e+00> : vector<4x24xf32>
    %1127 = tpu.matmul %1024, %1126, %cst_389 {dimension_numbers = #tpu.dot_dimension_numbers<[1], [0], [0], [1], [0, 0, 1, 1], [], []>} : vector<4x32xbf16>, vector<32x24xbf16>, vector<4x24xf32> -> vector<4x24xf32>
    %1128 = vector.extract_strided_slice %1000 {offsets = [0, 72], sizes = [1, 24], strides = [1, 1]} : vector<1x96xf32> to vector<1x24xf32>
    %1129 = vector.broadcast %1128 : vector<1x24xf32> to vector<4x24xf32>
    %1130 = arith.addf %1127, %1129 : vector<4x24xf32>
    %1131 = vector.extract_strided_slice %1130 {offsets = [0, 0], sizes = [4, 8], strides = [1, 1]} : vector<4x24xf32> to vector<4x8xf32>
    %cst_390 = arith.constant 0.353553385 : f32
    %1132 = vector.broadcast %cst_390 : f32 to vector<4x8xf32>
    %1133 = arith.mulf %1131, %1132 : vector<4x8xf32>
    %1134 = vector.extract_strided_slice %1130 {offsets = [0, 8], sizes = [4, 8], strides = [1, 1]} : vector<4x24xf32> to vector<4x8xf32>
    %1135 = vector.extract_strided_slice %1130 {offsets = [0, 16], sizes = [4, 8], strides = [1, 1]} : vector<4x24xf32> to vector<4x8xf32>
    %c3_391 = arith.constant 3 : index
    %c0_392 = arith.constant 0 : index
    %c0_393 = arith.constant 0 : index
    %1136 = vector.load %arg14[%c3_391, %c0_392, %c0_393] : memref<8x4x4xf32, #tpu.memory_space<vmem>>, vector<1x4x4xf32>
    %1137 = vector.shape_cast %1136 : vector<1x4x4xf32> to vector<4x4xf32>
    %1138 = arith.truncf %1133 : vector<4x8xf32> to vector<4x8xbf16>
    %1139 = arith.truncf %1134 : vector<4x8xf32> to vector<4x8xbf16>
    %1140 = arith.truncf %1135 : vector<4x8xf32> to vector<4x8xbf16>
    "tpu.trace_start"() <{level = 10 : i32, message = "nd,md->nm"}> : () -> ()
    %cst_394 = arith.constant dense<0.000000e+00> : vector<4x4xf32>
    %1141 = tpu.matmul %1138, %1139, %cst_394 {dimension_numbers = #tpu.dot_dimension_numbers<[1], [1], [0], [0], [0, 0, 1, 0], [], []>} : vector<4x8xbf16>, vector<4x8xbf16>, vector<4x4xf32> -> vector<4x4xf32>
    "tpu.trace_stop"() : () -> ()
    %1142 = arith.addf %1141, %1137 : vector<4x4xf32>
    %cst_395 = arith.constant dense<0xFF800000> : vector<4xf32>
    %1143 = vector.multi_reduction <maximumf>, %1142, %cst_395 [1] : vector<4x4xf32> to vector<4xf32>
    %1144 = vector.shape_cast %1143 : vector<4xf32> to vector<4x1xf32>
    %1145 = vector.broadcast %1144 : vector<4x1xf32> to vector<4x4xf32>
    %1146 = arith.subf %1142, %1145 : vector<4x4xf32>
    %1147 = math.exp %1146 : vector<4x4xf32>
    %cst_396 = arith.constant dense<0.000000e+00> : vector<4xf32>
    %1148 = vector.multi_reduction <add>, %1147, %cst_396 [1] : vector<4x4xf32> to vector<4xf32>
    %1149 = vector.shape_cast %1148 : vector<4xf32> to vector<4x1xf32>
    %1150 = tpu.reciprocal %1149 {approx = true} : vector<4x1xf32> -> vector<4x1xf32>
    %1151 = vector.broadcast %1150 : vector<4x1xf32> to vector<4x4xf32>
    %1152 = arith.mulf %1147, %1151 : vector<4x4xf32>
    %1153 = arith.truncf %1152 : vector<4x4xf32> to vector<4x4xbf16>
    %cst_397 = arith.constant dense<0.000000e+00> : vector<4x8xf32>
    %1154 = tpu.matmul %1153, %1140, %cst_397 {dimension_numbers = #tpu.dot_dimension_numbers<[1], [0], [0], [1], [0, 0, 1, 1], [], []>} : vector<4x4xbf16>, vector<4x8xbf16>, vector<4x8xf32> -> vector<4x8xf32>
    %1155 = arith.truncf %1154 : vector<4x8xf32> to vector<4x8xbf16>
    %c3_398 = arith.constant 3 : index
    %c0_399 = arith.constant 0 : index
    %c0_400 = arith.constant 0 : index
    %1156 = vector.load %arg13[%c3_398, %c0_399, %c0_400] : memref<8x8x32xbf16, #tpu.memory_space<vmem>>, vector<1x8x32xbf16>
    %1157 = vector.shape_cast %1156 : vector<1x8x32xbf16> to vector<8x32xbf16>
    %cst_401 = arith.constant dense<0.000000e+00> : vector<4x32xf32>
    %1158 = tpu.matmul %1155, %1157, %cst_401 {dimension_numbers = #tpu.dot_dimension_numbers<[1], [0], [0], [1], [0, 0, 1, 1], [], []>} : vector<4x8xbf16>, vector<8x32xbf16>, vector<4x32xf32> -> vector<4x32xf32>
    %1159 = arith.addf %1125, %1158 : vector<4x32xf32>
    %1160 = arith.addf %989, %1159 : vector<4x32xf32>
    %1161 = vector.broadcast %1001 : vector<1x32xf32> to vector<4x32xf32>
    %1162 = arith.addf %1160, %1161 : vector<4x32xf32>
    %cst_402 = arith.constant dense<0.000000e+00> : vector<4xf32>
    %1163 = vector.multi_reduction <add>, %1162, %cst_402 [1] : vector<4x32xf32> to vector<4xf32>
    %1164 = vector.shape_cast %1163 : vector<4xf32> to vector<4x1xf32>
    %cst_403 = arith.constant 3.200000e+01 : f32
    %1165 = vector.broadcast %cst_403 : f32 to vector<4x1xf32>
    %1166 = arith.divf %1164, %1165 : vector<4x1xf32>
    %1167 = vector.broadcast %1166 : vector<4x1xf32> to vector<4x32xf32>
    %1168 = arith.subf %1162, %1167 : vector<4x32xf32>
    %1169 = arith.mulf %1168, %1168 : vector<4x32xf32>
    %cst_404 = arith.constant dense<0.000000e+00> : vector<4xf32>
    %1170 = vector.multi_reduction <add>, %1169, %cst_404 [1] : vector<4x32xf32> to vector<4xf32>
    %1171 = vector.shape_cast %1170 : vector<4xf32> to vector<4x1xf32>
    %cst_405 = arith.constant 3.200000e+01 : f32
    %1172 = vector.broadcast %cst_405 : f32 to vector<4x1xf32>
    %1173 = arith.divf %1171, %1172 : vector<4x1xf32>
    %cst_406 = arith.constant 9.99999974E-6 : f32
    %1174 = vector.broadcast %cst_406 : f32 to vector<4x1xf32>
    %1175 = arith.addf %1173, %1174 : vector<4x1xf32>
    %1176 = math.rsqrt %1175 : vector<4x1xf32>
    %1177 = vector.broadcast %1176 : vector<4x1xf32> to vector<4x32xf32>
    %1178 = arith.mulf %1168, %1177 : vector<4x32xf32>
    %1179 = vector.broadcast %998 : vector<1x32xf32> to vector<4x32xf32>
    %1180 = arith.mulf %1178, %1179 : vector<4x32xf32>
    %1181 = vector.broadcast %999 : vector<1x32xf32> to vector<4x32xf32>
    %1182 = arith.addf %1180, %1181 : vector<4x32xf32>
    %1183 = vector.extract_strided_slice %991 {offsets = [0, 96], sizes = [32, 128], strides = [1, 1]} : vector<32x224xbf16> to vector<32x128xbf16>
    %1184 = arith.truncf %1182 : vector<4x32xf32> to vector<4x32xbf16>
    %cst_407 = arith.constant dense<0.000000e+00> : vector<4x128xf32>
    %1185 = tpu.matmul %1184, %1183, %cst_407 {dimension_numbers = #tpu.dot_dimension_numbers<[1], [0], [0], [1], [0, 0, 1, 1], [], []>} : vector<4x32xbf16>, vector<32x128xbf16>, vector<4x128xf32> -> vector<4x128xf32>
    %1186 = vector.broadcast %1002 : vector<1x128xf32> to vector<4x128xf32>
    %1187 = arith.addf %1185, %1186 : vector<4x128xf32>
    %cst_408 = arith.constant 5.000000e-01 : f32
    %1188 = vector.broadcast %cst_408 : f32 to vector<4x128xf32>
    %1189 = arith.mulf %1188, %1187 : vector<4x128xf32>
    %cst_409 = arith.constant 0.707106769 : f32
    %1190 = vector.broadcast %cst_409 : f32 to vector<4x128xf32>
    %1191 = arith.mulf %1187, %1190 : vector<4x128xf32>
    %1192 = math.erf %1191 : vector<4x128xf32>
    %cst_410 = arith.constant 1.000000e+00 : f32
    %1193 = vector.broadcast %cst_410 : f32 to vector<4x128xf32>
    %1194 = arith.addf %1193, %1192 : vector<4x128xf32>
    %1195 = arith.mulf %1189, %1194 : vector<4x128xf32>
    %1196 = arith.truncf %1195 : vector<4x128xf32> to vector<4x128xbf16>
    %cst_411 = arith.constant dense<0.000000e+00> : vector<4x32xf32>
    %1197 = tpu.matmul %1196, %995, %cst_411 {dimension_numbers = #tpu.dot_dimension_numbers<[1], [0], [0], [1], [0, 0, 1, 1], [], []>} : vector<4x128xbf16>, vector<128x32xbf16>, vector<4x32xf32> -> vector<4x32xf32>
    %1198 = arith.addf %1162, %1197 : vector<4x32xf32>
    %1199 = vector.broadcast %1003 : vector<1x32xf32> to vector<4x32xf32>
    %1200 = arith.addf %1198, %1199 : vector<4x32xf32>
    %c1_412 = arith.constant 1 : index
    %c0_413 = arith.constant 0 : index
    %c0_414 = arith.constant 0 : index
    %1201 = vector.load %arg10[%c1_412, %c0_413, %c0_414] : memref<2x32x224xbf16, #tpu.memory_space<vmem>>, vector<1x32x224xbf16>
    %1202 = vector.shape_cast %1201 : vector<1x32x224xbf16> to vector<32x224xbf16>
    %c1_415 = arith.constant 1 : index
    %c0_416 = arith.constant 0 : index
    %c0_417 = arith.constant 0 : index
    %1203 = vector.load %arg11[%c1_415, %c0_416, %c0_417] : memref<2x8x128xf32, #tpu.memory_space<vmem>>, vector<1x8x128xf32>
    %1204 = vector.shape_cast %1203 : vector<1x8x128xf32> to vector<8x128xf32>
    %c1_418 = arith.constant 1 : index
    %c0_419 = arith.constant 0 : index
    %c0_420 = arith.constant 0 : index
    %1205 = vector.load %arg12[%c1_418, %c0_419, %c0_420] : memref<2x128x32xbf16, #tpu.memory_space<vmem>>, vector<1x128x32xbf16>
    %1206 = vector.shape_cast %1205 : vector<1x128x32xbf16> to vector<128x32xbf16>
    %1207 = vector.extract_strided_slice %1204 {offsets = [0, 0], sizes = [1, 32], strides = [1, 1]} : vector<8x128xf32> to vector<1x32xf32>
    %1208 = vector.extract_strided_slice %1204 {offsets = [1, 0], sizes = [1, 32], strides = [1, 1]} : vector<8x128xf32> to vector<1x32xf32>
    %1209 = vector.extract_strided_slice %1204 {offsets = [2, 0], sizes = [1, 32], strides = [1, 1]} : vector<8x128xf32> to vector<1x32xf32>
    %1210 = vector.extract_strided_slice %1204 {offsets = [3, 0], sizes = [1, 32], strides = [1, 1]} : vector<8x128xf32> to vector<1x32xf32>
    %1211 = vector.extract_strided_slice %1204 {offsets = [4, 0], sizes = [1, 96], strides = [1, 1]} : vector<8x128xf32> to vector<1x96xf32>
    %1212 = vector.extract_strided_slice %1204 {offsets = [5, 0], sizes = [1, 32], strides = [1, 1]} : vector<8x128xf32> to vector<1x32xf32>
    %1213 = vector.extract_strided_slice %1204 {offsets = [6, 0], sizes = [1, 128], strides = [1, 1]} : vector<8x128xf32> to vector<1x128xf32>
    %1214 = vector.extract_strided_slice %1204 {offsets = [7, 0], sizes = [1, 32], strides = [1, 1]} : vector<8x128xf32> to vector<1x32xf32>
    %cst_421 = arith.constant dense<0.000000e+00> : vector<4xf32>
    %1215 = vector.multi_reduction <add>, %1200, %cst_421 [1] : vector<4x32xf32> to vector<4xf32>
    %1216 = vector.shape_cast %1215 : vector<4xf32> to vector<4x1xf32>
    %cst_422 = arith.constant 3.200000e+01 : f32
    %1217 = vector.broadcast %cst_422 : f32 to vector<4x1xf32>
    %1218 = arith.divf %1216, %1217 : vector<4x1xf32>
    %1219 = vector.broadcast %1218 : vector<4x1xf32> to vector<4x32xf32>
    %1220 = arith.subf %1200, %1219 : vector<4x32xf32>
    %1221 = arith.mulf %1220, %1220 : vector<4x32xf32>
    %cst_423 = arith.constant dense<0.000000e+00> : vector<4xf32>
    %1222 = vector.multi_reduction <add>, %1221, %cst_423 [1] : vector<4x32xf32> to vector<4xf32>
    %1223 = vector.shape_cast %1222 : vector<4xf32> to vector<4x1xf32>
    %cst_424 = arith.constant 3.200000e+01 : f32
    %1224 = vector.broadcast %cst_424 : f32 to vector<4x1xf32>
    %1225 = arith.divf %1223, %1224 : vector<4x1xf32>
    %cst_425 = arith.constant 9.99999974E-6 : f32
    %1226 = vector.broadcast %cst_425 : f32 to vector<4x1xf32>
    %1227 = arith.addf %1225, %1226 : vector<4x1xf32>
    %1228 = math.rsqrt %1227 : vector<4x1xf32>
    %1229 = vector.broadcast %1228 : vector<4x1xf32> to vector<4x32xf32>
    %1230 = arith.mulf %1220, %1229 : vector<4x32xf32>
    %1231 = vector.broadcast %1207 : vector<1x32xf32> to vector<4x32xf32>
    %1232 = arith.mulf %1230, %1231 : vector<4x32xf32>
    %1233 = vector.broadcast %1208 : vector<1x32xf32> to vector<4x32xf32>
    %1234 = arith.addf %1232, %1233 : vector<4x32xf32>
    %1235 = arith.truncf %1234 : vector<4x32xf32> to vector<4x32xbf16>
    %1236 = vector.extract_strided_slice %1202 {offsets = [0, 0], sizes = [32, 24], strides = [1, 1]} : vector<32x224xbf16> to vector<32x24xbf16>
    %cst_426 = arith.constant dense<0.000000e+00> : vector<4x24xf32>
    %1237 = tpu.matmul %1235, %1236, %cst_426 {dimension_numbers = #tpu.dot_dimension_numbers<[1], [0], [0], [1], [0, 0, 1, 1], [], []>} : vector<4x32xbf16>, vector<32x24xbf16>, vector<4x24xf32> -> vector<4x24xf32>
    %1238 = vector.extract_strided_slice %1211 {offsets = [0, 0], sizes = [1, 24], strides = [1, 1]} : vector<1x96xf32> to vector<1x24xf32>
    %1239 = vector.broadcast %1238 : vector<1x24xf32> to vector<4x24xf32>
    %1240 = arith.addf %1237, %1239 : vector<4x24xf32>
    %1241 = vector.extract_strided_slice %1240 {offsets = [0, 0], sizes = [4, 8], strides = [1, 1]} : vector<4x24xf32> to vector<4x8xf32>
    %cst_427 = arith.constant 0.353553385 : f32
    %1242 = vector.broadcast %cst_427 : f32 to vector<4x8xf32>
    %1243 = arith.mulf %1241, %1242 : vector<4x8xf32>
    %1244 = vector.extract_strided_slice %1240 {offsets = [0, 8], sizes = [4, 8], strides = [1, 1]} : vector<4x24xf32> to vector<4x8xf32>
    %1245 = vector.extract_strided_slice %1240 {offsets = [0, 16], sizes = [4, 8], strides = [1, 1]} : vector<4x24xf32> to vector<4x8xf32>
    %c4_428 = arith.constant 4 : index
    %c0_429 = arith.constant 0 : index
    %c0_430 = arith.constant 0 : index
    %1246 = vector.load %arg14[%c4_428, %c0_429, %c0_430] : memref<8x4x4xf32, #tpu.memory_space<vmem>>, vector<1x4x4xf32>
    %1247 = vector.shape_cast %1246 : vector<1x4x4xf32> to vector<4x4xf32>
    %1248 = arith.truncf %1243 : vector<4x8xf32> to vector<4x8xbf16>
    %1249 = arith.truncf %1244 : vector<4x8xf32> to vector<4x8xbf16>
    %1250 = arith.truncf %1245 : vector<4x8xf32> to vector<4x8xbf16>
    "tpu.trace_start"() <{level = 10 : i32, message = "nd,md->nm"}> : () -> ()
    %cst_431 = arith.constant dense<0.000000e+00> : vector<4x4xf32>
    %1251 = tpu.matmul %1248, %1249, %cst_431 {dimension_numbers = #tpu.dot_dimension_numbers<[1], [1], [0], [0], [0, 0, 1, 0], [], []>} : vector<4x8xbf16>, vector<4x8xbf16>, vector<4x4xf32> -> vector<4x4xf32>
    "tpu.trace_stop"() : () -> ()
    %1252 = arith.addf %1251, %1247 : vector<4x4xf32>
    %cst_432 = arith.constant dense<0xFF800000> : vector<4xf32>
    %1253 = vector.multi_reduction <maximumf>, %1252, %cst_432 [1] : vector<4x4xf32> to vector<4xf32>
    %1254 = vector.shape_cast %1253 : vector<4xf32> to vector<4x1xf32>
    %1255 = vector.broadcast %1254 : vector<4x1xf32> to vector<4x4xf32>
    %1256 = arith.subf %1252, %1255 : vector<4x4xf32>
    %1257 = math.exp %1256 : vector<4x4xf32>
    %cst_433 = arith.constant dense<0.000000e+00> : vector<4xf32>
    %1258 = vector.multi_reduction <add>, %1257, %cst_433 [1] : vector<4x4xf32> to vector<4xf32>
    %1259 = vector.shape_cast %1258 : vector<4xf32> to vector<4x1xf32>
    %1260 = tpu.reciprocal %1259 {approx = true} : vector<4x1xf32> -> vector<4x1xf32>
    %1261 = vector.broadcast %1260 : vector<4x1xf32> to vector<4x4xf32>
    %1262 = arith.mulf %1257, %1261 : vector<4x4xf32>
    %1263 = arith.truncf %1262 : vector<4x4xf32> to vector<4x4xbf16>
    %cst_434 = arith.constant dense<0.000000e+00> : vector<4x8xf32>
    %1264 = tpu.matmul %1263, %1250, %cst_434 {dimension_numbers = #tpu.dot_dimension_numbers<[1], [0], [0], [1], [0, 0, 1, 1], [], []>} : vector<4x4xbf16>, vector<4x8xbf16>, vector<4x8xf32> -> vector<4x8xf32>
    %1265 = arith.truncf %1264 : vector<4x8xf32> to vector<4x8xbf16>
    %c4_435 = arith.constant 4 : index
    %c0_436 = arith.constant 0 : index
    %c0_437 = arith.constant 0 : index
    %1266 = vector.load %arg13[%c4_435, %c0_436, %c0_437] : memref<8x8x32xbf16, #tpu.memory_space<vmem>>, vector<1x8x32xbf16>
    %1267 = vector.shape_cast %1266 : vector<1x8x32xbf16> to vector<8x32xbf16>
    %cst_438 = arith.constant dense<0.000000e+00> : vector<4x32xf32>
    %1268 = tpu.matmul %1265, %1267, %cst_438 {dimension_numbers = #tpu.dot_dimension_numbers<[1], [0], [0], [1], [0, 0, 1, 1], [], []>} : vector<4x8xbf16>, vector<8x32xbf16>, vector<4x32xf32> -> vector<4x32xf32>
    %1269 = vector.extract_strided_slice %1202 {offsets = [0, 24], sizes = [32, 24], strides = [1, 1]} : vector<32x224xbf16> to vector<32x24xbf16>
    %cst_439 = arith.constant dense<0.000000e+00> : vector<4x24xf32>
    %1270 = tpu.matmul %1235, %1269, %cst_439 {dimension_numbers = #tpu.dot_dimension_numbers<[1], [0], [0], [1], [0, 0, 1, 1], [], []>} : vector<4x32xbf16>, vector<32x24xbf16>, vector<4x24xf32> -> vector<4x24xf32>
    %1271 = vector.extract_strided_slice %1211 {offsets = [0, 24], sizes = [1, 24], strides = [1, 1]} : vector<1x96xf32> to vector<1x24xf32>
    %1272 = vector.broadcast %1271 : vector<1x24xf32> to vector<4x24xf32>
    %1273 = arith.addf %1270, %1272 : vector<4x24xf32>
    %1274 = vector.extract_strided_slice %1273 {offsets = [0, 0], sizes = [4, 8], strides = [1, 1]} : vector<4x24xf32> to vector<4x8xf32>
    %cst_440 = arith.constant 0.353553385 : f32
    %1275 = vector.broadcast %cst_440 : f32 to vector<4x8xf32>
    %1276 = arith.mulf %1274, %1275 : vector<4x8xf32>
    %1277 = vector.extract_strided_slice %1273 {offsets = [0, 8], sizes = [4, 8], strides = [1, 1]} : vector<4x24xf32> to vector<4x8xf32>
    %1278 = vector.extract_strided_slice %1273 {offsets = [0, 16], sizes = [4, 8], strides = [1, 1]} : vector<4x24xf32> to vector<4x8xf32>
    %c5_441 = arith.constant 5 : index
    %c0_442 = arith.constant 0 : index
    %c0_443 = arith.constant 0 : index
    %1279 = vector.load %arg14[%c5_441, %c0_442, %c0_443] : memref<8x4x4xf32, #tpu.memory_space<vmem>>, vector<1x4x4xf32>
    %1280 = vector.shape_cast %1279 : vector<1x4x4xf32> to vector<4x4xf32>
    %1281 = arith.truncf %1276 : vector<4x8xf32> to vector<4x8xbf16>
    %1282 = arith.truncf %1277 : vector<4x8xf32> to vector<4x8xbf16>
    %1283 = arith.truncf %1278 : vector<4x8xf32> to vector<4x8xbf16>
    "tpu.trace_start"() <{level = 10 : i32, message = "nd,md->nm"}> : () -> ()
    %cst_444 = arith.constant dense<0.000000e+00> : vector<4x4xf32>
    %1284 = tpu.matmul %1281, %1282, %cst_444 {dimension_numbers = #tpu.dot_dimension_numbers<[1], [1], [0], [0], [0, 0, 1, 0], [], []>} : vector<4x8xbf16>, vector<4x8xbf16>, vector<4x4xf32> -> vector<4x4xf32>
    "tpu.trace_stop"() : () -> ()
    %1285 = arith.addf %1284, %1280 : vector<4x4xf32>
    %cst_445 = arith.constant dense<0xFF800000> : vector<4xf32>
    %1286 = vector.multi_reduction <maximumf>, %1285, %cst_445 [1] : vector<4x4xf32> to vector<4xf32>
    %1287 = vector.shape_cast %1286 : vector<4xf32> to vector<4x1xf32>
    %1288 = vector.broadcast %1287 : vector<4x1xf32> to vector<4x4xf32>
    %1289 = arith.subf %1285, %1288 : vector<4x4xf32>
    %1290 = math.exp %1289 : vector<4x4xf32>
    %cst_446 = arith.constant dense<0.000000e+00> : vector<4xf32>
    %1291 = vector.multi_reduction <add>, %1290, %cst_446 [1] : vector<4x4xf32> to vector<4xf32>
    %1292 = vector.shape_cast %1291 : vector<4xf32> to vector<4x1xf32>
    %1293 = tpu.reciprocal %1292 {approx = true} : vector<4x1xf32> -> vector<4x1xf32>
    %1294 = vector.broadcast %1293 : vector<4x1xf32> to vector<4x4xf32>
    %1295 = arith.mulf %1290, %1294 : vector<4x4xf32>
    %1296 = arith.truncf %1295 : vector<4x4xf32> to vector<4x4xbf16>
    %cst_447 = arith.constant dense<0.000000e+00> : vector<4x8xf32>
    %1297 = tpu.matmul %1296, %1283, %cst_447 {dimension_numbers = #tpu.dot_dimension_numbers<[1], [0], [0], [1], [0, 0, 1, 1], [], []>} : vector<4x4xbf16>, vector<4x8xbf16>, vector<4x8xf32> -> vector<4x8xf32>
    %1298 = arith.truncf %1297 : vector<4x8xf32> to vector<4x8xbf16>
    %c5_448 = arith.constant 5 : index
    %c0_449 = arith.constant 0 : index
    %c0_450 = arith.constant 0 : index
    %1299 = vector.load %arg13[%c5_448, %c0_449, %c0_450] : memref<8x8x32xbf16, #tpu.memory_space<vmem>>, vector<1x8x32xbf16>
    %1300 = vector.shape_cast %1299 : vector<1x8x32xbf16> to vector<8x32xbf16>
    %cst_451 = arith.constant dense<0.000000e+00> : vector<4x32xf32>
    %1301 = tpu.matmul %1298, %1300, %cst_451 {dimension_numbers = #tpu.dot_dimension_numbers<[1], [0], [0], [1], [0, 0, 1, 1], [], []>} : vector<4x8xbf16>, vector<8x32xbf16>, vector<4x32xf32> -> vector<4x32xf32>
    %1302 = arith.addf %1268, %1301 : vector<4x32xf32>
    %1303 = vector.extract_strided_slice %1202 {offsets = [0, 48], sizes = [32, 24], strides = [1, 1]} : vector<32x224xbf16> to vector<32x24xbf16>
    %cst_452 = arith.constant dense<0.000000e+00> : vector<4x24xf32>
    %1304 = tpu.matmul %1235, %1303, %cst_452 {dimension_numbers = #tpu.dot_dimension_numbers<[1], [0], [0], [1], [0, 0, 1, 1], [], []>} : vector<4x32xbf16>, vector<32x24xbf16>, vector<4x24xf32> -> vector<4x24xf32>
    %1305 = vector.extract_strided_slice %1211 {offsets = [0, 48], sizes = [1, 24], strides = [1, 1]} : vector<1x96xf32> to vector<1x24xf32>
    %1306 = vector.broadcast %1305 : vector<1x24xf32> to vector<4x24xf32>
    %1307 = arith.addf %1304, %1306 : vector<4x24xf32>
    %1308 = vector.extract_strided_slice %1307 {offsets = [0, 0], sizes = [4, 8], strides = [1, 1]} : vector<4x24xf32> to vector<4x8xf32>
    %cst_453 = arith.constant 0.353553385 : f32
    %1309 = vector.broadcast %cst_453 : f32 to vector<4x8xf32>
    %1310 = arith.mulf %1308, %1309 : vector<4x8xf32>
    %1311 = vector.extract_strided_slice %1307 {offsets = [0, 8], sizes = [4, 8], strides = [1, 1]} : vector<4x24xf32> to vector<4x8xf32>
    %1312 = vector.extract_strided_slice %1307 {offsets = [0, 16], sizes = [4, 8], strides = [1, 1]} : vector<4x24xf32> to vector<4x8xf32>
    %c6_454 = arith.constant 6 : index
    %c0_455 = arith.constant 0 : index
    %c0_456 = arith.constant 0 : index
    %1313 = vector.load %arg14[%c6_454, %c0_455, %c0_456] : memref<8x4x4xf32, #tpu.memory_space<vmem>>, vector<1x4x4xf32>
    %1314 = vector.shape_cast %1313 : vector<1x4x4xf32> to vector<4x4xf32>
    %1315 = arith.truncf %1310 : vector<4x8xf32> to vector<4x8xbf16>
    %1316 = arith.truncf %1311 : vector<4x8xf32> to vector<4x8xbf16>
    %1317 = arith.truncf %1312 : vector<4x8xf32> to vector<4x8xbf16>
    "tpu.trace_start"() <{level = 10 : i32, message = "nd,md->nm"}> : () -> ()
    %cst_457 = arith.constant dense<0.000000e+00> : vector<4x4xf32>
    %1318 = tpu.matmul %1315, %1316, %cst_457 {dimension_numbers = #tpu.dot_dimension_numbers<[1], [1], [0], [0], [0, 0, 1, 0], [], []>} : vector<4x8xbf16>, vector<4x8xbf16>, vector<4x4xf32> -> vector<4x4xf32>
    "tpu.trace_stop"() : () -> ()
    %1319 = arith.addf %1318, %1314 : vector<4x4xf32>
    %cst_458 = arith.constant dense<0xFF800000> : vector<4xf32>
    %1320 = vector.multi_reduction <maximumf>, %1319, %cst_458 [1] : vector<4x4xf32> to vector<4xf32>
    %1321 = vector.shape_cast %1320 : vector<4xf32> to vector<4x1xf32>
    %1322 = vector.broadcast %1321 : vector<4x1xf32> to vector<4x4xf32>
    %1323 = arith.subf %1319, %1322 : vector<4x4xf32>
    %1324 = math.exp %1323 : vector<4x4xf32>
    %cst_459 = arith.constant dense<0.000000e+00> : vector<4xf32>
    %1325 = vector.multi_reduction <add>, %1324, %cst_459 [1] : vector<4x4xf32> to vector<4xf32>
    %1326 = vector.shape_cast %1325 : vector<4xf32> to vector<4x1xf32>
    %1327 = tpu.reciprocal %1326 {approx = true} : vector<4x1xf32> -> vector<4x1xf32>
    %1328 = vector.broadcast %1327 : vector<4x1xf32> to vector<4x4xf32>
    %1329 = arith.mulf %1324, %1328 : vector<4x4xf32>
    %1330 = arith.truncf %1329 : vector<4x4xf32> to vector<4x4xbf16>
    %cst_460 = arith.constant dense<0.000000e+00> : vector<4x8xf32>
    %1331 = tpu.matmul %1330, %1317, %cst_460 {dimension_numbers = #tpu.dot_dimension_numbers<[1], [0], [0], [1], [0, 0, 1, 1], [], []>} : vector<4x4xbf16>, vector<4x8xbf16>, vector<4x8xf32> -> vector<4x8xf32>
    %1332 = arith.truncf %1331 : vector<4x8xf32> to vector<4x8xbf16>
    %c6_461 = arith.constant 6 : index
    %c0_462 = arith.constant 0 : index
    %c0_463 = arith.constant 0 : index
    %1333 = vector.load %arg13[%c6_461, %c0_462, %c0_463] : memref<8x8x32xbf16, #tpu.memory_space<vmem>>, vector<1x8x32xbf16>
    %1334 = vector.shape_cast %1333 : vector<1x8x32xbf16> to vector<8x32xbf16>
    %cst_464 = arith.constant dense<0.000000e+00> : vector<4x32xf32>
    %1335 = tpu.matmul %1332, %1334, %cst_464 {dimension_numbers = #tpu.dot_dimension_numbers<[1], [0], [0], [1], [0, 0, 1, 1], [], []>} : vector<4x8xbf16>, vector<8x32xbf16>, vector<4x32xf32> -> vector<4x32xf32>
    %1336 = arith.addf %1302, %1335 : vector<4x32xf32>
    %1337 = vector.extract_strided_slice %1202 {offsets = [0, 72], sizes = [32, 24], strides = [1, 1]} : vector<32x224xbf16> to vector<32x24xbf16>
    %cst_465 = arith.constant dense<0.000000e+00> : vector<4x24xf32>
    %1338 = tpu.matmul %1235, %1337, %cst_465 {dimension_numbers = #tpu.dot_dimension_numbers<[1], [0], [0], [1], [0, 0, 1, 1], [], []>} : vector<4x32xbf16>, vector<32x24xbf16>, vector<4x24xf32> -> vector<4x24xf32>
    %1339 = vector.extract_strided_slice %1211 {offsets = [0, 72], sizes = [1, 24], strides = [1, 1]} : vector<1x96xf32> to vector<1x24xf32>
    %1340 = vector.broadcast %1339 : vector<1x24xf32> to vector<4x24xf32>
    %1341 = arith.addf %1338, %1340 : vector<4x24xf32>
    %1342 = vector.extract_strided_slice %1341 {offsets = [0, 0], sizes = [4, 8], strides = [1, 1]} : vector<4x24xf32> to vector<4x8xf32>
    %cst_466 = arith.constant 0.353553385 : f32
    %1343 = vector.broadcast %cst_466 : f32 to vector<4x8xf32>
    %1344 = arith.mulf %1342, %1343 : vector<4x8xf32>
    %1345 = vector.extract_strided_slice %1341 {offsets = [0, 8], sizes = [4, 8], strides = [1, 1]} : vector<4x24xf32> to vector<4x8xf32>
    %1346 = vector.extract_strided_slice %1341 {offsets = [0, 16], sizes = [4, 8], strides = [1, 1]} : vector<4x24xf32> to vector<4x8xf32>
    %c7_467 = arith.constant 7 : index
    %c0_468 = arith.constant 0 : index
    %c0_469 = arith.constant 0 : index
    %1347 = vector.load %arg14[%c7_467, %c0_468, %c0_469] : memref<8x4x4xf32, #tpu.memory_space<vmem>>, vector<1x4x4xf32>
    %1348 = vector.shape_cast %1347 : vector<1x4x4xf32> to vector<4x4xf32>
    %1349 = arith.truncf %1344 : vector<4x8xf32> to vector<4x8xbf16>
    %1350 = arith.truncf %1345 : vector<4x8xf32> to vector<4x8xbf16>
    %1351 = arith.truncf %1346 : vector<4x8xf32> to vector<4x8xbf16>
    "tpu.trace_start"() <{level = 10 : i32, message = "nd,md->nm"}> : () -> ()
    %cst_470 = arith.constant dense<0.000000e+00> : vector<4x4xf32>
    %1352 = tpu.matmul %1349, %1350, %cst_470 {dimension_numbers = #tpu.dot_dimension_numbers<[1], [1], [0], [0], [0, 0, 1, 0], [], []>} : vector<4x8xbf16>, vector<4x8xbf16>, vector<4x4xf32> -> vector<4x4xf32>
    "tpu.trace_stop"() : () -> ()
    %1353 = arith.addf %1352, %1348 : vector<4x4xf32>
    %cst_471 = arith.constant dense<0xFF800000> : vector<4xf32>
    %1354 = vector.multi_reduction <maximumf>, %1353, %cst_471 [1] : vector<4x4xf32> to vector<4xf32>
    %1355 = vector.shape_cast %1354 : vector<4xf32> to vector<4x1xf32>
    %1356 = vector.broadcast %1355 : vector<4x1xf32> to vector<4x4xf32>
    %1357 = arith.subf %1353, %1356 : vector<4x4xf32>
    %1358 = math.exp %1357 : vector<4x4xf32>
    %cst_472 = arith.constant dense<0.000000e+00> : vector<4xf32>
    %1359 = vector.multi_reduction <add>, %1358, %cst_472 [1] : vector<4x4xf32> to vector<4xf32>
    %1360 = vector.shape_cast %1359 : vector<4xf32> to vector<4x1xf32>
    %1361 = tpu.reciprocal %1360 {approx = true} : vector<4x1xf32> -> vector<4x1xf32>
    %1362 = vector.broadcast %1361 : vector<4x1xf32> to vector<4x4xf32>
    %1363 = arith.mulf %1358, %1362 : vector<4x4xf32>
    %1364 = arith.truncf %1363 : vector<4x4xf32> to vector<4x4xbf16>
    %cst_473 = arith.constant dense<0.000000e+00> : vector<4x8xf32>
    %1365 = tpu.matmul %1364, %1351, %cst_473 {dimension_numbers = #tpu.dot_dimension_numbers<[1], [0], [0], [1], [0, 0, 1, 1], [], []>} : vector<4x4xbf16>, vector<4x8xbf16>, vector<4x8xf32> -> vector<4x8xf32>
    %1366 = arith.truncf %1365 : vector<4x8xf32> to vector<4x8xbf16>
    %c7_474 = arith.constant 7 : index
    %c0_475 = arith.constant 0 : index
    %c0_476 = arith.constant 0 : index
    %1367 = vector.load %arg13[%c7_474, %c0_475, %c0_476] : memref<8x8x32xbf16, #tpu.memory_space<vmem>>, vector<1x8x32xbf16>
    %1368 = vector.shape_cast %1367 : vector<1x8x32xbf16> to vector<8x32xbf16>
    %cst_477 = arith.constant dense<0.000000e+00> : vector<4x32xf32>
    %1369 = tpu.matmul %1366, %1368, %cst_477 {dimension_numbers = #tpu.dot_dimension_numbers<[1], [0], [0], [1], [0, 0, 1, 1], [], []>} : vector<4x8xbf16>, vector<8x32xbf16>, vector<4x32xf32> -> vector<4x32xf32>
    %1370 = arith.addf %1336, %1369 : vector<4x32xf32>
    %1371 = arith.addf %1200, %1370 : vector<4x32xf32>
    %1372 = vector.broadcast %1212 : vector<1x32xf32> to vector<4x32xf32>
    %1373 = arith.addf %1371, %1372 : vector<4x32xf32>
    %cst_478 = arith.constant dense<0.000000e+00> : vector<4xf32>
    %1374 = vector.multi_reduction <add>, %1373, %cst_478 [1] : vector<4x32xf32> to vector<4xf32>
    %1375 = vector.shape_cast %1374 : vector<4xf32> to vector<4x1xf32>
    %cst_479 = arith.constant 3.200000e+01 : f32
    %1376 = vector.broadcast %cst_479 : f32 to vector<4x1xf32>
    %1377 = arith.divf %1375, %1376 : vector<4x1xf32>
    %1378 = vector.broadcast %1377 : vector<4x1xf32> to vector<4x32xf32>
    %1379 = arith.subf %1373, %1378 : vector<4x32xf32>
    %1380 = arith.mulf %1379, %1379 : vector<4x32xf32>
    %cst_480 = arith.constant dense<0.000000e+00> : vector<4xf32>
    %1381 = vector.multi_reduction <add>, %1380, %cst_480 [1] : vector<4x32xf32> to vector<4xf32>
    %1382 = vector.shape_cast %1381 : vector<4xf32> to vector<4x1xf32>
    %cst_481 = arith.constant 3.200000e+01 : f32
    %1383 = vector.broadcast %cst_481 : f32 to vector<4x1xf32>
    %1384 = arith.divf %1382, %1383 : vector<4x1xf32>
    %cst_482 = arith.constant 9.99999974E-6 : f32
    %1385 = vector.broadcast %cst_482 : f32 to vector<4x1xf32>
    %1386 = arith.addf %1384, %1385 : vector<4x1xf32>
    %1387 = math.rsqrt %1386 : vector<4x1xf32>
    %1388 = vector.broadcast %1387 : vector<4x1xf32> to vector<4x32xf32>
    %1389 = arith.mulf %1379, %1388 : vector<4x32xf32>
    %1390 = vector.broadcast %1209 : vector<1x32xf32> to vector<4x32xf32>
    %1391 = arith.mulf %1389, %1390 : vector<4x32xf32>
    %1392 = vector.broadcast %1210 : vector<1x32xf32> to vector<4x32xf32>
    %1393 = arith.addf %1391, %1392 : vector<4x32xf32>
    %1394 = vector.extract_strided_slice %1202 {offsets = [0, 96], sizes = [32, 128], strides = [1, 1]} : vector<32x224xbf16> to vector<32x128xbf16>
    %1395 = arith.truncf %1393 : vector<4x32xf32> to vector<4x32xbf16>
    %cst_483 = arith.constant dense<0.000000e+00> : vector<4x128xf32>
    %1396 = tpu.matmul %1395, %1394, %cst_483 {dimension_numbers = #tpu.dot_dimension_numbers<[1], [0], [0], [1], [0, 0, 1, 1], [], []>} : vector<4x32xbf16>, vector<32x128xbf16>, vector<4x128xf32> -> vector<4x128xf32>
    %1397 = vector.broadcast %1213 : vector<1x128xf32> to vector<4x128xf32>
    %1398 = arith.addf %1396, %1397 : vector<4x128xf32>
    %cst_484 = arith.constant 5.000000e-01 : f32
    %1399 = vector.broadcast %cst_484 : f32 to vector<4x128xf32>
    %1400 = arith.mulf %1399, %1398 : vector<4x128xf32>
    %cst_485 = arith.constant 0.707106769 : f32
    %1401 = vector.broadcast %cst_485 : f32 to vector<4x128xf32>
    %1402 = arith.mulf %1398, %1401 : vector<4x128xf32>
    %1403 = math.erf %1402 : vector<4x128xf32>
    %cst_486 = arith.constant 1.000000e+00 : f32
    %1404 = vector.broadcast %cst_486 : f32 to vector<4x128xf32>
    %1405 = arith.addf %1404, %1403 : vector<4x128xf32>
    %1406 = arith.mulf %1400, %1405 : vector<4x128xf32>
    %1407 = arith.truncf %1406 : vector<4x128xf32> to vector<4x128xbf16>
    %cst_487 = arith.constant dense<0.000000e+00> : vector<4x32xf32>
    %1408 = tpu.matmul %1407, %1206, %cst_487 {dimension_numbers = #tpu.dot_dimension_numbers<[1], [0], [0], [1], [0, 0, 1, 1], [], []>} : vector<4x128xbf16>, vector<128x32xbf16>, vector<4x32xf32> -> vector<4x32xf32>
    %1409 = arith.addf %1373, %1408 : vector<4x32xf32>
    %1410 = vector.broadcast %1214 : vector<1x32xf32> to vector<4x32xf32>
    %1411 = arith.addf %1409, %1410 : vector<4x32xf32>
    %1412 = vector.extract_strided_slice %1 {offsets = [21, 0], sizes = [1, 32], strides = [1, 1]} : vector<24x64xf32> to vector<1x32xf32>
    %1413 = vector.extract_strided_slice %1 {offsets = [22, 0], sizes = [1, 32], strides = [1, 1]} : vector<24x64xf32> to vector<1x32xf32>
    %cst_488 = arith.constant dense<0.000000e+00> : vector<4xf32>
    %1414 = vector.multi_reduction <add>, %1411, %cst_488 [1] : vector<4x32xf32> to vector<4xf32>
    %1415 = vector.shape_cast %1414 : vector<4xf32> to vector<4x1xf32>
    %cst_489 = arith.constant 3.200000e+01 : f32
    %1416 = vector.broadcast %cst_489 : f32 to vector<4x1xf32>
    %1417 = arith.divf %1415, %1416 : vector<4x1xf32>
    %1418 = vector.broadcast %1417 : vector<4x1xf32> to vector<4x32xf32>
    %1419 = arith.subf %1411, %1418 : vector<4x32xf32>
    %1420 = arith.mulf %1419, %1419 : vector<4x32xf32>
    %cst_490 = arith.constant dense<0.000000e+00> : vector<4xf32>
    %1421 = vector.multi_reduction <add>, %1420, %cst_490 [1] : vector<4x32xf32> to vector<4xf32>
    %1422 = vector.shape_cast %1421 : vector<4xf32> to vector<4x1xf32>
    %cst_491 = arith.constant 3.200000e+01 : f32
    %1423 = vector.broadcast %cst_491 : f32 to vector<4x1xf32>
    %1424 = arith.divf %1422, %1423 : vector<4x1xf32>
    %cst_492 = arith.constant 9.99999974E-6 : f32
    %1425 = vector.broadcast %cst_492 : f32 to vector<4x1xf32>
    %1426 = arith.addf %1424, %1425 : vector<4x1xf32>
    %1427 = math.rsqrt %1426 : vector<4x1xf32>
    %1428 = vector.broadcast %1427 : vector<4x1xf32> to vector<4x32xf32>
    %1429 = arith.mulf %1419, %1428 : vector<4x32xf32>
    %1430 = vector.broadcast %1412 : vector<1x32xf32> to vector<4x32xf32>
    %1431 = arith.mulf %1429, %1430 : vector<4x32xf32>
    %1432 = vector.broadcast %1413 : vector<1x32xf32> to vector<4x32xf32>
    %1433 = arith.addf %1431, %1432 : vector<4x32xf32>
    %cst_493 = arith.constant 5.000000e-01 : f32
    %1434 = vector.broadcast %cst_493 : f32 to vector<4x32xf32>
    %1435 = arith.mulf %1434, %1433 : vector<4x32xf32>
    %cst_494 = arith.constant 0.707106769 : f32
    %1436 = vector.broadcast %cst_494 : f32 to vector<4x32xf32>
    %1437 = arith.mulf %1433, %1436 : vector<4x32xf32>
    %1438 = math.erf %1437 : vector<4x32xf32>
    %cst_495 = arith.constant 1.000000e+00 : f32
    %1439 = vector.broadcast %cst_495 : f32 to vector<4x32xf32>
    %1440 = arith.addf %1439, %1438 : vector<4x32xf32>
    %1441 = arith.mulf %1435, %1440 : vector<4x32xf32>
    %c64 = arith.constant 64 : index
    %c0_496 = arith.constant 0 : index
    %1442 = vector.load %arg3[%c64, %c0_496] : memref<160x64xbf16, #tpu.memory_space<vmem>>, vector<32x64xbf16>
    %1443 = arith.truncf %1441 : vector<4x32xf32> to vector<4x32xbf16>
    %cst_497 = arith.constant dense<0.000000e+00> : vector<4x64xf32>
    %1444 = tpu.matmul %1443, %1442, %cst_497 {dimension_numbers = #tpu.dot_dimension_numbers<[1], [0], [0], [1], [0, 0, 1, 1], [], []>} : vector<4x32xbf16>, vector<32x64xbf16>, vector<4x64xf32> -> vector<4x64xf32>
    %1445 = vector.extract_strided_slice %1 {offsets = [23, 0], sizes = [1, 64], strides = [1, 1]} : vector<24x64xf32> to vector<1x64xf32>
    %1446 = vector.broadcast %1445 : vector<1x64xf32> to vector<4x64xf32>
    %1447 = arith.addf %1444, %1446 : vector<4x64xf32>
    %c0_498 = arith.constant 0 : index
    %c0_499 = arith.constant 0 : index
    %c0_500 = arith.constant 0 : index
    %1448 = vector.load %arg15[%c0_498, %c0_499, %c0_500] : memref<1x4x64xf32, #tpu.memory_space<vmem>>, vector<1x4x64xf32>
    %1449 = vector.shape_cast %1448 : vector<1x4x64xf32> to vector<4x64xf32>
    %1450 = vector.shape_cast %1447 : vector<4x64xf32> to vector<1x4x64xf32>
    tpu.vector_store %arg15[%c0_498, %c0_499, %c0_500], %1450 {strides = array<i32>} : memref<1x4x64xf32, #tpu.memory_space<vmem>>, vector<1x4x64xf32>,
    return
  }
  func.func @transform_0(%arg0: i32) -> (i32, i32) {
    %c0_i32 = arith.constant 0 : i32
    %c0_i32_0 = arith.constant 0 : i32
    return %arg0, %c0_i32 : i32, i32
  }
  func.func @transform_1(%arg0: i32) -> (i32, i32) {
    %c0_i32 = arith.constant 0 : i32
    %c0_i32_0 = arith.constant 0 : i32
    %c0_i32_1 = arith.constant 0 : i32
    return %c0_i32, %c0_i32_0 : i32, i32
  }
  func.func @transform_2(%arg0: i32) -> (i32, i32) {
    %c0_i32 = arith.constant 0 : i32
    %c0_i32_0 = arith.constant 0 : i32
    %c0_i32_1 = arith.constant 0 : i32
    return %c0_i32, %c0_i32_0 : i32, i32
  }
  func.func @transform_3(%arg0: i32) -> (i32, i32, i32) {
    %c0_i32 = arith.constant 0 : i32
    %c0_i32_0 = arith.constant 0 : i32
    %c0_i32_1 = arith.constant 0 : i32
    %c0_i32_2 = arith.constant 0 : i32
    return %c0_i32, %c0_i32_0, %c0_i32_1 : i32, i32, i32
  }
  func.func @transform_4(%arg0: i32) -> (i32, i32, i32) {
    %c0_i32 = arith.constant 0 : i32
    %c0_i32_0 = arith.constant 0 : i32
    %c0_i32_1 = arith.constant 0 : i32
    %c0_i32_2 = arith.constant 0 : i32
    return %c0_i32, %c0_i32_0, %c0_i32_1 : i32, i32, i32
  }
  func.func @transform_5(%arg0: i32) -> (i32, i32, i32) {
    %c0_i32 = arith.constant 0 : i32
    %c0_i32_0 = arith.constant 0 : i32
    %c0_i32_1 = arith.constant 0 : i32
    %c0_i32_2 = arith.constant 0 : i32
    return %c0_i32, %c0_i32_0, %c0_i32_1 : i32, i32, i32
  }
  func.func @transform_6(%arg0: i32) -> (i32, i32, i32) {
    %c0_i32 = arith.constant 0 : i32
    %c0_i32_0 = arith.constant 0 : i32
    %c0_i32_1 = arith.constant 0 : i32
    %c0_i32_2 = arith.constant 0 : i32
    return %c0_i32, %c0_i32_0, %c0_i32_1 : i32, i32, i32
  }
  func.func @transform_7(%arg0: i32) -> (i32, i32, i32) {
    %c0_i32 = arith.constant 0 : i32
    %c0_i32_0 = arith.constant 0 : i32
    %c0_i32_1 = arith.constant 0 : i32
    %c0_i32_2 = arith.constant 0 : i32
    return %c0_i32, %c0_i32_0, %c0_i32_1 : i32, i32, i32
  }
  func.func @transform_8(%arg0: i32) -> (i32, i32, i32) {
    %c0_i32 = arith.constant 0 : i32
    %c0_i32_0 = arith.constant 0 : i32
    %c0_i32_1 = arith.constant 0 : i32
    %c0_i32_2 = arith.constant 0 : i32
    return %c0_i32, %c0_i32_0, %c0_i32_1 : i32, i32, i32
  }
  func.func @transform_9(%arg0: i32) -> (i32, i32, i32) {
    %c0_i32 = arith.constant 0 : i32
    %c0_i32_0 = arith.constant 0 : i32
    %c0_i32_1 = arith.constant 0 : i32
    %c0_i32_2 = arith.constant 0 : i32
    return %c0_i32, %c0_i32_0, %c0_i32_1 : i32, i32, i32
  }
  func.func @transform_10(%arg0: i32) -> (i32, i32, i32) {
    %c0_i32 = arith.constant 0 : i32
    %c0_i32_0 = arith.constant 0 : i32
    %c0_i32_1 = arith.constant 0 : i32
    %c0_i32_2 = arith.constant 0 : i32
    return %c0_i32, %c0_i32_0, %c0_i32_1 : i32, i32, i32
  }
  func.func @transform_11(%arg0: i32) -> (i32, i32, i32) {
    %c0_i32 = arith.constant 0 : i32
    %c0_i32_0 = arith.constant 0 : i32
    %c0_i32_1 = arith.constant 0 : i32
    %c0_i32_2 = arith.constant 0 : i32
    return %c0_i32, %c0_i32_0, %c0_i32_1 : i32, i32, i32
  }
  func.func @transform_12(%arg0: i32) -> (i32, i32, i32) {
    %c0_i32 = arith.constant 0 : i32
    %c0_i32_0 = arith.constant 0 : i32
    %c0_i32_1 = arith.constant 0 : i32
    %c0_i32_2 = arith.constant 0 : i32
    return %c0_i32, %c0_i32_0, %c0_i32_1 : i32, i32, i32
  }
  func.func @transform_13(%arg0: i32) -> (i32, i32, i32) {
    %c0_i32 = arith.constant 0 : i32
    %c0_i32_0 = arith.constant 0 : i32
    %c0_i32_1 = arith.constant 0 : i32
    %c0_i32_2 = arith.constant 0 : i32
    return %c0_i32, %c0_i32_0, %c0_i32_1 : i32, i32, i32
  }
  func.func @transform_14(%arg0: i32) -> (i32, i32, i32) {
    %c0_i32 = arith.constant 0 : i32
    %c0_i32_0 = arith.constant 0 : i32
    %c0_i32_1 = arith.constant 0 : i32
    return %arg0, %c0_i32, %c0_i32_0 : i32, i32, i32
  }
}

</mosaic_0001>

<bundles_post_ra>
// kernel: vq_encoder_forward.1
= control target key start
LH: loop header
LB: loop body
LE: loop exit
PB: predicated region body
PF: predicated region fallthrough
CT: control target
= control target key end

     0   :  { %s11758_s0 = inlined_call_operand.vmem [shape: f32[32,64], index: 0, kind: input, shape index: {}]   ;;  %s11759_s1 = inlined_call_operand.vmem [shape: f32[24,64], index: 1, kind: input, shape index: {}]   ;;  %s11760_s2 = inlined_call_operand.vmem [shape: bf16[160,64], index: 2, kind: input, shape index: {}]   ;;  %s11761_s3 = inlined_call_operand.vmem [shape: f32[4,4,16], index: 3, kind: input, shape index: {}]   ;;  %s11762_s4 = inlined_call_operand.vmem [shape: bf16[4,16,112], index: 4, kind: input, shape index: {}]   ;;  %s11763_s5 = inlined_call_operand.vmem [shape: f32[4,8,64], index: 5, kind: input, shape index: {}]   ;;  %s11764_s6 = inlined_call_operand.vmem [shape: bf16[4,64,16], index: 6, kind: input, shape index: {}]   ;;  %s11765_s7 = inlined_call_operand.vmem [shape: bf16[16,4,16], index: 7, kind: input, shape index: {}]   ;;  %s11766_s8 = inlined_call_operand.vmem [shape: f32[16,16,16], index: 8, kind: input, shape index: {}]   ;;  %s11767_s9 = inlined_call_operand.vmem [shape: bf16[2,32,224], index: 9, kind: input, shape index: {}]   ;;  %s11768_s10 = inlined_call_operand.vmem [shape: f32[2,8,128], index: 10, kind: input, shape index: {}]   ;;  %s11769_s11 = inlined_call_operand.vmem [shape: bf16[2,128,32], index: 11, kind: input, shape index: {}]   ;;  %s11770_s12 = inlined_call_operand.vmem [shape: bf16[8,8,32], index: 12, kind: input, shape index: {}]   ;;  %s11771_s13 = inlined_call_operand.vmem [shape: f32[8,4,4], index: 13, kind: input, shape index: {}]   ;;  %s11772_s14 = inlined_call_operand.hbm [shape: f32[2,4,64], index: 14, kind: output, shape index: {}]  }
   0x1   :  { %11792 = sst [smem:[#allocation10_spill]] %s11758_s0 }
   0x2   :  { %19 = vsyncpa [#allocation3], 0 }
   0x3   :  { %21 = vsyncpa [#allocation3 + $0x1], 0  ;;  %s10050_s29 = smov 0   ;;  %s10052_s30 = smov 0  }
   0x4   :  { %s10054_s15 = smov 0   ;;  %s10056_s16 = smov 0  }
   0x5 LB: > { %11793 = sst [smem:[#allocation5_spill]] %s9947_s29  ;;  %s10071_s17 = sadd.s32 4294967295, %s9959_s16   ;;  %s9959_s16 = sphi %s10056_s16, %s11810_s16   ;;  %s9955_s15 = sphi %s10054_s15, %s11815_s15   ;;  %s9951_s30 = sphi %s10052_s30, %s11814_s30   ;;  %s9947_s29 = sphi %s10050_s29, %s11813_s29  }
   0x6   : > { %11794 = sst [smem:[#allocation6_spill]] %s9955_s15  ;;  %s8162_s18 = sadd.s32 4294967294, %s9959_s16  }
   0x7   : > { %s10075_s19 = sadd.s32 1, %s9959_s16   ;;  %s333_s20 = sadd.s32 1, %s9955_s15 }
   0x8   : > { %11795 = sst [smem:[#allocation7_spill]] %s10075_s19  ;;  %s330_s21 = ssub.s32 %s9959_s16, %s10075_s19 }
   0x9   : > { %p343_p0 = scmp.ne.s32.totalorder %s9955_s15, %s9951_s30  ;;  %p331_p1 = scmp.eq.s32.totalorder %s330_s21, 0 }
   0xa   : > { %p344_p2 = scmp.eq.s32.totalorder %s10071_s17, 1  ;;  %p349_p3 = scmp.ne.s32.totalorder %s9951_s30, %s9947_s29 }
   0xb   : > { %p350_p4 = scmp.eq.s32.totalorder %s8162_s18, 1  ;;  %p8165_p7 = scmp.ge.s32.totalorder %s9959_s16, 1 }
   0xc   : > { %s10086_s22 = scalar_select %p331_p1, %s9955_s15, %s333_s20  }
   0xd   : > { %p10088_p5 = por %p344_p2, %p343_p0  ;;  %p10092_p6 = por %p350_p4, %p349_p3 }
   0xe   : > { %11796 = sst [smem:[#allocation8_spill]] %s10086_s22  ;;  %p416_p8 = scmp.lt.s32.totalorder %s9959_s16, 3 }
   0xf   : > { %s11798_s24 = scalar_select %p10092_p6, 1, 0 }
  0x10   : > { %p417_p9 = pnand %p8165_p7, %p416_p8 }
  0x11   : > { %11799 = sst [smem:[#allocation9_spill]] %s11798_s24  ;;  %v9607_v0 = vld [vmem:[%s11760_s2] sm:$0xff] (!%p417_p9)   ;;  %v9961_v1 = vmov (!%p417_p9), 0.0   ;;  %v9608_v2 = vld [vmem:[%s11760_s2 + $0x8] sm:$0xff] (!%p417_p9)   ;;  %vm9962_vm0 = vmmov (!%p417_p9), 0   ;;  %s8167_s18 = sshll.u32 (!%p417_p9), %s10071_s17, 1  ;;  %v483_v8 = vlaneseq (!%p417_p9) }
  0x12   : > { %420 = sbr.rel (%p417_p9) target bundleno = 32065 (0x7d41), region = 76  ;;  %8739 = vmatprep.subr.bf16.mxu0 (!%p417_p9), %v9961_v1  ;;  %8751 = vmatprep.subr.bf16.mxu1 (!%p417_p9), %v9961_v1  ;;  %p463_p10 = scmp.lt.s32.totalorder (!%p417_p9), %s8167_s18, 3  ;;  %v9609_v3 = vld [vmem:[%s11760_s2 + $0x10] sm:$0xff] (!%p417_p9)   ;;  %v9610_v4 = vld [vmem:[%s11760_s2 + $0x18] sm:$0xff] (!%p417_p9)   ;;  %vm511_vm1 = vcmask (!%p417_p9), 523264   ;;  %v471_v11 = vld [vmem:[%s11759_s1] sm:$0xff] (!%p417_p9) }
  0x13   : > { %8740 = vmatpush3.bf16.msra.mxu0 (!%p417_p9), %v9607_v0  ;;  %8747 = vmatprep.mubr.msk.bf16.mxu0 (!%p417_p9), %vm9962_vm0, %v9961_v1  ;;  %s11800_s0 = sld [smem:[#allocation10_spill]] (!%p417_p9)  ;;  %v10127_v9 = vshrl.u32 (!%p417_p9), %v483_v8, 7  ;;  %vm556_vm2 = vcmask (!%p417_p9), 130048   ;;  %v472_v38 = vld [vmem:[%s11759_s1 + $0x8] sm:$0xff] (!%p417_p9)  ;;  %v600_v42 = vrot.slane (!%p417_p9), %v471_v11, 3  ;;  %vm599_vm3 = vcmask (!%p417_p9), 1044480  }
  0x14   : > { %8741 = vmatprep.subr.bf16.mxu0 (!%p417_p9), %v9961_v1  ;;  %8753 = vmatprep.mubr.msk.bf16.mxu1 (!%p417_p9), %vm9962_vm0, %v9961_v1  ;;  %v601_v43 = vrot.slane (!%p417_p9), %v472_v38, 3  ;;  %v473_v46 = vld [vmem:[%s11759_s1 + $0x10] sm:$0xff] (!%p417_p9)  ;;  %s11782_s22 = smov (!%p417_p9), 116   ;;  %vm722_vm4 = vcmask (!%p417_p9), 31744   ;;  %s11780_s27 = smov (!%p417_p9), 120   ;;  %vm1023_vm5 = vcmask (!%p417_p9), 1041408  }
  0x15   : > { %v10130_v10 = vsub.s32 (!%p417_p9), 0, %v10127_v9  ;;  %v10141_v37 = vsub.s32 (!%p417_p9), 1, %v10127_v9  ;;  %v10147_v39 = vsub.s32 (!%p417_p9), 2, %v10127_v9  ;;  %v603_v50 = vrot.slane (!%p417_p9), %v473_v46, 3  ;;  %s11776_s20 = smov (!%p417_p9), 92   ;;  %s11774_s21 = smov (!%p417_p9), 80  }
  0x16   : > { %v602_v49 = vsel (!%p417_p9), %vm599_vm3, %v600_v42, %v601_v43  ;;  %s11802_s26 = smov (!%p417_p9), 104   ;;  %s11803_s28 = smov (!%p417_p9), 92   ;;  %vm5489_vm6 = vcmask (!%p417_p9), 125952   ;;  %vm5806_vm7 = vcmask (!%p417_p9), 257024   ;;  %vm5848_vm8 = vcmask (!%p417_p9), 261120  }
  0x17   : > { %8742 = vmatpush3.bf16.msra.mxu0 (!%p417_p9), %v9608_v2  ;;  %v486_v12 = vrot.slane (!%p417_p9), %v471_v11, %v10130_v10  ;;  %v587_v40 = vrot.slane (!%p417_p9), %v471_v11, %v10141_v37  ;;  %v593_v45 = vrot.slane (!%p417_p9), %v471_v11, %v10147_v39  ;;  %v604_v55 = vsel (!%p417_p9), %vm599_vm3, %v601_v43, %v603_v50  ;;  %s9971_s24 = smov (!%p417_p9), 96   ;;  %s9973_s29 = smov (!%p417_p9), 32  }
  0x18   : > { %8743 = vmatprep.subr.bf16.mxu0 (!%p417_p9), %v9961_v1  ;;  %vm5899_vm9 = vcmask (!%p417_p9), 64512   ;;  %vm5946_vm10 = vcmask (!%p417_p9), 27648   ;;  %vm6179_vm11 = vcmask (!%p417_p9), 1043456   ;;  %s8456_s19 = sshll.u32 (!%p417_p9), %s10071_s17, 6  ;;  %vm8087_vm12 = vcmask (!%p417_p9), 519168  }
  0x19   : > { %s11817_s18 = smov (!%p463_p10, %s8167_s18), 3 }
  0x1a   : > { %s8168_s25 = sshll.u32 %s11817_s18, 3  ;;  %s11784_s18 = smov 124  }
  0x1b   : > { %s466_s15 = scalar_lea.vmem %s11800_s0, %s8168_s25  ;;  %8744 = vmatpush3.bf16.msra.mxu0 %v9609_v3  ;;  %s11778_s25 = smov 104  }
  0x1c   : > { %v469_v5 = vld [vmem:[%s466_s15] sm:$0xff]  ;;  %v470_v6 = vld [vmem:[%s466_s15 + $0x8] sm:$0xff]  ;;  %8745 = vmatprep.subr.bf16.mxu0 %v9961_v1  ;;  %s11806_s15 = smov 116  }
  0x1d   : > { %v482_v7 = vpack.c.bf16 %v470_v6, %v469_v5 }
  0x1f   : > { %8746 = vmatpush3.bf16.msra.mxu0 %v9610_v4 }
  0x20   : > { %8757 = vmatprep.subr.bf16.mxu0 %v9961_v1 }
  0x22   : > { %8748 = vmatmul.mubr.msk.bf16.vlgmr.msra.gmra.mrb[0].mxu0 %vm511_vm1, %v482_v7  ;;  %v10169_v7 = vld [vmem:[%s11762_s4] sm:$0xff]  }
  0x23   : > { %8759 = vmatprep.mubr.msk.bf16.mxu0 %vm9962_vm0, %v9961_v1  ;;  %8752 = vmatpush3.bf16.msra.mxu1 %v10169_v7 }
  0x24   : > { %8763 = vmatprep.subr.bf16.mxu1 %v9961_v1 }
  0xf5   : > { %v549_v13 = vpop.f32.mrb[0].mxu0 }
  0xf6   : > { %v550_v14 = vadd.f32 %v549_v13, %v486_v12  ;;  %v8749_v15 = vpop.f32.mrb[1].mxu0 }
  0xf7   : > { %v552_v16 = vpop.f32.mrb[2].mxu0 }
  0xf8   : > { %v553_v17 = vadd.f32 %v552_v16, %v486_v12  ;;  %v8750_v18 = vpop.f32.mrb[3].mxu0  ;;  %v557_v19 = vsel %vm556_vm2, %v550_v14, 0.0  ;;  %v10176_v16 = vld [vmem:[%s11763_s5] sm:$0xff] }
  0xf9   : > { %558 = vadd.xlane.f32.xlu0 %v557_v19  ;;  %v649_v19 = vrot.slane %v10176_v16, %v10130_v10 }
  0xfa   : > { %v560_v20 = vsel %vm556_vm2, %v553_v17, 0.0 }
  0xfd   : > { %561 = vadd.xlane.f32.xlu0 %v560_v20 }
 0x186   : > { %v559_v21 = vpop.xlane.xlu0 %558 }
 0x187   : > { %v564_v22 = vmul.f32 0.0625, %v559_v21 }
 0x189   : > { %v566_v23 = vsub.f32 %v550_v14, %v564_v22 }
 0x18a   : > { %v562_v24 = vpop.xlane.xlu0 %561 }
 0x18b   : > { %v565_v25 = vmul.f32 0.0625, %v562_v24  ;;  %v568_v26 = vmul.f32 %v566_v23, %v566_v23 }
 0x18d   : > { %v567_v27 = vsub.f32 %v553_v17, %v565_v25  ;;  %v570_v28 = vsel %vm556_vm2, %v568_v26, 0.0 }
 0x18e   : > { %571 = vadd.xlane.f32.xlu1 %v570_v28  ;;  %v10191_v28 = vsub.s32 4, %v10127_v9 }
 0x18f   : > { %v569_v29 = vmul.f32 %v567_v27, %v567_v27 }
 0x191   : > { %v573_v30 = vsel %vm556_vm2, %v569_v29, 0.0  ;;  %v10195_v29 = vrot.slane %v10176_v16, %v10191_v28 }
 0x192   : > { %574 = vadd.xlane.f32.xlu1 %v573_v30 }
 0x21b   : > { %v572_v31 = vpop.xlane.xlu1 %571 }
 0x21c   : > { %v576_v32 = vmul.f32 0.0625, %v572_v31 }
 0x21e   : > { %v578_v33 = vadd.f32 1e-05, %v576_v32 }
 0x21f   : > { %v575_v34 = vpop.xlane.xlu1 %574 }
 0x220   : > { %9665 = vrsqrt.f32 %v578_v33  ;;  %v577_v35 = vmul.f32 0.0625, %v575_v34 }
 0x222   : > { %v579_v36 = vadd.f32 1e-05, %v577_v35 }
 0x224   : > { %9667 = vrsqrt.f32 %v579_v36 }
 0x22a   : > { %v9666_v41 = vpop.eup %9665 }
 0x22b   : > { %v582_v44 = vmul.f32 %v9666_v41, %v566_v23  ;;  %v655_v23 = vrot.slane %v10176_v16, %v10141_v37 }
 0x22d   : > { %v588_v47 = vmul.f32 %v587_v40, %v582_v44 }
 0x22e   : > { %v9668_v48 = vpop.eup %9667 }
 0x22f   : > { %v594_v51 = vadd.f32 %v593_v45, %v588_v47  ;;  %v583_v52 = vmul.f32 %v9668_v48, %v567_v27  ;;  %v716_v47 = vld [vmem:[%s11766_s8 + $0x8] sm:$0xff] }
 0x231   : > { %v10154_v53 = vadd.f32 %v602_v49, %v594_v51  ;;  %v589_v54 = vmul.f32 %v587_v40, %v583_v52 }
 0x233   : > { %v620_v56 = vsel %vm556_vm2, %v10154_v53, 0.0  ;;  %v595_v57 = vadd.f32 %v593_v45, %v589_v54  ;;  %v715_v45 = vld [vmem:[%s11766_s8] sm:$0xff] }
 0x234   : > { %621 = vadd.xlane.f32.xlu0 %v620_v56 }
 0x235   : > { %v10158_v58 = vadd.f32 %v604_v55, %v595_v57 }
 0x237   : > { %v623_v59 = vsel %vm556_vm2, %v10158_v58, 0.0 }
 0x238   : > { %624 = vadd.xlane.f32.xlu1 %v623_v59 }
 0x2c1   : > { %v622_v60 = vpop.xlane.xlu0 %621 }
 0x2c2   : > { %v626_v61 = vmul.f32 0.0625, %v622_v60 }
 0x2c4   : > { %v628_v62 = vsub.f32 %v10154_v53, %v626_v61 }
 0x2c5   : > { %v625_v63 = vpop.xlane.xlu1 %624 }
 0x2c6   : > { %v627_v0 = vmul.f32 0.0625, %v625_v63  ;;  %v630_v2 = vmul.f32 %v628_v62, %v628_v62 }
 0x2c8   : > { %v629_v3 = vsub.f32 %v10158_v58, %v627_v0  ;;  %v632_v4 = vsel %vm556_vm2, %v630_v2, 0.0 }
 0x2c9   : > { %633 = vadd.xlane.f32.xlu0 %v632_v4 }
 0x2ca   : > { %v631_v5 = vmul.f32 %v629_v3, %v629_v3 }
 0x2cc   : > { %v635_v6 = vsel %vm556_vm2, %v631_v5, 0.0 }
 0x2cd   : > { %636 = vadd.xlane.f32.xlu1 %v635_v6 }
 0x2de   : > { %842 = vrot.lane.b32.xlu1 %v10169_v7, %s11782_s22 }
 0x356   : > { %v634_v8 = vpop.xlane.xlu0 %633 }
 0x357   : > { %v638_v11 = vmul.f32 0.0625, %v634_v8 }
 0x359   : > { %v640_v12 = vadd.f32 1e-05, %v638_v11 }
 0x35a   : > { %v637_v13 = vpop.xlane.xlu1 %636 }
 0x35b   : > { %9669 = vrsqrt.f32 %v640_v12  ;;  %v639_v14 = vmul.f32 0.0625, %v637_v13 }
 0x35d   : > { %v641_v15 = vadd.f32 1e-05, %v639_v14 }
 0x35e   : > { %v843_v44 = vpop.permute.xlu1 %842 }
 0x35f   : > { %9671 = vrsqrt.f32 %v641_v15 }
 0x365   : > { %v9670_v17 = vpop.eup %9669 }
 0x366   : > { %v644_v18 = vmul.f32 %v9670_v17, %v628_v62 }
 0x368   : > { %v650_v22 = vmul.f32 %v649_v19, %v644_v18 }
 0x369   : > { %v9672_v20 = vpop.eup %9671 }
 0x36a   : > { %v645_v21 = vmul.f32 %v9672_v20, %v629_v3  ;;  %v656_v25 = vadd.f32 %v655_v23, %v650_v22 }
 0x36c   : > { %v651_v24 = vmul.f32 %v649_v19, %v645_v21 }
 0x36e   : > { %v657_v26 = vadd.f32 %v655_v23, %v651_v24 }
 0x370   : > { %v10182_v27 = vpack.c.bf16 %v657_v26, %v656_v25 }
 0x372   : > { %8754 = vmatmul.mubr.msk.bf16.vlgmr.msra.gmra.mrb[0].mxu1 %vm556_vm2, %v10182_v27 }
 0x373   : > { %8765 = vmatprep.mubr.msk.bf16.mxu1 %vm9962_vm0, %v9961_v1 }
 0x445   : > { %v706_v30 = vpop.f32.mrb[0].mxu1 }
 0x446   : > { %v707_v31 = vadd.f32 %v706_v30, %v10195_v29  ;;  %v8755_v32 = vpop.f32.mrb[1].mxu1 }
 0x447   : > { %v709_v33 = vpop.f32.mrb[2].mxu1 }
 0x448   : > { %v710_v34 = vadd.f32 %v709_v33, %v10195_v29  ;;  %v8756_v35 = vpop.f32.mrb[3].mxu1  ;;  %v713_v36 = vmul.f32 0.5, %v707_v31 }
 0x44a   : > { %v714_v38 = vmul.f32 0.5, %v710_v34  ;;  %v718_v40 = vpack.c.bf16 %v710_v34, %v707_v31 }
 0x44c   : > { %v717_v41 = vpack.c.bf16 %v714_v38, %v713_v36  ;;  %720 = vrot.lane.b32.xlu0 %v718_v40, %s11784_s18  ;;  %v8179_v38 = vld [vmem:[%s11766_s8 + $0x10] sm:$0xff] }
 0x4be   : > { %v721_v42 = vpop.permute.xlu0 %720 }
 0x4bf   : > { %v727_v43 = vsel %vm722_vm4, %v721_v42, 0 }
 0x4c0   : > { %8758 = vmatpush3.bf16.xpose.msra.mxu0 %v727_v43 }
 0x4c1   : > { %8769 = vmatprep.subr.bf16.mxu0 %v9961_v1 }
 0x4c7   : > { %8760 = vmatmul.mubr.msk.bf16.vlgmr.msra.gmra.mrb[4].mxu0 %vm722_vm4, %v717_v41  ;;  %v8180_v41 = vld [vmem:[%s11766_s8 + $0x18] sm:$0xff] }
 0x4c8   : > { %8770 = vmatpush3.bf16.msra.mxu0 %v843_v44  ;;  %8771 = vmatprep.mubr.msk.bf16.mxu0 %vm9962_vm0, %v9961_v1 }
 0x4c9   : > { %8781 = vmatprep.subr.bf16.mxu0 %v9961_v1 }
 0x4cf   : > { %8772 = vmatmul.mubr.msk.bf16.vlgmr.msra.gmra.mrb[8].mxu0 %vm556_vm2, %v10182_v27 }
 0x4d0   : > { %8783 = vmatprep.mubr.msk.bf16.mxu0 %vm9962_vm0, %v9961_v1 }
 0x59a   : > { %v763_v46 = vpop.f32.mrb[4].mxu0 }
 0x59b   : > { %v764_v48 = vadd.f32 %v763_v46, %v715_v45  ;;  %v8761_v49 = vpop.f32.mrb[5].mxu0 }
 0x59c   : > { %v766_v50 = vpop.f32.mrb[6].mxu0 }
 0x59d   : > { %v767_v51 = vadd.f32 %v766_v50, %v716_v47  ;;  %v8762_v52 = vpop.f32.mrb[7].mxu0  ;;  %v770_v54 = vsel %vm556_vm2, %v764_v48, -inf }
 0x59e   : > { %771 = vmax.xlane.f32.xlu1 %v770_v54 }
 0x59f   : > { %v773_v55 = vsel %vm556_vm2, %v767_v51, -inf }
 0x5a0   : > { %774 = vmax.xlane.f32.xlu0 %v773_v55 }
 0x5a2   : > { %v883_v56 = vpop.f32.mrb[8].mxu0 }
 0x5a3   : > { %v8773_v57 = vpop.f32.mrb[9].mxu0 }
 0x5a4   : > { %v886_v59 = vpop.f32.mrb[10].mxu0 }
 0x5a5   : > { %v8774_v60 = vpop.f32.mrb[11].mxu0 }
 0x5b6   : > { %846 = vrot.lane.b32.xlu0 %v10195_v29, %s11782_s22 }
 0x62b   : > { %v772_v61 = vpop.xlane.xlu1 %771 }
 0x62c   : > { %v776_v62 = vsub.f32 %v764_v48, %v772_v61 }
 0x62d   : > { %v775_v63 = vpop.xlane.xlu0 %774 }
 0x62e   : > { %v778_v0 = vmul.f32 1.442695, %v776_v62  ;;  %v777_v2 = vsub.f32 %v767_v51, %v775_v63 }
 0x630   : > { %9673 = vpow2.f32 %v778_v0  ;;  %v780_v3 = vmul.f32 1.442695, %v777_v2 }
 0x631   : > { %v847_v4 = vpop.permute.xlu0 %846 }
 0x632   : > { %9675 = vpow2.f32 %v780_v3  ;;  %v884_v5 = vadd.f32 %v883_v56, %v847_v4  ;;  %v887_v6 = vadd.f32 %v886_v59, %v847_v4  ;;  %v841_v3 = vld [vmem:[%s11765_s7] sm:$0x3] }
 0x634   : > { %v890_v8 = vmul.f32 0.5, %v884_v5  ;;  %v891_v11 = vmul.f32 0.5, %v887_v6  ;;  %v896_v12 = vpack.c.bf16 %v887_v6, %v884_v5 }
 0x636   : > { %v895_v13 = vpack.c.bf16 %v891_v11, %v890_v8  ;;  %898 = vrot.lane.b32.xlu0 %v896_v12, %s11784_s18  ;;  %v1072_v8 = vsel %vm1023_vm5, %v841_v3, 0  ;;  %v8183_v11 = vld [vmem:[%s11765_s7 + $0x2] sm:$0x3] }
 0x63a   : > { %v9674_v14 = vpop.eup %9673 }
 0x63b   : > { %v782_v15 = vsel %vm556_vm2, %v9674_v14, 0.0 }
 0x63c   : > { %v9676_v17 = vpop.eup %9675  ;;  %783 = vadd.xlane.f32.xlu1 %v782_v15 }
 0x63d   : > { %v785_v18 = vsel %vm556_vm2, %v9676_v17, 0.0 }
 0x640   : > { %786 = vadd.xlane.f32.xlu1 %v785_v18 }
 0x651   : > { %793 = vrot.lane.b32.xlu1 %v718_v40, %s11780_s27 }
 0x6a8   : > { %v899_v26 = vpop.permute.xlu0 %898 }
 0x6a9   : > { %v904_v31 = vsel %vm722_vm4, %v899_v26, 0 }
 0x6c9   : > { %v784_v19 = vpop.xlane.xlu1 %783 }
 0x6ca   : > { %9677 = vrcp.f32 %v784_v19 }
 0x6cd   : > { %v787_v20 = vpop.xlane.xlu1 %786 }
 0x6ce   : > { %9679 = vrcp.f32 %v787_v20 }
 0x6d1   : > { %v794_v21 = vpop.permute.xlu1 %793 }
 0x6d2   : > { %8764 = vmatpush3.bf16.msra.mxu1 %v794_v21 }
 0x6d3   : > { %8775 = vmatprep.subr.bf16.mxu1 %v9961_v1 }
 0x6d4   : > { %v9678_v22 = vpop.eup %9677 }
 0x6d5   : > { %v790_v24 = vmul.f32 %v9678_v22, %v9674_v14 }
 0x6d8   : > { %v9680_v23 = vpop.eup %9679 }
 0x6d9   : > { %v791_v25 = vmul.f32 %v9680_v23, %v9676_v17 }
 0x6db   : > { %v792_v30 = vpack.c.bf16 %v791_v25, %v790_v24 }
 0x6dd   : > { %8766 = vmatmul.mubr.msk.bf16.vlgmr.msra.gmra.mrb[4].mxu1 %vm556_vm2, %v792_v30 }
 0x6de   : > { %8776 = vmatpush3.bf16.xpose.msra.mxu1 %v904_v31  ;;  %8777 = vmatprep.mubr.msk.bf16.mxu1 %vm9962_vm0, %v9961_v1 }
 0x6df   : > { %8787 = vmatprep.subr.bf16.mxu1 %v9961_v1 }
 0x6e5   : > { %8778 = vmatmul.mubr.msk.bf16.vlgmr.msra.gmra.mrb[8].mxu1 %vm722_vm4, %v895_v13 }
 0x6e6   : > { %8789 = vmatprep.mubr.msk.bf16.mxu1 %vm9962_vm0, %v9961_v1 }
 0x7b0   : > { %v833_v32 = vpop.f32.mrb[4].mxu1 }
 0x7b1   : > { %v8767_v33 = vpop.f32.mrb[5].mxu1 }
 0x7b2   : > { %v836_v34 = vpop.f32.mrb[6].mxu1 }
 0x7b3   : > { %v840_v35 = vpack.c.bf16 %v836_v34, %v833_v32  ;;  %v8768_v36 = vpop.f32.mrb[7].mxu1 }
 0x7b8   : > { %v940_v40 = vpop.f32.mrb[8].mxu1 }
 0x7b9   : > { %v941_v42 = vadd.f32 %v8179_v38, %v940_v40  ;;  %v8779_v43 = vpop.f32.mrb[9].mxu1 }
 0x7ba   : > { %v943_v44 = vpop.f32.mrb[10].mxu1 }
 0x7bb   : > { %v944_v45 = vadd.f32 %v8180_v41, %v943_v44  ;;  %v8780_v46 = vpop.f32.mrb[11].mxu1  ;;  %v947_v47 = vsel %vm556_vm2, %v941_v42, -inf }
 0x7bc   : > { %948 = vmax.xlane.f32.xlu1 %v947_v47 }
 0x7bd   : > { %v950_v48 = vsel %vm556_vm2, %v944_v45, -inf }
 0x7be   : > { %951 = vmax.xlane.f32.xlu0 %v950_v48  ;;  %v8187_v48 = vld [vmem:[%s11766_s8 + $0x20] sm:$0xff] }
 0x7cd   : > { %970 = vrot.lane.b32.xlu1 %v896_v12, %s11780_s27  ;;  %v1025_v12 = vsel %vm1023_vm5, %v8183_v11, 0 }
 0x7ce   : > { %8788 = vmatpush3.bf16.msra.mxu1 %v1025_v12 }
 0x7cf   : > { %8799 = vmatprep.subr.bf16.mxu1 %v9961_v1 }
 0x7d1   : > { %1118 = vrot.lane.b32.xlu1 %v10195_v29, %s11778_s25 }
 0x849   : > { %v949_v49 = vpop.xlane.xlu1 %948 }
 0x84a   : > { %v953_v50 = vsub.f32 %v941_v42, %v949_v49 }
 0x84b   : > { %v952_v51 = vpop.xlane.xlu0 %951 }
 0x84c   : > { %v955_v52 = vmul.f32 1.442695, %v953_v50  ;;  %v954_v54 = vsub.f32 %v944_v45, %v952_v51  ;;  %v8188_v50 = vld [vmem:[%s11766_s8 + $0x28] sm:$0xff] }
 0x84d   : > { %v971_v55 = vpop.permute.xlu1 %970 }
 0x84e   : > { %9681 = vpow2.f32 %v955_v52  ;;  %v957_v56 = vmul.f32 1.442695, %v954_v54  ;;  %8782 = vmatpush3.bf16.msra.mxu0 %v971_v55 }
 0x84f   : > { %8793 = vmatprep.subr.bf16.mxu0 %v9961_v1 }
 0x850   : > { %9683 = vpow2.f32 %v957_v56 }
 0x851   : > { %v1119_v33 = vpop.permute.xlu1 %1118 }
 0x858   : > { %v9682_v57 = vpop.eup %9681 }
 0x859   : > { %v959_v59 = vsel %vm556_vm2, %v9682_v57, 0.0 }
 0x85a   : > { %v9684_v60 = vpop.eup %9683  ;;  %960 = vadd.xlane.f32.xlu0 %v959_v59 }
 0x85b   : > { %v962_v61 = vsel %vm556_vm2, %v9684_v60, 0.0 }
 0x85e   : > { %963 = vadd.xlane.f32.xlu0 %v962_v61 }
 0x874   : > { %1115 = vrot.lane.b32.xlu0 %v10169_v7, %s11778_s25  ;;  %s11801_s25 = smov 120  }
 0x8e7   : > { %v961_v62 = vpop.xlane.xlu0 %960 }
 0x8e8   : > { %9685 = vrcp.f32 %v961_v62 }
 0x8eb   : > { %v964_v63 = vpop.xlane.xlu0 %963 }
 0x8ec   : > { %9687 = vrcp.f32 %v964_v63 }
 0x8ef   : > { %v1116_v19 = vpop.permute.xlu0 %1115 }
 0x8f2   : > { %v9686_v0 = vpop.eup %9685 }
 0x8f3   : > { %v967_v4 = vmul.f32 %v9686_v0, %v9682_v57 }
 0x8f6   : > { %v9688_v2 = vpop.eup %9687 }
 0x8f7   : > { %v968_v5 = vmul.f32 %v9688_v2, %v9684_v60 }
 0x8f9   : > { %v969_v6 = vpack.c.bf16 %v968_v5, %v967_v4 }
 0x8fb   : > { %8784 = vmatmul.mubr.msk.bf16.vlgmr.msra.gmra.mrb[12].mxu0 %vm556_vm2, %v969_v6 }
 0x8fc   : > { %8794 = vmatpush3.bf16.msra.mxu0 %v1072_v8  ;;  %8795 = vmatprep.mubr.msk.bf16.mxu0 %vm9962_vm0, %v9961_v1 }
 0x8fd   : > { %8805 = vmatprep.subr.bf16.mxu0 %v9961_v1 }
 0x903   : > { %8796 = vmatmul.mubr.msk.bf16.vlgmr.msra.gmra.mrb[16].mxu0 %vm722_vm4, %v840_v35 }
 0x904   : > { %8807 = vmatprep.mubr.msk.bf16.mxu0 %vm9962_vm0, %v9961_v1 }
 0x9ce   : > { %v1010_v13 = vpop.f32.mrb[12].mxu0 }
 0x9cf   : > { %v8785_v14 = vpop.f32.mrb[13].mxu0 }
 0x9d0   : > { %v1013_v15 = vpop.f32.mrb[14].mxu0 }
 0x9d1   : > { %v1017_v17 = vpack.c.bf16 %v1013_v15, %v1010_v13  ;;  %v8786_v18 = vpop.f32.mrb[15].mxu0 }
 0x9d3   : > { %8790 = vmatmul.mubr.msk.bf16.vlgmr.msra.gmra.mrb[12].mxu1 %vm722_vm4, %v1017_v17 }
 0x9d4   : > { %8800 = vmatpush3.bf16.msra.mxu1 %v1116_v19  ;;  %8801 = vmatprep.mubr.msk.bf16.mxu1 %vm9962_vm0, %v9961_v1  ;;  %v8191_v19 = vld [vmem:[%s11765_s7 + $0x4] sm:$0x3] }
 0x9d5   : > { %8811 = vmatprep.subr.bf16.mxu1 %v9961_v1 }
 0x9d6   : > { %v1108_v20 = vpop.f32.mrb[16].mxu0 }
 0x9d7   : > { %v8797_v21 = vpop.f32.mrb[17].mxu0 }
 0x9d8   : > { %v1111_v22 = vpop.f32.mrb[18].mxu0 }
 0x9d9   : > { %v8798_v23 = vpop.f32.mrb[19].mxu0 }
 0x9db   : > { %8802 = vmatmul.mubr.msk.bf16.vlgmr.msra.gmra.mrb[16].mxu1 %vm556_vm2, %v10182_v27 }
 0x9dc   : > { %8813 = vmatprep.mubr.msk.bf16.mxu1 %vm9962_vm0, %v9961_v1 }
 0xaa6   : > { %v1061_v24 = vpop.f32.mrb[12].mxu1 }
 0xaa7   : > { %v10273_v25 = vadd.f32 %v1108_v20, %v1061_v24  ;;  %v8791_v26 = vpop.f32.mrb[13].mxu1  ;;  %v1296_v20 = vsel %vm1023_vm5, %v8191_v19, 0  ;;  %v8198_v19 = vld [vmem:[%s11765_s7 + $0x6] sm:$0x3] }
 0xaa8   : > { %v1064_v30 = vpop.f32.mrb[14].mxu1 }
 0xaa9   : > { %v10275_v31 = vadd.f32 %v1111_v22, %v1064_v30  ;;  %v8792_v32 = vpop.f32.mrb[15].mxu1 }
 0xaae   : > { %v1155_v34 = vpop.f32.mrb[16].mxu1 }
 0xaaf   : > { %v1156_v35 = vadd.f32 %v1155_v34, %v1119_v33  ;;  %v8803_v36 = vpop.f32.mrb[17].mxu1 }
 0xab0   : > { %v1158_v38 = vpop.f32.mrb[18].mxu1 }
 0xab1   : > { %v1159_v40 = vadd.f32 %v1158_v38, %v1119_v33  ;;  %v8804_v41 = vpop.f32.mrb[19].mxu1  ;;  %v1162_v42 = vmul.f32 0.5, %v1156_v35 }
 0xab3   : > { %v1163_v43 = vmul.f32 0.5, %v1159_v40  ;;  %v1168_v44 = vpack.c.bf16 %v1159_v40, %v1156_v35 }
 0xab5   : > { %v1167_v45 = vpack.c.bf16 %v1163_v43, %v1162_v42  ;;  %1170 = vrot.lane.b32.xlu1 %v1168_v44, %s11784_s18 }
 0xb27   : > { %v1171_v46 = vpop.permute.xlu1 %1170 }
 0xb28   : > { %v1176_v47 = vsel %vm722_vm4, %v1171_v46, 0 }
 0xb29   : > { %8806 = vmatpush3.bf16.xpose.msra.mxu0 %v1176_v47 }
 0xb2a   : > { %8817 = vmatprep.subr.bf16.mxu0 %v9961_v1 }
 0xb30   : > { %8808 = vmatmul.mubr.msk.bf16.vlgmr.msra.gmra.mrb[20].mxu0 %vm722_vm4, %v1167_v45 }
 0xb31   : > { %8819 = vmatprep.mubr.msk.bf16.mxu0 %vm9962_vm0, %v9961_v1  ;;  %8818 = vmatpush3.bf16.msra.mxu0 %v1296_v20  ;;  %v1522_v20 = vsel %vm1023_vm5, %v8198_v19, 0 }
 0xb32   : > { %8829 = vmatprep.subr.bf16.mxu0 %v9961_v1 }
 0xc03   : > { %v1212_v49 = vpop.f32.mrb[20].mxu0 }
 0xc04   : > { %v1213_v51 = vadd.f32 %v8187_v48, %v1212_v49  ;;  %v8809_v52 = vpop.f32.mrb[21].mxu0 }
 0xc05   : > { %v1215_v54 = vpop.f32.mrb[22].mxu0 }
 0xc06   : > { %v1216_v55 = vadd.f32 %v8188_v50, %v1215_v54  ;;  %v8810_v56 = vpop.f32.mrb[23].mxu0  ;;  %v1219_v57 = vsel %vm556_vm2, %v1213_v51, -inf  ;;  %v8195_v54 = vld [vmem:[%s11766_s8 + $0x38] sm:$0xff] }
 0xc07   : > { %1220 = vmax.xlane.f32.xlu1 %v1219_v57 }
 0xc08   : > { %v1222_v59 = vsel %vm556_vm2, %v1216_v55, -inf }
 0xc09   : > { %1223 = vmax.xlane.f32.xlu0 %v1222_v59 }
 0xc18   : > { %1242 = vrot.lane.b32.xlu1 %v1168_v44, %s11780_s27 }
 0xc1c   : > { %1344 = vrot.lane.b32.xlu1 %v10195_v29, %s11776_s20 }
 0xc94   : > { %v1221_v60 = vpop.xlane.xlu1 %1220 }
 0xc95   : > { %v1225_v61 = vsub.f32 %v1213_v51, %v1221_v60  ;;  %v8194_v51 = vld [vmem:[%s11766_s8 + $0x30] sm:$0xff] }
 0xc96   : > { %v1224_v62 = vpop.xlane.xlu0 %1223 }
 0xc97   : > { %v1227_v63 = vmul.f32 1.442695, %v1225_v61  ;;  %v1226_v0 = vsub.f32 %v1216_v55, %v1224_v62 }
 0xc98   : > { %v1243_v2 = vpop.permute.xlu1 %1242 }
 0xc99   : > { %9689 = vpow2.f32 %v1227_v63  ;;  %v1229_v3 = vmul.f32 1.442695, %v1226_v0  ;;  %8812 = vmatpush3.bf16.msra.mxu1 %v1243_v2 }
 0xc9a   : > { %8823 = vmatprep.subr.bf16.mxu1 %v9961_v1 }
 0xc9b   : > { %9691 = vpow2.f32 %v1229_v3 }
 0xca3   : > { %v9690_v4 = vpop.eup %9689 }
 0xca4   : > { %v1231_v5 = vsel %vm556_vm2, %v9690_v4, 0.0 }
 0xca5   : > { %v9692_v6 = vpop.eup %9691  ;;  %1232 = vadd.xlane.f32.xlu0 %v1231_v5 }
 0xca6   : > { %v1234_v8 = vsel %vm556_vm2, %v9692_v6, 0.0 }
 0xca9   : > { %1235 = vadd.xlane.f32.xlu0 %v1234_v8 }
 0xcbf   : > { %1341 = vrot.lane.b32.xlu0 %v10169_v7, %s11776_s20  ;;  %s11804_s20 = smov 80  }
 0xd32   : > { %v1233_v29 = vpop.xlane.xlu0 %1232 }
 0xd33   : > { %9693 = vrcp.f32 %v1233_v29 }
 0xd36   : > { %v1236_v11 = vpop.xlane.xlu0 %1235 }
 0xd37   : > { %9695 = vrcp.f32 %v1236_v11 }
 0xd3a   : > { %v1342_v18 = vpop.permute.xlu0 %1341 }
 0xd3d   : > { %v9694_v12 = vpop.eup %9693 }
 0xd3e   : > { %v1239_v14 = vmul.f32 %v9694_v12, %v9690_v4 }
 0xd41   : > { %v9696_v13 = vpop.eup %9695 }
 0xd42   : > { %v1240_v15 = vmul.f32 %v9696_v13, %v9692_v6 }
 0xd44   : > { %v1241_v17 = vpack.c.bf16 %v1240_v15, %v1239_v14 }
 0xd46   : > { %8814 = vmatmul.mubr.msk.bf16.vlgmr.msra.gmra.mrb[20].mxu1 %vm556_vm2, %v1241_v17 }
 0xd47   : > { %8824 = vmatpush3.bf16.msra.mxu1 %v1342_v18  ;;  %8825 = vmatprep.mubr.msk.bf16.mxu1 %vm9962_vm0, %v9961_v1 }
 0xd48   : > { %8835 = vmatprep.subr.bf16.mxu1 %v9961_v1 }
 0xd4e   : > { %8826 = vmatmul.mubr.msk.bf16.vlgmr.msra.gmra.mrb[24].mxu1 %vm556_vm2, %v10182_v27  ;;  %v1345_v27 = vpop.permute.xlu1 %1344 }
 0xd4f   : > { %8837 = vmatprep.mubr.msk.bf16.mxu1 %vm9962_vm0, %v9961_v1 }
 0xe19   : > { %v1282_v21 = vpop.f32.mrb[20].mxu1 }
 0xe1a   : > { %v8815_v22 = vpop.f32.mrb[21].mxu1 }
 0xe1b   : > { %v1285_v23 = vpop.f32.mrb[22].mxu1 }
 0xe1c   : > { %v1289_v24 = vpack.c.bf16 %v1285_v23, %v1282_v21  ;;  %v8816_v26 = vpop.f32.mrb[23].mxu1 }
 0xe1e   : > { %8820 = vmatmul.mubr.msk.bf16.vlgmr.msra.gmra.mrb[24].mxu0 %vm722_vm4, %v1289_v24 }
 0xe1f   : > { %8831 = vmatprep.mubr.msk.bf16.mxu0 %vm9962_vm0, %v9961_v1 }
 0xe21   : > { %v1381_v30 = vpop.f32.mrb[24].mxu1 }
 0xe22   : > { %v1382_v32 = vadd.f32 %v1381_v30, %v1345_v27  ;;  %v8827_v33 = vpop.f32.mrb[25].mxu1 }
 0xe23   : > { %v1384_v34 = vpop.f32.mrb[26].mxu1 }
 0xe24   : > { %v1385_v35 = vadd.f32 %v1384_v34, %v1345_v27  ;;  %v8828_v36 = vpop.f32.mrb[27].mxu1  ;;  %v1388_v38 = vmul.f32 0.5, %v1382_v32  ;;  %v10347_v27 = vsub.s32 5, %v10127_v9 }
 0xe26   : > { %v1389_v40 = vmul.f32 0.5, %v1385_v35  ;;  %v1394_v41 = vpack.c.bf16 %v1385_v35, %v1382_v32  ;;  %v1572_v33 = vrot.slane %v10176_v16, %v10347_v27 }
 0xe28   : > { %v1393_v42 = vpack.c.bf16 %v1389_v40, %v1388_v38  ;;  %1396 = vrot.lane.b32.xlu1 %v1394_v41, %s11784_s18 }
 0xe9a   : > { %v1397_v43 = vpop.permute.xlu1 %1396 }
 0xe9b   : > { %v1402_v44 = vsel %vm722_vm4, %v1397_v43, 0 }
 0xe9c   : > { %8830 = vmatpush3.bf16.xpose.msra.mxu0 %v1402_v44 }
 0xe9d   : > { %8841 = vmatprep.subr.bf16.mxu0 %v9961_v1 }
 0xea3   : > { %8832 = vmatmul.mubr.msk.bf16.vlgmr.msra.gmra.mrb[28].mxu0 %vm722_vm4, %v1393_v42 }
 0xea4   : > { %8843 = vmatprep.mubr.msk.bf16.mxu0 %vm9962_vm0, %v9961_v1  ;;  %8842 = vmatpush3.bf16.msra.mxu0 %v1522_v20 }
 0xea5   : > { %8853 = vmatprep.subr.bf16.mxu0 %v9961_v1 }
 0xef1   : > { %v1332_v45 = vpop.f32.mrb[24].mxu0 }
 0xef2   : > { %v1339_v46 = vadd.f32 %v1332_v45, %v10273_v25  ;;  %v8821_v47 = vpop.f32.mrb[25].mxu0 }
 0xef3   : > { %v1335_v48 = vpop.f32.mrb[26].mxu0 }
 0xef4   : > { %v1340_v49 = vadd.f32 %v1335_v48, %v10275_v31  ;;  %v8822_v50 = vpop.f32.mrb[27].mxu0 }
 0xf76   : > { %v1438_v52 = vpop.f32.mrb[28].mxu0 }
 0xf77   : > { %v1439_v55 = vadd.f32 %v8194_v51, %v1438_v52  ;;  %v8833_v56 = vpop.f32.mrb[29].mxu0 }
 0xf78   : > { %v1441_v57 = vpop.f32.mrb[30].mxu0 }
 0xf79   : > { %v1442_v59 = vadd.f32 %v8195_v54, %v1441_v57  ;;  %v8834_v60 = vpop.f32.mrb[31].mxu0  ;;  %v1445_v25 = vsel %vm556_vm2, %v1439_v55, -inf }
 0xf7a   : > { %1446 = vmax.xlane.f32.xlu1 %v1445_v25 }
 0xf7b   : > { %v1448_v31 = vsel %vm556_vm2, %v1442_v59, -inf }
 0xf7c   : > { %1449 = vmax.xlane.f32.xlu0 %v1448_v31 }
 0xf8b   : > { %1468 = vrot.lane.b32.xlu1 %v1394_v41, %s11780_s27  ;;  %s9974_s27 = smov [#allocation2]  }
 0xf8f   : > { %1618 = vrot.lane.b32.xlu1 %v10169_v7, %s11774_s21  ;;  %s11805_s21 = smov 124  }
0x1007   : > { %v1447_v61 = vpop.xlane.xlu1 %1446 }
0x1008   : > { %v1451_v62 = vsub.f32 %v1439_v55, %v1447_v61  ;;  %v1604_v61 = vrot.slane %v10176_v16, %v10147_v39 }
0x1009   : > { %v1450_v63 = vpop.xlane.xlu0 %1449 }
0x100a   : > { %v1453_v0 = vmul.f32 1.442695, %v1451_v62  ;;  %v1452_v2 = vsub.f32 %v1442_v59, %v1450_v63  ;;  %v10371_v63 = vsub.s32 3, %v10127_v9 }
0x100b   : > { %v1469_v3 = vpop.permute.xlu1 %1468 }
0x100c   : > { %9697 = vpow2.f32 %v1453_v0  ;;  %v1455_v4 = vmul.f32 1.442695, %v1452_v2  ;;  %8836 = vmatpush3.bf16.msra.mxu1 %v1469_v3 }
0x100d   : > { %8847 = vmatprep.subr.bf16.mxu1 %v9961_v1 }
0x100e   : > { %9699 = vpow2.f32 %v1455_v4  ;;  %v1610_v4 = vrot.slane %v10176_v16, %v10371_v63 }
0x100f   : > { %v1619_v55 = vpop.permute.xlu1 %1618 }
0x1016   : > { %v9698_v5 = vpop.eup %9697 }
0x1017   : > { %v1457_v6 = vsel %vm556_vm2, %v9698_v5, 0.0 }
0x1018   : > { %v9700_v8 = vpop.eup %9699  ;;  %1458 = vadd.xlane.f32.xlu0 %v1457_v6 }
0x1019   : > { %v1460_v29 = vsel %vm556_vm2, %v9700_v8, 0.0 }
0x101c   : > { %1461 = vadd.xlane.f32.xlu0 %v1460_v29 }
0x10a5   : > { %v1459_v11 = vpop.xlane.xlu0 %1458 }
0x10a6   : > { %9701 = vrcp.f32 %v1459_v11  ;;  %v9612_v11 = vld [vmem:[%s11764_s6] sm:$0xff]  }
0x10a9   : > { %v1462_v12 = vpop.xlane.xlu0 %1461 }
0x10aa   : > { %9703 = vrcp.f32 %v1462_v12  ;;  %v9613_v12 = vld [vmem:[%s11764_s6 + $0x8] sm:$0xff]  }
0x10b0   : > { %v9702_v13 = vpop.eup %9701 }
0x10b1   : > { %v1465_v15 = vmul.f32 %v9702_v13, %v9698_v5  ;;  %v9614_v13 = vld [vmem:[%s11764_s6 + $0x10] sm:$0xff]  }
0x10b4   : > { %v9704_v14 = vpop.eup %9703 }
0x10b5   : > { %v1466_v17 = vmul.f32 %v9704_v14, %v9700_v8  ;;  %v9615_v14 = vld [vmem:[%s11764_s6 + $0x18] sm:$0xff]  }
0x10b7   : > { %v1467_v18 = vpack.c.bf16 %v1466_v17, %v1465_v15  ;;  %v10395_v15 = vsub.s32 6, %v10127_v9 }
0x10b9   : > { %8838 = vmatmul.mubr.msk.bf16.vlgmr.msra.gmra.mrb[28].mxu1 %vm556_vm2, %v1467_v18  ;;  %v1617_v17 = vrot.slane %v10176_v16, %v10395_v15 }
0x10ba   : > { %8849 = vmatprep.mubr.msk.bf16.mxu1 %vm9962_vm0, %v9961_v1  ;;  %8848 = vmatpush3.bf16.msra.mxu1 %v1619_v55 }
0x10bb   : > { %8865 = vmatprep.subr.bf16.mxu1 %v9961_v1 }
0x118c   : > { %v1508_v21 = vpop.f32.mrb[28].mxu1 }
0x118d   : > { %v8839_v22 = vpop.f32.mrb[29].mxu1 }
0x118e   : > { %v1511_v23 = vpop.f32.mrb[30].mxu1 }
0x118f   : > { %v1515_v24 = vpack.c.bf16 %v1511_v23, %v1508_v21  ;;  %v8840_v26 = vpop.f32.mrb[31].mxu1 }
0x1191   : > { %8844 = vmatmul.mubr.msk.bf16.vlgmr.msra.gmra.mrb[32].mxu0 %vm722_vm4, %v1515_v24 }
0x1192   : > { %8861 = vmatprep.mubr.msk.bf16.mxu0 %vm9962_vm0, %v9961_v1  ;;  %8854 = vmatpush3.bf16.msra.mxu0 %v9612_v11 }
0x1193   : > { %8855 = vmatprep.subr.bf16.mxu0 %v9961_v1 }
0x1196   : > { %8856 = vmatpush3.bf16.msra.mxu0 %v9613_v12 }
0x1197   : > { %8857 = vmatprep.subr.bf16.mxu0 %v9961_v1 }
0x119a   : > { %8858 = vmatpush3.bf16.msra.mxu0 %v9614_v13 }
0x119b   : > { %8859 = vmatprep.subr.bf16.mxu0 %v9961_v1 }
0x119e   : > { %8860 = vmatpush3.bf16.msra.mxu0 %v9615_v14 }
0x119f   : > { %8877 = vmatprep.subr.bf16.mxu0 %v9961_v1 }
0x1264   : > { %v1558_v30 = vpop.f32.mrb[32].mxu0 }
0x1265   : > { %v1565_v32 = vadd.f32 %v1558_v30, %v1339_v46  ;;  %v8845_v34 = vpop.f32.mrb[33].mxu0 }
0x1266   : > { %v1561_v35 = vpop.f32.mrb[34].mxu0 }
0x1267   : > { %v1567_v36 = vadd.f32 %v1565_v32, %v10154_v53  ;;  %v1566_v38 = vadd.f32 %v1561_v35, %v1340_v49  ;;  %v8846_v40 = vpop.f32.mrb[35].mxu0 }
0x1269   : > { %v10352_v41 = vadd.f32 %v1572_v33, %v1567_v36  ;;  %v1568_v42 = vadd.f32 %v1566_v38, %v10158_v58 }
0x126b   : > { %v10355_v43 = vadd.f32 %v1572_v33, %v1568_v42  ;;  %v1575_v44 = vsel %vm556_vm2, %v10352_v41, 0.0 }
0x126c   : > { %1576 = vadd.xlane.f32.xlu0 %v1575_v44  ;;  %v10403_v44 = vsub.s32 7, %v10127_v9 }
0x126d   : > { %v1578_v45 = vsel %vm556_vm2, %v10355_v43, 0.0 }
0x1270   : > { %1579 = vadd.xlane.f32.xlu0 %v1578_v45  ;;  %v1749_v45 = vrot.slane %v10176_v16, %v10403_v44 }
0x12f9   : > { %v1577_v53 = vpop.xlane.xlu0 %1576 }
0x12fa   : > { %v1581_v46 = vmul.f32 0.0625, %v1577_v53 }
0x12fc   : > { %v1583_v47 = vsub.f32 %v10352_v41, %v1581_v46 }
0x12fd   : > { %v1580_v48 = vpop.xlane.xlu0 %1579 }
0x12fe   : > { %v1582_v58 = vmul.f32 0.0625, %v1580_v48  ;;  %v1585_v49 = vmul.f32 %v1583_v47, %v1583_v47 }
0x1300   : > { %v1584_v50 = vsub.f32 %v10355_v43, %v1582_v58  ;;  %v1587_v51 = vsel %vm556_vm2, %v1585_v49, 0.0 }
0x1301   : > { %1588 = vadd.xlane.f32.xlu0 %v1587_v51 }
0x1302   : > { %v1586_v52 = vmul.f32 %v1584_v50, %v1584_v50 }
0x1304   : > { %v1590_v54 = vsel %vm556_vm2, %v1586_v52, 0.0 }
0x1305   : > { %1591 = vadd.xlane.f32.xlu0 %v1590_v54 }
0x138e   : > { %v1589_v7 = vpop.xlane.xlu0 %1588 }
0x138f   : > { %v1593_v56 = vmul.f32 0.0625, %v1589_v7 }
0x1391   : > { %v1595_v57 = vadd.f32 1e-05, %v1593_v56 }
0x1392   : > { %v1592_v59 = vpop.xlane.xlu0 %1591 }
0x1393   : > { %9705 = vrsqrt.f32 %v1595_v57  ;;  %v1594_v60 = vmul.f32 0.0625, %v1592_v59 }
0x1395   : > { %v1596_v25 = vadd.f32 1e-05, %v1594_v60 }
0x1397   : > { %9707 = vrsqrt.f32 %v1596_v25  ;;  %v10424_v25 = vld [vmem:[%s11762_s4 + $0x8] sm:$0xff]  }
0x139d   : > { %v9706_v31 = vpop.eup %9705 }
0x139e   : > { %v1599_v62 = vmul.f32 %v9706_v31, %v1583_v47 }
0x13a0   : > { %v1605_v2 = vmul.f32 %v1604_v61, %v1599_v62 }
0x13a1   : > { %v9708_v0 = vpop.eup %9707 }
0x13a2   : > { %v1600_v3 = vmul.f32 %v9708_v0, %v1584_v50  ;;  %v1611_v6 = vadd.f32 %v1610_v4, %v1605_v2 }
0x13a4   : > { %v1606_v5 = vmul.f32 %v1604_v61, %v1600_v3 }
0x13a6   : > { %v1612_v8 = vadd.f32 %v1610_v4, %v1606_v5  ;;  %v10431_v4 = vld [vmem:[%s11763_s5 + $0x8] sm:$0xff] }
0x13a7   : > { %v1801_v13 = vrot.slane %v10431_v4, %v10141_v37 }
0x13a8   : > { %v1613_v29 = vpack.c.bf16 %v1612_v8, %v1611_v6  ;;  %v1795_v6 = vrot.slane %v10431_v4, %v10130_v10 }
0x13aa   : > { %8850 = vmatmul.mubr.msk.bf16.vlgmr.msra.gmra.mrb[32].mxu1 %vm556_vm2, %v1613_v29 }
0x13ab   : > { %8867 = vmatprep.mubr.msk.bf16.mxu1 %vm9962_vm0, %v9961_v1  ;;  %8866 = vmatpush3.bf16.msra.mxu1 %v10424_v25 }
0x13ac   : > { %8871 = vmatprep.subr.bf16.mxu1 %v9961_v1 }
0x147d   : > { %v1658_v18 = vpop.f32.mrb[32].mxu1 }
0x147e   : > { %v1659_v19 = vadd.f32 %v1658_v18, %v1617_v17  ;;  %v8851_v20 = vpop.f32.mrb[33].mxu1 }
0x147f   : > { %v1661_v21 = vpop.f32.mrb[34].mxu1  ;;  %v10445_v20 = vrot.slane %v10431_v4, %v10191_v28 }
0x1480   : > { %v1667_v22 = vmul.f32 0.70710677, %v1659_v19  ;;  %v1662_v23 = vadd.f32 %v1661_v21, %v1617_v17  ;;  %v8852_v24 = vpop.f32.mrb[35].mxu1  ;;  %v1665_v34 = vmul.f32 0.5, %v1659_v19 }
0x1482   : > { %9709 = verf.f32 %v1667_v22  ;;  %v1668_v26 = vmul.f32 0.70710677, %v1662_v23  ;;  %v1666_v35 = vmul.f32 0.5, %v1662_v23 }
0x1484   : > { %9711 = verf.f32 %v1668_v26 }
0x148c   : > { %v9710_v30 = vpop.eup %9709 }
0x148d   : > { %v1671_v32 = vadd.f32 1.0, %v9710_v30 }
0x148e   : > { %v9712_v33 = vpop.eup %9711 }
0x148f   : > { %v1672_v36 = vadd.f32 1.0, %v9712_v33  ;;  %v1673_v38 = vmul.f32 %v1671_v32, %v1665_v34 }
0x1491   : > { %v1674_v40 = vmul.f32 %v1672_v36, %v1666_v35 }
0x1493   : > { %v1675_v42 = vpack.c.bf16 %v1674_v40, %v1673_v38 }
0x1495   : > { %8862 = vmatmul.mubr.msk.bf16.vlgmr.msra.gmra.mrb[36].mxu0 %vm511_vm1, %v1675_v42  ;;  %v8219_v42 = vld [vmem:[%s11766_s8 + $0x40] sm:$0xff] }
0x1496   : > { %8879 = vmatprep.mubr.msk.bf16.mxu0 %vm9962_vm0, %v9961_v1 }
0x1568   : > { %v1737_v53 = vpop.f32.mrb[36].mxu0 }
0x1569   : > { %v1744_v46 = vadd.f32 %v1737_v53, %v10352_v41  ;;  %v8863_v47 = vpop.f32.mrb[37].mxu0  ;;  %v8220_v53 = vld [vmem:[%s11766_s8 + $0x48] sm:$0xff] }
0x156a   : > { %v1740_v48 = vpop.f32.mrb[38].mxu0 }
0x156b   : > { %v10408_v58 = vadd.f32 %v1749_v45, %v1744_v46  ;;  %v1745_v49 = vadd.f32 %v1740_v48, %v10355_v43  ;;  %v8864_v50 = vpop.f32.mrb[39].mxu0 }
0x156d   : > { %v10411_v51 = vadd.f32 %v1749_v45, %v1745_v49  ;;  %v1766_v52 = vsel %vm556_vm2, %v10408_v58, 0.0 }
0x156e   : > { %1767 = vadd.xlane.f32.xlu0 %v1766_v52 }
0x156f   : > { %v1769_v9 = vsel %vm556_vm2, %v10411_v51, 0.0 }
0x1570   : > { %1770 = vadd.xlane.f32.xlu1 %v1769_v9 }
0x15fb   : > { %v1768_v16 = vpop.xlane.xlu0 %1767 }
0x15fc   : > { %v1772_v54 = vmul.f32 0.0625, %v1768_v16 }
0x15fd   : > { %v1771_v41 = vpop.xlane.xlu1 %1770 }
0x15fe   : > { %v1774_v55 = vsub.f32 %v10408_v58, %v1772_v54  ;;  %v1773_v7 = vmul.f32 0.0625, %v1771_v41 }
0x1600   : > { %v1775_v56 = vsub.f32 %v10411_v51, %v1773_v7  ;;  %v1776_v43 = vmul.f32 %v1774_v55, %v1774_v55 }
0x1602   : > { %v1778_v57 = vsel %vm556_vm2, %v1776_v43, 0.0  ;;  %v1777_v59 = vmul.f32 %v1775_v56, %v1775_v56 }
0x1603   : > { %1779 = vadd.xlane.f32.xlu0 %v1778_v57 }
0x1604   : > { %v1781_v60 = vsel %vm556_vm2, %v1777_v59, 0.0 }
0x1607   : > { %1782 = vadd.xlane.f32.xlu0 %v1781_v60 }
0x1690   : > { %v1780_v31 = vpop.xlane.xlu0 %1779 }
0x1691   : > { %v1784_v61 = vmul.f32 0.0625, %v1780_v31 }
0x1693   : > { %v1786_v62 = vadd.f32 1e-05, %v1784_v61 }
0x1694   : > { %v1783_v0 = vpop.xlane.xlu0 %1782 }
0x1695   : > { %9713 = vrsqrt.f32 %v1786_v62  ;;  %v1785_v2 = vmul.f32 0.0625, %v1783_v0 }
0x1697   : > { %v1787_v3 = vadd.f32 1e-05, %v1785_v2 }
0x1699   : > { %9715 = vrsqrt.f32 %v1787_v3 }
0x169f   : > { %v9714_v5 = vpop.eup %9713 }
0x16a0   : > { %v1790_v8 = vmul.f32 %v9714_v5, %v1774_v55 }
0x16a2   : > { %v1796_v11 = vmul.f32 %v1795_v6, %v1790_v8 }
0x16a3   : > { %v9716_v29 = vpop.eup %9715 }
0x16a4   : > { %v1791_v12 = vmul.f32 %v9716_v29, %v1775_v56  ;;  %v1802_v17 = vadd.f32 %v1801_v13, %v1796_v11 }
0x16a6   : > { %v1797_v14 = vmul.f32 %v1795_v6, %v1791_v12 }
0x16a8   : > { %v1803_v18 = vadd.f32 %v1801_v13, %v1797_v14 }
0x16aa   : > { %v10437_v19 = vpack.c.bf16 %v1803_v18, %v1802_v17 }
0x16ac   : > { %8868 = vmatmul.mubr.msk.bf16.vlgmr.msra.gmra.mrb[36].mxu1 %vm556_vm2, %v10437_v19 }
0x16ad   : > { %8873 = vmatprep.mubr.msk.bf16.mxu1 %vm9962_vm0, %v9961_v1 }
0x177f   : > { %v1852_v21 = vpop.f32.mrb[36].mxu1 }
0x1780   : > { %v1853_v22 = vadd.f32 %v1852_v21, %v10445_v20  ;;  %v8869_v23 = vpop.f32.mrb[37].mxu1 }
0x1781   : > { %v1855_v24 = vpop.f32.mrb[38].mxu1 }
0x1782   : > { %v1856_v26 = vadd.f32 %v1855_v24, %v10445_v20  ;;  %v8870_v30 = vpop.f32.mrb[39].mxu1  ;;  %v1859_v32 = vmul.f32 0.5, %v1853_v22 }
0x1784   : > { %v1860_v33 = vmul.f32 0.5, %v1856_v26  ;;  %v1865_v34 = vpack.c.bf16 %v1856_v26, %v1853_v22 }
0x1786   : > { %v1864_v35 = vpack.c.bf16 %v1860_v33, %v1859_v32  ;;  %1867 = vrot.lane.b32.xlu0 %v1865_v34, %s11784_s18 }
0x178a   : > { %1989 = vrot.lane.b32.xlu0 %v10424_v25, %s11782_s22 }
0x17f8   : > { %v1868_v36 = vpop.permute.xlu0 %1867 }
0x17f9   : > { %v1873_v38 = vsel %vm722_vm4, %v1868_v36, 0  ;;  %v8225_v36 = vld [vmem:[%s11766_s8 + $0x50] sm:$0xff] }
0x17fa   : > { %8872 = vmatpush3.bf16.xpose.msra.mxu1 %v1873_v38 }
0x17fb   : > { %8883 = vmatprep.subr.bf16.mxu1 %v9961_v1 }
0x17fc   : > { %v1990_v40 = vpop.permute.xlu0 %1989 }
0x1801   : > { %8874 = vmatmul.mubr.msk.bf16.vlgmr.msra.gmra.mrb[40].mxu1 %vm722_vm4, %v1864_v35 }
0x1802   : > { %8884 = vmatpush3.bf16.msra.mxu1 %v1990_v40  ;;  %8885 = vmatprep.mubr.msk.bf16.mxu1 %vm9962_vm0, %v9961_v1  ;;  %v8226_v40 = vld [vmem:[%s11766_s8 + $0x58] sm:$0xff] }
0x1803   : > { %8895 = vmatprep.subr.bf16.mxu1 %v9961_v1 }
0x1809   : > { %8886 = vmatmul.mubr.msk.bf16.vlgmr.msra.gmra.mrb[44].mxu1 %vm556_vm2, %v10437_v19 }
0x180a   : > { %8897 = vmatprep.mubr.msk.bf16.mxu1 %vm9962_vm0, %v9961_v1 }
0x18d4   : > { %v1909_v45 = vpop.f32.mrb[40].mxu1 }
0x18d5   : > { %v1910_v46 = vadd.f32 %v8219_v42, %v1909_v45  ;;  %v8875_v47 = vpop.f32.mrb[41].mxu1 }
0x18d6   : > { %v1912_v48 = vpop.f32.mrb[42].mxu1 }
0x18d7   : > { %v1913_v49 = vadd.f32 %v8220_v53, %v1912_v48  ;;  %v8876_v50 = vpop.f32.mrb[43].mxu1  ;;  %v1916_v52 = vsel %vm556_vm2, %v1910_v46, -inf }
0x18d8   : > { %1917 = vmax.xlane.f32.xlu1 %v1916_v52 }
0x18d9   : > { %v1919_v9 = vsel %vm556_vm2, %v1913_v49, -inf }
0x18da   : > { %1920 = vmax.xlane.f32.xlu0 %v1919_v9 }
0x18dc   : > { %v2030_v16 = vpop.f32.mrb[44].mxu1 }
0x18dd   : > { %v8887_v54 = vpop.f32.mrb[45].mxu1 }
0x18de   : > { %v2033_v41 = vpop.f32.mrb[46].mxu1 }
0x18df   : > { %v8888_v55 = vpop.f32.mrb[47].mxu1 }
0x18e9   : > { %1993 = vrot.lane.b32.xlu1 %v10445_v20, %s11782_s22 }
0x1965   : > { %v1918_v7 = vpop.xlane.xlu1 %1917 }
0x1966   : > { %v1922_v56 = vsub.f32 %v1910_v46, %v1918_v7 }
0x1967   : > { %v1921_v43 = vpop.xlane.xlu0 %1920 }
0x1968   : > { %v1924_v57 = vmul.f32 1.442695, %v1922_v56  ;;  %v1923_v59 = vsub.f32 %v1913_v49, %v1921_v43 }
0x1969   : > { %v1994_v60 = vpop.permute.xlu1 %1993 }
0x196a   : > { %9717 = vpow2.f32 %v1924_v57  ;;  %v1926_v31 = vmul.f32 1.442695, %v1923_v59  ;;  %v2031_v61 = vadd.f32 %v2030_v16, %v1994_v60  ;;  %v2034_v62 = vadd.f32 %v2033_v41, %v1994_v60 }
0x196c   : > { %9719 = vpow2.f32 %v1926_v31  ;;  %v2037_v0 = vmul.f32 0.5, %v2031_v61  ;;  %v2038_v2 = vmul.f32 0.5, %v2034_v62  ;;  %v2043_v3 = vpack.c.bf16 %v2034_v62, %v2031_v61  ;;  %v8223_v62 = vld [vmem:[%s11765_s7 + $0x8] sm:$0x3] }
0x196e   : > { %v2042_v5 = vpack.c.bf16 %v2038_v2, %v2037_v0 }
0x1974   : > { %v9718_v6 = vpop.eup %9717 }
0x1975   : > { %v1928_v8 = vsel %vm556_vm2, %v9718_v6, 0.0 }
0x1976   : > { %v9720_v29 = vpop.eup %9719  ;;  %1929 = vadd.xlane.f32.xlu1 %v1928_v8 }
0x1977   : > { %v1931_v11 = vsel %vm556_vm2, %v9720_v29, 0.0 }
0x1978   : > { %1932 = vadd.xlane.f32.xlu0 %v1931_v11 }
0x1987   : > { %2045 = vrot.lane.b32.xlu1 %v2043_v3, %s11784_s18 }
0x198e   : > { %1939 = vrot.lane.b32.xlu0 %v1865_v34, %s11801_s25 }
0x1a03   : > { %v1930_v12 = vpop.xlane.xlu1 %1929 }
0x1a04   : > { %9721 = vrcp.f32 %v1930_v12 }
0x1a05   : > { %v1933_v13 = vpop.xlane.xlu0 %1932 }
0x1a06   : > { %9723 = vrcp.f32 %v1933_v13 }
0x1a07   : > { %v2046_v23 = vpop.permute.xlu1 %2045 }
0x1a08   : > { %v2051_v26 = vsel %vm722_vm4, %v2046_v23, 0 }
0x1a09   : > { %v1940_v14 = vpop.permute.xlu0 %1939 }
0x1a0a   : > { %8878 = vmatpush3.bf16.msra.mxu0 %v1940_v14 }
0x1a0b   : > { %8889 = vmatprep.subr.bf16.mxu0 %v9961_v1 }
0x1a0e   : > { %v9722_v17 = vpop.eup %9721 }
0x1a0f   : > { %v1936_v21 = vmul.f32 %v9722_v17, %v9718_v6  ;;  %v8229_v6 = vld [vmem:[%s11765_s7 + $0xa] sm:$0x3] }
0x1a10   : > { %v9724_v18 = vpop.eup %9723  ;;  %v2171_v8 = vsel %vm1023_vm5, %v8229_v6, 0 }
0x1a11   : > { %v1937_v22 = vmul.f32 %v9724_v18, %v9720_v29 }
0x1a13   : > { %v1938_v24 = vpack.c.bf16 %v1937_v22, %v1936_v21 }
0x1a15   : > { %8880 = vmatmul.mubr.msk.bf16.vlgmr.msra.gmra.mrb[40].mxu0 %vm556_vm2, %v1938_v24 }
0x1a16   : > { %8890 = vmatpush3.bf16.xpose.msra.mxu0 %v2051_v26  ;;  %8891 = vmatprep.mubr.msk.bf16.mxu0 %vm9962_vm0, %v9961_v1 }
0x1a17   : > { %8901 = vmatprep.subr.bf16.mxu0 %v9961_v1 }
0x1a1d   : > { %8892 = vmatmul.mubr.msk.bf16.vlgmr.msra.gmra.mrb[44].mxu0 %vm722_vm4, %v2042_v5  ;;  %v2218_v5 = vsel %vm1023_vm5, %v8223_v62, 0 }
0x1a1e   : > { %8903 = vmatprep.mubr.msk.bf16.mxu0 %vm9962_vm0, %v9961_v1  ;;  %8902 = vmatpush3.bf16.msra.mxu0 %v2171_v8 }
0x1a1f   : > { %8913 = vmatprep.subr.bf16.mxu0 %v9961_v1 }
0x1ae8   : > { %v1979_v30 = vpop.f32.mrb[40].mxu0 }
0x1ae9   : > { %v8881_v32 = vpop.f32.mrb[41].mxu0 }
0x1aea   : > { %v1982_v33 = vpop.f32.mrb[42].mxu0 }
0x1aeb   : > { %v1986_v34 = vpack.c.bf16 %v1982_v33, %v1979_v30  ;;  %v8882_v35 = vpop.f32.mrb[43].mxu0 }
0x1af0   : > { %v2087_v38 = vpop.f32.mrb[44].mxu0 }
0x1af1   : > { %v2088_v42 = vadd.f32 %v8225_v36, %v2087_v38  ;;  %v8893_v45 = vpop.f32.mrb[45].mxu0 }
0x1af2   : > { %v2090_v53 = vpop.f32.mrb[46].mxu0 }
0x1af3   : > { %v2091_v46 = vadd.f32 %v8226_v40, %v2090_v53  ;;  %v8894_v47 = vpop.f32.mrb[47].mxu0  ;;  %v2094_v48 = vsel %vm556_vm2, %v2088_v42, -inf }
0x1af4   : > { %2095 = vmax.xlane.f32.xlu0 %v2094_v48 }
0x1af5   : > { %v2097_v49 = vsel %vm556_vm2, %v2091_v46, -inf }
0x1af6   : > { %2098 = vmax.xlane.f32.xlu1 %v2097_v49 }
0x1b07   : > { %2261 = vrot.lane.b32.xlu1 %v10424_v25, %s11802_s26 }
0x1b81   : > { %v2096_v50 = vpop.xlane.xlu0 %2095 }
0x1b82   : > { %v2100_v52 = vsub.f32 %v2088_v42, %v2096_v50 }
0x1b83   : > { %v2099_v9 = vpop.xlane.xlu1 %2098 }
0x1b84   : > { %v2102_v16 = vmul.f32 1.442695, %v2100_v52  ;;  %v2101_v54 = vsub.f32 %v2091_v46, %v2099_v9  ;;  %v8233_v9 = vld [vmem:[%s11766_s8 + $0x60] sm:$0xff] }
0x1b86   : > { %9725 = vpow2.f32 %v2102_v16  ;;  %v2104_v41 = vmul.f32 1.442695, %v2101_v54  ;;  %v8234_v54 = vld [vmem:[%s11766_s8 + $0x68] sm:$0xff] }
0x1b87   : > { %v2262_v17 = vpop.permute.xlu1 %2261 }
0x1b88   : > { %9727 = vpow2.f32 %v2104_v41 }
0x1b90   : > { %v9726_v55 = vpop.eup %9725 }
0x1b91   : > { %v2106_v7 = vsel %vm556_vm2, %v9726_v55, 0.0 }
0x1b92   : > { %v9728_v56 = vpop.eup %9727  ;;  %2107 = vadd.xlane.f32.xlu0 %v2106_v7 }
0x1b93   : > { %v2109_v43 = vsel %vm556_vm2, %v9728_v56, 0.0 }
0x1b96   : > { %2110 = vadd.xlane.f32.xlu0 %v2109_v43 }
0x1bac   : > { %2117 = vrot.lane.b32.xlu0 %v2043_v3, %s11801_s25 }
0x1bb0   : > { %2264 = vrot.lane.b32.xlu0 %v10445_v20, %s11802_s26 }
0x1c1f   : > { %v2108_v57 = vpop.xlane.xlu0 %2107 }
0x1c20   : > { %9729 = vrcp.f32 %v2108_v57 }
0x1c23   : > { %v2111_v59 = vpop.xlane.xlu0 %2110 }
0x1c24   : > { %9731 = vrcp.f32 %v2111_v59 }
0x1c27   : > { %v2118_v60 = vpop.permute.xlu0 %2117 }
0x1c28   : > { %8896 = vmatpush3.bf16.msra.mxu1 %v2118_v60 }
0x1c29   : > { %8907 = vmatprep.subr.bf16.mxu1 %v9961_v1 }
0x1c2a   : > { %v9730_v31 = vpop.eup %9729 }
0x1c2b   : > { %v2114_v0 = vmul.f32 %v9730_v31, %v9726_v55  ;;  %v2265_v35 = vpop.permute.xlu0 %2264 }
0x1c2e   : > { %v9732_v61 = vpop.eup %9731 }
0x1c2f   : > { %v2115_v2 = vmul.f32 %v9732_v61, %v9728_v56 }
0x1c31   : > { %v2116_v3 = vpack.c.bf16 %v2115_v2, %v2114_v0 }
0x1c33   : > { %8898 = vmatmul.mubr.msk.bf16.vlgmr.msra.gmra.mrb[48].mxu1 %vm556_vm2, %v2116_v3 }
0x1c34   : > { %8908 = vmatpush3.bf16.msra.mxu1 %v2218_v5  ;;  %8909 = vmatprep.mubr.msk.bf16.mxu1 %vm9962_vm0, %v9961_v1 }
0x1c35   : > { %8919 = vmatprep.subr.bf16.mxu1 %v9961_v1 }
0x1c3b   : > { %8910 = vmatmul.mubr.msk.bf16.vlgmr.msra.gmra.mrb[52].mxu1 %vm722_vm4, %v1986_v34 }
0x1c3c   : > { %8921 = vmatprep.mubr.msk.bf16.mxu1 %vm9962_vm0, %v9961_v1 }
0x1d06   : > { %v2157_v29 = vpop.f32.mrb[48].mxu1 }
0x1d07   : > { %v8899_v11 = vpop.f32.mrb[49].mxu1 }
0x1d08   : > { %v2160_v12 = vpop.f32.mrb[50].mxu1 }
0x1d09   : > { %v2164_v13 = vpack.c.bf16 %v2160_v12, %v2157_v29  ;;  %v8900_v14 = vpop.f32.mrb[51].mxu1 }
0x1d0b   : > { %8904 = vmatmul.mubr.msk.bf16.vlgmr.msra.gmra.mrb[48].mxu0 %vm722_vm4, %v2164_v13 }
0x1d0c   : > { %8914 = vmatpush3.bf16.msra.mxu0 %v2262_v17  ;;  %8915 = vmatprep.mubr.msk.bf16.mxu0 %vm9962_vm0, %v9961_v1 }
0x1d0d   : > { %8925 = vmatprep.subr.bf16.mxu0 %v9961_v1 }
0x1d0e   : > { %v2254_v18 = vpop.f32.mrb[52].mxu1 }
0x1d0f   : > { %v8911_v21 = vpop.f32.mrb[53].mxu1 }
0x1d10   : > { %v2257_v22 = vpop.f32.mrb[54].mxu1 }
0x1d11   : > { %v8912_v23 = vpop.f32.mrb[55].mxu1 }
0x1d13   : > { %8916 = vmatmul.mubr.msk.bf16.vlgmr.msra.gmra.mrb[52].mxu0 %vm556_vm2, %v10437_v19 }
0x1d14   : > { %8927 = vmatprep.mubr.msk.bf16.mxu0 %vm9962_vm0, %v9961_v1 }
0x1dde   : > { %v2207_v24 = vpop.f32.mrb[48].mxu0 }
0x1ddf   : > { %v10525_v26 = vadd.f32 %v2254_v18, %v2207_v24  ;;  %v8905_v30 = vpop.f32.mrb[49].mxu0 }
0x1de0   : > { %v2210_v32 = vpop.f32.mrb[50].mxu0 }
0x1de1   : > { %v10527_v33 = vadd.f32 %v2257_v22, %v2210_v32  ;;  %v8906_v34 = vpop.f32.mrb[51].mxu0  ;;  %v8237_v22 = vld [vmem:[%s11765_s7 + $0xc] sm:$0x3] }
0x1de2   : > { %v2442_v23 = vsel %vm1023_vm5, %v8237_v22, 0 }
0x1de6   : > { %v2301_v36 = vpop.f32.mrb[52].mxu0 }
0x1de7   : > { %v2302_v38 = vadd.f32 %v2301_v36, %v2265_v35  ;;  %v8917_v40 = vpop.f32.mrb[53].mxu0 }
0x1de8   : > { %v2304_v42 = vpop.f32.mrb[54].mxu0 }
0x1de9   : > { %v2305_v45 = vadd.f32 %v2304_v42, %v2265_v35  ;;  %v8918_v53 = vpop.f32.mrb[55].mxu0  ;;  %v2308_v46 = vmul.f32 0.5, %v2302_v38 }
0x1deb   : > { %v2309_v47 = vmul.f32 0.5, %v2305_v45  ;;  %v2314_v48 = vpack.c.bf16 %v2305_v45, %v2302_v38 }
0x1ded   : > { %v2313_v49 = vpack.c.bf16 %v2309_v47, %v2308_v46  ;;  %2316 = vrot.lane.b32.xlu0 %v2314_v48, %s11784_s18 }
0x1e5f   : > { %v2317_v50 = vpop.permute.xlu0 %2316 }
0x1e60   : > { %v2322_v52 = vsel %vm722_vm4, %v2317_v50, 0 }
0x1e61   : > { %8920 = vmatpush3.bf16.xpose.msra.mxu1 %v2322_v52 }
0x1e62   : > { %8931 = vmatprep.subr.bf16.mxu1 %v9961_v1 }
0x1e68   : > { %8922 = vmatmul.mubr.msk.bf16.vlgmr.msra.gmra.mrb[56].mxu1 %vm722_vm4, %v2313_v49 }
0x1e69   : > { %8933 = vmatprep.mubr.msk.bf16.mxu1 %vm9962_vm0, %v9961_v1  ;;  %8932 = vmatpush3.bf16.msra.mxu1 %v2442_v23 }
0x1e6a   : > { %8943 = vmatprep.subr.bf16.mxu1 %v9961_v1 }
0x1f3b   : > { %v2358_v16 = vpop.f32.mrb[56].mxu1 }
0x1f3c   : > { %v2359_v41 = vadd.f32 %v8233_v9, %v2358_v16  ;;  %v8923_v55 = vpop.f32.mrb[57].mxu1 }
0x1f3d   : > { %v2361_v7 = vpop.f32.mrb[58].mxu1 }
0x1f3e   : > { %v2362_v56 = vadd.f32 %v8234_v54, %v2361_v7  ;;  %v8924_v43 = vpop.f32.mrb[59].mxu1  ;;  %v2365_v57 = vsel %vm556_vm2, %v2359_v41, -inf }
0x1f3f   : > { %2366 = vmax.xlane.f32.xlu0 %v2365_v57  ;;  %v8241_v57 = vld [vmem:[%s11766_s8 + $0x78] sm:$0xff] }
0x1f40   : > { %v2368_v59 = vsel %vm556_vm2, %v2362_v56, -inf }
0x1f41   : > { %2369 = vmax.xlane.f32.xlu1 %v2368_v59 }
0x1f52   : > { %2388 = vrot.lane.b32.xlu1 %v2314_v48, %s11801_s25 }
0x1f56   : > { %2490 = vrot.lane.b32.xlu1 %v10445_v20, %s11803_s28 }
0x1fcc   : > { %v2367_v60 = vpop.xlane.xlu0 %2366 }
0x1fcd   : > { %v2371_v31 = vsub.f32 %v2359_v41, %v2367_v60 }
0x1fce   : > { %v2370_v61 = vpop.xlane.xlu1 %2369 }
0x1fcf   : > { %v2373_v62 = vmul.f32 1.442695, %v2371_v31  ;;  %v2372_v0 = vsub.f32 %v2362_v56, %v2370_v61  ;;  %v8240_v56 = vld [vmem:[%s11766_s8 + $0x70] sm:$0xff] }
0x1fd1   : > { %9733 = vpow2.f32 %v2373_v62  ;;  %v2375_v2 = vmul.f32 1.442695, %v2372_v0 }
0x1fd2   : > { %v2389_v3 = vpop.permute.xlu1 %2388 }
0x1fd3   : > { %9735 = vpow2.f32 %v2375_v2  ;;  %8926 = vmatpush3.bf16.msra.mxu0 %v2389_v3 }
0x1fd4   : > { %8937 = vmatprep.subr.bf16.mxu0 %v9961_v1 }
0x1fdb   : > { %v9734_v5 = vpop.eup %9733 }
0x1fdc   : > { %v2377_v6 = vsel %vm556_vm2, %v9734_v5, 0.0 }
0x1fdd   : > { %v9736_v8 = vpop.eup %9735  ;;  %2378 = vadd.xlane.f32.xlu0 %v2377_v6 }
0x1fde   : > { %v2380_v29 = vsel %vm556_vm2, %v9736_v8, 0.0 }
0x1fe1   : > { %2381 = vadd.xlane.f32.xlu0 %v2380_v29 }
0x1ff7   : > { %2487 = vrot.lane.b32.xlu0 %v10424_v25, %s11803_s28 }
0x206a   : > { %v2379_v20 = vpop.xlane.xlu0 %2378 }
0x206b   : > { %9737 = vrcp.f32 %v2379_v20 }
0x206e   : > { %v2382_v11 = vpop.xlane.xlu0 %2381 }
0x206f   : > { %9739 = vrcp.f32 %v2382_v11 }
0x2072   : > { %v2488_v21 = vpop.permute.xlu0 %2487 }
0x2075   : > { %v9738_v12 = vpop.eup %9737 }
0x2076   : > { %v2385_v14 = vmul.f32 %v9738_v12, %v9734_v5 }
0x2079   : > { %v9740_v13 = vpop.eup %9739 }
0x207a   : > { %v2386_v17 = vmul.f32 %v9740_v13, %v9736_v8 }
0x207c   : > { %v2387_v18 = vpack.c.bf16 %v2386_v17, %v2385_v14 }
0x207e   : > { %8928 = vmatmul.mubr.msk.bf16.vlgmr.msra.gmra.mrb[56].mxu0 %vm556_vm2, %v2387_v18 }
0x207f   : > { %8938 = vmatpush3.bf16.msra.mxu0 %v2488_v21  ;;  %8939 = vmatprep.mubr.msk.bf16.mxu0 %vm9962_vm0, %v9961_v1 }
0x2080   : > { %8949 = vmatprep.subr.bf16.mxu0 %v9961_v1 }
0x2086   : > { %8940 = vmatmul.mubr.msk.bf16.vlgmr.msra.gmra.mrb[60].mxu0 %vm556_vm2, %v10437_v19  ;;  %v2491_v19 = vpop.permute.xlu1 %2490 }
0x2087   : > { %8951 = vmatprep.mubr.msk.bf16.mxu0 %vm9962_vm0, %v9961_v1 }
0x2151   : > { %v2428_v24 = vpop.f32.mrb[56].mxu0 }
0x2152   : > { %v8929_v30 = vpop.f32.mrb[57].mxu0 }
0x2153   : > { %v2431_v32 = vpop.f32.mrb[58].mxu0 }
0x2154   : > { %v2435_v34 = vpack.c.bf16 %v2431_v32, %v2428_v24  ;;  %v8930_v35 = vpop.f32.mrb[59].mxu0  ;;  %v8244_v24 = vld [vmem:[%s11765_s7 + $0xe] sm:$0x3] }
0x2155   : > { %v2668_v30 = vsel %vm1023_vm5, %v8244_v24, 0 }
0x2156   : > { %8934 = vmatmul.mubr.msk.bf16.vlgmr.msra.gmra.mrb[60].mxu1 %vm722_vm4, %v2435_v34 }
0x2157   : > { %8945 = vmatprep.mubr.msk.bf16.mxu1 %vm9962_vm0, %v9961_v1 }
0x2159   : > { %v2527_v36 = vpop.f32.mrb[60].mxu0 }
0x215a   : > { %v2528_v38 = vadd.f32 %v2527_v36, %v2491_v19  ;;  %v8941_v40 = vpop.f32.mrb[61].mxu0 }
0x215b   : > { %v2530_v42 = vpop.f32.mrb[62].mxu0 }
0x215c   : > { %v2531_v45 = vadd.f32 %v2530_v42, %v2491_v19  ;;  %v8942_v53 = vpop.f32.mrb[63].mxu0  ;;  %v2534_v46 = vmul.f32 0.5, %v2528_v38  ;;  %v2718_v42 = vrot.slane %v10431_v4, %v10347_v27 }
0x215e   : > { %v2535_v47 = vmul.f32 0.5, %v2531_v45  ;;  %v2540_v48 = vpack.c.bf16 %v2531_v45, %v2528_v38 }
0x2160   : > { %v2539_v49 = vpack.c.bf16 %v2535_v47, %v2534_v46  ;;  %2542 = vrot.lane.b32.xlu1 %v2540_v48, %s11784_s18  ;;  %s11790_s18 = smov 56  }
0x21d2   : > { %v2543_v50 = vpop.permute.xlu1 %2542 }
0x21d3   : > { %v2548_v52 = vsel %vm722_vm4, %v2543_v50, 0 }
0x21d4   : > { %8944 = vmatpush3.bf16.xpose.msra.mxu1 %v2548_v52 }
0x21d5   : > { %8955 = vmatprep.subr.bf16.mxu1 %v9961_v1 }
0x21db   : > { %8946 = vmatmul.mubr.msk.bf16.vlgmr.msra.gmra.mrb[64].mxu1 %vm722_vm4, %v2539_v49 }
0x21dc   : > { %8957 = vmatprep.mubr.msk.bf16.mxu1 %vm9962_vm0, %v9961_v1  ;;  %8956 = vmatpush3.bf16.msra.mxu1 %v2668_v30 }
0x21dd   : > { %8967 = vmatprep.subr.bf16.mxu1 %v9961_v1 }
0x2229   : > { %v2478_v9 = vpop.f32.mrb[60].mxu1 }
0x222a   : > { %v2485_v16 = vadd.f32 %v2478_v9, %v10525_v26  ;;  %v8935_v54 = vpop.f32.mrb[61].mxu1 }
0x222b   : > { %v2481_v41 = vpop.f32.mrb[62].mxu1 }
0x222c   : > { %v2486_v55 = vadd.f32 %v2481_v41, %v10527_v33  ;;  %v8936_v7 = vpop.f32.mrb[63].mxu1 }
0x22ae   : > { %v2584_v43 = vpop.f32.mrb[64].mxu1 }
0x22af   : > { %v2585_v59 = vadd.f32 %v8240_v56, %v2584_v43  ;;  %v8947_v60 = vpop.f32.mrb[65].mxu1 }
0x22b0   : > { %v2587_v31 = vpop.f32.mrb[66].mxu1 }
0x22b1   : > { %v2588_v61 = vadd.f32 %v8241_v57, %v2587_v31  ;;  %v8948_v62 = vpop.f32.mrb[67].mxu1  ;;  %v2591_v26 = vsel %vm556_vm2, %v2585_v59, -inf }
0x22b2   : > { %2592 = vmax.xlane.f32.xlu0 %v2591_v26 }
0x22b3   : > { %v2594_v33 = vsel %vm556_vm2, %v2588_v61, -inf }
0x22b4   : > { %2595 = vmax.xlane.f32.xlu1 %v2594_v33 }
0x22c5   : > { %2614 = vrot.lane.b32.xlu1 %v2540_v48, %s11801_s25 }
0x22c9   : > { %2764 = vrot.lane.b32.xlu1 %v10424_v25, %s11804_s20 }
0x233f   : > { %v2593_v0 = vpop.xlane.xlu0 %2592 }
0x2340   : > { %v2597_v2 = vsub.f32 %v2585_v59, %v2593_v0 }
0x2341   : > { %v2596_v3 = vpop.xlane.xlu1 %2595 }
0x2342   : > { %v2599_v5 = vmul.f32 1.442695, %v2597_v2  ;;  %v2598_v6 = vsub.f32 %v2588_v61, %v2596_v3  ;;  %v2750_v3 = vrot.slane %v10431_v4, %v10147_v39 }
0x2344   : > { %9741 = vpow2.f32 %v2599_v5  ;;  %v2601_v8 = vmul.f32 1.442695, %v2598_v6 }
0x2345   : > { %v2615_v29 = vpop.permute.xlu1 %2614 }
0x2346   : > { %9743 = vpow2.f32 %v2601_v8  ;;  %8950 = vmatpush3.bf16.msra.mxu0 %v2615_v29 }
0x2347   : > { %8961 = vmatprep.subr.bf16.mxu0 %v9961_v1 }
0x2349   : > { %v2765_v60 = vpop.permute.xlu1 %2764 }
0x234e   : > { %v9742_v20 = vpop.eup %9741 }
0x234f   : > { %v2603_v11 = vsel %vm556_vm2, %v9742_v20, 0.0 }
0x2350   : > { %v9744_v12 = vpop.eup %9743  ;;  %2604 = vadd.xlane.f32.xlu0 %v2603_v11 }
0x2351   : > { %v2606_v13 = vsel %vm556_vm2, %v9744_v12, 0.0 }
0x2354   : > { %2607 = vadd.xlane.f32.xlu0 %v2606_v13 }
0x23dd   : > { %v2605_v25 = vpop.xlane.xlu0 %2604 }
0x23de   : > { %9745 = vrcp.f32 %v2605_v25 }
0x23e1   : > { %v2608_v14 = vpop.xlane.xlu0 %2607 }
0x23e2   : > { %9747 = vrcp.f32 %v2608_v14  ;;  %v9617_v14 = vld [vmem:[%s11764_s6 + $0x20] sm:$0xff]  }
0x23e8   : > { %v9746_v17 = vpop.eup %9745 }
0x23e9   : > { %v2611_v21 = vmul.f32 %v9746_v17, %v9742_v20  ;;  %v2756_v20 = vrot.slane %v10431_v4, %v10371_v63  ;;  %v9618_v17 = vld [vmem:[%s11764_s6 + $0x28] sm:$0xff]  }
0x23ec   : > { %v9748_v18 = vpop.eup %9747 }
0x23ed   : > { %v2612_v22 = vmul.f32 %v9748_v18, %v9744_v12  ;;  %v9619_v18 = vld [vmem:[%s11764_s6 + $0x30] sm:$0xff]  }
0x23ef   : > { %v2613_v23 = vpack.c.bf16 %v2612_v22, %v2611_v21  ;;  %v9620_v21 = vld [vmem:[%s11764_s6 + $0x38] sm:$0xff]   ;;  %v2763_v22 = vrot.slane %v10431_v4, %v10395_v15 }
0x23f1   : > { %8952 = vmatmul.mubr.msk.bf16.vlgmr.msra.gmra.mrb[64].mxu0 %vm556_vm2, %v2613_v23 }
0x23f2   : > { %8963 = vmatprep.mubr.msk.bf16.mxu0 %vm9962_vm0, %v9961_v1  ;;  %8962 = vmatpush3.bf16.msra.mxu0 %v2765_v60 }
0x23f3   : > { %8979 = vmatprep.subr.bf16.mxu0 %v9961_v1 }
0x24c4   : > { %v2654_v32 = vpop.f32.mrb[64].mxu0 }
0x24c5   : > { %v8953_v34 = vpop.f32.mrb[65].mxu0 }
0x24c6   : > { %v2657_v35 = vpop.f32.mrb[66].mxu0 }
0x24c7   : > { %v2661_v19 = vpack.c.bf16 %v2657_v35, %v2654_v32  ;;  %v8954_v36 = vpop.f32.mrb[67].mxu0 }
0x24c9   : > { %8958 = vmatmul.mubr.msk.bf16.vlgmr.msra.gmra.mrb[68].mxu1 %vm722_vm4, %v2661_v19 }
0x24ca   : > { %8975 = vmatprep.mubr.msk.bf16.mxu1 %vm9962_vm0, %v9961_v1  ;;  %8968 = vmatpush3.bf16.msra.mxu1 %v9617_v14 }
0x24cb   : > { %8969 = vmatprep.subr.bf16.mxu1 %v9961_v1 }
0x24ce   : > { %8970 = vmatpush3.bf16.msra.mxu1 %v9618_v17 }
0x24cf   : > { %8971 = vmatprep.subr.bf16.mxu1 %v9961_v1 }
0x24d2   : > { %8972 = vmatpush3.bf16.msra.mxu1 %v9619_v18 }
0x24d3   : > { %8973 = vmatprep.subr.bf16.mxu1 %v9961_v1 }
0x24d6   : > { %8974 = vmatpush3.bf16.msra.mxu1 %v9620_v21 }
0x24d7   : > { %8991 = vmatprep.subr.bf16.mxu1 %v9961_v1 }
0x259c   : > { %v2704_v38 = vpop.f32.mrb[68].mxu1 }
0x259d   : > { %v2711_v40 = vadd.f32 %v2704_v38, %v2485_v16  ;;  %v8959_v45 = vpop.f32.mrb[69].mxu1 }
0x259e   : > { %v2707_v53 = vpop.f32.mrb[70].mxu1 }
0x259f   : > { %v2713_v46 = vadd.f32 %v2711_v40, %v10408_v58  ;;  %v2712_v47 = vadd.f32 %v2707_v53, %v2486_v55  ;;  %v8960_v48 = vpop.f32.mrb[71].mxu1 }
0x25a1   : > { %v10603_v49 = vadd.f32 %v2718_v42, %v2713_v46  ;;  %v2714_v50 = vadd.f32 %v2712_v47, %v10411_v51 }
0x25a3   : > { %v10606_v52 = vadd.f32 %v2718_v42, %v2714_v50  ;;  %v2721_v9 = vsel %vm556_vm2, %v10603_v49, 0.0 }
0x25a4   : > { %2722 = vadd.xlane.f32.xlu0 %v2721_v9  ;;  %v2895_v9 = vrot.slane %v10431_v4, %v10403_v44 }
0x25a5   : > { %v2724_v16 = vsel %vm556_vm2, %v10606_v52, 0.0 }
0x25a8   : > { %2725 = vadd.xlane.f32.xlu0 %v2724_v16 }
0x2631   : > { %v2723_v54 = vpop.xlane.xlu0 %2722 }
0x2632   : > { %v2727_v41 = vmul.f32 0.0625, %v2723_v54 }
0x2634   : > { %v2729_v58 = vsub.f32 %v10603_v49, %v2727_v41 }
0x2635   : > { %v2726_v55 = vpop.xlane.xlu0 %2725 }
0x2636   : > { %v2728_v7 = vmul.f32 0.0625, %v2726_v55  ;;  %v2731_v56 = vmul.f32 %v2729_v58, %v2729_v58 }
0x2638   : > { %v2730_v43 = vsub.f32 %v10606_v52, %v2728_v7  ;;  %v2733_v51 = vsel %vm556_vm2, %v2731_v56, 0.0 }
0x2639   : > { %2734 = vadd.xlane.f32.xlu0 %v2733_v51 }
0x263a   : > { %v2732_v57 = vmul.f32 %v2730_v43, %v2730_v43 }
0x263c   : > { %v2736_v59 = vsel %vm556_vm2, %v2732_v57, 0.0 }
0x263d   : > { %2737 = vadd.xlane.f32.xlu0 %v2736_v59 }
0x26c6   : > { %v2735_v31 = vpop.xlane.xlu0 %2734 }
0x26c7   : > { %v2739_v61 = vmul.f32 0.0625, %v2735_v31 }
0x26c9   : > { %v2741_v62 = vadd.f32 1e-05, %v2739_v61 }
0x26ca   : > { %v2738_v26 = vpop.xlane.xlu0 %2737 }
0x26cb   : > { %9749 = vrsqrt.f32 %v2741_v62  ;;  %v2740_v33 = vmul.f32 0.0625, %v2738_v26 }
0x26cd   : > { %v2742_v0 = vadd.f32 1e-05, %v2740_v33 }
0x26cf   : > { %9751 = vrsqrt.f32 %v2742_v0  ;;  %v10664_v0 = vld [vmem:[%s11762_s4 + $0x10] sm:$0xff]  }
0x26d5   : > { %v9750_v2 = vpop.eup %9749 }
0x26d6   : > { %v2745_v5 = vmul.f32 %v9750_v2, %v2729_v58 }
0x26d8   : > { %v2751_v8 = vmul.f32 %v2750_v3, %v2745_v5 }
0x26d9   : > { %v9752_v6 = vpop.eup %9751 }
0x26da   : > { %v2746_v29 = vmul.f32 %v9752_v6, %v2730_v43  ;;  %v2757_v12 = vadd.f32 %v2756_v20, %v2751_v8 }
0x26dc   : > { %v2752_v11 = vmul.f32 %v2750_v3, %v2746_v29 }
0x26de   : > { %v2758_v13 = vadd.f32 %v2756_v20, %v2752_v11  ;;  %v10671_v20 = vld [vmem:[%s11763_s5 + $0x10] sm:$0xff] }
0x26df   : > { %v2947_v18 = vrot.slane %v10671_v20, %v10141_v37 }
0x26e0   : > { %v2759_v25 = vpack.c.bf16 %v2758_v13, %v2757_v12  ;;  %v2941_v12 = vrot.slane %v10671_v20, %v10130_v10 }
0x26e2   : > { %8964 = vmatmul.mubr.msk.bf16.vlgmr.msra.gmra.mrb[68].mxu0 %vm556_vm2, %v2759_v25 }
0x26e3   : > { %8981 = vmatprep.mubr.msk.bf16.mxu0 %vm9962_vm0, %v9961_v1  ;;  %8980 = vmatpush3.bf16.msra.mxu0 %v10664_v0 }
0x26e4   : > { %8985 = vmatprep.subr.bf16.mxu0 %v9961_v1 }
0x27b5   : > { %v2804_v23 = vpop.f32.mrb[68].mxu0 }
0x27b6   : > { %v2805_v24 = vadd.f32 %v2804_v23, %v2763_v22  ;;  %v8965_v30 = vpop.f32.mrb[69].mxu0 }
0x27b7   : > { %v2807_v32 = vpop.f32.mrb[70].mxu0  ;;  %v10685_v30 = vrot.slane %v10671_v20, %v10191_v28 }
0x27b8   : > { %v2813_v34 = vmul.f32 0.70710677, %v2805_v24  ;;  %v2808_v35 = vadd.f32 %v2807_v32, %v2763_v22  ;;  %v8966_v19 = vpop.f32.mrb[71].mxu0  ;;  %v2811_v45 = vmul.f32 0.5, %v2805_v24 }
0x27ba   : > { %9753 = verf.f32 %v2813_v34  ;;  %v2814_v36 = vmul.f32 0.70710677, %v2808_v35  ;;  %v2812_v53 = vmul.f32 0.5, %v2808_v35 }
0x27bc   : > { %9755 = verf.f32 %v2814_v36 }
0x27c4   : > { %v9754_v38 = vpop.eup %9753 }
0x27c5   : > { %v2817_v40 = vadd.f32 1.0, %v9754_v38 }
0x27c6   : > { %v9756_v42 = vpop.eup %9755 }
0x27c7   : > { %v2818_v46 = vadd.f32 1.0, %v9756_v42  ;;  %v2819_v47 = vmul.f32 %v2817_v40, %v2811_v45 }
0x27c9   : > { %v2820_v48 = vmul.f32 %v2818_v46, %v2812_v53 }
0x27cb   : > { %v2821_v50 = vpack.c.bf16 %v2820_v48, %v2819_v47 }
0x27cd   : > { %8976 = vmatmul.mubr.msk.bf16.vlgmr.msra.gmra.mrb[72].mxu1 %vm511_vm1, %v2821_v50  ;;  %v8265_v50 = vld [vmem:[%s11766_s8 + $0x80] sm:$0xff] }
0x27ce   : > { %8993 = vmatprep.mubr.msk.bf16.mxu1 %vm9962_vm0, %v9961_v1 }
0x28a0   : > { %v2883_v16 = vpop.f32.mrb[72].mxu1 }
0x28a1   : > { %v2890_v54 = vadd.f32 %v2883_v16, %v10603_v49  ;;  %v8977_v41 = vpop.f32.mrb[73].mxu1  ;;  %v8266_v16 = vld [vmem:[%s11766_s8 + $0x88] sm:$0xff] }
0x28a2   : > { %v2886_v58 = vpop.f32.mrb[74].mxu1 }
0x28a3   : > { %v10648_v55 = vadd.f32 %v2895_v9, %v2890_v54  ;;  %v2891_v7 = vadd.f32 %v2886_v58, %v10606_v52  ;;  %v8978_v56 = vpop.f32.mrb[75].mxu1 }
0x28a5   : > { %v10651_v43 = vadd.f32 %v2895_v9, %v2891_v7  ;;  %v2912_v51 = vsel %vm556_vm2, %v10648_v55, 0.0 }
0x28a6   : > { %2913 = vadd.xlane.f32.xlu0 %v2912_v51 }
0x28a7   : > { %v2915_v57 = vsel %vm556_vm2, %v10651_v43, 0.0 }
0x28a8   : > { %2916 = vadd.xlane.f32.xlu1 %v2915_v57 }
0x2933   : > { %v2914_v4 = vpop.xlane.xlu0 %2913 }
0x2934   : > { %v2918_v59 = vmul.f32 0.0625, %v2914_v4 }
0x2935   : > { %v2917_v49 = vpop.xlane.xlu1 %2916 }
0x2936   : > { %v2920_v60 = vsub.f32 %v10648_v55, %v2918_v59  ;;  %v2919_v31 = vmul.f32 0.0625, %v2917_v49 }
0x2938   : > { %v2921_v61 = vsub.f32 %v10651_v43, %v2919_v31  ;;  %v2922_v52 = vmul.f32 %v2920_v60, %v2920_v60 }
0x293a   : > { %v2924_v62 = vsel %vm556_vm2, %v2922_v52, 0.0  ;;  %v2923_v26 = vmul.f32 %v2921_v61, %v2921_v61 }
0x293b   : > { %2925 = vadd.xlane.f32.xlu0 %v2924_v62 }
0x293c   : > { %v2927_v33 = vsel %vm556_vm2, %v2923_v26, 0.0 }
0x293f   : > { %2928 = vadd.xlane.f32.xlu0 %v2927_v33 }
0x29c8   : > { %v2926_v2 = vpop.xlane.xlu0 %2925 }
0x29c9   : > { %v2930_v3 = vmul.f32 0.0625, %v2926_v2 }
0x29cb   : > { %v2932_v5 = vadd.f32 1e-05, %v2930_v3 }
0x29cc   : > { %v2929_v6 = vpop.xlane.xlu0 %2928 }
0x29cd   : > { %9757 = vrsqrt.f32 %v2932_v5  ;;  %v2931_v8 = vmul.f32 0.0625, %v2929_v6 }
0x29cf   : > { %v2933_v29 = vadd.f32 1e-05, %v2931_v8 }
0x29d1   : > { %9759 = vrsqrt.f32 %v2933_v29 }
0x29d7   : > { %v9758_v11 = vpop.eup %9757 }
0x29d8   : > { %v2936_v13 = vmul.f32 %v9758_v11, %v2920_v60 }
0x29da   : > { %v2942_v14 = vmul.f32 %v2941_v12, %v2936_v13 }
0x29db   : > { %v9760_v25 = vpop.eup %9759 }
0x29dc   : > { %v2937_v17 = vmul.f32 %v9760_v25, %v2921_v61  ;;  %v2948_v22 = vadd.f32 %v2947_v18, %v2942_v14 }
0x29de   : > { %v2943_v21 = vmul.f32 %v2941_v12, %v2937_v17 }
0x29e0   : > { %v2949_v23 = vadd.f32 %v2947_v18, %v2943_v21 }
0x29e2   : > { %v10677_v24 = vpack.c.bf16 %v2949_v23, %v2948_v22 }
0x29e4   : > { %8982 = vmatmul.mubr.msk.bf16.vlgmr.msra.gmra.mrb[72].mxu0 %vm556_vm2, %v10677_v24 }
0x29e5   : > { %8987 = vmatprep.mubr.msk.bf16.mxu0 %vm9962_vm0, %v9961_v1 }
0x2ab7   : > { %v2998_v32 = vpop.f32.mrb[72].mxu0 }
0x2ab8   : > { %v2999_v34 = vadd.f32 %v2998_v32, %v10685_v30  ;;  %v8983_v35 = vpop.f32.mrb[73].mxu0 }
0x2ab9   : > { %v3001_v19 = vpop.f32.mrb[74].mxu0 }
0x2aba   : > { %v3002_v36 = vadd.f32 %v3001_v19, %v10685_v30  ;;  %v8984_v38 = vpop.f32.mrb[75].mxu0  ;;  %v3005_v40 = vmul.f32 0.5, %v2999_v34 }
0x2abc   : > { %v3006_v42 = vmul.f32 0.5, %v3002_v36  ;;  %v3011_v45 = vpack.c.bf16 %v3002_v36, %v2999_v34 }
0x2abe   : > { %v3010_v53 = vpack.c.bf16 %v3006_v42, %v3005_v40  ;;  %3013 = vrot.lane.b32.xlu0 %v3011_v45, %s11805_s21 }
0x2ac2   : > { %3135 = vrot.lane.b32.xlu0 %v10664_v0, %s11806_s15 }
0x2b30   : > { %v3014_v46 = vpop.permute.xlu0 %3013 }
0x2b31   : > { %v3019_v47 = vsel %vm722_vm4, %v3014_v46, 0  ;;  %v8271_v46 = vld [vmem:[%s11766_s8 + $0x90] sm:$0xff] }
0x2b32   : > { %8986 = vmatpush3.bf16.xpose.msra.mxu0 %v3019_v47 }
0x2b33   : > { %8997 = vmatprep.subr.bf16.mxu0 %v9961_v1 }
0x2b34   : > { %v3136_v48 = vpop.permute.xlu0 %3135 }
0x2b39   : > { %8988 = vmatmul.mubr.msk.bf16.vlgmr.msra.gmra.mrb[76].mxu0 %vm722_vm4, %v3010_v53 }
0x2b3a   : > { %8998 = vmatpush3.bf16.msra.mxu0 %v3136_v48  ;;  %8999 = vmatprep.mubr.msk.bf16.mxu0 %vm9962_vm0, %v9961_v1  ;;  %v8272_v48 = vld [vmem:[%s11766_s8 + $0x98] sm:$0xff] }
0x2b3b   : > { %9009 = vmatprep.subr.bf16.mxu0 %v9961_v1 }
0x2b41   : > { %9000 = vmatmul.mubr.msk.bf16.vlgmr.msra.gmra.mrb[80].mxu0 %vm556_vm2, %v10677_v24 }
0x2b42   : > { %9011 = vmatprep.mubr.msk.bf16.mxu0 %vm9962_vm0, %v9961_v1 }
0x2c0c   : > { %v3055_v9 = vpop.f32.mrb[76].mxu0 }
0x2c0d   : > { %v3056_v54 = vadd.f32 %v8265_v50, %v3055_v9  ;;  %v8989_v41 = vpop.f32.mrb[77].mxu0 }
0x2c0e   : > { %v3058_v58 = vpop.f32.mrb[78].mxu0 }
0x2c0f   : > { %v3059_v7 = vadd.f32 %v8266_v16, %v3058_v58  ;;  %v8990_v56 = vpop.f32.mrb[79].mxu0  ;;  %v3062_v51 = vsel %vm556_vm2, %v3056_v54, -inf }
0x2c10   : > { %3063 = vmax.xlane.f32.xlu0 %v3062_v51 }
0x2c11   : > { %v3065_v57 = vsel %vm556_vm2, %v3059_v7, -inf }
0x2c12   : > { %3066 = vmax.xlane.f32.xlu1 %v3065_v57 }
0x2c14   : > { %v3176_v4 = vpop.f32.mrb[80].mxu0 }
0x2c15   : > { %v9001_v59 = vpop.f32.mrb[81].mxu0 }
0x2c16   : > { %v3179_v49 = vpop.f32.mrb[82].mxu0 }
0x2c17   : > { %v9002_v60 = vpop.f32.mrb[83].mxu0 }
0x2c23   : > { %3139 = vrot.lane.b32.xlu1 %v10685_v30, %s11806_s15 }
0x2c26   : > { %3085 = vrot.lane.b32.xlu0 %v3011_v45, %s11801_s25 }
0x2c9d   : > { %v3064_v31 = vpop.xlane.xlu0 %3063 }
0x2c9e   : > { %v3068_v61 = vsub.f32 %v3056_v54, %v3064_v31 }
0x2c9f   : > { %v3067_v52 = vpop.xlane.xlu1 %3066 }
0x2ca0   : > { %v3070_v62 = vmul.f32 1.442695, %v3068_v61  ;;  %v3069_v26 = vsub.f32 %v3059_v7, %v3067_v52 }
0x2ca1   : > { %v3086_v33 = vpop.permute.xlu0 %3085 }
0x2ca2   : > { %9761 = vpow2.f32 %v3070_v62  ;;  %v3072_v2 = vmul.f32 1.442695, %v3069_v26  ;;  %8992 = vmatpush3.bf16.msra.mxu1 %v3086_v33 }
0x2ca3   : > { %v3140_v3 = vpop.permute.xlu1 %3139  ;;  %9003 = vmatprep.subr.bf16.mxu1 %v9961_v1 }
0x2ca4   : > { %9763 = vpow2.f32 %v3072_v2  ;;  %v3177_v5 = vadd.f32 %v3176_v4, %v3140_v3  ;;  %v3180_v6 = vadd.f32 %v3179_v49, %v3140_v3 }
0x2ca6   : > { %v3183_v8 = vmul.f32 0.5, %v3177_v5  ;;  %v3184_v29 = vmul.f32 0.5, %v3180_v6  ;;  %v3189_v11 = vpack.c.bf16 %v3180_v6, %v3177_v5  ;;  %v8269_v5 = vld [vmem:[%s11765_s7 + $0x10] sm:$0x3] }
0x2ca8   : > { %v3188_v12 = vpack.c.bf16 %v3184_v29, %v3183_v8 }
0x2cac   : > { %v9762_v13 = vpop.eup %9761 }
0x2cad   : > { %v3074_v25 = vsel %vm556_vm2, %v9762_v13, 0.0 }
0x2cae   : > { %v9764_v14 = vpop.eup %9763  ;;  %3075 = vadd.xlane.f32.xlu1 %v3074_v25 }
0x2caf   : > { %v3077_v17 = vsel %vm556_vm2, %v9764_v14, 0.0 }
0x2cb0   : > { %3078 = vadd.xlane.f32.xlu0 %v3077_v17 }
0x2cc6   : > { %3191 = vrot.lane.b32.xlu0 %v3189_v11, %s11805_s21 }
0x2d3b   : > { %v3076_v18 = vpop.xlane.xlu1 %3075 }
0x2d3c   : > { %9765 = vrcp.f32 %v3076_v18 }
0x2d3d   : > { %v3079_v21 = vpop.xlane.xlu0 %3078 }
0x2d3e   : > { %9767 = vrcp.f32 %v3079_v21 }
0x2d41   : > { %v3192_v35 = vpop.permute.xlu0 %3191 }
0x2d42   : > { %v3197_v36 = vsel %vm722_vm4, %v3192_v35, 0 }
0x2d46   : > { %v9766_v22 = vpop.eup %9765 }
0x2d47   : > { %v3082_v32 = vmul.f32 %v9766_v22, %v9762_v13 }
0x2d48   : > { %v9768_v23 = vpop.eup %9767 }
0x2d49   : > { %v3083_v34 = vmul.f32 %v9768_v23, %v9764_v14 }
0x2d4b   : > { %v3084_v19 = vpack.c.bf16 %v3083_v34, %v3082_v32 }
0x2d4d   : > { %8994 = vmatmul.mubr.msk.bf16.vlgmr.msra.gmra.mrb[76].mxu1 %vm556_vm2, %v3084_v19 }
0x2d4e   : > { %9004 = vmatpush3.bf16.xpose.msra.mxu1 %v3197_v36  ;;  %9005 = vmatprep.mubr.msk.bf16.mxu1 %vm9962_vm0, %v9961_v1 }
0x2d4f   : > { %9015 = vmatprep.subr.bf16.mxu1 %v9961_v1 }
0x2d55   : > { %9006 = vmatmul.mubr.msk.bf16.vlgmr.msra.gmra.mrb[80].mxu1 %vm722_vm4, %v3188_v12  ;;  %v8275_v12 = vld [vmem:[%s11765_s7 + $0x12] sm:$0x3] }
0x2d56   : > { %9017 = vmatprep.mubr.msk.bf16.mxu1 %vm9962_vm0, %v9961_v1  ;;  %v3317_v13 = vsel %vm1023_vm5, %v8275_v12, 0 }
0x2d57   : > { %9016 = vmatpush3.bf16.msra.mxu1 %v3317_v13 }
0x2d58   : > { %9027 = vmatprep.subr.bf16.mxu1 %v9961_v1 }
0x2e20   : > { %v3125_v38 = vpop.f32.mrb[76].mxu1 }
0x2e21   : > { %v8995_v40 = vpop.f32.mrb[77].mxu1 }
0x2e22   : > { %v3128_v42 = vpop.f32.mrb[78].mxu1 }
0x2e23   : > { %v3132_v45 = vpack.c.bf16 %v3128_v42, %v3125_v38  ;;  %v8996_v53 = vpop.f32.mrb[79].mxu1 }
0x2e28   : > { %v3233_v47 = vpop.f32.mrb[80].mxu1 }
0x2e29   : > { %v3234_v50 = vadd.f32 %v8271_v46, %v3233_v47  ;;  %v9007_v9 = vpop.f32.mrb[81].mxu1 }
0x2e2a   : > { %v3236_v16 = vpop.f32.mrb[82].mxu1 }
0x2e2b   : > { %v3237_v54 = vadd.f32 %v8272_v48, %v3236_v16  ;;  %v9008_v41 = vpop.f32.mrb[83].mxu1  ;;  %v3240_v58 = vsel %vm556_vm2, %v3234_v50, -inf }
0x2e2c   : > { %3241 = vmax.xlane.f32.xlu1 %v3240_v58 }
0x2e2d   : > { %v3243_v7 = vsel %vm556_vm2, %v3237_v54, -inf }
0x2e2e   : > { %3244 = vmax.xlane.f32.xlu0 %v3243_v7 }
0x2eb9   : > { %v3242_v56 = vpop.xlane.xlu1 %3241 }
0x2eba   : > { %v3246_v51 = vsub.f32 %v3234_v50, %v3242_v56 }
0x2ebb   : > { %v3245_v57 = vpop.xlane.xlu0 %3244 }
0x2ebc   : > { %v3248_v4 = vmul.f32 1.442695, %v3246_v51  ;;  %v3247_v59 = vsub.f32 %v3237_v54, %v3245_v57  ;;  %v8279_v57 = vld [vmem:[%s11766_s8 + $0xa0] sm:$0xff] }
0x2ebe   : > { %9769 = vpow2.f32 %v3248_v4  ;;  %v3250_v49 = vmul.f32 1.442695, %v3247_v59  ;;  %v8280_v59 = vld [vmem:[%s11766_s8 + $0xa8] sm:$0xff] }
0x2ec0   : > { %9771 = vpow2.f32 %v3250_v49 }
0x2ec8   : > { %v9770_v60 = vpop.eup %9769 }
0x2ec9   : > { %v3252_v31 = vsel %vm556_vm2, %v9770_v60, 0.0 }
0x2eca   : > { %v9772_v61 = vpop.eup %9771  ;;  %3253 = vadd.xlane.f32.xlu1 %v3252_v31 }
0x2ecb   : > { %v3255_v52 = vsel %vm556_vm2, %v9772_v61, 0.0 }
0x2ece   : > { %3256 = vadd.xlane.f32.xlu1 %v3255_v52 }
0x2edf   : > { %3263 = vrot.lane.b32.xlu1 %v3189_v11, %s11801_s25  ;;  %v3364_v11 = vsel %vm1023_vm5, %v8269_v5, 0 }
0x2ee3   : > { %3407 = vrot.lane.b32.xlu1 %v10664_v0, %s11802_s26 }
0x2ee7   : > { %3410 = vrot.lane.b32.xlu1 %v10685_v30, %s11802_s26 }
0x2f57   : > { %v3254_v62 = vpop.xlane.xlu1 %3253 }
0x2f58   : > { %9773 = vrcp.f32 %v3254_v62 }
0x2f5b   : > { %v3257_v26 = vpop.xlane.xlu1 %3256 }
0x2f5c   : > { %9775 = vrcp.f32 %v3257_v26 }
0x2f5f   : > { %v3264_v33 = vpop.permute.xlu1 %3263 }
0x2f60   : > { %9010 = vmatpush3.bf16.msra.mxu0 %v3264_v33 }
0x2f61   : > { %9021 = vmatprep.subr.bf16.mxu0 %v9961_v1 }
0x2f62   : > { %v9774_v2 = vpop.eup %9773 }
0x2f63   : > { %v3260_v6 = vmul.f32 %v9774_v2, %v9770_v60  ;;  %v3408_v22 = vpop.permute.xlu1 %3407 }
0x2f66   : > { %v9776_v3 = vpop.eup %9775 }
0x2f67   : > { %v3261_v8 = vmul.f32 %v9776_v3, %v9772_v61  ;;  %v3411_v53 = vpop.permute.xlu1 %3410 }
0x2f69   : > { %v3262_v29 = vpack.c.bf16 %v3261_v8, %v3260_v6 }
0x2f6b   : > { %9012 = vmatmul.mubr.msk.bf16.vlgmr.msra.gmra.mrb[84].mxu0 %vm556_vm2, %v3262_v29 }
0x2f6c   : > { %9022 = vmatpush3.bf16.msra.mxu0 %v3364_v11  ;;  %9023 = vmatprep.mubr.msk.bf16.mxu0 %vm9962_vm0, %v9961_v1 }
0x2f6d   : > { %9033 = vmatprep.subr.bf16.mxu0 %v9961_v1 }
0x2f73   : > { %9024 = vmatmul.mubr.msk.bf16.vlgmr.msra.gmra.mrb[88].mxu0 %vm722_vm4, %v3132_v45 }
0x2f74   : > { %9035 = vmatprep.mubr.msk.bf16.mxu0 %vm9962_vm0, %v9961_v1 }
0x303e   : > { %v3303_v25 = vpop.f32.mrb[84].mxu0 }
0x303f   : > { %v9013_v14 = vpop.f32.mrb[85].mxu0 }
0x3040   : > { %v3306_v17 = vpop.f32.mrb[86].mxu0 }
0x3041   : > { %v3310_v18 = vpack.c.bf16 %v3306_v17, %v3303_v25  ;;  %v9014_v21 = vpop.f32.mrb[87].mxu0 }
0x3043   : > { %9018 = vmatmul.mubr.msk.bf16.vlgmr.msra.gmra.mrb[84].mxu1 %vm722_vm4, %v3310_v18 }
0x3044   : > { %9028 = vmatpush3.bf16.msra.mxu1 %v3408_v22  ;;  %9029 = vmatprep.mubr.msk.bf16.mxu1 %vm9962_vm0, %v9961_v1 }
0x3045   : > { %9039 = vmatprep.subr.bf16.mxu1 %v9961_v1 }
0x3046   : > { %v3400_v23 = vpop.f32.mrb[88].mxu0 }
0x3047   : > { %v9025_v32 = vpop.f32.mrb[89].mxu0 }
0x3048   : > { %v3403_v34 = vpop.f32.mrb[90].mxu0 }
0x3049   : > { %v9026_v35 = vpop.f32.mrb[91].mxu0 }
0x304b   : > { %9030 = vmatmul.mubr.msk.bf16.vlgmr.msra.gmra.mrb[88].mxu1 %vm556_vm2, %v10677_v24 }
0x304c   : > { %9041 = vmatprep.mubr.msk.bf16.mxu1 %vm9962_vm0, %v9961_v1 }
0x3116   : > { %v3353_v19 = vpop.f32.mrb[84].mxu1 }
0x3117   : > { %v10765_v36 = vadd.f32 %v3400_v23, %v3353_v19  ;;  %v9019_v38 = vpop.f32.mrb[85].mxu1 }
0x3118   : > { %v3356_v40 = vpop.f32.mrb[86].mxu1 }
0x3119   : > { %v10767_v42 = vadd.f32 %v3403_v34, %v3356_v40  ;;  %v9020_v45 = vpop.f32.mrb[87].mxu1 }
0x311e   : > { %v3447_v46 = vpop.f32.mrb[88].mxu1 }
0x311f   : > { %v3448_v47 = vadd.f32 %v3447_v46, %v3411_v53  ;;  %v9031_v48 = vpop.f32.mrb[89].mxu1 }
0x3120   : > { %v3450_v50 = vpop.f32.mrb[90].mxu1 }
0x3121   : > { %v3451_v9 = vadd.f32 %v3450_v50, %v3411_v53  ;;  %v9032_v16 = vpop.f32.mrb[91].mxu1  ;;  %v3454_v54 = vmul.f32 0.5, %v3448_v47 }
0x3123   : > { %v3455_v41 = vmul.f32 0.5, %v3451_v9  ;;  %v3460_v58 = vpack.c.bf16 %v3451_v9, %v3448_v47 }
0x3125   : > { %v3459_v7 = vpack.c.bf16 %v3455_v41, %v3454_v54  ;;  %3462 = vrot.lane.b32.xlu0 %v3460_v58, %s11805_s21 }
0x3197   : > { %v3463_v56 = vpop.permute.xlu0 %3462 }
0x3198   : > { %v3468_v51 = vsel %vm722_vm4, %v3463_v56, 0 }
0x3199   : > { %9034 = vmatpush3.bf16.xpose.msra.mxu0 %v3468_v51 }
0x319a   : > { %9045 = vmatprep.subr.bf16.mxu0 %v9961_v1 }
0x31a0   : > { %9036 = vmatmul.mubr.msk.bf16.vlgmr.msra.gmra.mrb[92].mxu0 %vm722_vm4, %v3459_v7 }
0x31a1   : > { %9047 = vmatprep.mubr.msk.bf16.mxu0 %vm9962_vm0, %v9961_v1 }
0x3273   : > { %v3504_v4 = vpop.f32.mrb[92].mxu0 }
0x3274   : > { %v3505_v49 = vadd.f32 %v8279_v57, %v3504_v4  ;;  %v9037_v60 = vpop.f32.mrb[93].mxu0 }
0x3275   : > { %v3507_v31 = vpop.f32.mrb[94].mxu0 }
0x3276   : > { %v3508_v61 = vadd.f32 %v8280_v59, %v3507_v31  ;;  %v9038_v52 = vpop.f32.mrb[95].mxu0  ;;  %v3511_v62 = vsel %vm556_vm2, %v3505_v49, -inf }
0x3277   : > { %3512 = vmax.xlane.f32.xlu1 %v3511_v62  ;;  %v8287_v62 = vld [vmem:[%s11766_s8 + $0xb8] sm:$0xff] }
0x3278   : > { %v3514_v26 = vsel %vm556_vm2, %v3508_v61, -inf }
0x3279   : > { %3515 = vmax.xlane.f32.xlu0 %v3514_v26 }
0x328f   : > { %3633 = vrot.lane.b32.xlu0 %v10664_v0, %s11803_s28 }
0x3304   : > { %v3513_v33 = vpop.xlane.xlu1 %3512 }
0x3305   : > { %v3517_v2 = vsub.f32 %v3505_v49, %v3513_v33 }
0x3306   : > { %v3516_v3 = vpop.xlane.xlu0 %3515 }
0x3307   : > { %v3519_v5 = vmul.f32 1.442695, %v3517_v2  ;;  %v3518_v6 = vsub.f32 %v3508_v61, %v3516_v3  ;;  %v8286_v61 = vld [vmem:[%s11766_s8 + $0xb0] sm:$0xff] }
0x3309   : > { %9777 = vpow2.f32 %v3519_v5  ;;  %v3521_v8 = vmul.f32 1.442695, %v3518_v6 }
0x330a   : > { %v3634_v34 = vpop.permute.xlu0 %3633 }
0x330b   : > { %9779 = vpow2.f32 %v3521_v8 }
0x3313   : > { %v9778_v29 = vpop.eup %9777 }
0x3314   : > { %v3523_v11 = vsel %vm556_vm2, %v9778_v29, 0.0 }
0x3315   : > { %v9780_v12 = vpop.eup %9779  ;;  %3524 = vadd.xlane.f32.xlu1 %v3523_v11 }
0x3316   : > { %v3526_v13 = vsel %vm556_vm2, %v9780_v12, 0.0 }
0x3319   : > { %3527 = vadd.xlane.f32.xlu1 %v3526_v13 }
0x332a   : > { %3534 = vrot.lane.b32.xlu1 %v3460_v58, %s11801_s25 }
0x332e   : > { %3636 = vrot.lane.b32.xlu1 %v10685_v30, %s11803_s28  ;;  %v8283_v30 = vld [vmem:[%s11765_s7 + $0x14] sm:$0x3] }
0x332f   : > { %v3588_v35 = vsel %vm1023_vm5, %v8283_v30, 0 }
0x3330   : > { %9046 = vmatpush3.bf16.msra.mxu0 %v3588_v35 }
0x3331   : > { %9057 = vmatprep.subr.bf16.mxu0 %v9961_v1 }
0x33a2   : > { %v3525_v25 = vpop.xlane.xlu1 %3524 }
0x33a3   : > { %9781 = vrcp.f32 %v3525_v25 }
0x33a6   : > { %v3528_v14 = vpop.xlane.xlu1 %3527 }
0x33a7   : > { %9783 = vrcp.f32 %v3528_v14 }
0x33aa   : > { %v3535_v17 = vpop.permute.xlu1 %3534 }
0x33ab   : > { %9040 = vmatpush3.bf16.msra.mxu1 %v3535_v17 }
0x33ac   : > { %9051 = vmatprep.subr.bf16.mxu1 %v9961_v1 }
0x33ad   : > { %v9782_v18 = vpop.eup %9781 }
0x33ae   : > { %v3531_v22 = vmul.f32 %v9782_v18, %v9778_v29 }
0x33b1   : > { %v9784_v21 = vpop.eup %9783 }
0x33b2   : > { %v3532_v23 = vmul.f32 %v9784_v21, %v9780_v12 }
0x33b4   : > { %v3533_v32 = vpack.c.bf16 %v3532_v23, %v3531_v22 }
0x33b6   : > { %9042 = vmatmul.mubr.msk.bf16.vlgmr.msra.gmra.mrb[92].mxu1 %vm556_vm2, %v3533_v32 }
0x33b7   : > { %9052 = vmatpush3.bf16.msra.mxu1 %v3634_v34  ;;  %9053 = vmatprep.mubr.msk.bf16.mxu1 %vm9962_vm0, %v9961_v1 }
0x33b8   : > { %9063 = vmatprep.subr.bf16.mxu1 %v9961_v1 }
0x33be   : > { %9054 = vmatmul.mubr.msk.bf16.vlgmr.msra.gmra.mrb[96].mxu1 %vm556_vm2, %v10677_v24  ;;  %v3637_v24 = vpop.permute.xlu1 %3636 }
0x33bf   : > { %9065 = vmatprep.mubr.msk.bf16.mxu1 %vm9962_vm0, %v9961_v1 }
0x3489   : > { %v3574_v19 = vpop.f32.mrb[92].mxu1 }
0x348a   : > { %v9043_v38 = vpop.f32.mrb[93].mxu1 }
0x348b   : > { %v3577_v40 = vpop.f32.mrb[94].mxu1  ;;  %v8290_v38 = vld [vmem:[%s11765_s7 + $0x16] sm:$0x3] }
0x348c   : > { %v3581_v45 = vpack.c.bf16 %v3577_v40, %v3574_v19  ;;  %v9044_v53 = vpop.f32.mrb[95].mxu1  ;;  %v3814_v40 = vsel %vm1023_vm5, %v8290_v38, 0 }
0x348e   : > { %9048 = vmatmul.mubr.msk.bf16.vlgmr.msra.gmra.mrb[96].mxu0 %vm722_vm4, %v3581_v45 }
0x348f   : > { %9059 = vmatprep.mubr.msk.bf16.mxu0 %vm9962_vm0, %v9961_v1 }
0x3491   : > { %v3673_v46 = vpop.f32.mrb[96].mxu1 }
0x3492   : > { %v3674_v47 = vadd.f32 %v3673_v46, %v3637_v24  ;;  %v9055_v48 = vpop.f32.mrb[97].mxu1 }
0x3493   : > { %v3676_v50 = vpop.f32.mrb[98].mxu1 }
0x3494   : > { %v3677_v9 = vadd.f32 %v3676_v50, %v3637_v24  ;;  %v9056_v16 = vpop.f32.mrb[99].mxu1  ;;  %v3680_v54 = vmul.f32 0.5, %v3674_v47 }
0x3496   : > { %v3681_v41 = vmul.f32 0.5, %v3677_v9  ;;  %v3686_v58 = vpack.c.bf16 %v3677_v9, %v3674_v47  ;;  %v3864_v9 = vrot.slane %v10671_v20, %v10347_v27 }
0x3498   : > { %v3685_v7 = vpack.c.bf16 %v3681_v41, %v3680_v54  ;;  %3688 = vrot.lane.b32.xlu1 %v3686_v58, %s11805_s21 }
0x350a   : > { %v3689_v56 = vpop.permute.xlu1 %3688 }
0x350b   : > { %v3694_v51 = vsel %vm722_vm4, %v3689_v56, 0 }
0x350c   : > { %9058 = vmatpush3.bf16.xpose.msra.mxu0 %v3694_v51 }
0x350d   : > { %9069 = vmatprep.subr.bf16.mxu0 %v9961_v1 }
0x3513   : > { %9060 = vmatmul.mubr.msk.bf16.vlgmr.msra.gmra.mrb[100].mxu0 %vm722_vm4, %v3685_v7 }
0x3514   : > { %9071 = vmatprep.mubr.msk.bf16.mxu0 %vm9962_vm0, %v9961_v1  ;;  %9070 = vmatpush3.bf16.msra.mxu0 %v3814_v40 }
0x3515   : > { %9081 = vmatprep.subr.bf16.mxu0 %v9961_v1 }
0x3561   : > { %v3624_v57 = vpop.f32.mrb[96].mxu0 }
0x3562   : > { %v3631_v4 = vadd.f32 %v3624_v57, %v10765_v36  ;;  %v9049_v59 = vpop.f32.mrb[97].mxu0 }
0x3563   : > { %v3627_v49 = vpop.f32.mrb[98].mxu0 }
0x3564   : > { %v3632_v60 = vadd.f32 %v3627_v49, %v10767_v42  ;;  %v9050_v31 = vpop.f32.mrb[99].mxu0 }
0x35e6   : > { %v3730_v52 = vpop.f32.mrb[100].mxu0 }
0x35e7   : > { %v3731_v26 = vadd.f32 %v8286_v61, %v3730_v52  ;;  %v9061_v33 = vpop.f32.mrb[101].mxu0 }
0x35e8   : > { %v3733_v2 = vpop.f32.mrb[102].mxu0 }
0x35e9   : > { %v3734_v3 = vadd.f32 %v8287_v62, %v3733_v2  ;;  %v9062_v5 = vpop.f32.mrb[103].mxu0  ;;  %v3737_v36 = vsel %vm556_vm2, %v3731_v26, -inf }
0x35ea   : > { %3738 = vmax.xlane.f32.xlu1 %v3737_v36 }
0x35eb   : > { %v3740_v42 = vsel %vm556_vm2, %v3734_v3, -inf }
0x35ec   : > { %3741 = vmax.xlane.f32.xlu0 %v3740_v42 }
0x3677   : > { %v3739_v6 = vpop.xlane.xlu1 %3738 }
0x3678   : > { %v3743_v8 = vsub.f32 %v3731_v26, %v3739_v6 }
0x3679   : > { %v3742_v29 = vpop.xlane.xlu0 %3741 }
0x367a   : > { %v3745_v11 = vmul.f32 1.442695, %v3743_v8  ;;  %v3744_v12 = vsub.f32 %v3734_v3, %v3742_v29 }
0x367c   : > { %9785 = vpow2.f32 %v3745_v11  ;;  %v3747_v13 = vmul.f32 1.442695, %v3744_v12  ;;  %v3896_v11 = vrot.slane %v10671_v20, %v10147_v39 }
0x367e   : > { %9787 = vpow2.f32 %v3747_v13 }
0x3686   : > { %v9786_v25 = vpop.eup %9785 }
0x3687   : > { %v3749_v14 = vsel %vm556_vm2, %v9786_v25, 0.0 }
0x3688   : > { %v9788_v17 = vpop.eup %9787  ;;  %3750 = vadd.xlane.f32.xlu0 %v3749_v14  ;;  %v3902_v14 = vrot.slane %v10671_v20, %v10371_v63 }
0x3689   : > { %v3752_v18 = vsel %vm556_vm2, %v9788_v17, 0.0 }
0x368a   : > { %3753 = vadd.xlane.f32.xlu1 %v3752_v18 }
0x369e   : > { %3760 = vrot.lane.b32.xlu0 %v3686_v58, %s11801_s25 }
0x3715   : > { %v3751_v21 = vpop.xlane.xlu0 %3750 }
0x3716   : > { %9789 = vrcp.f32 %v3751_v21 }
0x3717   : > { %v3754_v22 = vpop.xlane.xlu1 %3753 }
0x3718   : > { %9791 = vrcp.f32 %v3754_v22 }
0x3719   : > { %v3761_v23 = vpop.permute.xlu0 %3760 }
0x371a   : > { %9064 = vmatpush3.bf16.msra.mxu1 %v3761_v23  ;;  %v9622_v23 = vld [vmem:[%s11764_s6 + $0x40] sm:$0xff]  }
0x371b   : > { %9075 = vmatprep.subr.bf16.mxu1 %v9961_v1 }
0x3720   : > { %v9790_v32 = vpop.eup %9789 }
0x3721   : > { %v3757_v30 = vmul.f32 %v9790_v32, %v9786_v25  ;;  %v9623_v32 = vld [vmem:[%s11764_s6 + $0x48] sm:$0xff]  }
0x3722   : > { %v9792_v34 = vpop.eup %9791 }
0x3723   : > { %v3758_v35 = vmul.f32 %v9792_v34, %v9788_v17  ;;  %v9624_v34 = vld [vmem:[%s11764_s6 + $0x50] sm:$0xff]  }
0x3725   : > { %v3759_v19 = vpack.c.bf16 %v3758_v35, %v3757_v30  ;;  %v9625_v30 = vld [vmem:[%s11764_s6 + $0x58] sm:$0xff]   ;;  %v3909_v35 = vrot.slane %v10671_v20, %v10395_v15 }
0x3727   : > { %9066 = vmatmul.mubr.msk.bf16.vlgmr.msra.gmra.mrb[100].mxu1 %vm556_vm2, %v3759_v19 }
0x3728   : > { %9077 = vmatprep.mubr.msk.bf16.mxu1 %vm9962_vm0, %v9961_v1 }
0x37fa   : > { %v3800_v45 = vpop.f32.mrb[100].mxu1 }
0x37fb   : > { %v9067_v53 = vpop.f32.mrb[101].mxu1 }
0x37fc   : > { %v3803_v24 = vpop.f32.mrb[102].mxu1 }
0x37fd   : > { %v3807_v46 = vpack.c.bf16 %v3803_v24, %v3800_v45  ;;  %v9068_v47 = vpop.f32.mrb[103].mxu1 }
0x37ff   : > { %9072 = vmatmul.mubr.msk.bf16.vlgmr.msra.gmra.mrb[104].mxu0 %vm722_vm4, %v3807_v46 }
0x3800   : > { %9089 = vmatprep.mubr.msk.bf16.mxu0 %vm9962_vm0, %v9961_v1  ;;  %9082 = vmatpush3.bf16.msra.mxu0 %v9622_v23 }
0x3801   : > { %9083 = vmatprep.subr.bf16.mxu0 %v9961_v1 }
0x3804   : > { %9084 = vmatpush3.bf16.msra.mxu0 %v9623_v32 }
0x3805   : > { %9085 = vmatprep.subr.bf16.mxu0 %v9961_v1 }
0x3808   : > { %9086 = vmatpush3.bf16.msra.mxu0 %v9624_v34 }
0x3809   : > { %9087 = vmatprep.subr.bf16.mxu0 %v9961_v1 }
0x380c   : > { %9088 = vmatpush3.bf16.msra.mxu0 %v9625_v30 }
0x380d   : > { %9105 = vmatprep.subr.bf16.mxu0 %v9961_v1 }
0x38d2   : > { %v3850_v48 = vpop.f32.mrb[104].mxu0 }
0x38d3   : > { %v3857_v50 = vadd.f32 %v3850_v48, %v3631_v4  ;;  %v9073_v16 = vpop.f32.mrb[105].mxu0 }
0x38d4   : > { %v3853_v54 = vpop.f32.mrb[106].mxu0 }
0x38d5   : > { %v3859_v41 = vadd.f32 %v3857_v50, %v10648_v55  ;;  %v3858_v58 = vadd.f32 %v3853_v54, %v3632_v60  ;;  %v9074_v7 = vpop.f32.mrb[107].mxu0 }
0x38d7   : > { %v10841_v56 = vadd.f32 %v3864_v9, %v3859_v41  ;;  %v3860_v51 = vadd.f32 %v3858_v58, %v10651_v43 }
0x38d9   : > { %v10844_v57 = vadd.f32 %v3864_v9, %v3860_v51  ;;  %v3867_v59 = vsel %vm556_vm2, %v10841_v56, 0.0 }
0x38da   : > { %3868 = vadd.xlane.f32.xlu1 %v3867_v59  ;;  %v4041_v59 = vrot.slane %v10671_v20, %v10403_v44 }
0x38db   : > { %v3870_v4 = vsel %vm556_vm2, %v10844_v57, 0.0 }
0x38de   : > { %3871 = vadd.xlane.f32.xlu1 %v3870_v4 }
0x3967   : > { %v3869_v49 = vpop.xlane.xlu1 %3868 }
0x3968   : > { %v3873_v31 = vmul.f32 0.0625, %v3869_v49 }
0x396a   : > { %v3875_v55 = vsub.f32 %v10841_v56, %v3873_v31 }
0x396b   : > { %v3872_v60 = vpop.xlane.xlu1 %3871 }
0x396c   : > { %v3874_v61 = vmul.f32 0.0625, %v3872_v60  ;;  %v3877_v52 = vmul.f32 %v3875_v55, %v3875_v55 }
0x396e   : > { %v3876_v62 = vsub.f32 %v10844_v57, %v3874_v61  ;;  %v3879_v43 = vsel %vm556_vm2, %v3877_v52, 0.0 }
0x396f   : > { %3880 = vadd.xlane.f32.xlu1 %v3879_v43 }
0x3970   : > { %v3878_v26 = vmul.f32 %v3876_v62, %v3876_v62 }
0x3972   : > { %v3882_v33 = vsel %vm556_vm2, %v3878_v26, 0.0 }
0x3973   : > { %3883 = vadd.xlane.f32.xlu1 %v3882_v33 }
0x3984   : > { %3910 = vrot.lane.b32.xlu1 %v10664_v0, %s11804_s20 }
0x39fc   : > { %v3881_v2 = vpop.xlane.xlu1 %3880 }
0x39fd   : > { %v3885_v3 = vmul.f32 0.0625, %v3881_v2 }
0x39ff   : > { %v3887_v5 = vadd.f32 1e-05, %v3885_v3 }
0x3a00   : > { %v3884_v36 = vpop.xlane.xlu1 %3883 }
0x3a01   : > { %9793 = vrsqrt.f32 %v3887_v5  ;;  %v3886_v42 = vmul.f32 0.0625, %v3884_v36 }
0x3a03   : > { %v3888_v6 = vadd.f32 1e-05, %v3886_v42 }
0x3a04   : > { %v3911_v8 = vpop.permute.xlu1 %3910 }
0x3a05   : > { %9795 = vrsqrt.f32 %v3888_v6  ;;  %9076 = vmatpush3.bf16.msra.mxu1 %v3911_v8  ;;  %v10904_v8 = vld [vmem:[%s11762_s4 + $0x18] sm:$0xff]  }
0x3a06   : > { %9093 = vmatprep.subr.bf16.mxu1 %v9961_v1 }
0x3a0b   : > { %v9794_v29 = vpop.eup %9793 }
0x3a0c   : > { %v3891_v12 = vmul.f32 %v9794_v29, %v3875_v55 }
0x3a0e   : > { %v3897_v25 = vmul.f32 %v3896_v11, %v3891_v12 }
0x3a0f   : > { %v9796_v13 = vpop.eup %9795 }
0x3a10   : > { %v3892_v0 = vmul.f32 %v9796_v13, %v3876_v62  ;;  %v3903_v18 = vadd.f32 %v3902_v14, %v3897_v25 }
0x3a12   : > { %v3898_v17 = vmul.f32 %v3896_v11, %v3892_v0 }
0x3a14   : > { %v3904_v21 = vadd.f32 %v3902_v14, %v3898_v17  ;;  %v10913_v14 = vld [vmem:[%s11763_s5 + $0x18] sm:$0xff] }
0x3a15   : > { %v4093_v34 = vrot.slane %v10913_v14, %v10141_v37 }
0x3a16   : > { %v3905_v22 = vpack.c.bf16 %v3904_v21, %v3903_v18  ;;  %v4087_v18 = vrot.slane %v10913_v14, %v10130_v10 }
0x3a18   : > { %9078 = vmatmul.mubr.msk.bf16.vlgmr.msra.gmra.mrb[104].mxu1 %vm556_vm2, %v3905_v22 }
0x3a19   : > { %9095 = vmatprep.mubr.msk.bf16.mxu1 %vm9962_vm0, %v9961_v1  ;;  %9094 = vmatpush3.bf16.msra.mxu1 %v10904_v8 }
0x3a1a   : > { %9099 = vmatprep.subr.bf16.mxu1 %v9961_v1 }
0x3aeb   : > { %v3950_v19 = vpop.f32.mrb[104].mxu1 }
0x3aec   : > { %v3951_v38 = vadd.f32 %v3950_v19, %v3909_v35  ;;  %v9079_v40 = vpop.f32.mrb[105].mxu1 }
0x3aed   : > { %v3953_v45 = vpop.f32.mrb[106].mxu1  ;;  %v10927_v40 = vrot.slane %v10913_v14, %v10191_v28 }
0x3aee   : > { %v3959_v53 = vmul.f32 0.70710677, %v3951_v38  ;;  %v3954_v24 = vadd.f32 %v3953_v45, %v3909_v35  ;;  %v9080_v46 = vpop.f32.mrb[107].mxu1  ;;  %v3957_v16 = vmul.f32 0.5, %v3951_v38 }
0x3af0   : > { %9797 = verf.f32 %v3959_v53  ;;  %v3960_v47 = vmul.f32 0.70710677, %v3954_v24  ;;  %v3958_v54 = vmul.f32 0.5, %v3954_v24 }
0x3af2   : > { %9799 = verf.f32 %v3960_v47 }
0x3afa   : > { %v9798_v48 = vpop.eup %9797 }
0x3afb   : > { %v3963_v50 = vadd.f32 1.0, %v9798_v48 }
0x3afc   : > { %v9800_v9 = vpop.eup %9799 }
0x3afd   : > { %v3964_v41 = vadd.f32 1.0, %v9800_v9  ;;  %v3965_v58 = vmul.f32 %v3963_v50, %v3957_v16 }
0x3aff   : > { %v3966_v7 = vmul.f32 %v3964_v41, %v3958_v54 }
0x3b01   : > { %v3967_v51 = vpack.c.bf16 %v3966_v7, %v3965_v58 }
0x3b03   : > { %9090 = vmatmul.mubr.msk.bf16.vlgmr.msra.gmra.mrb[108].mxu0 %vm511_vm1, %v3967_v51  ;;  %v8311_v51 = vld [vmem:[%s11766_s8 + $0xc0] sm:$0xff] }
0x3b04   : > { %9107 = vmatprep.mubr.msk.bf16.mxu0 %vm9962_vm0, %v9961_v1 }
0x3bd6   : > { %v4029_v4 = vpop.f32.mrb[108].mxu0 }
0x3bd7   : > { %v4036_v49 = vadd.f32 %v4029_v4, %v10841_v56  ;;  %v9091_v31 = vpop.f32.mrb[109].mxu0  ;;  %v8312_v4 = vld [vmem:[%s11766_s8 + $0xc8] sm:$0xff] }
0x3bd8   : > { %v4032_v55 = vpop.f32.mrb[110].mxu0 }
0x3bd9   : > { %v10888_v60 = vadd.f32 %v4041_v59, %v4036_v49  ;;  %v4037_v61 = vadd.f32 %v4032_v55, %v10844_v57  ;;  %v9092_v52 = vpop.f32.mrb[111].mxu0 }
0x3bdb   : > { %v10891_v62 = vadd.f32 %v4041_v59, %v4037_v61  ;;  %v4058_v43 = vsel %vm556_vm2, %v10888_v60, 0.0 }
0x3bdc   : > { %4059 = vadd.xlane.f32.xlu0 %v4058_v43 }
0x3bdd   : > { %v4061_v26 = vsel %vm556_vm2, %v10891_v62, 0.0 }
0x3bde   : > { %4062 = vadd.xlane.f32.xlu1 %v4061_v26 }
0x3bef   : > { %4281 = vrot.lane.b32.xlu1 %v10904_v8, %s11806_s15 }
0x3c69   : > { %v4060_v20 = vpop.xlane.xlu0 %4059 }
0x3c6a   : > { %v4064_v33 = vmul.f32 0.0625, %v4060_v20 }
0x3c6b   : > { %v4063_v56 = vpop.xlane.xlu1 %4062 }
0x3c6c   : > { %v4066_v2 = vsub.f32 %v10888_v60, %v4064_v33  ;;  %v4065_v3 = vmul.f32 0.0625, %v4063_v56 }
0x3c6e   : > { %v4067_v5 = vsub.f32 %v10891_v62, %v4065_v3  ;;  %v4068_v57 = vmul.f32 %v4066_v2, %v4066_v2 }
0x3c6f   : > { %v4282_v7 = vpop.permute.xlu1 %4281 }
0x3c70   : > { %v4070_v36 = vsel %vm556_vm2, %v4068_v57, 0.0  ;;  %v4069_v42 = vmul.f32 %v4067_v5, %v4067_v5 }
0x3c71   : > { %4071 = vadd.xlane.f32.xlu0 %v4070_v36 }
0x3c72   : > { %v4073_v6 = vsel %vm556_vm2, %v4069_v42, 0.0 }
0x3c75   : > { %4074 = vadd.xlane.f32.xlu0 %v4073_v6 }
0x3cfe   : > { %v4072_v29 = vpop.xlane.xlu0 %4071 }
0x3cff   : > { %v4076_v11 = vmul.f32 0.0625, %v4072_v29 }
0x3d01   : > { %v4078_v12 = vadd.f32 1e-05, %v4076_v11 }
0x3d02   : > { %v4075_v13 = vpop.xlane.xlu0 %4074 }
0x3d03   : > { %9801 = vrsqrt.f32 %v4078_v12  ;;  %v4077_v25 = vmul.f32 0.0625, %v4075_v13 }
0x3d05   : > { %v4079_v0 = vadd.f32 1e-05, %v4077_v25 }
0x3d07   : > { %9803 = vrsqrt.f32 %v4079_v0 }
0x3d0d   : > { %v9802_v17 = vpop.eup %9801 }
0x3d0e   : > { %v4082_v21 = vmul.f32 %v9802_v17, %v4066_v2 }
0x3d10   : > { %v4088_v23 = vmul.f32 %v4087_v18, %v4082_v21 }
0x3d11   : > { %v9804_v22 = vpop.eup %9803 }
0x3d12   : > { %v4083_v32 = vmul.f32 %v9804_v22, %v4067_v5  ;;  %v4094_v35 = vadd.f32 %v4093_v34, %v4088_v23 }
0x3d14   : > { %v4089_v30 = vmul.f32 %v4087_v18, %v4083_v32 }
0x3d16   : > { %v4095_v19 = vadd.f32 %v4093_v34, %v4089_v30 }
0x3d18   : > { %v10919_v38 = vpack.c.bf16 %v4095_v19, %v4094_v35 }
0x3d1a   : > { %9096 = vmatmul.mubr.msk.bf16.vlgmr.msra.gmra.mrb[108].mxu1 %vm556_vm2, %v10919_v38 }
0x3d1b   : > { %9101 = vmatprep.mubr.msk.bf16.mxu1 %vm9962_vm0, %v9961_v1 }
0x3ded   : > { %v4144_v45 = vpop.f32.mrb[108].mxu1 }
0x3dee   : > { %v4145_v53 = vadd.f32 %v4144_v45, %v10927_v40  ;;  %v9097_v24 = vpop.f32.mrb[109].mxu1 }
0x3def   : > { %v4147_v46 = vpop.f32.mrb[110].mxu1 }
0x3df0   : > { %v4148_v47 = vadd.f32 %v4147_v46, %v10927_v40  ;;  %v9098_v48 = vpop.f32.mrb[111].mxu1  ;;  %v4151_v50 = vmul.f32 0.5, %v4145_v53 }
0x3df2   : > { %v4152_v9 = vmul.f32 0.5, %v4148_v47  ;;  %v4157_v16 = vpack.c.bf16 %v4148_v47, %v4145_v53 }
0x3df4   : > { %v4156_v54 = vpack.c.bf16 %v4152_v9, %v4151_v50  ;;  %4159 = vrot.lane.b32.xlu0 %v4157_v16, %s11805_s21 }
0x3e66   : > { %v4160_v41 = vpop.permute.xlu0 %4159 }
0x3e67   : > { %v4165_v58 = vsel %vm722_vm4, %v4160_v41, 0  ;;  %v8317_v41 = vld [vmem:[%s11766_s8 + $0xd0] sm:$0xff] }
0x3e68   : > { %9100 = vmatpush3.bf16.xpose.msra.mxu1 %v4165_v58 }
0x3e69   : > { %9111 = vmatprep.subr.bf16.mxu1 %v9961_v1 }
0x3e6f   : > { %9102 = vmatmul.mubr.msk.bf16.vlgmr.msra.gmra.mrb[112].mxu1 %vm722_vm4, %v4156_v54 }
0x3e70   : > { %9112 = vmatpush3.bf16.msra.mxu1 %v4282_v7  ;;  %9113 = vmatprep.mubr.msk.bf16.mxu1 %vm9962_vm0, %v9961_v1  ;;  %v8318_v7 = vld [vmem:[%s11766_s8 + $0xd8] sm:$0xff] }
0x3e71   : > { %9123 = vmatprep.subr.bf16.mxu1 %v9961_v1 }
0x3e77   : > { %9114 = vmatmul.mubr.msk.bf16.vlgmr.msra.gmra.mrb[116].mxu1 %vm556_vm2, %v10919_v38 }
0x3e78   : > { %9125 = vmatprep.mubr.msk.bf16.mxu1 %vm9962_vm0, %v9961_v1 }
0x3f42   : > { %v4201_v59 = vpop.f32.mrb[112].mxu1 }
0x3f43   : > { %v4202_v49 = vadd.f32 %v8311_v51, %v4201_v59  ;;  %v9103_v31 = vpop.f32.mrb[113].mxu1 }
0x3f44   : > { %v4204_v55 = vpop.f32.mrb[114].mxu1 }
0x3f45   : > { %v4205_v61 = vadd.f32 %v8312_v4, %v4204_v55  ;;  %v9104_v52 = vpop.f32.mrb[115].mxu1  ;;  %v4208_v43 = vsel %vm556_vm2, %v4202_v49, -inf }
0x3f46   : > { %4209 = vmax.xlane.f32.xlu0 %v4208_v43 }
0x3f47   : > { %v4211_v26 = vsel %vm556_vm2, %v4205_v61, -inf }
0x3f48   : > { %4212 = vmax.xlane.f32.xlu1 %v4211_v26 }
0x3f4a   : > { %v4322_v20 = vpop.f32.mrb[116].mxu1 }
0x3f4b   : > { %v9115_v33 = vpop.f32.mrb[117].mxu1 }
0x3f4c   : > { %v4325_v56 = vpop.f32.mrb[118].mxu1 }
0x3f4d   : > { %v9116_v2 = vpop.f32.mrb[119].mxu1 }
0x3f5c   : > { %4285 = vrot.lane.b32.xlu0 %v10927_v40, %s11806_s15  ;;  %s9970_s15 = smov 112  }
0x3fd3   : > { %v4210_v3 = vpop.xlane.xlu0 %4209 }
0x3fd4   : > { %v4214_v5 = vsub.f32 %v4202_v49, %v4210_v3 }
0x3fd5   : > { %v4213_v57 = vpop.xlane.xlu1 %4212 }
0x3fd6   : > { %v4216_v36 = vmul.f32 1.442695, %v4214_v5  ;;  %v4215_v42 = vsub.f32 %v4205_v61, %v4213_v57 }
0x3fd7   : > { %v4286_v6 = vpop.permute.xlu0 %4285 }
0x3fd8   : > { %9805 = vpow2.f32 %v4216_v36  ;;  %v4218_v29 = vmul.f32 1.442695, %v4215_v42  ;;  %v4323_v11 = vadd.f32 %v4322_v20, %v4286_v6  ;;  %v4326_v12 = vadd.f32 %v4325_v56, %v4286_v6 }
0x3fda   : > { %9807 = vpow2.f32 %v4218_v29  ;;  %v4329_v13 = vmul.f32 0.5, %v4323_v11  ;;  %v4330_v25 = vmul.f32 0.5, %v4326_v12  ;;  %v4335_v0 = vpack.c.bf16 %v4326_v12, %v4323_v11  ;;  %v8315_v12 = vld [vmem:[%s11765_s7 + $0x18] sm:$0x3] }
0x3fdc   : > { %v4334_v17 = vpack.c.bf16 %v4330_v25, %v4329_v13  ;;  %4337 = vrot.lane.b32.xlu0 %v4335_v0, %s11805_s21 }
0x3fe2   : > { %v9806_v18 = vpop.eup %9805 }
0x3fe3   : > { %v4220_v21 = vsel %vm556_vm2, %v9806_v18, 0.0 }
0x3fe4   : > { %v9808_v22 = vpop.eup %9807  ;;  %4221 = vadd.xlane.f32.xlu1 %v4220_v21 }
0x3fe5   : > { %v4223_v23 = vsel %vm556_vm2, %v9808_v22, 0.0 }
0x3fe8   : > { %4224 = vadd.xlane.f32.xlu1 %v4223_v23 }
0x3ff9   : > { %4231 = vrot.lane.b32.xlu1 %v4157_v16, %s11801_s25 }
0x404e   : > { %v4338_v24 = vpop.permute.xlu0 %4337 }
0x404f   : > { %v4343_v47 = vsel %vm722_vm4, %v4338_v24, 0 }
0x4071   : > { %v4222_v32 = vpop.xlane.xlu1 %4221 }
0x4072   : > { %9809 = vrcp.f32 %v4222_v32 }
0x4075   : > { %v4225_v34 = vpop.xlane.xlu1 %4224 }
0x4076   : > { %9811 = vrcp.f32 %v4225_v34 }
0x4079   : > { %v4232_v30 = vpop.permute.xlu1 %4231 }
0x407a   : > { %9106 = vmatpush3.bf16.msra.mxu0 %v4232_v30 }
0x407b   : > { %9117 = vmatprep.subr.bf16.mxu0 %v9961_v1 }
0x407c   : > { %v9810_v35 = vpop.eup %9809 }
0x407d   : > { %v4228_v45 = vmul.f32 %v9810_v35, %v9806_v18  ;;  %v8321_v18 = vld [vmem:[%s11765_s7 + $0x1a] sm:$0x3] }
0x407e   : > { %v4463_v21 = vsel %vm1023_vm5, %v8321_v18, 0 }
0x4080   : > { %v9812_v19 = vpop.eup %9811 }
0x4081   : > { %v4229_v53 = vmul.f32 %v9812_v19, %v9808_v22 }
0x4083   : > { %v4230_v46 = vpack.c.bf16 %v4229_v53, %v4228_v45 }
0x4085   : > { %9108 = vmatmul.mubr.msk.bf16.vlgmr.msra.gmra.mrb[112].mxu0 %vm556_vm2, %v4230_v46 }
0x4086   : > { %9118 = vmatpush3.bf16.xpose.msra.mxu0 %v4343_v47  ;;  %9119 = vmatprep.mubr.msk.bf16.mxu0 %vm9962_vm0, %v9961_v1 }
0x4087   : > { %9129 = vmatprep.subr.bf16.mxu0 %v9961_v1 }
0x408d   : > { %9120 = vmatmul.mubr.msk.bf16.vlgmr.msra.gmra.mrb[116].mxu0 %vm722_vm4, %v4334_v17  ;;  %v4510_v17 = vsel %vm1023_vm5, %v8315_v12, 0 }
0x408e   : > { %9131 = vmatprep.mubr.msk.bf16.mxu0 %vm9962_vm0, %v9961_v1  ;;  %9130 = vmatpush3.bf16.msra.mxu0 %v4463_v21 }
0x408f   : > { %9141 = vmatprep.subr.bf16.mxu0 %v9961_v1 }
0x4158   : > { %v4271_v48 = vpop.f32.mrb[112].mxu0 }
0x4159   : > { %v9109_v50 = vpop.f32.mrb[113].mxu0 }
0x415a   : > { %v4274_v9 = vpop.f32.mrb[114].mxu0 }
0x415b   : > { %v4278_v16 = vpack.c.bf16 %v4274_v9, %v4271_v48  ;;  %v9110_v54 = vpop.f32.mrb[115].mxu0 }
0x4160   : > { %v4379_v58 = vpop.f32.mrb[116].mxu0 }
0x4161   : > { %v4380_v51 = vadd.f32 %v8317_v41, %v4379_v58  ;;  %v9121_v59 = vpop.f32.mrb[117].mxu0 }
0x4162   : > { %v4382_v4 = vpop.f32.mrb[118].mxu0 }
0x4163   : > { %v4383_v49 = vadd.f32 %v8318_v7, %v4382_v4  ;;  %v9122_v31 = vpop.f32.mrb[119].mxu0  ;;  %v4386_v55 = vsel %vm556_vm2, %v4380_v51, -inf }
0x4164   : > { %4387 = vmax.xlane.f32.xlu0 %v4386_v55 }
0x4165   : > { %v4389_v61 = vsel %vm556_vm2, %v4383_v49, -inf }
0x4166   : > { %4390 = vmax.xlane.f32.xlu1 %v4389_v61 }
0x4177   : > { %4553 = vrot.lane.b32.xlu1 %v10904_v8, %s11802_s26 }
0x41f1   : > { %v4388_v52 = vpop.xlane.xlu0 %4387 }
0x41f2   : > { %v4392_v43 = vsub.f32 %v4380_v51, %v4388_v52 }
0x41f3   : > { %v4391_v26 = vpop.xlane.xlu1 %4390 }
0x41f4   : > { %v4394_v20 = vmul.f32 1.442695, %v4392_v43  ;;  %v4393_v33 = vsub.f32 %v4383_v49, %v4391_v26  ;;  %v8325_v26 = vld [vmem:[%s11766_s8 + $0xe0] sm:$0xff] }
0x41f6   : > { %9813 = vpow2.f32 %v4394_v20  ;;  %v4396_v56 = vmul.f32 1.442695, %v4393_v33  ;;  %v8326_v33 = vld [vmem:[%s11766_s8 + $0xe8] sm:$0xff] }
0x41f7   : > { %v4554_v35 = vpop.permute.xlu1 %4553 }
0x41f8   : > { %9815 = vpow2.f32 %v4396_v56 }
0x4200   : > { %v9814_v2 = vpop.eup %9813 }
0x4201   : > { %v4398_v3 = vsel %vm556_vm2, %v9814_v2, 0.0 }
0x4202   : > { %v9816_v5 = vpop.eup %9815  ;;  %4399 = vadd.xlane.f32.xlu0 %v4398_v3 }
0x4203   : > { %v4401_v57 = vsel %vm556_vm2, %v9816_v5, 0.0 }
0x4206   : > { %4402 = vadd.xlane.f32.xlu0 %v4401_v57 }
0x421c   : > { %4409 = vrot.lane.b32.xlu0 %v4335_v0, %s11801_s25 }
0x4220   : > { %4556 = vrot.lane.b32.xlu0 %v10927_v40, %s11802_s26 }
0x428f   : > { %v4400_v36 = vpop.xlane.xlu0 %4399 }
0x4290   : > { %9817 = vrcp.f32 %v4400_v36 }
0x4293   : > { %v4403_v42 = vpop.xlane.xlu0 %4402 }
0x4294   : > { %9819 = vrcp.f32 %v4403_v42 }
0x4297   : > { %v4410_v6 = vpop.permute.xlu0 %4409 }
0x4298   : > { %9124 = vmatpush3.bf16.msra.mxu1 %v4410_v6 }
0x4299   : > { %9135 = vmatprep.subr.bf16.mxu1 %v9961_v1 }
0x429a   : > { %v9818_v29 = vpop.eup %9817 }
0x429b   : > { %v4406_v13 = vmul.f32 %v9818_v29, %v9814_v2  ;;  %v4557_v54 = vpop.permute.xlu0 %4556 }
0x429e   : > { %v9820_v11 = vpop.eup %9819 }
0x429f   : > { %v4407_v25 = vmul.f32 %v9820_v11, %v9816_v5 }
0x42a1   : > { %v4408_v0 = vpack.c.bf16 %v4407_v25, %v4406_v13 }
0x42a3   : > { %9126 = vmatmul.mubr.msk.bf16.vlgmr.msra.gmra.mrb[120].mxu1 %vm556_vm2, %v4408_v0 }
0x42a4   : > { %9136 = vmatpush3.bf16.msra.mxu1 %v4510_v17  ;;  %9137 = vmatprep.mubr.msk.bf16.mxu1 %vm9962_vm0, %v9961_v1 }
0x42a5   : > { %9147 = vmatprep.subr.bf16.mxu1 %v9961_v1 }
0x42ab   : > { %9138 = vmatmul.mubr.msk.bf16.vlgmr.msra.gmra.mrb[124].mxu1 %vm722_vm4, %v4278_v16 }
0x42ac   : > { %9149 = vmatprep.mubr.msk.bf16.mxu1 %vm9962_vm0, %v9961_v1 }
0x4376   : > { %v4449_v22 = vpop.f32.mrb[120].mxu1 }
0x4377   : > { %v9127_v23 = vpop.f32.mrb[121].mxu1 }
0x4378   : > { %v4452_v32 = vpop.f32.mrb[122].mxu1 }
0x4379   : > { %v4456_v34 = vpack.c.bf16 %v4452_v32, %v4449_v22  ;;  %v9128_v30 = vpop.f32.mrb[123].mxu1 }
0x437b   : > { %9132 = vmatmul.mubr.msk.bf16.vlgmr.msra.gmra.mrb[120].mxu0 %vm722_vm4, %v4456_v34 }
0x437c   : > { %9142 = vmatpush3.bf16.msra.mxu0 %v4554_v35  ;;  %9143 = vmatprep.mubr.msk.bf16.mxu0 %vm9962_vm0, %v9961_v1 }
0x437d   : > { %9153 = vmatprep.subr.bf16.mxu0 %v9961_v1 }
0x437e   : > { %v4546_v19 = vpop.f32.mrb[124].mxu1 }
0x437f   : > { %v9139_v45 = vpop.f32.mrb[125].mxu1 }
0x4380   : > { %v4549_v53 = vpop.f32.mrb[126].mxu1 }
0x4381   : > { %v9140_v24 = vpop.f32.mrb[127].mxu1 }
0x4383   : > { %9144 = vmatmul.mubr.msk.bf16.vlgmr.msra.gmra.mrb[124].mxu0 %vm556_vm2, %v10919_v38 }
0x4384   : > { %9155 = vmatprep.mubr.msk.bf16.mxu0 %vm9962_vm0, %v9961_v1 }
0x444e   : > { %v4499_v46 = vpop.f32.mrb[120].mxu0 }
0x444f   : > { %v11005_v47 = vadd.f32 %v4546_v19, %v4499_v46  ;;  %v9133_v48 = vpop.f32.mrb[121].mxu0 }
0x4450   : > { %v4502_v50 = vpop.f32.mrb[122].mxu0 }
0x4451   : > { %v11007_v9 = vadd.f32 %v4549_v53, %v4502_v50  ;;  %v9134_v16 = vpop.f32.mrb[123].mxu0  ;;  %v8329_v53 = vld [vmem:[%s11765_s7 + $0x1c] sm:$0x3] }
0x4452   : > { %v4734_v24 = vsel %vm1023_vm5, %v8329_v53, 0 }
0x4456   : > { %v4593_v41 = vpop.f32.mrb[124].mxu0 }
0x4457   : > { %v4594_v58 = vadd.f32 %v4593_v41, %v4557_v54  ;;  %v9145_v7 = vpop.f32.mrb[125].mxu0 }
0x4458   : > { %v4596_v51 = vpop.f32.mrb[126].mxu0 }
0x4459   : > { %v4597_v59 = vadd.f32 %v4596_v51, %v4557_v54  ;;  %v9146_v4 = vpop.f32.mrb[127].mxu0  ;;  %v4600_v49 = vmul.f32 0.5, %v4594_v58 }
0x445b   : > { %v4601_v31 = vmul.f32 0.5, %v4597_v59  ;;  %v4606_v55 = vpack.c.bf16 %v4597_v59, %v4594_v58 }
0x445d   : > { %v4605_v61 = vpack.c.bf16 %v4601_v31, %v4600_v49  ;;  %4608 = vrot.lane.b32.xlu1 %v4606_v55, %s11805_s21 }
0x44cf   : > { %v4609_v52 = vpop.permute.xlu1 %4608 }
0x44d0   : > { %v4614_v43 = vsel %vm722_vm4, %v4609_v52, 0 }
0x44d1   : > { %9148 = vmatpush3.bf16.xpose.msra.mxu1 %v4614_v43 }
0x44d2   : > { %9159 = vmatprep.subr.bf16.mxu1 %v9961_v1 }
0x44d8   : > { %9150 = vmatmul.mubr.msk.bf16.vlgmr.msra.gmra.mrb[128].mxu1 %vm722_vm4, %v4605_v61 }
0x44d9   : > { %9161 = vmatprep.mubr.msk.bf16.mxu1 %vm9962_vm0, %v9961_v1  ;;  %9160 = vmatpush3.bf16.msra.mxu1 %v4734_v24 }
0x44da   : > { %9171 = vmatprep.subr.bf16.mxu1 %v9961_v1 }
0x45ab   : > { %v4650_v20 = vpop.f32.mrb[128].mxu1 }
0x45ac   : > { %v4651_v56 = vadd.f32 %v8325_v26, %v4650_v20  ;;  %v9151_v2 = vpop.f32.mrb[129].mxu1 }
0x45ad   : > { %v4653_v3 = vpop.f32.mrb[130].mxu1 }
0x45ae   : > { %v4654_v5 = vadd.f32 %v8326_v33, %v4653_v3  ;;  %v9152_v57 = vpop.f32.mrb[131].mxu1  ;;  %v4657_v36 = vsel %vm556_vm2, %v4651_v56, -inf }
0x45af   : > { %4658 = vmax.xlane.f32.xlu0 %v4657_v36  ;;  %v8333_v36 = vld [vmem:[%s11766_s8 + $0xf8] sm:$0xff] }
0x45b0   : > { %v4660_v42 = vsel %vm556_vm2, %v4654_v5, -inf }
0x45b1   : > { %4661 = vmax.xlane.f32.xlu1 %v4660_v42 }
0x45c2   : > { %4680 = vrot.lane.b32.xlu1 %v4606_v55, %s11801_s25 }
0x45c6   : > { %4782 = vrot.lane.b32.xlu1 %v10927_v40, %s11803_s28 }
0x463c   : > { %v4659_v6 = vpop.xlane.xlu0 %4658 }
0x463d   : > { %v4663_v29 = vsub.f32 %v4651_v56, %v4659_v6 }
0x463e   : > { %v4662_v11 = vpop.xlane.xlu1 %4661 }
0x463f   : > { %v4665_v12 = vmul.f32 1.442695, %v4663_v29  ;;  %v4664_v13 = vsub.f32 %v4654_v5, %v4662_v11  ;;  %v8332_v5 = vld [vmem:[%s11766_s8 + $0xf0] sm:$0xff] }
0x4641   : > { %9821 = vpow2.f32 %v4665_v12  ;;  %v4667_v25 = vmul.f32 1.442695, %v4664_v13 }
0x4642   : > { %v4681_v0 = vpop.permute.xlu1 %4680 }
0x4643   : > { %9823 = vpow2.f32 %v4667_v25  ;;  %9154 = vmatpush3.bf16.msra.mxu0 %v4681_v0 }
0x4644   : > { %9165 = vmatprep.subr.bf16.mxu0 %v9961_v1 }
0x464b   : > { %v9822_v17 = vpop.eup %9821 }
0x464c   : > { %v4669_v18 = vsel %vm556_vm2, %v9822_v17, 0.0 }
0x464d   : > { %v9824_v21 = vpop.eup %9823  ;;  %4670 = vadd.xlane.f32.xlu0 %v4669_v18 }
0x464e   : > { %v4672_v22 = vsel %vm556_vm2, %v9824_v21, 0.0 }
0x4651   : > { %4673 = vadd.xlane.f32.xlu0 %v4672_v22 }
0x4667   : > { %4779 = vrot.lane.b32.xlu0 %v10904_v8, %s11803_s28  ;;  %s459_s28 = sand.u32 1, %s9951_s30  }
0x4668   : > { %s8090_s17 = scalar_lea.sflag [#allocation3], %s459_s28 }
0x46da   : > { %v4671_v40 = vpop.xlane.xlu0 %4670 }
0x46db   : > { %9825 = vrcp.f32 %v4671_v40 }
0x46de   : > { %v4674_v23 = vpop.xlane.xlu0 %4673 }
0x46df   : > { %9827 = vrcp.f32 %v4674_v23 }
0x46e2   : > { %v4780_v45 = vpop.permute.xlu0 %4779 }
0x46e5   : > { %v9826_v32 = vpop.eup %9825 }
0x46e6   : > { %v4677_v30 = vmul.f32 %v9826_v32, %v9822_v17 }
0x46e9   : > { %v9828_v34 = vpop.eup %9827 }
0x46ea   : > { %v4678_v35 = vmul.f32 %v9828_v34, %v9824_v21 }
0x46ec   : > { %v4679_v19 = vpack.c.bf16 %v4678_v35, %v4677_v30 }
0x46ee   : > { %9156 = vmatmul.mubr.msk.bf16.vlgmr.msra.gmra.mrb[128].mxu0 %vm556_vm2, %v4679_v19 }
0x46ef   : > { %9166 = vmatpush3.bf16.msra.mxu0 %v4780_v45  ;;  %9167 = vmatprep.mubr.msk.bf16.mxu0 %vm9962_vm0, %v9961_v1 }
0x46f0   : > { %9177 = vmatprep.subr.bf16.mxu0 %v9961_v1 }
0x46f6   : > { %9168 = vmatmul.mubr.msk.bf16.vlgmr.msra.gmra.mrb[132].mxu0 %vm556_vm2, %v10919_v38  ;;  %v4783_v38 = vpop.permute.xlu1 %4782 }
0x46f7   : > { %9179 = vmatprep.mubr.msk.bf16.mxu0 %vm9962_vm0, %v9961_v1 }
0x47c1   : > { %v4720_v46 = vpop.f32.mrb[128].mxu0 }
0x47c2   : > { %v9157_v48 = vpop.f32.mrb[129].mxu0 }
0x47c3   : > { %v4723_v50 = vpop.f32.mrb[130].mxu0 }
0x47c4   : > { %v4727_v16 = vpack.c.bf16 %v4723_v50, %v4720_v46  ;;  %v9158_v54 = vpop.f32.mrb[131].mxu0  ;;  %v8336_v46 = vld [vmem:[%s11765_s7 + $0x1e] sm:$0x3] }
0x47c5   : > { %v4960_v48 = vsel %vm1023_vm5, %v8336_v46, 0 }
0x47c6   : > { %9162 = vmatmul.mubr.msk.bf16.vlgmr.msra.gmra.mrb[132].mxu1 %vm722_vm4, %v4727_v16 }
0x47c7   : > { %9173 = vmatprep.mubr.msk.bf16.mxu1 %vm9962_vm0, %v9961_v1 }
0x47c9   : > { %v4819_v41 = vpop.f32.mrb[132].mxu0 }
0x47ca   : > { %v4820_v58 = vadd.f32 %v4819_v41, %v4783_v38  ;;  %v9169_v7 = vpop.f32.mrb[133].mxu0 }
0x47cb   : > { %v4822_v51 = vpop.f32.mrb[134].mxu0 }
0x47cc   : > { %v4823_v59 = vadd.f32 %v4822_v51, %v4783_v38  ;;  %v9170_v4 = vpop.f32.mrb[135].mxu0  ;;  %v4826_v49 = vmul.f32 0.5, %v4820_v58  ;;  %v5010_v51 = vrot.slane %v10913_v14, %v10347_v27 }
0x47ce   : > { %v4827_v31 = vmul.f32 0.5, %v4823_v59  ;;  %v4832_v55 = vpack.c.bf16 %v4823_v59, %v4820_v58 }
0x47d0   : > { %v4831_v61 = vpack.c.bf16 %v4827_v31, %v4826_v49  ;;  %4834 = vrot.lane.b32.xlu1 %v4832_v55, %s11805_s21 }
0x4842   : > { %v4835_v52 = vpop.permute.xlu1 %4834 }
0x4843   : > { %v4840_v43 = vsel %vm722_vm4, %v4835_v52, 0 }
0x4844   : > { %9172 = vmatpush3.bf16.xpose.msra.mxu1 %v4840_v43 }
0x4845   : > { %9183 = vmatprep.subr.bf16.mxu1 %v9961_v1 }
0x484b   : > { %9174 = vmatmul.mubr.msk.bf16.vlgmr.msra.gmra.mrb[136].mxu1 %vm722_vm4, %v4831_v61 }
0x484c   : > { %9185 = vmatprep.mubr.msk.bf16.mxu1 %vm9962_vm0, %v9961_v1  ;;  %9184 = vmatpush3.bf16.msra.mxu1 %v4960_v48 }
0x484d   : > { %9195 = vmatprep.subr.bf16.mxu1 %v9961_v1 }
0x4899   : > { %v4770_v26 = vpop.f32.mrb[132].mxu1 }
0x489a   : > { %v4777_v20 = vadd.f32 %v4770_v26, %v11005_v47  ;;  %v9163_v33 = vpop.f32.mrb[133].mxu1 }
0x489b   : > { %v4773_v56 = vpop.f32.mrb[134].mxu1 }
0x489c   : > { %v4778_v2 = vadd.f32 %v4773_v56, %v11007_v9  ;;  %v9164_v3 = vpop.f32.mrb[135].mxu1 }
0x491e   : > { %v4876_v57 = vpop.f32.mrb[136].mxu1 }
0x491f   : > { %v4877_v42 = vadd.f32 %v8332_v5, %v4876_v57  ;;  %v9175_v6 = vpop.f32.mrb[137].mxu1 }
0x4920   : > { %v4879_v29 = vpop.f32.mrb[138].mxu1 }
0x4921   : > { %v4880_v11 = vadd.f32 %v8333_v36, %v4879_v29  ;;  %v9176_v12 = vpop.f32.mrb[139].mxu1  ;;  %v4883_v47 = vsel %vm556_vm2, %v4877_v42, -inf }
0x4922   : > { %4884 = vmax.xlane.f32.xlu0 %v4883_v47 }
0x4923   : > { %v4886_v9 = vsel %vm556_vm2, %v4880_v11, -inf }
0x4924   : > { %4887 = vmax.xlane.f32.xlu1 %v4886_v9 }
0x4935   : > { %4906 = vrot.lane.b32.xlu1 %v4832_v55, %s11801_s25 }
0x4939   : > { %5056 = vrot.lane.b32.xlu1 %v10904_v8, %s11804_s20 }
0x49af   : > { %v4885_v13 = vpop.xlane.xlu0 %4884 }
0x49b0   : > { %v4889_v25 = vsub.f32 %v4877_v42, %v4885_v13 }
0x49b1   : > { %v4888_v0 = vpop.xlane.xlu1 %4887 }
0x49b2   : > { %v4891_v17 = vmul.f32 1.442695, %v4889_v25  ;;  %v4890_v18 = vsub.f32 %v4880_v11, %v4888_v0  ;;  %v5042_v0 = vrot.slane %v10913_v14, %v10147_v39 }
0x49b4   : > { %9829 = vpow2.f32 %v4891_v17  ;;  %v4893_v21 = vmul.f32 1.442695, %v4890_v18 }
0x49b5   : > { %v4907_v22 = vpop.permute.xlu1 %4906 }
0x49b6   : > { %9831 = vpow2.f32 %v4893_v21  ;;  %9178 = vmatpush3.bf16.msra.mxu0 %v4907_v22 }
0x49b7   : > { %9189 = vmatprep.subr.bf16.mxu0 %v9961_v1 }
0x49b9   : > { %v5057_v6 = vpop.permute.xlu1 %5056 }
0x49be   : > { %v9830_v40 = vpop.eup %9829 }
0x49bf   : > { %v4895_v23 = vsel %vm556_vm2, %v9830_v40, 0.0 }
0x49c0   : > { %v9832_v32 = vpop.eup %9831  ;;  %4896 = vadd.xlane.f32.xlu0 %v4895_v23 }
0x49c1   : > { %v4898_v34 = vsel %vm556_vm2, %v9832_v32, 0.0 }
0x49c4   : > { %4899 = vadd.xlane.f32.xlu0 %v4898_v34 }
0x4a4d   : > { %v4897_v8 = vpop.xlane.xlu0 %4896 }
0x4a4e   : > { %9833 = vrcp.f32 %v4897_v8 }
0x4a51   : > { %v4900_v30 = vpop.xlane.xlu0 %4899 }
0x4a52   : > { %9835 = vrcp.f32 %v4900_v30  ;;  %v9627_v30 = vld [vmem:[%s11764_s6 + $0x60] sm:$0xff]  }
0x4a58   : > { %v9834_v35 = vpop.eup %9833 }
0x4a59   : > { %v4903_v45 = vmul.f32 %v9834_v35, %v9830_v40  ;;  %v5048_v40 = vrot.slane %v10913_v14, %v10371_v63  ;;  %v9628_v35 = vld [vmem:[%s11764_s6 + $0x68] sm:$0xff]  }
0x4a5c   : > { %v9836_v19 = vpop.eup %9835 }
0x4a5d   : > { %v4904_v53 = vmul.f32 %v9836_v19, %v9832_v32  ;;  %v9629_v19 = vld [vmem:[%s11764_s6 + $0x70] sm:$0xff]  }
0x4a5f   : > { %v4905_v24 = vpack.c.bf16 %v4904_v53, %v4903_v45  ;;  %v9630_v45 = vld [vmem:[%s11764_s6 + $0x78] sm:$0xff]   ;;  %v5055_v53 = vrot.slane %v10913_v14, %v10395_v15 }
0x4a61   : > { %9180 = vmatmul.mubr.msk.bf16.vlgmr.msra.gmra.mrb[136].mxu0 %vm556_vm2, %v4905_v24 }
0x4a62   : > { %9191 = vmatprep.mubr.msk.bf16.mxu0 %vm9962_vm0, %v9961_v1  ;;  %9190 = vmatpush3.bf16.msra.mxu0 %v5057_v6 }
0x4b34   : > { %v4946_v50 = vpop.f32.mrb[136].mxu0 }
0x4b35   : > { %v9181_v16 = vpop.f32.mrb[137].mxu0 }
0x4b36   : > { %v4949_v54 = vpop.f32.mrb[138].mxu0 }
0x4b37   : > { %v4953_v38 = vpack.c.bf16 %v4949_v54, %v4946_v50  ;;  %v9182_v41 = vpop.f32.mrb[139].mxu0 }
0x4b39   : > { %9186 = vmatmul.mubr.msk.bf16.vlgmr.msra.gmra.mrb[140].mxu1 %vm722_vm4, %v4953_v38 }
0x4b3a   : > { %9203 = vmatprep.mubr.msk.bf16.mxu1 %vm9962_vm0, %v9961_v1  ;;  %9196 = vmatpush3.bf16.msra.mxu1 %v9627_v30 }
0x4b3b   : > { %9197 = vmatprep.subr.bf16.mxu1 %v9961_v1 }
0x4b3e   : > { %9198 = vmatpush3.bf16.msra.mxu1 %v9628_v35 }
0x4b3f   : > { %9199 = vmatprep.subr.bf16.mxu1 %v9961_v1 }
0x4b42   : > { %9200 = vmatpush3.bf16.msra.mxu1 %v9629_v19 }
0x4b43   : > { %9201 = vmatprep.subr.bf16.mxu1 %v9961_v1 }
0x4b46   : > { %9202 = vmatpush3.bf16.msra.mxu1 %v9630_v45 }
0x4b47   : > { %9235 = vmatprep.subr.bf16.mxu1 %v9961_v1 }
0x4c0c   : > { %v4996_v58 = vpop.f32.mrb[140].mxu1 }
0x4c0d   : > { %v5003_v7 = vadd.f32 %v4996_v58, %v4777_v20  ;;  %v9187_v59 = vpop.f32.mrb[141].mxu1 }
0x4c0e   : > { %v4999_v4 = vpop.f32.mrb[142].mxu1 }
0x4c0f   : > { %v5005_v49 = vadd.f32 %v5003_v7, %v10888_v60  ;;  %v5004_v31 = vadd.f32 %v4999_v4, %v4778_v2  ;;  %v9188_v55 = vpop.f32.mrb[143].mxu1 }
0x4c11   : > { %v11083_v61 = vadd.f32 %v5010_v51, %v5005_v49  ;;  %v5006_v52 = vadd.f32 %v5004_v31, %v10891_v62 }
0x4c13   : > { %v11086_v43 = vadd.f32 %v5010_v51, %v5006_v52  ;;  %v5013_v26 = vsel %vm556_vm2, %v11083_v61, 0.0 }
0x4c14   : > { %5014 = vadd.xlane.f32.xlu0 %v5013_v26  ;;  %v9969_v26 = vmov 0.0|0.0  }
0x4c15   : > { %v5016_v20 = vsel %vm556_vm2, %v11086_v43, 0.0  ;;  %9531 = vmatprep.subr.bf16.mxu0 %v9969_v26 }
0x4c18   : > { %5017 = vadd.xlane.f32.xlu0 %v5016_v20 }
0x4ca1   : > { %v5015_v33 = vpop.xlane.xlu0 %5014 }
0x4ca2   : > { %v5019_v56 = vmul.f32 0.0625, %v5015_v33 }
0x4ca4   : > { %v5021_v60 = vsub.f32 %v11083_v61, %v5019_v56  ;;  %v5187_v56 = vrot.slane %v10913_v14, %v10403_v44  ;;  %v8345_v14 = vld [vmem:[%s11761_s3 + $0x4] sm:$0xf] }
0x4ca5   : > { %v5018_v2 = vpop.xlane.xlu0 %5017 }
0x4ca6   : > { %v5020_v3 = vmul.f32 0.0625, %v5018_v2  ;;  %v5023_v5 = vmul.f32 %v5021_v60, %v5021_v60 }
0x4ca8   : > { %v5022_v57 = vsub.f32 %v11086_v43, %v5020_v3  ;;  %v5025_v62 = vsel %vm556_vm2, %v5023_v5, 0.0 }
0x4ca9   : > { %5026 = vadd.xlane.f32.xlu0 %v5025_v62 }
0x4caa   : > { %v5024_v36 = vmul.f32 %v5022_v57, %v5022_v57 }
0x4cac   : > { %v5028_v42 = vsel %vm556_vm2, %v5024_v36, 0.0 }
0x4cad   : > { %5029 = vadd.xlane.f32.xlu0 %v5028_v42  ;;  %v5190_v42 = vld [vmem:[%s11761_s3] sm:$0xf] }
0x4d36   : > { %v5027_v29 = vpop.xlane.xlu0 %5026 }
0x4d37   : > { %v5031_v11 = vmul.f32 0.0625, %v5027_v29 }
0x4d39   : > { %v5033_v12 = vadd.f32 1e-05, %v5031_v11 }
0x4d3a   : > { %v5030_v47 = vpop.xlane.xlu0 %5029 }
0x4d3b   : > { %9837 = vrsqrt.f32 %v5033_v12  ;;  %v5032_v9 = vmul.f32 0.0625, %v5030_v47 }
0x4d3d   : > { %v5034_v13 = vadd.f32 1e-05, %v5032_v9 }
0x4d3f   : > { %9839 = vrsqrt.f32 %v5034_v13 }
0x4d45   : > { %v9838_v25 = vpop.eup %9837 }
0x4d46   : > { %v5037_v17 = vmul.f32 %v9838_v25, %v5021_v60 }
0x4d48   : > { %v5043_v21 = vmul.f32 %v5042_v0, %v5037_v17 }
0x4d49   : > { %v9840_v18 = vpop.eup %9839 }
0x4d4a   : > { %v5038_v22 = vmul.f32 %v9840_v18, %v5022_v57  ;;  %v5049_v32 = vadd.f32 %v5048_v40, %v5043_v21 }
0x4d4c   : > { %v5044_v23 = vmul.f32 %v5042_v0, %v5038_v22  ;;  %v9895_v22 = vld [vmem:[%s11759_s1 + $0x10] sm:$0xff] }
0x4d4e   : > { %v5050_v34 = vadd.f32 %v5048_v40, %v5044_v23  ;;  %v5544_v40 = vrot.slane %v9895_v22, %v10191_v28  ;;  %v5539_v23 = vrot.slane %v9895_v22, %v10371_v63 }
0x4d50   : > { %v5051_v8 = vpack.c.bf16 %v5050_v34, %v5049_v32 }
0x4d52   : > { %9192 = vmatmul.mubr.msk.bf16.vlgmr.msra.gmra.mrb[140].mxu0 %vm556_vm2, %v5051_v8 }
0x4d53   : > { %9211 = vmatprep.mubr.msk.f32.mxu0 %vm9962_vm0, %v9961_v1 }
0x4e25   : > { %v5096_v24 = vpop.f32.mrb[140].mxu0 }
0x4e26   : > { %v5097_v46 = vadd.f32 %v5096_v24, %v5055_v53  ;;  %v9193_v48 = vpop.f32.mrb[141].mxu0 }
0x4e27   : > { %v5099_v50 = vpop.f32.mrb[142].mxu0 }
0x4e28   : > { %v5105_v16 = vmul.f32 0.70710677, %v5097_v46  ;;  %v5100_v54 = vadd.f32 %v5099_v50, %v5055_v53  ;;  %v9194_v38 = vpop.f32.mrb[143].mxu0  ;;  %v5103_v59 = vmul.f32 0.5, %v5097_v46 }
0x4e2a   : > { %9841 = verf.f32 %v5105_v16  ;;  %v5106_v41 = vmul.f32 0.70710677, %v5100_v54  ;;  %v5104_v4 = vmul.f32 0.5, %v5100_v54 }
0x4e2c   : > { %9843 = verf.f32 %v5106_v41 }
0x4e34   : > { %v9842_v58 = vpop.eup %9841 }
0x4e35   : > { %v5109_v7 = vadd.f32 1.0, %v9842_v58 }
0x4e36   : > { %v9844_v51 = vpop.eup %9843 }
0x4e37   : > { %v5110_v49 = vadd.f32 1.0, %v9844_v51  ;;  %v5111_v31 = vmul.f32 %v5109_v7, %v5103_v59 }
0x4e39   : > { %v5112_v55 = vmul.f32 %v5110_v49, %v5104_v4  ;;  %v9631_v4 = vld [vmem:[%s11760_s2 + $0x38] sm:$0xff]  }
0x4e3b   : > { %v5113_v52 = vpack.c.bf16 %v5112_v55, %v5111_v31 }
0x4e3d   : > { %9204 = vmatmul.mubr.msk.bf16.vlgmr.msra.gmra.mrb[144].mxu1 %vm511_vm1, %v5113_v52 }
0x4e3e   : > { %9237 = vmatprep.mubr.msk.bf16.mxu1 %vm9962_vm0, %v9961_v1  ;;  %9236 = vmatpush3.bf16.msra.mxu1 %v9631_v4 }
0x4e3f   : > { %9241 = vmatprep.subr.bf16.mxu1 %v9961_v1 }
0x4f10   : > { %v5175_v20 = vpop.f32.mrb[144].mxu1 }
0x4f11   : > { %v5182_v33 = vadd.f32 %v5175_v20, %v11083_v61  ;;  %v9205_v60 = vpop.f32.mrb[145].mxu1  ;;  %v8347_v61 = vld [vmem:[%s11761_s3 + $0x8] sm:$0xf] }
0x4f12   : > { %v5178_v2 = vpop.f32.mrb[146].mxu1 }
0x4f13   : > { %v5183_v3 = vadd.f32 %v5178_v2, %v11086_v43  ;;  %v9206_v5 = vpop.f32.mrb[147].mxu1  ;;  %v5188_v57 = vadd.f32 %v5187_v56, %v5182_v33  ;;  %v8349_v43 = vld [vmem:[%s11761_s3 + $0xc] sm:$0xf] }
0x4f15   : > { %v5189_v62 = vadd.f32 %v5187_v56, %v5183_v3 }
0x4f17   : > { %v9532_v36 = vpack.c.bf16 %v5189_v62, %v5188_v57 }
0x4f19   : > { %9533 = vmatpush3.bf16.msra.mxu0 %v9532_v36 }
0x4f1a   : > { %9534 = vmatprep.subr.bf16.mxu0 %v9969_v26 }
0x4f1c   : > { %9212 = vmatmul.mubr.msk.f32.vlgmr.msra.gmra.mrb[144].mxu0 %vm556_vm2, %v5190_v42  ;;  %v9632_v42 = vld [vmem:[%s11760_s2 + $0x30] sm:$0xff]  }
0x4f1d   : > { %9536 = vmatpush3.bf16.msra.mxu0 %v9532_v36  ;;  %9218 = vmatprep.mubr.msk.f32.mxu0 %vm9962_vm0, %v9961_v1 }
0x4f1e   : > { %9537 = vmatprep.subr.bf16.mxu0 %v9969_v26 }
0x4f20   : > { %9219 = vmatmul.mubr.msk.f32.vlgmr.msra.gmra.mrb[146].mxu0 %vm556_vm2, %v8345_v14 }
0x4f21   : > { %9539 = vmatpush3.bf16.msra.mxu0 %v9532_v36  ;;  %9225 = vmatprep.mubr.msk.f32.mxu0 %vm9962_vm0, %v9961_v1 }
0x4f22   : > { %9540 = vmatprep.subr.bf16.mxu0 %v9969_v26 }
0x4f24   : > { %9226 = vmatmul.mubr.msk.f32.vlgmr.msra.gmra.mrb[148].mxu0 %vm556_vm2, %v8347_v61 }
0x4f25   : > { %9542 = vmatpush3.bf16.msra.mxu0 %v9532_v36  ;;  %9232 = vmatprep.mubr.msk.f32.mxu0 %vm9962_vm0, %v9961_v1 }
0x4f26   : > { %9259 = vmatprep.subr.bf16.mxu0 %v9961_v1 }
0x4f28   : > { %9233 = vmatmul.mubr.msk.f32.vlgmr.msra.gmra.mrb[150].mxu0 %vm556_vm2, %v8349_v43 }
0x4f29   : > { %9263 = vmatprep.mubr.msk.bf16.mxu0 %vm9962_vm0, %v9961_v1 }
0x4fef   : > { %v5260_v6 = vpop.f32.mrb[144].mxu0 }
0x4ff0   : > { %v9213_v29 = vpop.f32.mrb[145].mxu0  ;;  %v5490_v11 = vsel %vm5489_vm6, %v5260_v6, 0.0 }
0x4ff1   : > { %5491 = vadd.xlane.f32.xlu0 %v5490_v11  ;;  %v9633_v29 = vld [vmem:[%s11760_s2 + $0x40] sm:$0xff]  }
0x4ff3   : > { %v5335_v12 = vpop.f32.mrb[146].mxu0 }
0x4ff4   : > { %v5494_v47 = vsel %vm5489_vm6, %v5335_v12, 0.0  ;;  %v9220_v9 = vpop.f32.mrb[147].mxu0 }
0x4ff5   : > { %5495 = vadd.xlane.f32.xlu1 %v5494_v47 }
0x4ff7   : > { %v5410_v13 = vpop.f32.mrb[148].mxu0 }
0x4ff8   : > { %v5498_v25 = vsel %vm5489_vm6, %v5410_v13, 0.0  ;;  %v9227_v0 = vpop.f32.mrb[149].mxu0 }
0x4ff9   : > { %5499 = vadd.xlane.f32.xlu0 %v5498_v25  ;;  %v9634_v0 = vld [vmem:[%s11760_s2 + $0x48] sm:$0xff]  }
0x4ffb   : > { %v5485_v17 = vpop.f32.mrb[150].mxu0 }
0x4ffc   : > { %v5502_v18 = vsel %vm5489_vm6, %v5485_v17, 0.0  ;;  %v9234_v21 = vpop.f32.mrb[151].mxu0 }
0x4ffd   : > { %5503 = vadd.xlane.f32.xlu0 %v5502_v18 }
0x5006   : > { %5556 = vrot.lane.b32.xlu1 %v5544_v40, %s9970_s15 }
0x500a   : > { %5724 = vrot.lane.b32.xlu1 %v5539_v23, %s11804_s20 }
0x507e   : > { %v5492_v32 = vpop.xlane.xlu0 %5491 }
0x5082   : > { %v5496_v34 = vpop.xlane.xlu1 %5495 }
0x5083   : > { %v5497_v30 = vadd.f32 %v5496_v34, %v5492_v32 }
0x5086   : > { %v5500_v8 = vpop.xlane.xlu0 %5499  ;;  %v5557_v62 = vpop.permute.xlu1 %5556 }
0x5087   : > { %v5501_v35 = vadd.f32 %v5500_v8, %v5497_v30 }
0x508a   : > { %v5504_v19 = vpop.xlane.xlu0 %5503  ;;  %v5725_v21 = vpop.permute.xlu1 %5724 }
0x508b   : > { %v5505_v45 = vadd.f32 %v5504_v19, %v5501_v35 }
0x508d   : > { %v5507_v53 = vmul.f32 0.015625, %v5505_v45 }
0x508f   : > { %v5508_v24 = vsub.f32 %v5260_v6, %v5507_v53  ;;  %v5514_v46 = vsub.f32 %v5335_v12, %v5507_v53  ;;  %v5520_v54 = vsub.f32 %v5410_v13, %v5507_v53  ;;  %v5526_v58 = vsub.f32 %v5485_v17, %v5507_v53 }
0x5091   : > { %v5509_v48 = vmul.f32 %v5508_v24, %v5508_v24  ;;  %v5515_v16 = vmul.f32 %v5514_v46, %v5514_v46  ;;  %v5521_v41 = vmul.f32 %v5520_v54, %v5520_v54  ;;  %v5527_v51 = vmul.f32 %v5526_v58, %v5526_v58 }
0x5093   : > { %v5510_v50 = vsel %vm5489_vm6, %v5509_v48, 0.0  ;;  %v5516_v38 = vsel %vm5489_vm6, %v5515_v16, 0.0  ;;  %v5522_v7 = vsel %vm5489_vm6, %v5521_v41, 0.0  ;;  %v5528_v59 = vsel %vm5489_vm6, %v5527_v51, 0.0  ;;  %v11213_v16 = vld [vmem:[%s11767_s9 + $0x10] ss:$8 sps:$4 sm:$0xff]  }
0x5094   : > { %5511 = vadd.xlane.f32.xlu0 %v5510_v50  ;;  %v11207_v50 = vld [vmem:[%s11767_s9] ss:$8 sps:$4 sm:$0xff]  }
0x5095   : > { %9260 = vmatpush3.bf16.msra.mxu0 %v11207_v50 }
0x5096   : > { %9261 = vmatprep.subr.bf16.mxu0 %v9961_v1 }
0x5098   : > { %5517 = vadd.xlane.f32.xlu0 %v5516_v38 }
0x5099   : > { %9262 = vmatpush3.bf16.msra.mxu0 %v11213_v16 }
0x509a   : > { %9267 = vmatprep.subr.bf16.mxu0 %v9961_v1 }
0x509c   : > { %5523 = vadd.xlane.f32.xlu0 %v5522_v7 }
0x50a0   : > { %5529 = vadd.xlane.f32.xlu0 %v5528_v59 }
0x50b6   : > { %5551 = vrot.lane.b32.xlu0 %v5539_v23, %s9970_s15 }
0x50ba   : > { %5662 = vrot.lane.b32.xlu0 %v5539_v23, %s9971_s24 }
0x50be   : > { %5666 = vrot.lane.b32.xlu0 %v5544_v40, %s9971_s24 }
0x50c2   : > { %5728 = vrot.lane.b32.xlu0 %v5544_v40, %s11804_s20 }
0x5121   : > { %v5512_v49 = vpop.xlane.xlu0 %5511 }
0x5125   : > { %v5518_v31 = vpop.xlane.xlu0 %5517 }
0x5126   : > { %v5519_v52 = vadd.f32 %v5518_v31, %v5512_v49 }
0x5129   : > { %v5524_v55 = vpop.xlane.xlu0 %5523 }
0x512a   : > { %v5525_v26 = vadd.f32 %v5524_v55, %v5519_v52 }
0x512d   : > { %v5530_v20 = vpop.xlane.xlu0 %5529 }
0x512e   : > { %v5531_v33 = vadd.f32 %v5530_v20, %v5525_v26 }
0x5130   : > { %v5532_v56 = vmul.f32 0.015625, %v5531_v33 }
0x5131   : > { %v5552_v5 = vpop.permute.xlu0 %5551 }
0x5132   : > { %v5533_v60 = vadd.f32 1e-05, %v5532_v56 }
0x5134   : > { %9845 = vrsqrt.f32 %v5533_v60 }
0x5135   : > { %v5663_v47 = vpop.permute.xlu0 %5662 }
0x5139   : > { %v5667_v13 = vpop.permute.xlu0 %5666 }
0x513e   : > { %v9846_v2 = vpop.eup %9845 }
0x513f   : > { %v5549_v3 = vmul.f32 %v9846_v2, %v5514_v46  ;;  %v5535_v61 = vmul.f32 %v9846_v2, %v5508_v24  ;;  %v5661_v11 = vmul.f32 %v9846_v2, %v5520_v54  ;;  %v5723_v18 = vmul.f32 %v9846_v2, %v5526_v58  ;;  %v11221_v58 = vld [vmem:[%s11768_s10] sm:$0xff] }
0x5140   : > { %v5824_v7 = vrot.slane %v11221_v58, %v10130_v10  ;;  %v5829_v4 = vrot.slane %v11221_v58, %v10141_v37  ;;  %v11235_v52 = vrot.slane %v11221_v58, %v10191_v28 }
0x5141   : > { %v5554_v57 = vmul.f32 %v5552_v5, %v5549_v3  ;;  %v5540_v43 = vmul.f32 %v5539_v23, %v5535_v61  ;;  %v5665_v9 = vmul.f32 %v5663_v47, %v5661_v11  ;;  %v5727_v22 = vmul.f32 %v5725_v21, %v5723_v18 }
0x5143   : > { %v5559_v36 = vadd.f32 %v5557_v62, %v5554_v57  ;;  %v5545_v6 = vadd.f32 %v5544_v40, %v5540_v43  ;;  %v5669_v25 = vadd.f32 %v5667_v13, %v5665_v9  ;;  %v5729_v40 = vpop.permute.xlu0 %5728 }
0x5144   : > { %v5731_v23 = vadd.f32 %v5729_v40, %v5727_v22 }
0x5145   : > { %v5562_v14 = vpack.c.bf16 %v5559_v36, %v5559_v36  ;;  %v5548_v12 = vpack.c.bf16 %v5545_v6, %v5545_v6  ;;  %v5672_v17 = vpack.c.bf16 %v5669_v25, %v5669_v25  ;;  %v5893_v36 = vld [vmem:[%s11771_s13] sm:$0xf] }
0x5146   : > { %v5734_v32 = vpack.c.bf16 %v5731_v23, %v5731_v23 }
0x5147   : > { %9238 = vmatmul.mubr.msk.bf16.vlgmr.msra.gmra.mrb[148].mxu1 %vm556_vm2, %v5562_v14 }
0x5148   : > { %9242 = vmatpush3.bf16.msra.mxu1 %v9632_v42  ;;  %9243 = vmatprep.mubr.msk.bf16.mxu1 %vm9962_vm0, %v9961_v1 }
0x5149   : > { %9247 = vmatprep.subr.bf16.mxu1 %v9961_v1 }
0x5153   : > { %9244 = vmatmul.mubr.msk.bf16.vlgmr.msra.gmra.mrb[148].mxu1 %vm556_vm2, %v5548_v12 }
0x5154   : > { %9248 = vmatpush3.bf16.msra.mxu1 %v9633_v29  ;;  %9249 = vmatprep.mubr.msk.bf16.mxu1 %vm9962_vm0, %v9961_v1 }
0x5155   : > { %9253 = vmatprep.subr.bf16.mxu1 %v9961_v1 }
0x515f   : > { %9250 = vmatmul.mubr.msk.bf16.vlgmr.msra.gmra.mrb[148].mxu1 %vm556_vm2, %v5672_v17 }
0x5160   : > { %9254 = vmatpush3.bf16.msra.mxu1 %v9634_v0  ;;  %9255 = vmatprep.mubr.msk.bf16.mxu1 %vm9962_vm0, %v9961_v1 }
0x5161   : > { %9287 = vmatprep.subr.bf16.mxu1 %v9961_v1 }
0x516b   : > { %9256 = vmatmul.mubr.msk.bf16.vlgmr.msra.gmra.mrb[148].mxu1 %vm556_vm2, %v5734_v32 }
0x516c   : > { %9289 = vmatprep.mubr.msk.bf16.mxu1 %vm9962_vm0, %v9961_v1 }
0x523e   : > { %v11198_v34 = vpop.f32.mrb[148].mxu1 }
0x523f   : > { %v9257_v8 = vpop.f32.mrb[149].mxu1  ;;  %v5807_v30 = vsel %vm5806_vm7, %v11198_v34, 0.0 }
0x5240   : > { %5808 = vadd.xlane.f32.xlu1 %v5807_v30  ;;  %v5781_v35 = vpop.f32.mrb[150].mxu1 }
0x5241   : > { %v9258_v19 = vpop.f32.mrb[151].mxu1 }
0x52cd   : > { %v5809_v45 = vpop.xlane.xlu1 %5808 }
0x52ce   : > { %v5811_v53 = vmul.f32 0.03125, %v5809_v45 }
0x52d0   : > { %v5812_v24 = vsub.f32 %v11198_v34, %v5811_v53 }
0x52d2   : > { %v5813_v46 = vmul.f32 %v5812_v24, %v5812_v24 }
0x52d4   : > { %v5814_v48 = vsel %vm5806_vm7, %v5813_v46, 0.0 }
0x52d5   : > { %5815 = vadd.xlane.f32.xlu0 %v5814_v48 }
0x5362   : > { %v5816_v54 = vpop.xlane.xlu0 %5815 }
0x5363   : > { %v5817_v38 = vmul.f32 0.03125, %v5816_v54 }
0x5365   : > { %v5818_v41 = vadd.f32 1e-05, %v5817_v38 }
0x5367   : > { %9847 = vrsqrt.f32 %v5818_v41 }
0x5371   : > { %v9848_v51 = vpop.eup %9847 }
0x5372   : > { %v5820_v59 = vmul.f32 %v9848_v51, %v5812_v24 }
0x5374   : > { %v5825_v49 = vmul.f32 %v5824_v7, %v5820_v59  ;;  %v8365_v59 = vld [vmem:[%s11771_s13 + $0x4] sm:$0xf] }
0x5376   : > { %v5830_v31 = vadd.f32 %v5829_v4, %v5825_v49 }
0x5378   : > { %v11227_v55 = vpack.c.bf16 %v5830_v31, %v5830_v31 }
0x537a   : > { %9264 = vmatmul.mubr.msk.bf16.vlgmr.msra.gmra.mrb[152].mxu0 %vm5848_vm8, %v11227_v55 }
0x537b   : > { %9269 = vmatprep.mubr.msk.bf16.mxu0 %vm9962_vm0, %v9961_v1 }
0x544d   : > { %v5886_v26 = vpop.f32.mrb[152].mxu0 }
0x544e   : > { %v5887_v20 = vadd.f32 %v5886_v26, %v11235_v52  ;;  %v9265_v33 = vpop.f32.mrb[153].mxu0 }
0x544f   : > { %v5889_v56 = vpop.f32.mrb[154].mxu0 }
0x5450   : > { %v5895_v60 = vpack.c.bf16 %v5887_v20, %v5887_v20  ;;  %v9266_v2 = vpop.f32.mrb[155].mxu0  ;;  %v5892_v57 = vmul.f32 0.35355338, %v5887_v20 }
0x5452   : > { %5897 = vrot.lane.b32.xlu0 %v5895_v60, %s11801_s25  ;;  %v5894_v62 = vpack.c.bf16 %v5892_v57, %v5892_v57 }
0x5456   : > { %6009 = vrot.lane.b32.xlu0 %v11207_v50, %s11802_s26 }
0x545a   : > { %6011 = vrot.lane.b32.xlu0 %v11213_v16, %s11802_s26 }
0x54c4   : > { %v5898_v3 = vpop.permute.xlu0 %5897 }
0x54c5   : > { %v5904_v5 = vsel %vm5899_vm9, %v5898_v3, 0 }
0x54c6   : > { %9268 = vmatpush3.bf16.xpose.msra.mxu0 %v5904_v5 }
0x54c7   : > { %9273 = vmatprep.subr.bf16.mxu0 %v9961_v1 }
0x54c8   : > { %v6010_v22 = vpop.permute.xlu0 %6009 }
0x54cc   : > { %v6012_v23 = vpop.permute.xlu0 %6011 }
0x54cd   : > { %9270 = vmatmul.mubr.msk.bf16.vlgmr.msra.gmra.mrb[156].mxu0 %vm5899_vm9, %v5894_v62 }
0x54ce   : > { %9275 = vmatprep.mubr.msk.bf16.mxu0 %vm9962_vm0, %v9961_v1 }
0x55a0   : > { %v5940_v42 = vpop.f32.mrb[156].mxu0 }
0x55a1   : > { %v5941_v14 = vadd.f32 %v5940_v42, %v5893_v36  ;;  %v9271_v61 = vpop.f32.mrb[157].mxu0 }
0x55a2   : > { %v5943_v43 = vpop.f32.mrb[158].mxu0 }
0x55a3   : > { %v9272_v6 = vpop.f32.mrb[159].mxu0  ;;  %v5947_v29 = vsel %vm5946_vm10, %v5941_v14, -inf }
0x55a4   : > { %5948 = vmax.xlane.f32.xlu1 %v5947_v29 }
0x5631   : > { %v5949_v11 = vpop.xlane.xlu1 %5948 }
0x5632   : > { %v5950_v12 = vsub.f32 %v5941_v14, %v5949_v11  ;;  %v6008_v14 = vld [vmem:[%s11770_s12] sm:$0xf]  ;;  %v8368_v11 = vld [vmem:[%s11770_s12 + $0x4] sm:$0xf] }
0x5633   : > { %v6227_v6 = vsel %vm6179_vm11, %v6008_v14, 0 }
0x5634   : > { %v5951_v47 = vmul.f32 1.442695, %v5950_v12  ;;  %v6181_v12 = vsel %vm6179_vm11, %v8368_v11, 0 }
0x5636   : > { %9849 = vpow2.f32 %v5951_v47 }
0x5640   : > { %v9850_v9 = vpop.eup %9849 }
0x5641   : > { %v5953_v13 = vsel %vm5946_vm10, %v9850_v9, 0.0 }
0x5642   : > { %5954 = vadd.xlane.f32.xlu1 %v5953_v13 }
0x5653   : > { %5959 = vrot.lane.b32.xlu1 %v5895_v60, %s9970_s15 }
0x5657   : > { %6016 = vrot.lane.b32.xlu1 %v11235_v52, %s11802_s26 }
0x56cf   : > { %v5955_v25 = vpop.xlane.xlu1 %5954 }
0x56d0   : > { %9851 = vrcp.f32 %v5955_v25 }
0x56d3   : > { %v5960_v0 = vpop.permute.xlu1 %5959 }
0x56d4   : > { %v5965_v17 = vsel %vm1023_vm5, %v5960_v0, 0 }
0x56d5   : > { %9274 = vmatpush3.bf16.msra.mxu0 %v5965_v17 }
0x56d6   : > { %9279 = vmatprep.subr.bf16.mxu0 %v9961_v1 }
0x56d7   : > { %v6017_v19 = vpop.permute.xlu1 %6016 }
0x56da   : > { %v9852_v18 = vpop.eup %9851 }
0x56db   : > { %v5957_v21 = vmul.f32 %v9852_v18, %v9850_v9 }
0x56dd   : > { %v5958_v40 = vpack.c.bf16 %v5957_v21, %v5957_v21 }
0x56df   : > { %9276 = vmatmul.mubr.msk.bf16.vlgmr.msra.gmra.mrb[160].mxu0 %vm722_vm4, %v5958_v40 }
0x56e0   : > { %9280 = vmatpush3.bf16.msra.mxu0 %v6010_v22  ;;  %9283 = vmatprep.mubr.msk.bf16.mxu0 %vm9962_vm0, %v9961_v1 }
0x56e1   : > { %9281 = vmatprep.subr.bf16.mxu0 %v9961_v1 }
0x56e4   : > { %9282 = vmatpush3.bf16.msra.mxu0 %v6012_v23 }
0x56e5   : > { %9293 = vmatprep.subr.bf16.mxu0 %v9961_v1 }
0x56e7   : > { %9284 = vmatmul.mubr.msk.bf16.vlgmr.msra.gmra.mrb[164].mxu0 %vm5848_vm8, %v11227_v55 }
0x56e8   : > { %9295 = vmatprep.mubr.msk.bf16.mxu0 %vm9962_vm0, %v9961_v1 }
0x57b2   : > { %v6001_v32 = vpop.f32.mrb[160].mxu0 }
0x57b3   : > { %v9277_v8 = vpop.f32.mrb[161].mxu0  ;;  %v6007_v29 = vpack.c.bf16 %v6001_v32, %v6001_v32 }
0x57b4   : > { %v6004_v30 = vpop.f32.mrb[162].mxu0 }
0x57b5   : > { %v9278_v35 = vpop.f32.mrb[163].mxu0 }
0x57ba   : > { %v6053_v45 = vpop.f32.mrb[164].mxu0 }
0x57bb   : > { %v6054_v53 = vadd.f32 %v6053_v45, %v6017_v19  ;;  %v9285_v24 = vpop.f32.mrb[165].mxu0 }
0x57bc   : > { %v6056_v46 = vpop.f32.mrb[166].mxu0 }
0x57bd   : > { %v6063_v48 = vpack.c.bf16 %v6054_v53, %v6054_v53  ;;  %v9286_v54 = vpop.f32.mrb[167].mxu0  ;;  %v6059_v7 = vmul.f32 0.35355338, %v6054_v53 }
0x57bf   : > { %6065 = vrot.lane.b32.xlu0 %v6063_v48, %s11801_s25  ;;  %v6062_v51 = vpack.c.bf16 %v6059_v7, %v6059_v7 }
0x5831   : > { %v6066_v38 = vpop.permute.xlu0 %6065 }
0x5832   : > { %v6071_v41 = vsel %vm5899_vm9, %v6066_v38, 0 }
0x5833   : > { %9288 = vmatpush3.bf16.xpose.msra.mxu1 %v6071_v41 }
0x5834   : > { %9299 = vmatprep.subr.bf16.mxu1 %v9961_v1 }
0x583a   : > { %9290 = vmatmul.mubr.msk.bf16.vlgmr.msra.gmra.mrb[152].mxu1 %vm5899_vm9, %v6062_v51 }
0x583b   : > { %9301 = vmatprep.mubr.msk.bf16.mxu1 %vm9962_vm0, %v9961_v1  ;;  %9300 = vmatpush3.bf16.msra.mxu1 %v6181_v12 }
0x583c   : > { %9311 = vmatprep.subr.bf16.mxu1 %v9961_v1 }
0x590d   : > { %v6107_v4 = vpop.f32.mrb[152].mxu1 }
0x590e   : > { %v6108_v49 = vadd.f32 %v8365_v59, %v6107_v4  ;;  %v9291_v31 = vpop.f32.mrb[153].mxu1  ;;  %v8372_v4 = vld [vmem:[%s11771_s13 + $0x8] sm:$0xf] }
0x590f   : > { %v6110_v26 = vpop.f32.mrb[154].mxu1 }
0x5910   : > { %v9292_v20 = vpop.f32.mrb[155].mxu1  ;;  %v6113_v33 = vsel %vm5946_vm10, %v6108_v49, -inf }
0x5911   : > { %6114 = vmax.xlane.f32.xlu1 %v6113_v33 }
0x5922   : > { %6269 = vrot.lane.b32.xlu1 %v11207_v50, %s11804_s20 }
0x5926   : > { %6271 = vrot.lane.b32.xlu1 %v11213_v16, %s11804_s20 }
0x599e   : > { %v6115_v56 = vpop.xlane.xlu1 %6114 }
0x599f   : > { %v6116_v60 = vsub.f32 %v6108_v49, %v6115_v56 }
0x59a1   : > { %v6117_v2 = vmul.f32 1.442695, %v6116_v60 }
0x59a2   : > { %v6270_v47 = vpop.permute.xlu1 %6269 }
0x59a3   : > { %9853 = vpow2.f32 %v6117_v2 }
0x59a6   : > { %v6272_v18 = vpop.permute.xlu1 %6271 }
0x59ad   : > { %v9854_v3 = vpop.eup %9853 }
0x59ae   : > { %v6119_v5 = vsel %vm5946_vm10, %v9854_v3, 0.0 }
0x59af   : > { %6120 = vadd.xlane.f32.xlu0 %v6119_v5 }
0x59c5   : > { %6125 = vrot.lane.b32.xlu0 %v6063_v48, %s9970_s15 }
0x59c9   : > { %6275 = vrot.lane.b32.xlu0 %v11235_v52, %s11804_s20 }
0x5a3c   : > { %v6121_v57 = vpop.xlane.xlu0 %6120 }
0x5a3d   : > { %9855 = vrcp.f32 %v6121_v57 }
0x5a40   : > { %v6126_v62 = vpop.permute.xlu0 %6125 }
0x5a41   : > { %v6131_v36 = vsel %vm1023_vm5, %v6126_v62, 0 }
0x5a42   : > { %9294 = vmatpush3.bf16.msra.mxu0 %v6131_v36 }
0x5a43   : > { %9305 = vmatprep.subr.bf16.mxu0 %v9961_v1 }
0x5a44   : > { %v6276_v45 = vpop.permute.xlu0 %6275 }
0x5a47   : > { %v9856_v42 = vpop.eup %9855 }
0x5a48   : > { %v6123_v61 = vmul.f32 %v9856_v42, %v9854_v3 }
0x5a4a   : > { %v6124_v43 = vpack.c.bf16 %v6123_v61, %v6123_v61 }
0x5a4c   : > { %9296 = vmatmul.mubr.msk.bf16.vlgmr.msra.gmra.mrb[168].mxu0 %vm722_vm4, %v6124_v43 }
0x5a4d   : > { %9306 = vmatpush3.bf16.msra.mxu0 %v6227_v6  ;;  %9307 = vmatprep.mubr.msk.bf16.mxu0 %vm9962_vm0, %v9961_v1 }
0x5a4e   : > { %9319 = vmatprep.subr.bf16.mxu0 %v9961_v1 }
0x5a54   : > { %9308 = vmatmul.mubr.msk.bf16.vlgmr.msra.gmra.mrb[172].mxu0 %vm5899_vm9, %v6007_v29 }
0x5a55   : > { %9321 = vmatprep.mubr.msk.bf16.mxu0 %vm9962_vm0, %v9961_v1 }
0x5b1f   : > { %v6167_v9 = vpop.f32.mrb[168].mxu0 }
0x5b20   : > { %v6173_v13 = vpack.c.bf16 %v6167_v9, %v6167_v9  ;;  %v9297_v25 = vpop.f32.mrb[169].mxu0 }
0x5b21   : > { %v6170_v0 = vpop.f32.mrb[170].mxu0 }
0x5b22   : > { %v9298_v17 = vpop.f32.mrb[171].mxu0  ;;  %9302 = vmatmul.mubr.msk.bf16.vlgmr.msra.gmra.mrb[156].mxu1 %vm5899_vm9, %v6173_v13 }
0x5b23   : > { %9312 = vmatpush3.bf16.msra.mxu1 %v6270_v47  ;;  %9315 = vmatprep.mubr.msk.bf16.mxu1 %vm9962_vm0, %v9961_v1 }
0x5b24   : > { %9313 = vmatprep.subr.bf16.mxu1 %v9961_v1 }
0x5b27   : > { %v6263_v21 = vpop.f32.mrb[172].mxu0  ;;  %9314 = vmatpush3.bf16.msra.mxu1 %v6272_v18 }
0x5b28   : > { %v9309_v22 = vpop.f32.mrb[173].mxu0  ;;  %9325 = vmatprep.subr.bf16.mxu1 %v9961_v1 }
0x5b29   : > { %v6266_v40 = vpop.f32.mrb[174].mxu0 }
0x5b2a   : > { %v9310_v23 = vpop.f32.mrb[175].mxu0  ;;  %9316 = vmatmul.mubr.msk.bf16.vlgmr.msra.gmra.mrb[160].mxu1 %vm5848_vm8, %v11227_v55 }
0x5b2b   : > { %9327 = vmatprep.mubr.msk.bf16.mxu1 %vm9962_vm0, %v9961_v1 }
0x5bf5   : > { %v6217_v32 = vpop.f32.mrb[156].mxu1 }
0x5bf6   : > { %v11312_v8 = vadd.f32 %v6263_v21, %v6217_v32  ;;  %v9303_v30 = vpop.f32.mrb[157].mxu1 }
0x5bf7   : > { %v6220_v35 = vpop.f32.mrb[158].mxu1 }
0x5bf8   : > { %v9304_v19 = vpop.f32.mrb[159].mxu1 }
0x5bfd   : > { %v6312_v53 = vpop.f32.mrb[160].mxu1 }
0x5bfe   : > { %v6313_v24 = vadd.f32 %v6312_v53, %v6276_v45  ;;  %v9317_v46 = vpop.f32.mrb[161].mxu1 }
0x5bff   : > { %v6315_v48 = vpop.f32.mrb[162].mxu1 }
0x5c00   : > { %v6322_v54 = vpack.c.bf16 %v6313_v24, %v6313_v24  ;;  %v9318_v38 = vpop.f32.mrb[163].mxu1  ;;  %v6318_v51 = vmul.f32 0.35355338, %v6313_v24  ;;  %v8378_v48 = vld [vmem:[%s11771_s13 + $0xc] sm:$0xf] }
0x5c02   : > { %6324 = vrot.lane.b32.xlu1 %v6322_v54, %s11801_s25  ;;  %v6321_v59 = vpack.c.bf16 %v6318_v51, %v6318_v51 }
0x5c74   : > { %v6325_v41 = vpop.permute.xlu1 %6324 }
0x5c75   : > { %v6330_v7 = vsel %vm5899_vm9, %v6325_v41, 0 }
0x5c76   : > { %9320 = vmatpush3.bf16.xpose.msra.mxu0 %v6330_v7 }
0x5c77   : > { %9331 = vmatprep.subr.bf16.mxu0 %v9961_v1 }
0x5c7d   : > { %9322 = vmatmul.mubr.msk.bf16.vlgmr.msra.gmra.mrb[176].mxu0 %vm5899_vm9, %v6321_v59 }
0x5c7e   : > { %9333 = vmatprep.mubr.msk.bf16.mxu0 %vm9962_vm0, %v9961_v1 }
0x5d50   : > { %v6366_v49 = vpop.f32.mrb[176].mxu0 }
0x5d51   : > { %v6367_v31 = vadd.f32 %v8372_v4, %v6366_v49  ;;  %v9323_v26 = vpop.f32.mrb[177].mxu0 }
0x5d52   : > { %v6369_v20 = vpop.f32.mrb[178].mxu0 }
0x5d53   : > { %v9324_v33 = vpop.f32.mrb[179].mxu0  ;;  %v6372_v56 = vsel %vm5946_vm10, %v6367_v31, -inf }
0x5d54   : > { %6373 = vmax.xlane.f32.xlu0 %v6372_v56 }
0x5d6a   : > { %6384 = vrot.lane.b32.xlu0 %v6322_v54, %s9970_s15 }
0x5d6e   : > { %6484 = vrot.lane.b32.xlu0 %v11213_v16, %s11790_s18 }
0x5de1   : > { %v6374_v60 = vpop.xlane.xlu0 %6373 }
0x5de2   : > { %v6375_v2 = vsub.f32 %v6367_v31, %v6374_v60 }
0x5de4   : > { %v6376_v3 = vmul.f32 1.442695, %v6375_v2 }
0x5de5   : > { %v6385_v5 = vpop.permute.xlu0 %6384 }
0x5de6   : > { %9857 = vpow2.f32 %v6376_v3  ;;  %v6390_v57 = vsel %vm1023_vm5, %v6385_v5, 0  ;;  %v8381_v5 = vld [vmem:[%s11770_s12 + $0xc] sm:$0xf] }
0x5de7   : > { %9326 = vmatpush3.bf16.msra.mxu1 %v6390_v57  ;;  %v6652_v57 = vsel %vm6179_vm11, %v8381_v5, 0 }
0x5de8   : > { %9337 = vmatprep.subr.bf16.mxu1 %v9961_v1 }
0x5de9   : > { %v6485_v29 = vpop.permute.xlu0 %6484 }
0x5df0   : > { %v9858_v62 = vpop.eup %9857 }
0x5df1   : > { %v6378_v36 = vsel %vm5946_vm10, %v9858_v62, 0.0 }
0x5df2   : > { %6379 = vadd.xlane.f32.xlu1 %v6378_v36 }
0x5e03   : > { %6482 = vrot.lane.b32.xlu1 %v11207_v50, %s11790_s18 }
0x5e07   : > { %6488 = vrot.lane.b32.xlu1 %v11235_v52, %s11790_s18  ;;  %v8375_v52 = vld [vmem:[%s11770_s12 + $0x8] sm:$0xf]  ;;  %s11807_s18 = smov 56  }
0x5e08   : > { %v6439_v11 = vsel %vm6179_vm11, %v8375_v52, 0  ;;  %v6699_v52 = vrot.slane %v11221_v58, %v10347_v27 }
0x5e09   : > { %9332 = vmatpush3.bf16.msra.mxu0 %v6439_v11 }
0x5e0a   : > { %9345 = vmatprep.subr.bf16.mxu0 %v9961_v1 }
0x5e7f   : > { %v6380_v42 = vpop.xlane.xlu1 %6379 }
0x5e80   : > { %9859 = vrcp.f32 %v6380_v42 }
0x5e83   : > { %v6483_v43 = vpop.permute.xlu1 %6482 }
0x5e8a   : > { %v9860_v14 = vpop.eup %9859 }
0x5e8b   : > { %v6382_v61 = vmul.f32 %v9860_v14, %v9858_v62 }
0x5e8d   : > { %v6383_v6 = vpack.c.bf16 %v6382_v61, %v6382_v61 }
0x5e8f   : > { %9328 = vmatmul.mubr.msk.bf16.vlgmr.msra.gmra.mrb[164].mxu1 %vm722_vm4, %v6383_v6 }
0x5e90   : > { %9338 = vmatpush3.bf16.msra.mxu1 %v6483_v43  ;;  %9341 = vmatprep.mubr.msk.bf16.mxu1 %vm9962_vm0, %v9961_v1  ;;  %v9639_v43 = vld [vmem:[%s11767_s9 + $0x4] ss:$8 sps:$4 sm:$0xff]  }
0x5e91   : > { %9339 = vmatprep.subr.bf16.mxu1 %v9961_v1 }
0x5e94   : > { %9340 = vmatpush3.bf16.msra.mxu1 %v6485_v29 }
0x5e95   : > { %9351 = vmatprep.subr.bf16.mxu1 %v9961_v1 }
0x5e97   : > { %9342 = vmatmul.mubr.msk.bf16.vlgmr.msra.gmra.mrb[168].mxu1 %vm5848_vm8, %v11227_v55  ;;  %v6489_v55 = vpop.permute.xlu1 %6488 }
0x5e98   : > { %9353 = vmatprep.mubr.msk.bf16.mxu1 %vm9962_vm0, %v9961_v1 }
0x5f62   : > { %v6426_v12 = vpop.f32.mrb[164].mxu1 }
0x5f63   : > { %v6432_v47 = vpack.c.bf16 %v6426_v12, %v6426_v12  ;;  %v9329_v9 = vpop.f32.mrb[165].mxu1 }
0x5f64   : > { %v6429_v13 = vpop.f32.mrb[166].mxu1 }
0x5f65   : > { %v9330_v25 = vpop.f32.mrb[167].mxu1  ;;  %9334 = vmatmul.mubr.msk.bf16.vlgmr.msra.gmra.mrb[180].mxu0 %vm5899_vm9, %v6432_v47 }
0x5f66   : > { %9347 = vmatprep.mubr.msk.bf16.mxu0 %vm9962_vm0, %v9961_v1 }
0x5f6a   : > { %v6525_v0 = vpop.f32.mrb[168].mxu1 }
0x5f6b   : > { %v6526_v17 = vadd.f32 %v6525_v0, %v6489_v55  ;;  %v9343_v18 = vpop.f32.mrb[169].mxu1 }
0x5f6c   : > { %v6528_v21 = vpop.f32.mrb[170].mxu1 }
0x5f6d   : > { %v6535_v22 = vpack.c.bf16 %v6526_v17, %v6526_v17  ;;  %v9344_v40 = vpop.f32.mrb[171].mxu1  ;;  %v6531_v30 = vmul.f32 0.35355338, %v6526_v17 }
0x5f6e   : > { %v9640_v40 = vld [vmem:[%s11767_s9 + $0x14] ss:$8 sps:$4 sm:$0xff]  }
0x5f6f   : > { %6537 = vrot.lane.b32.xlu0 %v6535_v22, %s11801_s25  ;;  %v6534_v35 = vpack.c.bf16 %v6531_v30, %v6531_v30 }
0x5fe1   : > { %v6538_v23 = vpop.permute.xlu0 %6537 }
0x5fe2   : > { %v6543_v32 = vsel %vm5899_vm9, %v6538_v23, 0  ;;  %v9642_v23 = vld [vmem:[%s11769_s11 + $0x8] sm:$0xff]  }
0x5fe3   : > { %9346 = vmatpush3.bf16.xpose.msra.mxu0 %v6543_v32  ;;  %v9643_v32 = vld [vmem:[%s11769_s11 + $0x10] sm:$0xff]  }
0x5fe4   : > { %9357 = vmatprep.subr.bf16.mxu0 %v9961_v1 }
0x5fea   : > { %9348 = vmatmul.mubr.msk.bf16.vlgmr.msra.gmra.mrb[184].mxu0 %vm5899_vm9, %v6534_v35 }
0x5feb   : > { %9359 = vmatprep.mubr.msk.bf16.mxu0 %vm9962_vm0, %v9961_v1  ;;  %9358 = vmatpush3.bf16.msra.mxu0 %v6652_v57 }
0x5fec   : > { %9371 = vmatprep.subr.bf16.mxu0 %v9961_v1 }
0x6038   : > { %v6475_v19 = vpop.f32.mrb[180].mxu0 }
0x6039   : > { %v6481_v45 = vadd.f32 %v6475_v19, %v11312_v8  ;;  %v9335_v53 = vpop.f32.mrb[181].mxu0 }
0x603a   : > { %v6478_v24 = vpop.f32.mrb[182].mxu0 }
0x603b   : > { %v9336_v46 = vpop.f32.mrb[183].mxu0 }
0x603c   : > { %v6717_v46 = vrot.slane %v11221_v58, %v10147_v39 }
0x60bd   : > { %v6579_v54 = vpop.f32.mrb[184].mxu0 }
0x60be   : > { %v6580_v38 = vadd.f32 %v8378_v48, %v6579_v54  ;;  %v9349_v41 = vpop.f32.mrb[185].mxu0 }
0x60bf   : > { %v6582_v7 = vpop.f32.mrb[186].mxu0 }
0x60c0   : > { %v9350_v51 = vpop.f32.mrb[187].mxu0  ;;  %v6585_v59 = vsel %vm5946_vm10, %v6580_v38, -inf }
0x60c1   : > { %6586 = vmax.xlane.f32.xlu1 %v6585_v59  ;;  %v9644_v59 = vld [vmem:[%s11769_s11 + $0x18] sm:$0xff]  }
0x614e   : > { %v6587_v4 = vpop.xlane.xlu1 %6586 }
0x614f   : > { %v6588_v49 = vsub.f32 %v6580_v38, %v6587_v4  ;;  %v6722_v38 = vrot.slane %v11221_v58, %v10371_v63  ;;  %v9645_v4 = vld [vmem:[%s11769_s11 + $0x20] sm:$0xff]  }
0x6151   : > { %v6589_v31 = vmul.f32 1.442695, %v6588_v49  ;;  %v9646_v49 = vld [vmem:[%s11769_s11 + $0x28] sm:$0xff]  }
0x6153   : > { %9861 = vpow2.f32 %v6589_v31  ;;  %v9647_v31 = vld [vmem:[%s11769_s11 + $0x30] sm:$0xff]  }
0x615d   : > { %v9862_v8 = vpop.eup %9861 }
0x615e   : > { %v6591_v26 = vsel %vm5946_vm10, %v9862_v8, 0.0 }
0x615f   : > { %6592 = vadd.xlane.f32.xlu0 %v6591_v26  ;;  %v6728_v26 = vrot.slane %v11221_v58, %v10395_v15 }
0x6175   : > { %6597 = vrot.lane.b32.xlu0 %v6535_v22, %s9970_s15 }
0x6179   : > { %6737 = vrot.lane.b32.xlu0 %v9639_v43, %s9973_s29 }
0x617d   : > { %6739 = vrot.lane.b32.xlu0 %v11213_v16, %s9973_s29 }
0x61ec   : > { %v6593_v20 = vpop.xlane.xlu0 %6592 }
0x61ed   : > { %9863 = vrcp.f32 %v6593_v20 }
0x61f0   : > { %v6598_v33 = vpop.permute.xlu0 %6597 }
0x61f1   : > { %v6603_v56 = vsel %vm1023_vm5, %v6598_v33, 0 }
0x61f2   : > { %9352 = vmatpush3.bf16.msra.mxu1 %v6603_v56 }
0x61f3   : > { %9363 = vmatprep.subr.bf16.mxu1 %v9961_v1 }
0x61f4   : > { %v6738_v0 = vpop.permute.xlu0 %6737 }
0x61f7   : > { %v9864_v60 = vpop.eup %9863 }
0x61f8   : > { %v6595_v2 = vmul.f32 %v9864_v60, %v9862_v8  ;;  %v6740_v19 = vpop.permute.xlu0 %6739  ;;  %v9648_v8 = vld [vmem:[%s11769_s11 + $0x38] sm:$0xff]  }
0x61fa   : > { %v6596_v3 = vpack.c.bf16 %v6595_v2, %v6595_v2 }
0x61fc   : > { %9354 = vmatmul.mubr.msk.bf16.vlgmr.msra.gmra.mrb[172].mxu1 %vm722_vm4, %v6596_v3 }
0x61fd   : > { %9367 = vmatprep.mubr.msk.bf16.mxu1 %vm9962_vm0, %v9961_v1 }
0x62cf   : > { %v6639_v62 = vpop.f32.mrb[172].mxu1 }
0x62d0   : > { %v6645_v36 = vpack.c.bf16 %v6639_v62, %v6639_v62  ;;  %v9355_v42 = vpop.f32.mrb[173].mxu1 }
0x62d1   : > { %v6642_v14 = vpop.f32.mrb[174].mxu1 }
0x62d2   : > { %v9356_v61 = vpop.f32.mrb[175].mxu1  ;;  %9360 = vmatmul.mubr.msk.bf16.vlgmr.msra.gmra.mrb[188].mxu0 %vm5899_vm9, %v6645_v36  ;;  %v6889_v14 = vrot.slane %v11221_v58, %v10403_v44  ;;  %v11457_v58 = vld [vmem:[%s11767_s9 + $0x20] ss:$8 sps:$4 sm:$0xff]  }
0x62d3   : > { %9387 = vmatprep.mubr.msk.bf16.mxu0 %vm9962_vm0, %v9961_v1 }
0x63a5   : > { %v6688_v6 = vpop.f32.mrb[188].mxu0 }
0x63a6   : > { %v6694_v29 = vadd.f32 %v6688_v6, %v6481_v45  ;;  %v9361_v11 = vpop.f32.mrb[189].mxu0 }
0x63a7   : > { %v6691_v12 = vpop.f32.mrb[190].mxu0 }
0x63a8   : > { %v6695_v47 = vadd.f32 %v6694_v29, %v11198_v34  ;;  %v9362_v9 = vpop.f32.mrb[191].mxu0 }
0x63aa   : > { %v11386_v13 = vadd.f32 %v6699_v52, %v6695_v47 }
0x63ac   : > { %v6701_v25 = vsel %vm5806_vm7, %v11386_v13, 0.0 }
0x63ad   : > { %6702 = vadd.xlane.f32.xlu1 %v6701_v25 }
0x63be   : > { %6735 = vrot.lane.b32.xlu1 %v11207_v50, %s9973_s29  ;;  %v9641_v50 = vld [vmem:[%s11769_s11] sm:$0xff]  }
0x63bf   : > { %9372 = vmatpush3.bf16.msra.mxu0 %v9641_v50 }
0x63c0   : > { %9373 = vmatprep.subr.bf16.mxu0 %v9961_v1 }
0x63c3   : > { %9374 = vmatpush3.bf16.msra.mxu0 %v9642_v23 }
0x63c4   : > { %9375 = vmatprep.subr.bf16.mxu0 %v9961_v1 }
0x63c7   : > { %9376 = vmatpush3.bf16.msra.mxu0 %v9643_v32 }
0x63c8   : > { %9377 = vmatprep.subr.bf16.mxu0 %v9961_v1 }
0x63cb   : > { %9378 = vmatpush3.bf16.msra.mxu0 %v9644_v59 }
0x63cc   : > { %9379 = vmatprep.subr.bf16.mxu0 %v9961_v1 }
0x63cf   : > { %9380 = vmatpush3.bf16.msra.mxu0 %v9645_v4 }
0x63d0   : > { %9381 = vmatprep.subr.bf16.mxu0 %v9961_v1 }
0x63d3   : > { %9382 = vmatpush3.bf16.msra.mxu0 %v9646_v49 }
0x63d4   : > { %9383 = vmatprep.subr.bf16.mxu0 %v9961_v1 }
0x63d7   : > { %9384 = vmatpush3.bf16.msra.mxu0 %v9647_v31 }
0x63d8   : > { %9385 = vmatprep.subr.bf16.mxu0 %v9961_v1 }
0x63db   : > { %9386 = vmatpush3.bf16.msra.mxu0 %v9648_v8 }
0x63dc   : > { %9419 = vmatprep.subr.bf16.mxu0 %v9961_v1 }
0x643a   : > { %v6703_v16 = vpop.xlane.xlu1 %6702 }
0x643b   : > { %v6704_v55 = vmul.f32 0.03125, %v6703_v16 }
0x643d   : > { %v6705_v17 = vsub.f32 %v11386_v13, %v6704_v55 }
0x643e   : > { %v6736_v18 = vpop.permute.xlu1 %6735 }
0x643f   : > { %v6706_v21 = vmul.f32 %v6705_v17, %v6705_v17  ;;  %v6744_v22 = vsel %vm5848_vm8, %v6736_v18, %v6738_v0 }
0x6440   : > { %9364 = vmatpush3.bf16.msra.mxu1 %v6744_v22 }
0x6441   : > { %v6707_v34 = vsel %vm5806_vm7, %v6706_v21, 0.0  ;;  %9365 = vmatprep.subr.bf16.mxu1 %v9961_v1  ;;  %v11471_v21 = vld [vmem:[%s11768_s10 + $0x8] sm:$0xff] }
0x6442   : > { %6708 = vadd.xlane.f32.xlu1 %v6707_v34  ;;  %v6931_v22 = vrot.slane %v11471_v21, %v10130_v10  ;;  %v6936_v50 = vrot.slane %v11471_v21, %v10141_v37 }
0x6453   : > { %6741 = vrot.lane.b32.xlu1 %v9640_v40, %s9973_s29 }
0x64cf   : > { %v6709_v30 = vpop.xlane.xlu1 %6708 }
0x64d0   : > { %v6710_v35 = vmul.f32 0.03125, %v6709_v30 }
0x64d2   : > { %v6711_v45 = vadd.f32 1e-05, %v6710_v35  ;;  %v11485_v35 = vrot.slane %v11471_v21, %v10191_v28 }
0x64d3   : > { %v6742_v53 = vpop.permute.xlu1 %6741 }
0x64d4   : > { %9865 = vrsqrt.f32 %v6711_v45  ;;  %v6745_v24 = vsel %vm5848_vm8, %v6740_v19, %v6742_v53 }
0x64d5   : > { %9366 = vmatpush3.bf16.msra.mxu1 %v6745_v24 }
0x64d6   : > { %9391 = vmatprep.subr.bf16.mxu1 %v9961_v1 }
0x64de   : > { %v9866_v48 = vpop.eup %9865 }
0x64df   : > { %v6713_v54 = vmul.f32 %v9866_v48, %v6705_v17 }
0x64e1   : > { %v6718_v41 = vmul.f32 %v6717_v46, %v6713_v54 }
0x64e3   : > { %v6723_v7 = vadd.f32 %v6722_v38, %v6718_v41  ;;  %v8418_v38 = vld [vmem:[%s11771_s13 + $0x10] sm:$0xf] }
0x64e5   : > { %v6724_v51 = vpack.c.bf16 %v6723_v7, %v6723_v7 }
0x64e7   : > { %9368 = vmatmul.mubr.msk.bf16.vlgmr.msra.gmra.mrb[176].mxu1 %vm5848_vm8, %v6724_v51 }
0x64e8   : > { %9395 = vmatprep.mubr.msk.bf16.mxu1 %vm9962_vm0, %v9961_v1  ;;  %9392 = vmatpush3.bf16.msra.mxu1 %v11457_v58 }
0x64e9   : > { %9393 = vmatprep.subr.bf16.mxu1 %v9961_v1 }
0x65ba   : > { %v6785_v20 = vpop.f32.mrb[176].mxu1 }
0x65bb   : > { %v6786_v33 = vadd.f32 %v6785_v20, %v6728_v26  ;;  %v9369_v56 = vpop.f32.mrb[177].mxu1 }
0x65bc   : > { %v6788_v60 = vpop.f32.mrb[178].mxu1 }
0x65bd   : > { %v6792_v2 = vmul.f32 0.70710677, %v6786_v33  ;;  %v9370_v3 = vpop.f32.mrb[179].mxu1  ;;  %v6791_v57 = vmul.f32 0.5, %v6786_v33 }
0x65bf   : > { %9867 = verf.f32 %v6792_v2 }
0x65c9   : > { %v9868_v5 = vpop.eup %9867 }
0x65ca   : > { %v6794_v62 = vadd.f32 1.0, %v9868_v5 }
0x65cc   : > { %v6795_v36 = vmul.f32 %v6794_v62, %v6791_v57 }
0x65ce   : > { %v6796_v42 = vpack.c.bf16 %v6795_v36, %v6795_v36 }
0x65d0   : > { %9388 = vmatmul.mubr.bf16.vlgmr.msra.gmra.mrb[192].mxu0 %v6796_v42 }
0x65d1   : > { %9421 = vmatprep.mubr.msk.bf16.mxu0 %vm9962_vm0, %v9961_v1 }
0x66a3   : > { %v6879_v61 = vpop.f32.mrb[192].mxu0 }
0x66a4   : > { %v6885_v43 = vadd.f32 %v6879_v61, %v11386_v13  ;;  %v9389_v6 = vpop.f32.mrb[193].mxu0  ;;  %v11463_v13 = vld [vmem:[%s11767_s9 + $0x30] ss:$8 sps:$4 sm:$0xff]  }
0x66a5   : > { %v6882_v29 = vpop.f32.mrb[194].mxu0  ;;  %9394 = vmatpush3.bf16.msra.mxu1 %v11463_v13 }
0x66a6   : > { %v11448_v52 = vadd.f32 %v6889_v14, %v6885_v43  ;;  %v9390_v11 = vpop.f32.mrb[195].mxu0  ;;  %9399 = vmatprep.subr.bf16.mxu1 %v9961_v1 }
0x66a8   : > { %v6915_v12 = vsel %vm5806_vm7, %v11448_v52, 0.0 }
0x66a9   : > { %6916 = vadd.xlane.f32.xlu0 %v6915_v12 }
0x6736   : > { %v6917_v47 = vpop.xlane.xlu0 %6916 }
0x6737   : > { %v6918_v9 = vmul.f32 0.03125, %v6917_v47 }
0x6739   : > { %v6919_v25 = vsub.f32 %v11448_v52, %v6918_v9 }
0x673b   : > { %v6920_v16 = vmul.f32 %v6919_v25, %v6919_v25 }
0x673d   : > { %v6921_v55 = vsel %vm5806_vm7, %v6920_v16, 0.0 }
0x673e   : > { %6922 = vadd.xlane.f32.xlu1 %v6921_v55 }
0x67cb   : > { %v6923_v0 = vpop.xlane.xlu1 %6922 }
0x67cc   : > { %v6924_v17 = vmul.f32 0.03125, %v6923_v0 }
0x67ce   : > { %v6925_v18 = vadd.f32 1e-05, %v6924_v17 }
0x67d0   : > { %9869 = vrsqrt.f32 %v6925_v18  ;;  %v8423_v18 = vld [vmem:[%s11771_s13 + $0x14] sm:$0xf] }
0x67da   : > { %v9870_v34 = vpop.eup %9869 }
0x67db   : > { %v6927_v40 = vmul.f32 %v9870_v34, %v6919_v25 }
0x67dd   : > { %v6932_v23 = vmul.f32 %v6931_v22, %v6927_v40 }
0x67df   : > { %v6937_v32 = vadd.f32 %v6936_v50, %v6932_v23 }
0x67e1   : > { %v11477_v30 = vpack.c.bf16 %v6937_v32, %v6937_v32 }
0x67e3   : > { %9396 = vmatmul.mubr.msk.bf16.vlgmr.msra.gmra.mrb[180].mxu1 %vm5848_vm8, %v11477_v30 }
0x67e4   : > { %9401 = vmatprep.mubr.msk.bf16.mxu1 %vm9962_vm0, %v9961_v1 }
0x68b6   : > { %v6992_v10 = vpop.f32.mrb[180].mxu1 }
0x68b7   : > { %v6993_v19 = vadd.f32 %v6992_v10, %v11485_v35  ;;  %v9397_v45 = vpop.f32.mrb[181].mxu1 }
0x68b8   : > { %v6995_v53 = vpop.f32.mrb[182].mxu1 }
0x68b9   : > { %v7002_v37 = vpack.c.bf16 %v6993_v19, %v6993_v19  ;;  %v9398_v24 = vpop.f32.mrb[183].mxu1  ;;  %v6998_v48 = vmul.f32 0.35355338, %v6993_v19 }
0x68bb   : > { %7004 = vrot.lane.b32.xlu0 %v7002_v37, %s11801_s25  ;;  %v7001_v54 = vpack.c.bf16 %v6998_v48, %v6998_v48 }
0x68bf   : > { %7115 = vrot.lane.b32.xlu0 %v11457_v58, %s11802_s26 }
0x68c3   : > { %7117 = vrot.lane.b32.xlu0 %v11463_v13, %s11802_s26 }
0x68c7   : > { %7122 = vrot.lane.b32.xlu0 %v11485_v35, %s11802_s26  ;;  %s11716_s26 = scalar_lea.hbm %s11772_s14, %s8456_s19 }
0x692d   : > { %v7005_v28 = vpop.permute.xlu0 %7004 }
0x692e   : > { %v7010_v46 = vsel %vm5899_vm9, %v7005_v28, 0 }
0x692f   : > { %9400 = vmatpush3.bf16.xpose.msra.mxu1 %v7010_v46 }
0x6930   : > { %9405 = vmatprep.subr.bf16.mxu1 %v9961_v1 }
0x6931   : > { %v7116_v57 = vpop.permute.xlu0 %7115 }
0x6935   : > { %v7118_v36 = vpop.permute.xlu0 %7117 }
0x6936   : > { %9402 = vmatmul.mubr.msk.bf16.vlgmr.msra.gmra.mrb[184].mxu1 %vm5899_vm9, %v7001_v54  ;;  %v8421_v54 = vld [vmem:[%s11770_s12 + $0x10] sm:$0xf] }
0x6937   : > { %9407 = vmatprep.mubr.msk.bf16.mxu1 %vm9962_vm0, %v9961_v1 }
0x6939   : > { %v7123_v6 = vpop.permute.xlu0 %7122 }
0x6a09   : > { %v7046_v41 = vpop.f32.mrb[184].mxu1 }
0x6a0a   : > { %v7047_v7 = vadd.f32 %v8418_v38, %v7046_v41  ;;  %v9403_v51 = vpop.f32.mrb[185].mxu1 }
0x6a0b   : > { %v7049_v59 = vpop.f32.mrb[186].mxu1 }
0x6a0c   : > { %v9404_v4 = vpop.f32.mrb[187].mxu1  ;;  %v7052_v49 = vsel %vm5946_vm10, %v7047_v7, -inf  ;;  %v8426_v59 = vld [vmem:[%s11770_s12 + $0x14] sm:$0xf] }
0x6a0d   : > { %7053 = vmax.xlane.f32.xlu1 %v7052_v49  ;;  %v7286_v4 = vsel %vm6179_vm11, %v8426_v59, 0 }
0x6a9a   : > { %v7054_v31 = vpop.xlane.xlu1 %7053 }
0x6a9b   : > { %v7055_v8 = vsub.f32 %v7047_v7, %v7054_v31  ;;  %v7332_v7 = vsel %vm6179_vm11, %v8421_v54, 0 }
0x6a9d   : > { %v7056_v26 = vmul.f32 1.442695, %v7055_v8 }
0x6a9f   : > { %9871 = vpow2.f32 %v7056_v26 }
0x6aa9   : > { %v9872_v20 = vpop.eup %9871 }
0x6aaa   : > { %v7058_v33 = vsel %vm5946_vm10, %v9872_v20, 0.0 }
0x6aab   : > { %7059 = vadd.xlane.f32.xlu1 %v7058_v33 }
0x6abc   : > { %7064 = vrot.lane.b32.xlu1 %v7002_v37, %s9970_s15 }
0x6b38   : > { %v7060_v56 = vpop.xlane.xlu1 %7059 }
0x6b39   : > { %9873 = vrcp.f32 %v7060_v56 }
0x6b3c   : > { %v7065_v60 = vpop.permute.xlu1 %7064 }
0x6b3d   : > { %v7070_v2 = vsel %vm1023_vm5, %v7065_v60, 0 }
0x6b3e   : > { %9406 = vmatpush3.bf16.msra.mxu1 %v7070_v2 }
0x6b3f   : > { %9411 = vmatprep.subr.bf16.mxu1 %v9961_v1 }
0x6b43   : > { %v9874_v3 = vpop.eup %9873 }
0x6b44   : > { %v7062_v5 = vmul.f32 %v9874_v3, %v9872_v20 }
0x6b46   : > { %v7063_v62 = vpack.c.bf16 %v7062_v5, %v7062_v5 }
0x6b48   : > { %9408 = vmatmul.mubr.msk.bf16.vlgmr.msra.gmra.mrb[188].mxu1 %vm722_vm4, %v7063_v62 }
0x6b49   : > { %9412 = vmatpush3.bf16.msra.mxu1 %v7116_v57  ;;  %9415 = vmatprep.mubr.msk.bf16.mxu1 %vm9962_vm0, %v9961_v1 }
0x6b4a   : > { %9413 = vmatprep.subr.bf16.mxu1 %v9961_v1 }
0x6b4d   : > { %9414 = vmatpush3.bf16.msra.mxu1 %v7118_v36 }
0x6b4e   : > { %9425 = vmatprep.subr.bf16.mxu1 %v9961_v1 }
0x6b50   : > { %9416 = vmatmul.mubr.msk.bf16.vlgmr.msra.gmra.mrb[192].mxu1 %vm5848_vm8, %v11477_v30 }
0x6b51   : > { %9427 = vmatprep.mubr.msk.bf16.mxu1 %vm9962_vm0, %v9961_v1 }
0x6c1b   : > { %v7106_v42 = vpop.f32.mrb[188].mxu1 }
0x6c1c   : > { %v9409_v14 = vpop.f32.mrb[189].mxu1  ;;  %v7112_v51 = vpack.c.bf16 %v7106_v42, %v7106_v42 }
0x6c1d   : > { %v7109_v61 = vpop.f32.mrb[190].mxu1 }
0x6c1e   : > { %v9410_v43 = vpop.f32.mrb[191].mxu1 }
0x6c23   : > { %v7159_v29 = vpop.f32.mrb[192].mxu1 }
0x6c24   : > { %v7160_v11 = vadd.f32 %v7159_v29, %v7123_v6  ;;  %v9417_v12 = vpop.f32.mrb[193].mxu1 }
0x6c25   : > { %v7162_v47 = vpop.f32.mrb[194].mxu1 }
0x6c26   : > { %v7169_v9 = vpack.c.bf16 %v7160_v11, %v7160_v11  ;;  %v9418_v25 = vpop.f32.mrb[195].mxu1  ;;  %v7165_v0 = vmul.f32 0.35355338, %v7160_v11 }
0x6c28   : > { %7171 = vrot.lane.b32.xlu1 %v7169_v9, %s11801_s25  ;;  %v7168_v17 = vpack.c.bf16 %v7165_v0, %v7165_v0  ;;  %v8430_v0 = vld [vmem:[%s11771_s13 + $0x18] sm:$0xf] }
0x6c9a   : > { %v7172_v16 = vpop.permute.xlu1 %7171 }
0x6c9b   : > { %v7177_v55 = vsel %vm5899_vm9, %v7172_v16, 0 }
0x6c9c   : > { %9420 = vmatpush3.bf16.xpose.msra.mxu0 %v7177_v55 }
0x6c9d   : > { %9431 = vmatprep.subr.bf16.mxu0 %v9961_v1 }
0x6ca3   : > { %9422 = vmatmul.mubr.msk.bf16.vlgmr.msra.gmra.mrb[196].mxu0 %vm5899_vm9, %v7168_v17 }
0x6ca4   : > { %9433 = vmatprep.mubr.msk.bf16.mxu0 %vm9962_vm0, %v9961_v1  ;;  %9432 = vmatpush3.bf16.msra.mxu0 %v7286_v4 }
0x6ca5   : > { %9443 = vmatprep.subr.bf16.mxu0 %v9961_v1 }
0x6d76   : > { %v7213_v22 = vpop.f32.mrb[196].mxu0 }
0x6d77   : > { %v7214_v34 = vadd.f32 %v8423_v18, %v7213_v22  ;;  %v9423_v40 = vpop.f32.mrb[197].mxu0 }
0x6d78   : > { %v7216_v50 = vpop.f32.mrb[198].mxu0 }
0x6d79   : > { %v9424_v23 = vpop.f32.mrb[199].mxu0  ;;  %v7219_v32 = vsel %vm5946_vm10, %v7214_v34, -inf }
0x6d7a   : > { %7220 = vmax.xlane.f32.xlu0 %v7219_v32 }
0x6d90   : > { %7231 = vrot.lane.b32.xlu0 %v7169_v9, %s9970_s15 }
0x6d94   : > { %7376 = vrot.lane.b32.xlu0 %v11463_v13, %s11804_s20 }
0x6e07   : > { %v7221_v10 = vpop.xlane.xlu0 %7220 }
0x6e08   : > { %v7222_v19 = vsub.f32 %v7214_v34, %v7221_v10 }
0x6e0a   : > { %v7223_v45 = vmul.f32 1.442695, %v7222_v19 }
0x6e0b   : > { %v7232_v53 = vpop.permute.xlu0 %7231 }
0x6e0c   : > { %9875 = vpow2.f32 %v7223_v45  ;;  %v7237_v37 = vsel %vm1023_vm5, %v7232_v53, 0 }
0x6e0d   : > { %9426 = vmatpush3.bf16.msra.mxu1 %v7237_v37 }
0x6e0e   : > { %9437 = vmatprep.subr.bf16.mxu1 %v9961_v1 }
0x6e0f   : > { %v7377_v56 = vpop.permute.xlu0 %7376 }
0x6e16   : > { %v9876_v24 = vpop.eup %9875 }
0x6e17   : > { %v7225_v28 = vsel %vm5946_vm10, %v9876_v24, 0.0 }
0x6e18   : > { %7226 = vadd.xlane.f32.xlu1 %v7225_v28 }
0x6e29   : > { %7374 = vrot.lane.b32.xlu1 %v11457_v58, %s11804_s20 }
0x6e2d   : > { %7380 = vrot.lane.b32.xlu1 %v11485_v35, %s11804_s20  ;;  %s8166_s20 = sshll.u32 %s459_s28, 2 }
0x6e2e   : > { %s461_s21 = scalar_lea.vmem [#allocation2], %s8166_s20 }
0x6e2f   : > { %s8103_s22 = sshll.u32 %s461_s21, 4  ;;  %s11718_s22 = int_to_ptr.vmem [resolvable:$true] %s8103_s22 }
0x6ea5   : > { %v7227_v46 = vpop.xlane.xlu1 %7226 }
0x6ea6   : > { %9877 = vrcp.f32 %v7227_v46 }
0x6ea9   : > { %v7375_v26 = vpop.permute.xlu1 %7374 }
0x6ead   : > { %v7381_v61 = vpop.permute.xlu1 %7380 }
0x6eb0   : > { %v9878_v48 = vpop.eup %9877 }
0x6eb1   : > { %v7229_v38 = vmul.f32 %v9878_v48, %v9876_v24 }
0x6eb3   : > { %v7230_v41 = vpack.c.bf16 %v7229_v38, %v7229_v38  ;;  %v8433_v38 = vld [vmem:[%s11770_s12 + $0x18] sm:$0xf] }
0x6eb5   : > { %9428 = vmatmul.mubr.msk.bf16.vlgmr.msra.gmra.mrb[196].mxu1 %vm722_vm4, %v7230_v41  ;;  %v7544_v41 = vsel %vm6179_vm11, %v8433_v38, 0 }
0x6eb6   : > { %9438 = vmatpush3.bf16.msra.mxu1 %v7332_v7  ;;  %9439 = vmatprep.mubr.msk.bf16.mxu1 %vm9962_vm0, %v9961_v1 }
0x6eb7   : > { %9451 = vmatprep.subr.bf16.mxu1 %v9961_v1 }
0x6ebd   : > { %9440 = vmatmul.mubr.msk.bf16.vlgmr.msra.gmra.mrb[200].mxu1 %vm5899_vm9, %v7112_v51 }
0x6ebe   : > { %9453 = vmatprep.mubr.msk.bf16.mxu1 %vm9962_vm0, %v9961_v1 }
0x6f88   : > { %v7273_v49 = vpop.f32.mrb[196].mxu1 }
0x6f89   : > { %v7279_v31 = vpack.c.bf16 %v7273_v49, %v7273_v49  ;;  %v9429_v8 = vpop.f32.mrb[197].mxu1 }
0x6f8a   : > { %v7276_v20 = vpop.f32.mrb[198].mxu1 }
0x6f8b   : > { %v9430_v33 = vpop.f32.mrb[199].mxu1  ;;  %9434 = vmatmul.mubr.msk.bf16.vlgmr.msra.gmra.mrb[200].mxu0 %vm5899_vm9, %v7279_v31 }
0x6f8c   : > { %9444 = vmatpush3.bf16.msra.mxu0 %v7375_v26  ;;  %9447 = vmatprep.mubr.msk.bf16.mxu0 %vm9962_vm0, %v9961_v1 }
0x6f8d   : > { %9445 = vmatprep.subr.bf16.mxu0 %v9961_v1 }
0x6f90   : > { %v7368_v60 = vpop.f32.mrb[200].mxu1  ;;  %9446 = vmatpush3.bf16.msra.mxu0 %v7377_v56 }
0x6f91   : > { %v9441_v2 = vpop.f32.mrb[201].mxu1  ;;  %9457 = vmatprep.subr.bf16.mxu0 %v9961_v1 }
0x6f92   : > { %v7371_v3 = vpop.f32.mrb[202].mxu1 }
0x6f93   : > { %v9442_v5 = vpop.f32.mrb[203].mxu1  ;;  %9448 = vmatmul.mubr.msk.bf16.vlgmr.msra.gmra.mrb[204].mxu0 %vm5848_vm8, %v11477_v30 }
0x6f94   : > { %9459 = vmatprep.mubr.msk.bf16.mxu0 %vm9962_vm0, %v9961_v1 }
0x705e   : > { %v7322_v57 = vpop.f32.mrb[200].mxu0 }
0x705f   : > { %v11562_v62 = vadd.f32 %v7368_v60, %v7322_v57  ;;  %v9435_v36 = vpop.f32.mrb[201].mxu0 }
0x7060   : > { %v7325_v42 = vpop.f32.mrb[202].mxu0 }
0x7061   : > { %v9436_v14 = vpop.f32.mrb[203].mxu0 }
0x7066   : > { %v7417_v43 = vpop.f32.mrb[204].mxu0 }
0x7067   : > { %v7418_v6 = vadd.f32 %v7417_v43, %v7381_v61  ;;  %v9449_v29 = vpop.f32.mrb[205].mxu0  ;;  %v8436_v43 = vld [vmem:[%s11771_s13 + $0x1c] sm:$0xf] }
0x7068   : > { %v7420_v11 = vpop.f32.mrb[206].mxu0 }
0x7069   : > { %v7427_v12 = vpack.c.bf16 %v7418_v6, %v7418_v6  ;;  %v9450_v47 = vpop.f32.mrb[207].mxu0  ;;  %v7423_v16 = vmul.f32 0.35355338, %v7418_v6 }
0x706b   : > { %7429 = vrot.lane.b32.xlu0 %v7427_v12, %s11801_s25  ;;  %v7426_v55 = vpack.c.bf16 %v7423_v16, %v7423_v16 }
0x70dd   : > { %v7430_v9 = vpop.permute.xlu0 %7429 }
0x70de   : > { %v7435_v25 = vsel %vm5899_vm9, %v7430_v9, 0 }
0x70df   : > { %9452 = vmatpush3.bf16.xpose.msra.mxu1 %v7435_v25 }
0x70e0   : > { %9463 = vmatprep.subr.bf16.mxu1 %v9961_v1 }
0x70e6   : > { %9454 = vmatmul.mubr.msk.bf16.vlgmr.msra.gmra.mrb[204].mxu1 %vm5899_vm9, %v7426_v55 }
0x70e7   : > { %9465 = vmatprep.mubr.msk.bf16.mxu1 %vm9962_vm0, %v9961_v1  ;;  %9464 = vmatpush3.bf16.msra.mxu1 %v7544_v41 }
0x70e8   : > { %9477 = vmatprep.subr.bf16.mxu1 %v9961_v1 }
0x71b9   : > { %v7471_v17 = vpop.f32.mrb[204].mxu1 }
0x71ba   : > { %v7472_v18 = vadd.f32 %v8430_v0, %v7471_v17  ;;  %v9455_v22 = vpop.f32.mrb[205].mxu1 }
0x71bb   : > { %v7474_v34 = vpop.f32.mrb[206].mxu1 }
0x71bc   : > { %v9456_v40 = vpop.f32.mrb[207].mxu1  ;;  %v7477_v50 = vsel %vm5946_vm10, %v7472_v18, -inf }
0x71bd   : > { %7478 = vmax.xlane.f32.xlu1 %v7477_v50 }
0x71ce   : > { %7587 = vrot.lane.b32.xlu1 %v11457_v58, %s11807_s18 }
0x71d2   : > { %7589 = vrot.lane.b32.xlu1 %v11463_v13, %s11807_s18 }
0x724a   : > { %v7479_v23 = vpop.xlane.xlu1 %7478 }
0x724b   : > { %v7480_v32 = vsub.f32 %v7472_v18, %v7479_v23  ;;  %v8439_v23 = vld [vmem:[%s11770_s12 + $0x1c] sm:$0xf] }
0x724d   : > { %v7481_v10 = vmul.f32 1.442695, %v7480_v32  ;;  %v7757_v32 = vsel %vm6179_vm11, %v8439_v23, 0  ;;  %v7993_v23 = vrot.slane %v11471_v21, %v10403_v44 }
0x724e   : > { %v7588_v48 = vpop.permute.xlu1 %7587 }
0x724f   : > { %9879 = vpow2.f32 %v7481_v10 }
0x7259   : > { %v9880_v19 = vpop.eup %9879 }
0x725a   : > { %v7483_v45 = vsel %vm5946_vm10, %v9880_v19, 0.0 }
0x725b   : > { %7484 = vadd.xlane.f32.xlu0 %v7483_v45 }
0x7271   : > { %7489 = vrot.lane.b32.xlu0 %v7427_v12, %s9970_s15 }
0x7275   : > { %7593 = vrot.lane.b32.xlu0 %v11485_v35, %s11807_s18  ;;  %v7590_v35 = vpop.permute.xlu1 %7589 }
0x72e8   : > { %v7485_v53 = vpop.xlane.xlu0 %7484 }
0x72e9   : > { %9881 = vrcp.f32 %v7485_v53 }
0x72ec   : > { %v7490_v37 = vpop.permute.xlu0 %7489 }
0x72ed   : > { %v7495_v24 = vsel %vm1023_vm5, %v7490_v37, 0 }
0x72ee   : > { %9458 = vmatpush3.bf16.msra.mxu0 %v7495_v24 }
0x72ef   : > { %9469 = vmatprep.subr.bf16.mxu0 %v9961_v1 }
0x72f3   : > { %v9882_v28 = vpop.eup %9881 }
0x72f4   : > { %v7487_v46 = vmul.f32 %v9882_v28, %v9880_v19 }
0x72f6   : > { %v7488_v54 = vpack.c.bf16 %v7487_v46, %v7487_v46  ;;  %v7804_v46 = vrot.slane %v11471_v21, %v10347_v27 }
0x72f8   : > { %9460 = vmatmul.mubr.msk.bf16.vlgmr.msra.gmra.mrb[208].mxu0 %vm722_vm4, %v7488_v54 }
0x72f9   : > { %9470 = vmatpush3.bf16.msra.mxu0 %v7588_v48  ;;  %9473 = vmatprep.mubr.msk.bf16.mxu0 %vm9962_vm0, %v9961_v1 }
0x72fa   : > { %9471 = vmatprep.subr.bf16.mxu0 %v9961_v1 }
0x72fd   : > { %9472 = vmatpush3.bf16.msra.mxu0 %v7590_v35 }
0x72fe   : > { %9483 = vmatprep.subr.bf16.mxu0 %v9961_v1 }
0x7300   : > { %9474 = vmatmul.mubr.msk.bf16.vlgmr.msra.gmra.mrb[212].mxu0 %vm5848_vm8, %v11477_v30  ;;  %v7594_v30 = vpop.permute.xlu0 %7593 }
0x7301   : > { %9485 = vmatprep.mubr.msk.bf16.mxu0 %vm9962_vm0, %v9961_v1 }
0x73cb   : > { %v7531_v7 = vpop.f32.mrb[208].mxu0 }
0x73cc   : > { %v7537_v51 = vpack.c.bf16 %v7531_v7, %v7531_v7  ;;  %v9461_v59 = vpop.f32.mrb[209].mxu0 }
0x73cd   : > { %v7534_v4 = vpop.f32.mrb[210].mxu0 }
0x73ce   : > { %v9462_v49 = vpop.f32.mrb[211].mxu0  ;;  %9466 = vmatmul.mubr.msk.bf16.vlgmr.msra.gmra.mrb[208].mxu1 %vm5899_vm9, %v7537_v51  ;;  %v9653_v51 = vld [vmem:[%s11767_s9 + $0x24] ss:$8 sps:$4 sm:$0xff]  }
0x73cf   : > { %9479 = vmatprep.mubr.msk.bf16.mxu1 %vm9962_vm0, %v9961_v1 }
0x73d3   : > { %v7630_v31 = vpop.f32.mrb[212].mxu0 }
0x73d4   : > { %v7631_v8 = vadd.f32 %v7630_v31, %v7594_v30  ;;  %v9475_v26 = vpop.f32.mrb[213].mxu0 }
0x73d5   : > { %v7633_v20 = vpop.f32.mrb[214].mxu0  ;;  %v9657_v26 = vld [vmem:[%s11769_s11 + $0x50] sm:$0xff]  }
0x73d6   : > { %v7640_v33 = vpack.c.bf16 %v7631_v8, %v7631_v8  ;;  %v9476_v56 = vpop.f32.mrb[215].mxu0  ;;  %v7636_v3 = vmul.f32 0.35355338, %v7631_v8  ;;  %v9656_v8 = vld [vmem:[%s11769_s11 + $0x48] sm:$0xff]  }
0x73d8   : > { %7642 = vrot.lane.b32.xlu1 %v7640_v33, %s11801_s25  ;;  %v7639_v5 = vpack.c.bf16 %v7636_v3, %v7636_v3  ;;  %s9897_s25 = scalar_lea.vmem %s11718_s22, 64 }
0x73d9   : > { %p9898_p11 = scmp.ne.s32.totalorder %s11718_s22, %s9897_s25 }
0x73db   : > { %p9899_p12 = pnand %p9898_p11, %p10088_p5 }
0x73dd   : > { %p9900_p13 = pneg %p9899_p12 }
0x744a   : > { %v7643_v60 = vpop.permute.xlu1 %7642 }
0x744b   : > { %v7648_v2 = vsel %vm5899_vm9, %v7643_v60, 0 }
0x744c   : > { %9478 = vmatpush3.bf16.xpose.msra.mxu1 %v7648_v2 }
0x744d   : > { %9489 = vmatprep.subr.bf16.mxu1 %v9961_v1 }
0x7453   : > { %9480 = vmatmul.mubr.msk.bf16.vlgmr.msra.gmra.mrb[212].mxu1 %vm5899_vm9, %v7639_v5 }
0x7454   : > { %9491 = vmatprep.mubr.msk.bf16.mxu1 %vm9962_vm0, %v9961_v1  ;;  %9490 = vmatpush3.bf16.msra.mxu1 %v7757_v32 }
0x7455   : > { %9503 = vmatprep.subr.bf16.mxu1 %v9961_v1 }
0x74a1   : > { %v7580_v57 = vpop.f32.mrb[208].mxu1 }
0x74a2   : > { %v7586_v36 = vadd.f32 %v7580_v57, %v11562_v62  ;;  %v9467_v42 = vpop.f32.mrb[209].mxu1 }
0x74a3   : > { %v7583_v14 = vpop.f32.mrb[210].mxu1 }
0x74a4   : > { %v9468_v61 = vpop.f32.mrb[211].mxu1 }
0x74a5   : > { %v7827_v61 = vrot.slane %v11471_v21, %v10371_v63  ;;  %v9660_v63 = vld [vmem:[%s11769_s11 + $0x68] sm:$0xff]  }
0x7526   : > { %v7684_v6 = vpop.f32.mrb[212].mxu1 }
0x7527   : > { %v7685_v29 = vadd.f32 %v8436_v43, %v7684_v6  ;;  %v9481_v11 = vpop.f32.mrb[213].mxu1 }
0x7528   : > { %v7687_v12 = vpop.f32.mrb[214].mxu1  ;;  %v9658_v11 = vld [vmem:[%s11769_s11 + $0x58] sm:$0xff]  }
0x7529   : > { %v9482_v47 = vpop.f32.mrb[215].mxu1  ;;  %v7690_v9 = vsel %vm5946_vm10, %v7685_v29, -inf  ;;  %v9661_v12 = vld [vmem:[%s11769_s11 + $0x70] sm:$0xff]  }
0x752a   : > { %7691 = vmax.xlane.f32.xlu0 %v7690_v9  ;;  %v9662_v47 = vld [vmem:[%s11769_s11 + $0x78] sm:$0xff]   ;;  %v7833_v9 = vrot.slane %v11471_v21, %v10395_v15 }
0x7540   : > { %7702 = vrot.lane.b32.xlu0 %v7640_v33, %s9970_s15 }
0x7544   : > { %7842 = vrot.lane.b32.xlu0 %v9653_v51, %s9973_s29 }
0x7548   : > { %7844 = vrot.lane.b32.xlu0 %v11463_v13, %s9973_s29  ;;  %v9655_v13 = vld [vmem:[%s11769_s11 + $0x40] sm:$0xff]  }
0x75b7   : > { %v7692_v25 = vpop.xlane.xlu0 %7691 }
0x75b8   : > { %v7693_v16 = vsub.f32 %v7685_v29, %v7692_v25 }
0x75ba   : > { %v7694_v62 = vmul.f32 1.442695, %v7693_v16 }
0x75bb   : > { %v7703_v55 = vpop.permute.xlu0 %7702 }
0x75bc   : > { %9883 = vpow2.f32 %v7694_v62  ;;  %v7708_v0 = vsel %vm1023_vm5, %v7703_v55, 0 }
0x75bd   : > { %9484 = vmatpush3.bf16.msra.mxu0 %v7708_v0 }
0x75be   : > { %9495 = vmatprep.subr.bf16.mxu0 %v9961_v1 }
0x75c6   : > { %v9884_v17 = vpop.eup %9883 }
0x75c7   : > { %v7696_v18 = vsel %vm5946_vm10, %v9884_v17, 0.0 }
0x75c8   : > { %7697 = vadd.xlane.f32.xlu1 %v7696_v18 }
0x7655   : > { %v7698_v22 = vpop.xlane.xlu1 %7697 }
0x7656   : > { %9885 = vrcp.f32 %v7698_v22 }
0x7660   : > { %v9886_v34 = vpop.eup %9885 }
0x7661   : > { %v7700_v40 = vmul.f32 %v9886_v34, %v9884_v17 }
0x7663   : > { %v7701_v50 = vpack.c.bf16 %v7700_v40, %v7700_v40 }
0x7665   : > { %9486 = vmatmul.mubr.msk.bf16.vlgmr.msra.gmra.mrb[216].mxu0 %vm722_vm4, %v7701_v50 }
0x7666   : > { %9499 = vmatprep.mubr.msk.bf16.mxu0 %vm9962_vm0, %v9961_v1 }
0x7738   : > { %v7744_v10 = vpop.f32.mrb[216].mxu0 }
0x7739   : > { %v7750_v19 = vpack.c.bf16 %v7744_v10, %v7744_v10  ;;  %v9487_v45 = vpop.f32.mrb[217].mxu0 }
0x773a   : > { %v7747_v53 = vpop.f32.mrb[218].mxu0 }
0x773b   : > { %v9488_v37 = vpop.f32.mrb[219].mxu0  ;;  %9492 = vmatmul.mubr.msk.bf16.vlgmr.msra.gmra.mrb[216].mxu1 %vm5899_vm9, %v7750_v19 }
0x773c   : > { %9519 = vmatprep.mubr.msk.bf16.mxu1 %vm9962_vm0, %v9961_v1  ;;  %9504 = vmatpush3.bf16.msra.mxu1 %v9655_v13 }
0x773d   : > { %9505 = vmatprep.subr.bf16.mxu1 %v9961_v1 }
0x7740   : > { %9506 = vmatpush3.bf16.msra.mxu1 %v9656_v8 }
0x7741   : > { %9507 = vmatprep.subr.bf16.mxu1 %v9961_v1 }
0x7744   : > { %9508 = vmatpush3.bf16.msra.mxu1 %v9657_v26 }
0x7745   : > { %9509 = vmatprep.subr.bf16.mxu1 %v9961_v1 }
0x7748   : > { %9510 = vmatpush3.bf16.msra.mxu1 %v9658_v11 }
0x7749   : > { %9511 = vmatprep.subr.bf16.mxu1 %v9961_v1 }
0x780e   : > { %v7793_v24 = vpop.f32.mrb[216].mxu1 }
0x780f   : > { %v7799_v28 = vadd.f32 %v7793_v24, %v7586_v36  ;;  %v9493_v48 = vpop.f32.mrb[217].mxu1  ;;  %v7822_v36 = vrot.slane %v11471_v21, %v10147_v39  ;;  %v9659_v39 = vld [vmem:[%s11769_s11 + $0x60] sm:$0xff]  }
0x7810   : > { %v7796_v54 = vpop.f32.mrb[218].mxu1  ;;  %9512 = vmatpush3.bf16.msra.mxu1 %v9659_v39  ;;  %v9663_v21 = vld [vmem:[%s11760_s2 + $0x20] sm:$0xff]  }
0x7811   : > { %v7800_v35 = vadd.f32 %v7799_v28, %v11448_v52  ;;  %v9494_v38 = vpop.f32.mrb[219].mxu1  ;;  %v9654_v52 = vld [vmem:[%s11767_s9 + $0x34] ss:$8 sps:$4 sm:$0xff]   ;;  %9513 = vmatprep.subr.bf16.mxu1 %v9961_v1 }
0x7812   : > { %7846 = vrot.lane.b32.xlu0 %v9654_v52, %s9973_s29  ;;  %v9664_v38 = vld [vmem:[%s11760_s2 + $0x28] sm:$0xff]   ;;  %v9896_v52 = vld [vmem:[%s11759_s1 + $0x10] sm:$0xff] }
0x7813   : > { %v11630_v41 = vadd.f32 %v7804_v46, %v7800_v35 }
0x7814   : > { %9514 = vmatpush3.bf16.msra.mxu1 %v9660_v63 }
0x7815   : > { %v7806_v7 = vsel %vm5806_vm7, %v11630_v41, 0.0  ;;  %9515 = vmatprep.subr.bf16.mxu1 %v9961_v1 }
0x7816   : > { %7807 = vadd.xlane.f32.xlu1 %v7806_v7 }
0x7818   : > { %9516 = vmatpush3.bf16.msra.mxu1 %v9661_v12 }
0x7819   : > { %9517 = vmatprep.subr.bf16.mxu1 %v9961_v1 }
0x781c   : > { %9518 = vmatpush3.bf16.msra.mxu1 %v9662_v47 }
0x78a3   : > { %v7808_v59 = vpop.xlane.xlu1 %7807 }
0x78a4   : > { %v7809_v4 = vmul.f32 0.03125, %v7808_v59  ;;  %v8011_v59 = vrot.slane %v9896_v52, %v10347_v27  ;;  %v8031_v27 = vrot.slane %v9896_v52, %v10403_v44 }
0x78a6   : > { %v7810_v49 = vsub.f32 %v11630_v41, %v7809_v4 }
0x78a8   : > { %v7811_v30 = vmul.f32 %v7810_v49, %v7810_v49 }
0x78aa   : > { %v7812_v31 = vsel %vm5806_vm7, %v7811_v30, 0.0 }
0x78ab   : > { %7813 = vadd.xlane.f32.xlu1 %v7812_v31 }
0x78bc   : > { %7840 = vrot.lane.b32.xlu1 %v11457_v58, %s9973_s29  ;;  %v7843_v58 = vpop.permute.xlu0 %7842  ;;  %s9901_s29 = sshll.u32 %s9974_s27, 4  ;;  %s9902_s29 = int_to_ptr.vmem [resolvable:$false] %s9901_s29 }
0x78bd   : > { %s9903_s15 = scalar_lea.vmem %s9902_s29, 128  ;;  %p9904_p0 = scmp.lt.s32.totalorder %s11718_s22, %s9902_s29 }
0x78be   : > { %p9905_p1 = scmp.lt.s32.totalorder %s9903_s15, %s9897_s25 }
0x78c0   : > { %v7845_v20 = vpop.permute.xlu0 %7844  ;;  %p9906_p2 = por %p9905_p1, %p9904_p0 }
0x78c2   : > { %p9907_p3 = pnand %p9906_p2, %p9900_p13 }
0x78c4   : > { %v7847_v3 = vpop.permute.xlu0 %7846 }
0x78c5   : > { %v7849_v57 = vsel %vm5848_vm8, %v7845_v20, %v7847_v3 }
0x7938   : > { %v7814_v33 = vpop.xlane.xlu1 %7813 }
0x7939   : > { %v7815_v56 = vmul.f32 0.03125, %v7814_v33 }
0x793b   : > { %v7816_v60 = vadd.f32 1e-05, %v7815_v56 }
0x793c   : > { %v7841_v2 = vpop.permute.xlu1 %7840 }
0x793d   : > { %9887 = vrsqrt.f32 %v7816_v60  ;;  %v7848_v5 = vsel %vm5848_vm8, %v7841_v2, %v7843_v58 }
0x793e   : > { %9496 = vmatpush3.bf16.msra.mxu0 %v7848_v5 }
0x793f   : > { %9497 = vmatprep.subr.bf16.mxu0 %v9961_v1 }
0x7942   : > { %9498 = vmatpush3.bf16.msra.mxu0 %v7849_v57 }
0x7943   : > { %9523 = vmatprep.subr.bf16.mxu0 %v9961_v1 }
0x7947   : > { %v9888_v42 = vpop.eup %9887 }
0x7948   : > { %v7818_v14 = vmul.f32 %v9888_v42, %v7810_v49  ;;  %v8016_v49 = vrot.slane %v9896_v52, %v10395_v15 }
0x794a   : > { %v7823_v43 = vmul.f32 %v7822_v36, %v7818_v14 }
0x794c   : > { %v7828_v6 = vadd.f32 %v7827_v61, %v7823_v43 }
0x794e   : > { %v7829_v29 = vpack.c.bf16 %v7828_v6, %v7828_v6 }
0x7950   : > { %9500 = vmatmul.mubr.msk.bf16.vlgmr.msra.gmra.mrb[220].mxu0 %vm5848_vm8, %v7829_v29 }
0x7951   : > { %9527 = vmatprep.mubr.msk.bf16.mxu0 %vm9962_vm0, %v9961_v1  ;;  %9524 = vmatpush3.bf16.msra.mxu0 %v9663_v21 }
0x7952   : > { %9525 = vmatprep.subr.bf16.mxu0 %v9961_v1 }
0x7955   : > { %9526 = vmatpush3.bf16.msra.mxu0 %v9664_v38 }
0x7a23   : > { %v7889_v25 = vpop.f32.mrb[220].mxu0 }
0x7a24   : > { %v7890_v16 = vadd.f32 %v7889_v25, %v7833_v9  ;;  %v9501_v62 = vpop.f32.mrb[221].mxu0 }
0x7a25   : > { %v7892_v55 = vpop.f32.mrb[222].mxu0 }
0x7a26   : > { %v7896_v0 = vmul.f32 0.70710677, %v7890_v16  ;;  %v9502_v17 = vpop.f32.mrb[223].mxu0  ;;  %v7895_v22 = vmul.f32 0.5, %v7890_v16 }
0x7a28   : > { %9889 = verf.f32 %v7896_v0 }
0x7a32   : > { %v9890_v18 = vpop.eup %9889 }
0x7a33   : > { %v7898_v34 = vadd.f32 1.0, %v9890_v18 }
0x7a35   : > { %v7899_v40 = vmul.f32 %v7898_v34, %v7895_v22 }
0x7a37   : > { %v7900_v50 = vpack.c.bf16 %v7899_v40, %v7899_v40 }
0x7a39   : > { %9520 = vmatmul.mubr.bf16.vlgmr.msra.gmra.mrb[220].mxu1 %v7900_v50 }
0x7b0c   : > { %v7983_v32 = vpop.f32.mrb[220].mxu1 }
0x7b0d   : > { %v7989_v10 = vadd.f32 %v7983_v32, %v11630_v41  ;;  %v9521_v19 = vpop.f32.mrb[221].mxu1 }
0x7b0e   : > { %v7986_v45 = vpop.f32.mrb[222].mxu1 }
0x7b0f   : > { %v7994_v53 = vadd.f32 %v7993_v23, %v7989_v10  ;;  %v9522_v37 = vpop.f32.mrb[223].mxu1 }
0x7b11   : > { %v7995_v24 = vsel %vm5806_vm7, %v7994_v53, 0.0 }
0x7b12   : > { %7996 = vadd.xlane.f32.xlu1 %v7995_v24 }
0x7b9f   : > { %v7997_v28 = vpop.xlane.xlu1 %7996 }
0x7ba0   : > { %v7998_v46 = vmul.f32 0.03125, %v7997_v28 }
0x7ba2   : > { %v7999_v48 = vsub.f32 %v7994_v53, %v7998_v46 }
0x7ba4   : > { %v8000_v54 = vmul.f32 %v7999_v48, %v7999_v48 }
0x7ba6   : > { %v8001_v35 = vsel %vm5806_vm7, %v8000_v54, 0.0 }
0x7ba7   : > { %8002 = vadd.xlane.f32.xlu0 %v8001_v35 }
0x7c34   : > { %v8003_v41 = vpop.xlane.xlu0 %8002 }
0x7c35   : > { %v8004_v7 = vmul.f32 0.03125, %v8003_v41 }
0x7c37   : > { %v8005_v51 = vadd.f32 1e-05, %v8004_v7 }
0x7c39   : > { %9891 = vrsqrt.f32 %v8005_v51 }
0x7c43   : > { %v9892_v4 = vpop.eup %9891 }
0x7c44   : > { %v8007_v30 = vmul.f32 %v9892_v4, %v7999_v48 }
0x7c46   : > { %v8012_v31 = vmul.f32 %v8011_v59, %v8007_v30 }
0x7c48   : > { %v8017_v13 = vadd.f32 %v8016_v49, %v8012_v31 }
0x7c4a   : > { %v8019_v1 = vmul.f32 0.70710677, %v8017_v13  ;;  %v8018_v26 = vmul.f32 0.5, %v8017_v13 }
0x7c4c   : > { %9893 = verf.f32 %v8019_v1 }
0x7c56   : > { %v9894_v8 = vpop.eup %9893 }
0x7c57   : > { %v8021_v58 = vadd.f32 1.0, %v9894_v8 }
0x7c59   : > { %v8022_v20 = vmul.f32 %v8021_v58, %v8018_v26 }
0x7c5b   : > { %v8027_v33 = vpack.c.bf16 %v8022_v20, %v8022_v20 }
0x7c5d   : > { %9528 = vmatmul.mubr.msk.bf16.vlgmr.msra.gmra.mrb[224].mxu0 %vm5848_vm8, %v8027_v33 }
0x7d30   : > { %v8081_v15 = vpop.f32.mrb[224].mxu0 }
0x7d31   : > { %v8082_v56 = vadd.f32 %v8081_v15, %v8031_v27  ;;  %v9529_v60 = vpop.f32.mrb[225].mxu0 }
0x7d32   : > { %v8084_v2 = vpop.f32.mrb[226].mxu0 }
0x7d33   : > { %v9530_v44 = vpop.f32.mrb[227].mxu0  ;;  %8088 = vst.msk [vmem:[%s461_s21] sm:$0xf] %vm8087_vm12, %v8082_v56 }
0x7d34   : > { %9910 = shalt.err (!%p9907_p3)
}
0x7d35   : > { %s9911_s0 = scalar_lea.hbm %s11716_s26, 64  ;;  %s9915_s19 = scalar_lea.hbm %s11772_s14, 128 }
0x7d36   : > { %p9912_p4 = scmp.ne.s32.totalorder %s11716_s26, %s9911_s0  ;;  %p9916_p9 = scmp.lt.u32.totalorder %s11716_s26, %s11772_s14 }
0x7d37   : > { %p9917_p10 = scmp.lt.u32.totalorder %s9915_s19, %s9911_s0  ;;  %p9919_p12 = scmp.lt.u32.totalorder %s9911_s0, %s11716_s26 }
0x7d38   : > { %p9913_p7 = pnand %p9912_p4, %p10088_p5 }
0x7d39   : > { %p9918_p11 = por %p9917_p10, %p9916_p9 }
0x7d3a   : > { %p9914_p8 = pneg %p9913_p7 }
0x7d3b   : > { %p9920_p13 = por %p9919_p12, %p9918_p11 }
0x7d3d   : > { %p9921_p0 = pnand %p9920_p13, %p9914_p8 }
0x7d3f   : > { %9924 = shalt.err (!%p9921_p0)
}
0x7d40   : > { %9555 = dma.vmem_to_hbm [thread:$0]  (%p10088_p5), %s11718_s22, 64, %s11716_s26, %s8090_s17  }
0x7d41 PF: > { %s11808_s24 = sld [smem:[#allocation5_spill]]  ;;  %p9561_p1 = scmp.ge.s32.totalorder %s9959_s16, 2 }
0x7d43   : > { %p9558_p2 = pnand %p9561_p1, %p10092_p6 }
0x7d47   : > { %s8115_s27 = sand.u32 1, %s11808_s24  }
0x7d48   : > { %s8116_s29 = scalar_lea.sflag [#allocation3], %s8115_s27 }
0x7d49   : > { %9942 = dma.done.wait (!%p9558_p2), %s8116_s29, 64  }
0x7d4a   : > { %9944 = vsyncadd (!%p9558_p2), %s8116_s29, 4294967232  ;;  %s11810_s16 = sld [smem:[#allocation7_spill]]  ;;  %s11811_s15 = sld [smem:[#allocation6_spill]] }
0x7d4b   : > { %s11812_s0 = sld [smem:[#allocation8_spill]]  ;;  %s11813_s29 = smov %s9951_s30 }
0x7d50   : > { %p24_p3 = scmp.ge.s32.totalorder %s11810_s16, 4   ;;  %s11814_s30 = smov %s11811_s15 }
0x7d51   : > { %s11815_s15 = smov %s11812_s0 }
0x7d52   :  { %26 = sbr.rel (!%p24_p3) target bundleno = 5 (0x5), region = 170 }
0x7d59   :  { %8121 = vsyncpa [#allocation3], 1 }
0x7d5a   :  { %8123 = vsyncpa [#allocation3 + $0x1], 1 }

</bundles_post_ra>
